<compile_context>
chip_gen: v6e
topology: v6e:2x2x1
jax: 0.10.0
libtpu: 0.0.40
codegen_flags: <defaults>
</compile_context>

<pallas_src>
import functools

import jax
import jax.numpy as jnp
from jax.experimental import pallas as pl
from jax.experimental.pallas import tpu as pltpu

COMPUTE_DTYPE = jnp.bfloat16          # MXU operand dtype (all accumulation stays f32)
VMEM_LIMIT_BYTES = 64 * 1024 * 1024   # safe on v5e/v6e/v7x; demo tiles use far less
LPAD = 8                              # sublane-aligned column base of the padded scratch


def _round_up(a, m):
    return (a + m - 1) // m * m


def _pick_tile_h(h, w, c, budget_bytes=2 << 20):
    rows = max(1, budget_bytes // max(1, w * c * 4))
    th = int(min(h, rows))
    while h % th:
        th -= 1
    return th


# ----------------------------------------------------------------------------
# Kernel 0: GroupNorm statistics (per-channel sum / sum^2), stripe-tiled accumulator
# ----------------------------------------------------------------------------

def _gn_stats_kernel(x_ref, o_ref):
    @pl.when(pl.program_id(1) == 0)
    def _():
        o_ref[...] = jnp.zeros_like(o_ref)

    x = x_ref[0].astype(jnp.float32)                       # (TH, W, C)
    c = x.shape[-1]
    s1 = jnp.sum(x, axis=(0, 1)).reshape(1, c)
    s2 = jnp.sum(x * x, axis=(0, 1)).reshape(1, c)
    o_ref[0, 0:1, :] = o_ref[0, 0:1, :] + s1
    o_ref[0, 1:2, :] = o_ref[0, 1:2, :] + s2


# ----------------------------------------------------------------------------
# Kernel 1: GN-affine + SiLU + 3x3 conv (+ optional residual / 1x1-shortcut epilogue)
# ----------------------------------------------------------------------------

def _gn_silu_conv3x3_kernel(*refs, W, inv_scale, residual_mode):
    if residual_mode == "none":
        xm, xt, xb, sc_ref, sh_ref, w_ref, cb_ref, o_ref, xp = refs
        r_ref = sw_ref = sb_ref = None
    elif residual_mode == "identity":
        xm, xt, xb, sc_ref, sh_ref, w_ref, cb_ref, r_ref, o_ref, xp = refs
        sw_ref = sb_ref = None
    else:  # "conv1x1"
        xm, xt, xb, sc_ref, sh_ref, w_ref, cb_ref, r_ref, sw_ref, sb_ref, o_ref, xp = refs

    th = o_ref.shape[1]
    cin = xm.shape[-1]
    cout = o_ref.shape[-1]
    hw = th * W
    j = pl.program_id(1)
    nj = pl.num_programs(1)

    s = sc_ref[0, 0, :]                                    # (C,) f32 per-batch scale
    b = sh_ref[0, 0, :]                                    # (C,) f32 per-batch shift

    def act(v):                                            # GN affine + SiLU -> bf16
        y = v.astype(jnp.float32) * s + b
        return (y * jax.nn.sigmoid(y)).astype(xp.dtype)

    # Thin halo borders only (no full zero fill of the scratch each step).
    zcol = jnp.zeros((th + 2, 1, cin), xp.dtype)
    xp[:, LPAD - 1:LPAD, :] = zcol
    xp[:, LPAD + W:LPAD + W + 1, :] = zcol
    # Interior rows (sublane-aligned store at column base LPAD) + 1-row halos
    # (halo rows are zeroed at the image boundary via the scalar masks).
    xp[1:th + 1, LPAD:LPAD + W, :] = act(xm[0])
    xp[0:1, LPAD:LPAD + W, :] = act(xt[0]) * (j > 0).astype(xp.dtype)
    xp[th + 1:th + 2, LPAD:LPAD + W, :] = act(xb[0]) * (j < nj - 1).astype(xp.dtype)

    # 3x3 conv = 9 shifted bf16 matmuls, f32 accumulation, init from tap 0.
    acc = None
    for k in range(9):
        kh, kw = divmod(k, 3)
        xs = xp[kh:kh + th, LPAD - 1 + kw:LPAD - 1 + kw + W, :].reshape(hw, cin)
        part = jnp.dot(xs, w_ref[k], preferred_element_type=jnp.float32)
        acc = part if acc is None else acc + part
    acc = acc + cb_ref[...]                                # bias folded into epilogue

    if residual_mode == "identity":
        acc = acc + r_ref[0].astype(jnp.float32).reshape(hw, cout)
    elif residual_mode == "conv1x1":
        cr = r_ref.shape[-1]
        rr = r_ref[0].reshape(hw, cr).astype(sw_ref.dtype)
        acc = acc + (jnp.dot(rr, sw_ref[...], preferred_element_type=jnp.float32)
                     + sb_ref[...])
    if residual_mode != "none" and inv_scale != 1.0:
        acc = acc * inv_scale

    o_ref[0] = acc.reshape(th, W, cout).astype(o_ref.dtype)


def fused_gn_silu_conv3x3(x, gamma, beta, w_hwio, bias, *, num_groups, eps, tile_h,
                          residual=None, shortcut_w=None, shortcut_b=None,
                          inv_scale=1.0, out_dtype=None):
    n, h, wdim, cin = x.shape
    cout = w_hwio.shape[-1]
    out_dtype = out_dtype or x.dtype
    assert h % tile_h == 0, (h, tile_h)
    assert cin % num_groups == 0
    ht = h // tile_h

    # ---- pass 1: per-channel sum / sum^2 (stripe-tiled accumulator kernel) -------
    sums = pl.pallas_call(
        _gn_stats_kernel,
        out_shape=jax.ShapeDtypeStruct((n, 2, cin), jnp.float32),
        grid=(n, ht),
        in_specs=[pl.BlockSpec((1, tile_h, wdim, cin), lambda i, j: (i, j, 0, 0))],
        out_specs=pl.BlockSpec((1, 2, cin), lambda i, j: (i, 0, 0)),
        compiler_params=pltpu.CompilerParams(
            dimension_semantics=("parallel", "arbitrary"),
            vmem_limit_bytes=VMEM_LIMIT_BYTES),
        cost_estimate=pl.CostEstimate(
            flops=int(3 * x.size), transcendentals=0,
            bytes_accessed=int(x.size * x.dtype.itemsize + n * 2 * cin * 4)),
    )(x)

    # ---- tiny O(N*C) group-stat -> per-channel affine (plain JAX) ----------------
    cpg = cin // num_groups
    cnt = float(h * wdim * cpg)
    s1 = jnp.sum(sums[:, 0, :].reshape(n, num_groups, cpg), axis=-1)
    s2 = jnp.sum(sums[:, 1, :].reshape(n, num_groups, cpg), axis=-1)
    mean_g = s1 / cnt
    var_g = jnp.maximum(s2 / cnt - mean_g * mean_g, 0.0)   # clamp: no NaN from rsqrt
    inv_g = jax.lax.rsqrt(var_g + eps)
    mean_c = jnp.repeat(mean_g, cpg, axis=-1)               # (N, C)
    inv_c = jnp.repeat(inv_g, cpg, axis=-1)
    g_row = gamma.reshape(1, cin).astype(jnp.float32)
    b_row = beta.reshape(1, cin).astype(jnp.float32)
    scale = (inv_c * g_row).reshape(n, 1, cin)
    shift = (b_row - mean_c * inv_c * g_row).reshape(n, 1, cin)

    # ---- pass 2: normalize + SiLU + conv3x3 (+ fused residual epilogue) ----------
    w9 = w_hwio.reshape(9, cin, cout).astype(COMPUTE_DTYPE)
    cb2 = bias.reshape(1, cout).astype(jnp.float32)

    if residual is None:
        residual_mode = "none"
    elif shortcut_w is not None:
        residual_mode = "conv1x1"
    else:
        residual_mode = "identity"

    def xm_map(i, j): return (i, j, 0, 0)
    def xt_map(i, j): return (i, jnp.maximum(j * tile_h - 1, 0), 0, 0)
    def xb_map(i, j): return (i, jnp.minimum(j * tile_h + tile_h, h - 1), 0, 0)

    inputs = [x, x, x, scale, shift, w9, cb2]
    in_specs = [
        pl.BlockSpec((1, tile_h, wdim, cin), xm_map),
        pl.BlockSpec((1, 1, wdim, cin), xt_map),           # top halo row
        pl.BlockSpec((1, 1, wdim, cin), xb_map),           # bottom halo row
        pl.BlockSpec((1, 1, cin), lambda i, j: (i, 0, 0)),
        pl.BlockSpec((1, 1, cin), lambda i, j: (i, 0, 0)),
        pl.BlockSpec((9, cin, cout), lambda i, j: (0, 0, 0)),
        pl.BlockSpec((1, cout), lambda i, j: (0, 0)),
    ]
    flops = 2.0 * n * h * wdim * cin * cout * 9
    bytes_acc = (x.size * x.dtype.itemsize + w9.size * 2 + n * 2 * cin * 4
                 + n * h * wdim * cout * jnp.dtype(out_dtype).itemsize)
    if residual_mode != "none":
        cr = residual.shape[-1]
        inputs.append(residual)
        in_specs.append(pl.BlockSpec((1, tile_h, wdim, cr), lambda i, j: (i, j, 0, 0)))
        bytes_acc += residual.size * residual.dtype.itemsize
    if residual_mode == "conv1x1":
        inputs.append(shortcut_w.astype(COMPUTE_DTYPE))
        inputs.append(shortcut_b.reshape(1, cout).astype(jnp.float32))
        in_specs.append(pl.BlockSpec((cr, cout), lambda i, j: (0, 0)))
        in_specs.append(pl.BlockSpec((1, cout), lambda i, j: (0, 0)))
        flops += 2.0 * n * h * wdim * cr * cout

    wp = LPAD + _round_up(wdim + 1, 8)                      # sublane-padded scratch W
    kernel = functools.partial(_gn_silu_conv3x3_kernel, W=wdim,
                               inv_scale=float(inv_scale),
                               residual_mode=residual_mode)

    return pl.pallas_call(
        kernel,
        out_shape=jax.ShapeDtypeStruct((n, h, wdim, cout), out_dtype),
        grid=(n, ht),
        in_specs=in_specs,
        out_specs=pl.BlockSpec((1, tile_h, wdim, cout), lambda i, j: (i, j, 0, 0)),
        scratch_shapes=[pltpu.VMEM((tile_h + 2, wp, cin), COMPUTE_DTYPE)],
        compiler_params=pltpu.CompilerParams(
            dimension_semantics=("parallel", "parallel"),
            vmem_limit_bytes=VMEM_LIMIT_BYTES),
        cost_estimate=pl.CostEstimate(
            flops=int(flops), transcendentals=int(n * h * wdim * cin),
            bytes_accessed=int(bytes_acc)),
    )(*inputs)


# ----------------------------------------------------------------------------
# Kernel 2: nearest-2x upsample + 3x3 conv via sub-pixel phase decomposition
# ----------------------------------------------------------------------------

def _phase_weights(w_hwio):
    """Collapse (conv3x3, pad=1) o (nearest 2x) into four 2x2 phase convs on the
    un-upsampled input.  Phase (dr,dc) output at (p,t) reads x[p+dr+ai-1, t+dc+bi-1]."""
    sets = [[[0], [1, 2]], [[0, 1], [2]]]     # parity -> (offset index -> source taps)
    phases = []
    for dr in range(2):
        for dc in range(2):
            taps = []
            for ai in range(2):
                for bi in range(2):
                    ws = jnp.zeros_like(w_hwio[0, 0])
                    for kh in sets[dr][ai]:
                        for kw in sets[dc][bi]:
                            ws = ws + w_hwio[kh, kw]
                    taps.append(ws)
            phases.append(jnp.stack(taps).reshape((2, 2) + w_hwio.shape[2:]))
    return jnp.stack(phases)                   # (4, 2, 2, Cin, Cout)


def _upsample2x_conv3x3_kernel(xm, xt, xb, w_ref, cb_ref, o_ref, xp, *, W):
    th = xm.shape[1]
    c = xm.shape[-1]
    cout = cb_ref.shape[-1]
    hw = th * W
    j = pl.program_id(1)
    nj = pl.num_programs(1)

    zcol = jnp.zeros((th + 2, 1, c), xp.dtype)
    xp[:, LPAD - 1:LPAD, :] = zcol
    xp[:, LPAD + W:LPAD + W + 1, :] = zcol
    xp[1:th + 1, LPAD:LPAD + W, :] = xm[0].astype(xp.dtype)
    xp[0:1, LPAD:LPAD + W, :] = xt[0].astype(xp.dtype) * (j > 0).astype(xp.dtype)
    xp[th + 1:th + 2, LPAD:LPAD + W, :] = (
        xb[0].astype(xp.dtype) * (j < nj - 1).astype(xp.dtype))

    # Phase-at-a-time: a single live f32 accumulator (1/4 the accumulator VMEM).
    for dr in range(2):
        for dc in range(2):
            ph = dr * 2 + dc
            acc = None
            for ai in range(2):
                for bi in range(2):
                    xs = xp[dr + ai:dr + ai + th,
                            LPAD - 1 + dc + bi:LPAD - 1 + dc + bi + W, :].reshape(hw, c)
                    part = jnp.dot(xs, w_ref[ph, ai, bi],
                                   preferred_element_type=jnp.float32)
                    acc = part if acc is None else acc + part
            acc = acc + cb_ref[...]
            # (1, TH, 2, W, 2*Cout) block: lane-aligned slice store per (dr, dc).
            o_ref[0, :, dr, :, dc * cout:(dc + 1) * cout] = (
                acc.reshape(th, W, cout).astype(o_ref.dtype))


def fused_upsample2x_conv3x3(x_nhwc, w_hwio, bias, *, tile_h):
    n, h, wdim, c = x_nhwc.shape
    cout = w_hwio.shape[-1]
    assert h % tile_h == 0
    ht = h // tile_h
    wp = LPAD + _round_up(wdim + 1, 8)
    wph = _phase_weights(w_hwio).astype(COMPUTE_DTYPE)      # (4, 2, 2, C, Cout)
    b2 = bias.reshape(1, cout).astype(jnp.float32)

    def xm_map(i, j): return (i, j, 0, 0)
    def xt_map(i, j): return (i, jnp.maximum(j * tile_h - 1, 0), 0, 0)
    def xb_map(i, j): return (i, jnp.minimum(j * tile_h + tile_h, h - 1), 0, 0)

    out5 = pl.pallas_call(
        functools.partial(_upsample2x_conv3x3_kernel, W=wdim),
        out_shape=jax.ShapeDtypeStruct((n, h, 2, wdim, 2 * cout), x_nhwc.dtype),
        grid=(n, ht),
        in_specs=[
            pl.BlockSpec((1, tile_h, wdim, c), xm_map),
            pl.BlockSpec((1, 1, wdim, c), xt_map),
            pl.BlockSpec((1, 1, wdim, c), xb_map),
            pl.BlockSpec((4, 2, 2, c, cout), lambda i, j: (0, 0, 0, 0, 0)),
            pl.BlockSpec((1, cout), lambda i, j: (0, 0)),
        ],
        out_specs=pl.BlockSpec((1, tile_h, 2, wdim, 2 * cout),
                               lambda i, j: (i, j, 0, 0, 0)),
        scratch_shapes=[pltpu.VMEM((tile_h + 2, wp, c), COMPUTE_DTYPE)],
        compiler_params=pltpu.CompilerParams(
            dimension_semantics=("parallel", "parallel"),
            vmem_limit_bytes=VMEM_LIMIT_BYTES),
        cost_estimate=pl.CostEstimate(
            flops=int(2.0 * n * h * wdim * c * cout * 16), transcendentals=0,
            bytes_accessed=int(x_nhwc.size * x_nhwc.dtype.itemsize + wph.size * 2
                               + n * h * wdim * 4 * cout * x_nhwc.dtype.itemsize)),
    )(x_nhwc, x_nhwc, x_nhwc, wph, b2)
    # (N, H, 2, W, 2*C) row-major IS the 2x-nearest interleave: pure-view reshape.
    return out5.reshape(n, 2 * h, 2 * wdim, cout)


# ----------------------------------------------------------------------------
# Module forward (UpDecoderBlock2D semantics; temb=None, dropout p=0.0)
# ----------------------------------------------------------------------------

def resnet_block_2d(x_nhwc, p, *, groups, eps, output_scale_factor, tile_h):
    h1 = fused_gn_silu_conv3x3(
        x_nhwc, p["norm1_g"], p["norm1_b"], p["conv1_w"], p["conv1_b"],
        num_groups=groups, eps=eps, tile_h=tile_h, out_dtype=COMPUTE_DTYPE)
    return fused_gn_silu_conv3x3(
        h1, p["norm2_g"], p["norm2_b"], p["conv2_w"], p["conv2_b"],
        num_groups=groups, eps=eps, tile_h=tile_h,
        residual=x_nhwc, shortcut_w=p.get("shortcut_w"), shortcut_b=p.get("shortcut_b"),
        inv_scale=1.0 / output_scale_factor, out_dtype=x_nhwc.dtype)


def up_decoder_block_2d(x_nchw, params, *, resnet_groups=32, resnet_eps=1e-6,
                        output_scale_factor=1.0, tile_h=None):
    x = jnp.transpose(x_nchw, (0, 2, 3, 1))            # NCHW -> NHWC (kernel layout)
    n, h, w, c = x.shape
    th = tile_h or _pick_tile_h(h, w, c)
    for rp in params["resnets"]:
        x = resnet_block_2d(x, rp, groups=resnet_groups, eps=resnet_eps,
                            output_scale_factor=output_scale_factor, tile_h=th)
    up = params.get("upsampler")
    if up is not None:
        x = fused_upsample2x_conv3x3(x, up["conv_w"], up["conv_b"], tile_h=th)
    return jnp.transpose(x, (0, 3, 1, 2))              # NHWC -> NCHW (interface only)


# ----------------------------------------------------------------------------
# Deterministic parameter init (PyTorch-like shapes; synthetic values)
# ----------------------------------------------------------------------------

def _conv_init(key, kh, kw, cin, cout):
    fan_in = kh * kw * cin
    bound = 1.0 / (fan_in ** 0.5)
    k1, k2 = jax.random.split(key)
    w = jax.random.uniform(k1, (kh, kw, cin, cout), jnp.float32, -bound, bound)
    b = jax.random.uniform(k2, (cout,), jnp.float32, -bound, bound)
    return w, b


def init_params(key, in_channels, out_channels, num_layers=1, add_upsample=True):
    params = {"resnets": []}
    keys = jax.random.split(key, num_layers + 1)
    for i in range(num_layers):
        cin = in_channels if i == 0 else out_channels
        k = jax.random.split(keys[i], 3)
        p = {
            "norm1_g": jnp.ones((cin,), jnp.float32),
            "norm1_b": jnp.zeros((cin,), jnp.float32),
            "norm2_g": jnp.ones((out_channels,), jnp.float32),
            "norm2_b": jnp.zeros((out_channels,), jnp.float32),
        }
        p["conv1_w"], p["conv1_b"] = _conv_init(k[0], 3, 3, cin, out_channels)
        p["conv2_w"], p["conv2_b"] = _conv_init(k[1], 3, 3, out_channels, out_channels)
        if cin != out_channels:                         # use_in_shortcut
            w, b = _conv_init(k[2], 1, 1, cin, out_channels)
            p["shortcut_w"] = w.reshape(cin, out_channels)
            p["shortcut_b"] = b
        params["resnets"].append(p)
    if add_upsample:
        w, b = _conv_init(keys[-1], 3, 3, out_channels, out_channels)
        params["upsampler"] = {"conv_w": w, "conv_b": b}
    else:
        params["upsampler"] = None
    return params


# ----------------------------------------------------------------------------
# Pure-JAX reference (same bf16 operand strategy as the kernels) for validation
# ----------------------------------------------------------------------------

def _ref_gn_silu(x, g, b, groups, eps):
    n, h, w, c = x.shape
    xg = x.reshape(n, h, w, groups, c // groups)
    mean = xg.mean(axis=(1, 2, 4), keepdims=True)
    var = xg.var(axis=(1, 2, 4), keepdims=True)
    y = ((xg - mean) * jax.lax.rsqrt(var + eps)).reshape(n, h, w, c)
    y = y * g + b
    return y * jax.nn.sigmoid(y)


def _ref_conv3x3(x, w, b):
    out = jax.lax.conv_general_dilated(
        x.astype(COMPUTE_DTYPE), w.astype(COMPUTE_DTYPE), window_strides=(1, 1),
        padding="SAME", dimension_numbers=("NHWC", "HWIO", "NHWC"),
        preferred_element_type=jnp.float32)
    return out + b


def _ref_resnet(x, p, groups, eps, osf):
    h1 = _ref_gn_silu(x, p["norm1_g"], p["norm1_b"], groups, eps)
    h1 = _ref_conv3x3(h1, p["conv1_w"], p["conv1_b"])
    h1 = h1.astype(COMPUTE_DTYPE).astype(jnp.float32)     # kernel stores it as bf16
    h2 = _ref_gn_silu(h1, p["norm2_g"], p["norm2_b"], groups, eps)
    h2 = _ref_conv3x3(h2, p["conv2_w"], p["conv2_b"])
    if "shortcut_w" in p:
        sc = (jnp.dot(x.astype(COMPUTE_DTYPE), p["shortcut_w"].astype(COMPUTE_DTYPE),
                      preferred_element_type=jnp.float32) + p["shortcut_b"])
    else:
        sc = x
    return (sc + h2) / osf


def _ref_up_decoder_block(x_nchw, params, groups, eps, osf):
    x = jnp.transpose(x_nchw, (0, 2, 3, 1))
    for p in params["resnets"]:
        x = _ref_resnet(x, p, groups, eps, osf)
    up = params.get("upsampler")
    if up is not None:
        xu = jnp.repeat(jnp.repeat(x, 2, axis=1), 2, axis=2)
        x = _ref_conv3x3(xu, up["conv_w"], up["conv_b"])
    return jnp.transpose(x, (0, 3, 1, 2))


# ----------------------------------------------------------------------------
if __name__ == "__main__":
    key = jax.random.PRNGKey(0)
    kx, kp = jax.random.split(key)

    # UpDecoderBlock2D(in_channels=192, out_channels=128, num_layers=1,
    #                  resnet_groups=32, temb_channels=None, add_upsample=True)
    # (Cout=128 keeps output tiles lane-dense; Cin != Cout exercises the 1x1 shortcut.)
    N, Cin, Cout, H, W = 2, 192, 128, 8, 8
    x = jax.random.normal(kx, (N, Cin, H, W), jnp.float32)      # NCHW like PyTorch
    params = init_params(kp, Cin, Cout, num_layers=1, add_upsample=True)

    fwd = jax.jit(functools.partial(up_decoder_block_2d, resnet_groups=32,
                                    resnet_eps=1e-6, output_scale_factor=1.0,
                                    tile_h=4))                  # 2 H-stripes -> halo path
    out = fwd(x, params)
    jax.block_until_ready(out)

    assert out.shape == (N, Cout, 2 * H, 2 * W), out.shape
    assert bool(jnp.all(jnp.isfinite(out)))

    ref = _ref_up_decoder_block(x, params, 32, 1e-6, 1.0)
    err = float(jnp.max(jnp.abs(out - ref)) / (jnp.max(jnp.abs(ref)) + 1e-6))
    assert err < 5e-2, f"mismatch vs reference: rel-max-err={err}"
    print("KERNEL_OK")
</pallas_src>

<mosaic_0001>
module attributes {stable_mosaic.version = 11 : i64} {
  func.func @_gn_stats_kernel(%arg0: i32, %arg1: i32, %arg2: memref<1x4x8x192xf32, #tpu.memory_space<vmem>>, %arg3: memref<1x2x192xf32, #tpu.memory_space<vmem>>) attributes {dimension_semantics = [#tpu.dimension_semantics<parallel>, #tpu.dimension_semantics<arbitrary>], iteration_bounds = array<i64: 2, 2>, scalar_prefetch = 0 : i64, scratch_operands = 0 : i64, tpu.core_type = #tpu.core_type<tc>, window_params = [{transform_indices = @transform_0, window_bounds = array<i64: 1, 4, 8, 192>}, {transform_indices = @transform_1, window_bounds = array<i64: 1, 2, 192>}]} {
    %c0_i32 = arith.constant 0 : i32
    %0 = arith.cmpi eq, %arg1, %c0_i32 : i32
    %1 = arith.extui %0 : i1 to i32
    %c0_i32_0 = arith.constant 0 : i32
    %2 = arith.cmpi ne, %1, %c0_i32_0 : i32
    scf.if %2 {
      %cst_16 = arith.constant 0.000000e+00 : f32
      %22 = vector.broadcast %cst_16 : f32 to vector<1x2x192xf32>
      %c0_17 = arith.constant 0 : index
      %c0_18 = arith.constant 0 : index
      %c0_19 = arith.constant 0 : index
      %23 = vector.load %arg3[%c0_17, %c0_18, %c0_19] : memref<1x2x192xf32, #tpu.memory_space<vmem>>, vector<1x2x192xf32>
      tpu.vector_store %arg3[%c0_17, %c0_18, %c0_19], %22 {strides = array<i32>} : memref<1x2x192xf32, #tpu.memory_space<vmem>>, vector<1x2x192xf32>,
    } else {
    }
    %c0 = arith.constant 0 : index
    %c0_1 = arith.constant 0 : index
    %c0_2 = arith.constant 0 : index
    %c0_3 = arith.constant 0 : index
    %3 = vector.load %arg2[%c0, %c0_1, %c0_2, %c0_3] : memref<1x4x8x192xf32, #tpu.memory_space<vmem>>, vector<1x4x8x192xf32>
    %4 = vector.shape_cast %3 : vector<1x4x8x192xf32> to vector<4x8x192xf32>
    %cst = arith.constant dense<0.000000e+00> : vector<192xf32>
    %5 = vector.multi_reduction <add>, %4, %cst [0, 1] : vector<4x8x192xf32> to vector<192xf32>
    %6 = vector.shape_cast %5 : vector<192xf32> to vector<1x192xf32>
    %7 = arith.mulf %4, %4 : vector<4x8x192xf32>
    %cst_4 = arith.constant dense<0.000000e+00> : vector<192xf32>
    %8 = vector.multi_reduction <add>, %7, %cst_4 [0, 1] : vector<4x8x192xf32> to vector<192xf32>
    %9 = vector.shape_cast %8 : vector<192xf32> to vector<1x192xf32>
    %c0_5 = arith.constant 0 : index
    %c0_6 = arith.constant 0 : index
    %c0_7 = arith.constant 0 : index
    %10 = vector.load %arg3[%c0_5, %c0_6, %c0_7] : memref<1x2x192xf32, #tpu.memory_space<vmem>>, vector<1x1x192xf32>
    %11 = vector.shape_cast %10 : vector<1x1x192xf32> to vector<1x192xf32>
    %12 = arith.addf %11, %6 : vector<1x192xf32>
    %c0_8 = arith.constant 0 : index
    %c0_9 = arith.constant 0 : index
    %c0_10 = arith.constant 0 : index
    %13 = vector.load %arg3[%c0_8, %c0_9, %c0_10] : memref<1x2x192xf32, #tpu.memory_space<vmem>>, vector<1x1x192xf32>
    %14 = vector.shape_cast %13 : vector<1x1x192xf32> to vector<1x192xf32>
    %15 = vector.shape_cast %12 : vector<1x192xf32> to vector<1x1x192xf32>
    tpu.vector_store %arg3[%c0_8, %c0_9, %c0_10], %15 {strides = array<i32>} : memref<1x2x192xf32, #tpu.memory_space<vmem>>, vector<1x1x192xf32>,
    %c0_11 = arith.constant 0 : index
    %c1 = arith.constant 1 : index
    %c0_12 = arith.constant 0 : index
    %16 = vector.load %arg3[%c0_11, %c1, %c0_12] : memref<1x2x192xf32, #tpu.memory_space<vmem>>, vector<1x1x192xf32>
    %17 = vector.shape_cast %16 : vector<1x1x192xf32> to vector<1x192xf32>
    %18 = arith.addf %17, %9 : vector<1x192xf32>
    %c0_13 = arith.constant 0 : index
    %c1_14 = arith.constant 1 : index
    %c0_15 = arith.constant 0 : index
    %19 = vector.load %arg3[%c0_13, %c1_14, %c0_15] : memref<1x2x192xf32, #tpu.memory_space<vmem>>, vector<1x1x192xf32>
    %20 = vector.shape_cast %19 : vector<1x1x192xf32> to vector<1x192xf32>
    %21 = vector.shape_cast %18 : vector<1x192xf32> to vector<1x1x192xf32>
    tpu.vector_store %arg3[%c0_13, %c1_14, %c0_15], %21 {strides = array<i32>} : memref<1x2x192xf32, #tpu.memory_space<vmem>>, vector<1x1x192xf32>,
    return
  }
  func.func @transform_0(%arg0: i32, %arg1: i32) -> (i32, i32, i32, i32) {
    %c0_i32 = arith.constant 0 : i32
    %c0_i32_0 = arith.constant 0 : i32
    %c0_i32_1 = arith.constant 0 : i32
    return %arg0, %arg1, %c0_i32, %c0_i32_0 : i32, i32, i32, i32
  }
  func.func @transform_1(%arg0: i32, %arg1: i32) -> (i32, i32, i32) {
    %c0_i32 = arith.constant 0 : i32
    %c0_i32_0 = arith.constant 0 : i32
    %c0_i32_1 = arith.constant 0 : i32
    return %arg0, %c0_i32, %c0_i32_0 : i32, i32, i32
  }
}

module attributes {stable_mosaic.version = 11 : i64} {
  func.func @_gn_silu_conv3x3_kernel(%arg0: i32, %arg1: i32, %arg2: memref<1x4x8x192xf32, #tpu.memory_space<vmem>>, %arg3: memref<1x1x8x192xf32, #tpu.memory_space<vmem>>, %arg4: memref<1x1x8x192xf32, #tpu.memory_space<vmem>>, %arg5: memref<1x1x192xf32, #tpu.memory_space<vmem>>, %arg6: memref<1x1x192xf32, #tpu.memory_space<vmem>>, %arg7: memref<9x192x128xbf16, #tpu.memory_space<vmem>>, %arg8: memref<1x128xf32, #tpu.memory_space<vmem>>, %arg9: memref<1x4x8x128xbf16, #tpu.memory_space<vmem>>, %arg10: memref<6x24x192xbf16, #tpu.memory_space<vmem>>) attributes {dimension_semantics = [#tpu.dimension_semantics<parallel>, #tpu.dimension_semantics<parallel>], iteration_bounds = array<i64: 2, 2>, scalar_prefetch = 0 : i64, scratch_operands = 1 : i64, tpu.core_type = #tpu.core_type<tc>, window_params = [{transform_indices = @transform_0, window_bounds = array<i64: 1, 4, 8, 192>}, {transform_indices = @transform_1, window_bounds = array<i64: 1, 1, 8, 192>}, {transform_indices = @transform_2, window_bounds = array<i64: 1, 1, 8, 192>}, {transform_indices = @transform_3, window_bounds = array<i64: 1, 1, 192>}, {transform_indices = @transform_4, window_bounds = array<i64: 1, 1, 192>}, {pipeline_mode = #tpu.pipeline_mode<synchronous>, transform_indices = @transform_5, window_bounds = array<i64: 9, 192, 128>}, {pipeline_mode = #tpu.pipeline_mode<synchronous>, transform_indices = @transform_6, window_bounds = array<i64: 1, 128>}, {transform_indices = @transform_7, window_bounds = array<i64: 1, 4, 8, 128>}]} {
    %c0 = arith.constant 0 : index
    %c0_0 = arith.constant 0 : index
    %c0_1 = arith.constant 0 : index
    %0 = vector.load %arg5[%c0, %c0_0, %c0_1] : memref<1x1x192xf32, #tpu.memory_space<vmem>>, vector<1x1x192xf32>
    %1 = vector.shape_cast %0 : vector<1x1x192xf32> to vector<192xf32>
    %c0_2 = arith.constant 0 : index
    %c0_3 = arith.constant 0 : index
    %c0_4 = arith.constant 0 : index
    %2 = vector.load %arg6[%c0_2, %c0_3, %c0_4] : memref<1x1x192xf32, #tpu.memory_space<vmem>>, vector<1x1x192xf32>
    %3 = vector.shape_cast %2 : vector<1x1x192xf32> to vector<192xf32>
    %cst = arith.constant 0.000000e+00 : bf16
    %4 = vector.broadcast %cst : bf16 to vector<6x1x192xbf16>
    %c0_5 = arith.constant 0 : index
    %c7 = arith.constant 7 : index
    %c0_6 = arith.constant 0 : index
    %5 = vector.load %arg10[%c0_5, %c7, %c0_6] : memref<6x24x192xbf16, #tpu.memory_space<vmem>>, vector<6x1x192xbf16>
    tpu.vector_store %arg10[%c0_5, %c7, %c0_6], %4 {strides = array<i32>} : memref<6x24x192xbf16, #tpu.memory_space<vmem>>, vector<6x1x192xbf16>,
    %c0_7 = arith.constant 0 : index
    %c16 = arith.constant 16 : index
    %c0_8 = arith.constant 0 : index
    %6 = vector.load %arg10[%c0_7, %c16, %c0_8] : memref<6x24x192xbf16, #tpu.memory_space<vmem>>, vector<6x1x192xbf16>
    tpu.vector_store %arg10[%c0_7, %c16, %c0_8], %4 {strides = array<i32>} : memref<6x24x192xbf16, #tpu.memory_space<vmem>>, vector<6x1x192xbf16>,
    %c0_9 = arith.constant 0 : index
    %c0_10 = arith.constant 0 : index
    %c0_11 = arith.constant 0 : index
    %c0_12 = arith.constant 0 : index
    %7 = vector.load %arg2[%c0_9, %c0_10, %c0_11, %c0_12] : memref<1x4x8x192xf32, #tpu.memory_space<vmem>>, vector<1x4x8x192xf32>
    %8 = vector.shape_cast %7 : vector<1x4x8x192xf32> to vector<4x8x192xf32>
    %9 = vector.shape_cast %1 : vector<192xf32> to vector<1x1x192xf32>
    %10 = vector.broadcast %9 : vector<1x1x192xf32> to vector<4x8x192xf32>
    %11 = arith.mulf %8, %10 : vector<4x8x192xf32>
    %12 = vector.shape_cast %3 : vector<192xf32> to vector<1x1x192xf32>
    %13 = vector.broadcast %12 : vector<1x1x192xf32> to vector<4x8x192xf32>
    %14 = arith.addf %11, %13 : vector<4x8x192xf32>
    %15 = arith.negf %14 : vector<4x8x192xf32>
    %16 = math.exp %15 : vector<4x8x192xf32>
    %cst_13 = arith.constant 1.000000e+00 : f32
    %17 = vector.broadcast %cst_13 : f32 to vector<4x8x192xf32>
    %18 = arith.addf %17, %16 : vector<4x8x192xf32>
    %19 = arith.divf %17, %18 : vector<4x8x192xf32>
    %20 = arith.mulf %14, %19 : vector<4x8x192xf32>
    %21 = arith.truncf %20 : vector<4x8x192xf32> to vector<4x8x192xbf16>
    %c1 = arith.constant 1 : index
    %c8 = arith.constant 8 : index
    %c0_14 = arith.constant 0 : index
    %22 = vector.load %arg10[%c1, %c8, %c0_14] : memref<6x24x192xbf16, #tpu.memory_space<vmem>>, vector<4x8x192xbf16>
    tpu.vector_store %arg10[%c1, %c8, %c0_14], %21 {strides = array<i32>} : memref<6x24x192xbf16, #tpu.memory_space<vmem>>, vector<4x8x192xbf16>,
    %c0_15 = arith.constant 0 : index
    %c0_16 = arith.constant 0 : index
    %c0_17 = arith.constant 0 : index
    %c0_18 = arith.constant 0 : index
    %23 = vector.load %arg3[%c0_15, %c0_16, %c0_17, %c0_18] : memref<1x1x8x192xf32, #tpu.memory_space<vmem>>, vector<1x1x8x192xf32>
    %24 = vector.shape_cast %23 : vector<1x1x8x192xf32> to vector<1x8x192xf32>
    %25 = vector.shape_cast %1 : vector<192xf32> to vector<1x1x192xf32>
    %26 = vector.broadcast %25 : vector<1x1x192xf32> to vector<1x8x192xf32>
    %27 = arith.mulf %24, %26 : vector<1x8x192xf32>
    %28 = vector.shape_cast %3 : vector<192xf32> to vector<1x1x192xf32>
    %29 = vector.broadcast %28 : vector<1x1x192xf32> to vector<1x8x192xf32>
    %30 = arith.addf %27, %29 : vector<1x8x192xf32>
    %31 = arith.negf %30 : vector<1x8x192xf32>
    %32 = math.exp %31 : vector<1x8x192xf32>
    %cst_19 = arith.constant 1.000000e+00 : f32
    %33 = vector.broadcast %cst_19 : f32 to vector<1x8x192xf32>
    %34 = arith.addf %33, %32 : vector<1x8x192xf32>
    %35 = arith.divf %33, %34 : vector<1x8x192xf32>
    %36 = arith.mulf %30, %35 : vector<1x8x192xf32>
    %37 = arith.truncf %36 : vector<1x8x192xf32> to vector<1x8x192xbf16>
    %c0_i32 = arith.constant 0 : i32
    %38 = arith.cmpi sgt, %arg1, %c0_i32 : i32
    %39 = arith.extui %38 : i1 to i32
    %40 = arith.sitofp %39 : i32 to f32
    %41 = arith.truncf %40 : f32 to bf16
    %42 = vector.broadcast %41 : bf16 to vector<1x8x192xbf16>
    %43 = arith.mulf %37, %42 : vector<1x8x192xbf16>
    %c0_20 = arith.constant 0 : index
    %c8_21 = arith.constant 8 : index
    %c0_22 = arith.constant 0 : index
    %44 = vector.load %arg10[%c0_20, %c8_21, %c0_22] : memref<6x24x192xbf16, #tpu.memory_space<vmem>>, vector<1x8x192xbf16>
    tpu.vector_store %arg10[%c0_20, %c8_21, %c0_22], %43 {strides = array<i32>} : memref<6x24x192xbf16, #tpu.memory_space<vmem>>, vector<1x8x192xbf16>,
    %c0_23 = arith.constant 0 : index
    %c0_24 = arith.constant 0 : index
    %c0_25 = arith.constant 0 : index
    %c0_26 = arith.constant 0 : index
    %45 = vector.load %arg4[%c0_23, %c0_24, %c0_25, %c0_26] : memref<1x1x8x192xf32, #tpu.memory_space<vmem>>, vector<1x1x8x192xf32>
    %46 = vector.shape_cast %45 : vector<1x1x8x192xf32> to vector<1x8x192xf32>
    %47 = vector.shape_cast %1 : vector<192xf32> to vector<1x1x192xf32>
    %48 = vector.broadcast %47 : vector<1x1x192xf32> to vector<1x8x192xf32>
    %49 = arith.mulf %46, %48 : vector<1x8x192xf32>
    %50 = vector.shape_cast %3 : vector<192xf32> to vector<1x1x192xf32>
    %51 = vector.broadcast %50 : vector<1x1x192xf32> to vector<1x8x192xf32>
    %52 = arith.addf %49, %51 : vector<1x8x192xf32>
    %53 = arith.negf %52 : vector<1x8x192xf32>
    %54 = math.exp %53 : vector<1x8x192xf32>
    %cst_27 = arith.constant 1.000000e+00 : f32
    %55 = vector.broadcast %cst_27 : f32 to vector<1x8x192xf32>
    %56 = arith.addf %55, %54 : vector<1x8x192xf32>
    %57 = arith.divf %55, %56 : vector<1x8x192xf32>
    %58 = arith.mulf %52, %57 : vector<1x8x192xf32>
    %59 = arith.truncf %58 : vector<1x8x192xf32> to vector<1x8x192xbf16>
    %c1_i32 = arith.constant 1 : i32
    %60 = arith.cmpi slt, %arg1, %c1_i32 : i32
    %61 = arith.extui %60 : i1 to i32
    %62 = arith.sitofp %61 : i32 to f32
    %63 = arith.truncf %62 : f32 to bf16
    %64 = vector.broadcast %63 : bf16 to vector<1x8x192xbf16>
    %65 = arith.mulf %59, %64 : vector<1x8x192xbf16>
    %c5 = arith.constant 5 : index
    %c8_28 = arith.constant 8 : index
    %c0_29 = arith.constant 0 : index
    %66 = vector.load %arg10[%c5, %c8_28, %c0_29] : memref<6x24x192xbf16, #tpu.memory_space<vmem>>, vector<1x8x192xbf16>
    tpu.vector_store %arg10[%c5, %c8_28, %c0_29], %65 {strides = array<i32>} : memref<6x24x192xbf16, #tpu.memory_space<vmem>>, vector<1x8x192xbf16>,
    %c0_30 = arith.constant 0 : index
    %c7_31 = arith.constant 7 : index
    %c0_32 = arith.constant 0 : index
    %67 = vector.load %arg10[%c0_30, %c7_31, %c0_32] : memref<6x24x192xbf16, #tpu.memory_space<vmem>>, vector<4x8x192xbf16>
    %68 = vector.shape_cast %67 : vector<4x8x192xbf16> to vector<32x192xbf16>
    %c0_33 = arith.constant 0 : index
    %c0_34 = arith.constant 0 : index
    %c0_35 = arith.constant 0 : index
    %69 = vector.load %arg7[%c0_33, %c0_34, %c0_35] : memref<9x192x128xbf16, #tpu.memory_space<vmem>>, vector<1x192x128xbf16>
    %70 = vector.shape_cast %69 : vector<1x192x128xbf16> to vector<192x128xbf16>
    %cst_36 = arith.constant dense<0.000000e+00> : vector<32x128xf32>
    %71 = tpu.matmul %68, %70, %cst_36 {dimension_numbers = #tpu.dot_dimension_numbers<[1], [0], [0], [1], [0, 0, 1, 1], [], []>} : vector<32x192xbf16>, vector<192x128xbf16>, vector<32x128xf32> -> vector<32x128xf32>
    %c0_37 = arith.constant 0 : index
    %c8_38 = arith.constant 8 : index
    %c0_39 = arith.constant 0 : index
    %72 = vector.load %arg10[%c0_37, %c8_38, %c0_39] : memref<6x24x192xbf16, #tpu.memory_space<vmem>>, vector<4x8x192xbf16>
    %73 = vector.shape_cast %72 : vector<4x8x192xbf16> to vector<32x192xbf16>
    %c1_40 = arith.constant 1 : index
    %c0_41 = arith.constant 0 : index
    %c0_42 = arith.constant 0 : index
    %74 = vector.load %arg7[%c1_40, %c0_41, %c0_42] : memref<9x192x128xbf16, #tpu.memory_space<vmem>>, vector<1x192x128xbf16>
    %75 = vector.shape_cast %74 : vector<1x192x128xbf16> to vector<192x128xbf16>
    %cst_43 = arith.constant dense<0.000000e+00> : vector<32x128xf32>
    %76 = tpu.matmul %73, %75, %cst_43 {dimension_numbers = #tpu.dot_dimension_numbers<[1], [0], [0], [1], [0, 0, 1, 1], [], []>} : vector<32x192xbf16>, vector<192x128xbf16>, vector<32x128xf32> -> vector<32x128xf32>
    %77 = arith.addf %71, %76 : vector<32x128xf32>
    %c0_44 = arith.constant 0 : index
    %c9 = arith.constant 9 : index
    %c0_45 = arith.constant 0 : index
    %78 = vector.load %arg10[%c0_44, %c9, %c0_45] : memref<6x24x192xbf16, #tpu.memory_space<vmem>>, vector<4x8x192xbf16>
    %79 = vector.shape_cast %78 : vector<4x8x192xbf16> to vector<32x192xbf16>
    %c2 = arith.constant 2 : index
    %c0_46 = arith.constant 0 : index
    %c0_47 = arith.constant 0 : index
    %80 = vector.load %arg7[%c2, %c0_46, %c0_47] : memref<9x192x128xbf16, #tpu.memory_space<vmem>>, vector<1x192x128xbf16>
    %81 = vector.shape_cast %80 : vector<1x192x128xbf16> to vector<192x128xbf16>
    %cst_48 = arith.constant dense<0.000000e+00> : vector<32x128xf32>
    %82 = tpu.matmul %79, %81, %cst_48 {dimension_numbers = #tpu.dot_dimension_numbers<[1], [0], [0], [1], [0, 0, 1, 1], [], []>} : vector<32x192xbf16>, vector<192x128xbf16>, vector<32x128xf32> -> vector<32x128xf32>
    %83 = arith.addf %77, %82 : vector<32x128xf32>
    %c1_49 = arith.constant 1 : index
    %c7_50 = arith.constant 7 : index
    %c0_51 = arith.constant 0 : index
    %84 = vector.load %arg10[%c1_49, %c7_50, %c0_51] : memref<6x24x192xbf16, #tpu.memory_space<vmem>>, vector<4x8x192xbf16>
    %85 = vector.shape_cast %84 : vector<4x8x192xbf16> to vector<32x192xbf16>
    %c3 = arith.constant 3 : index
    %c0_52 = arith.constant 0 : index
    %c0_53 = arith.constant 0 : index
    %86 = vector.load %arg7[%c3, %c0_52, %c0_53] : memref<9x192x128xbf16, #tpu.memory_space<vmem>>, vector<1x192x128xbf16>
    %87 = vector.shape_cast %86 : vector<1x192x128xbf16> to vector<192x128xbf16>
    %cst_54 = arith.constant dense<0.000000e+00> : vector<32x128xf32>
    %88 = tpu.matmul %85, %87, %cst_54 {dimension_numbers = #tpu.dot_dimension_numbers<[1], [0], [0], [1], [0, 0, 1, 1], [], []>} : vector<32x192xbf16>, vector<192x128xbf16>, vector<32x128xf32> -> vector<32x128xf32>
    %89 = arith.addf %83, %88 : vector<32x128xf32>
    %c1_55 = arith.constant 1 : index
    %c8_56 = arith.constant 8 : index
    %c0_57 = arith.constant 0 : index
    %90 = vector.load %arg10[%c1_55, %c8_56, %c0_57] : memref<6x24x192xbf16, #tpu.memory_space<vmem>>, vector<4x8x192xbf16>
    %91 = vector.shape_cast %90 : vector<4x8x192xbf16> to vector<32x192xbf16>
    %c4 = arith.constant 4 : index
    %c0_58 = arith.constant 0 : index
    %c0_59 = arith.constant 0 : index
    %92 = vector.load %arg7[%c4, %c0_58, %c0_59] : memref<9x192x128xbf16, #tpu.memory_space<vmem>>, vector<1x192x128xbf16>
    %93 = vector.shape_cast %92 : vector<1x192x128xbf16> to vector<192x128xbf16>
    %cst_60 = arith.constant dense<0.000000e+00> : vector<32x128xf32>
    %94 = tpu.matmul %91, %93, %cst_60 {dimension_numbers = #tpu.dot_dimension_numbers<[1], [0], [0], [1], [0, 0, 1, 1], [], []>} : vector<32x192xbf16>, vector<192x128xbf16>, vector<32x128xf32> -> vector<32x128xf32>
    %95 = arith.addf %89, %94 : vector<32x128xf32>
    %c1_61 = arith.constant 1 : index
    %c9_62 = arith.constant 9 : index
    %c0_63 = arith.constant 0 : index
    %96 = vector.load %arg10[%c1_61, %c9_62, %c0_63] : memref<6x24x192xbf16, #tpu.memory_space<vmem>>, vector<4x8x192xbf16>
    %97 = vector.shape_cast %96 : vector<4x8x192xbf16> to vector<32x192xbf16>
    %c5_64 = arith.constant 5 : index
    %c0_65 = arith.constant 0 : index
    %c0_66 = arith.constant 0 : index
    %98 = vector.load %arg7[%c5_64, %c0_65, %c0_66] : memref<9x192x128xbf16, #tpu.memory_space<vmem>>, vector<1x192x128xbf16>
    %99 = vector.shape_cast %98 : vector<1x192x128xbf16> to vector<192x128xbf16>
    %cst_67 = arith.constant dense<0.000000e+00> : vector<32x128xf32>
    %100 = tpu.matmul %97, %99, %cst_67 {dimension_numbers = #tpu.dot_dimension_numbers<[1], [0], [0], [1], [0, 0, 1, 1], [], []>} : vector<32x192xbf16>, vector<192x128xbf16>, vector<32x128xf32> -> vector<32x128xf32>
    %101 = arith.addf %95, %100 : vector<32x128xf32>
    %c2_68 = arith.constant 2 : index
    %c7_69 = arith.constant 7 : index
    %c0_70 = arith.constant 0 : index
    %102 = vector.load %arg10[%c2_68, %c7_69, %c0_70] : memref<6x24x192xbf16, #tpu.memory_space<vmem>>, vector<4x8x192xbf16>
    %103 = vector.shape_cast %102 : vector<4x8x192xbf16> to vector<32x192xbf16>
    %c6 = arith.constant 6 : index
    %c0_71 = arith.constant 0 : index
    %c0_72 = arith.constant 0 : index
    %104 = vector.load %arg7[%c6, %c0_71, %c0_72] : memref<9x192x128xbf16, #tpu.memory_space<vmem>>, vector<1x192x128xbf16>
    %105 = vector.shape_cast %104 : vector<1x192x128xbf16> to vector<192x128xbf16>
    %cst_73 = arith.constant dense<0.000000e+00> : vector<32x128xf32>
    %106 = tpu.matmul %103, %105, %cst_73 {dimension_numbers = #tpu.dot_dimension_numbers<[1], [0], [0], [1], [0, 0, 1, 1], [], []>} : vector<32x192xbf16>, vector<192x128xbf16>, vector<32x128xf32> -> vector<32x128xf32>
    %107 = arith.addf %101, %106 : vector<32x128xf32>
    %c2_74 = arith.constant 2 : index
    %c8_75 = arith.constant 8 : index
    %c0_76 = arith.constant 0 : index
    %108 = vector.load %arg10[%c2_74, %c8_75, %c0_76] : memref<6x24x192xbf16, #tpu.memory_space<vmem>>, vector<4x8x192xbf16>
    %109 = vector.shape_cast %108 : vector<4x8x192xbf16> to vector<32x192xbf16>
    %c7_77 = arith.constant 7 : index
    %c0_78 = arith.constant 0 : index
    %c0_79 = arith.constant 0 : index
    %110 = vector.load %arg7[%c7_77, %c0_78, %c0_79] : memref<9x192x128xbf16, #tpu.memory_space<vmem>>, vector<1x192x128xbf16>
    %111 = vector.shape_cast %110 : vector<1x192x128xbf16> to vector<192x128xbf16>
    %cst_80 = arith.constant dense<0.000000e+00> : vector<32x128xf32>
    %112 = tpu.matmul %109, %111, %cst_80 {dimension_numbers = #tpu.dot_dimension_numbers<[1], [0], [0], [1], [0, 0, 1, 1], [], []>} : vector<32x192xbf16>, vector<192x128xbf16>, vector<32x128xf32> -> vector<32x128xf32>
    %113 = arith.addf %107, %112 : vector<32x128xf32>
    %c2_81 = arith.constant 2 : index
    %c9_82 = arith.constant 9 : index
    %c0_83 = arith.constant 0 : index
    %114 = vector.load %arg10[%c2_81, %c9_82, %c0_83] : memref<6x24x192xbf16, #tpu.memory_space<vmem>>, vector<4x8x192xbf16>
    %115 = vector.shape_cast %114 : vector<4x8x192xbf16> to vector<32x192xbf16>
    %c8_84 = arith.constant 8 : index
    %c0_85 = arith.constant 0 : index
    %c0_86 = arith.constant 0 : index
    %116 = vector.load %arg7[%c8_84, %c0_85, %c0_86] : memref<9x192x128xbf16, #tpu.memory_space<vmem>>, vector<1x192x128xbf16>
    %117 = vector.shape_cast %116 : vector<1x192x128xbf16> to vector<192x128xbf16>
    %cst_87 = arith.constant dense<0.000000e+00> : vector<32x128xf32>
    %118 = tpu.matmul %115, %117, %cst_87 {dimension_numbers = #tpu.dot_dimension_numbers<[1], [0], [0], [1], [0, 0, 1, 1], [], []>} : vector<32x192xbf16>, vector<192x128xbf16>, vector<32x128xf32> -> vector<32x128xf32>
    %119 = arith.addf %113, %118 : vector<32x128xf32>
    %c0_88 = arith.constant 0 : index
    %c0_89 = arith.constant 0 : index
    %120 = vector.load %arg8[%c0_88, %c0_89] : memref<1x128xf32, #tpu.memory_space<vmem>>, vector<1x128xf32>
    %121 = vector.broadcast %120 : vector<1x128xf32> to vector<32x128xf32>
    %122 = arith.addf %119, %121 : vector<32x128xf32>
    %123 = vector.shape_cast %122 : vector<32x128xf32> to vector<4x8x128xf32>
    %124 = arith.truncf %123 : vector<4x8x128xf32> to vector<4x8x128xbf16>
    %c0_90 = arith.constant 0 : index
    %c0_91 = arith.constant 0 : index
    %c0_92 = arith.constant 0 : index
    %c0_93 = arith.constant 0 : index
    %125 = vector.load %arg9[%c0_90, %c0_91, %c0_92, %c0_93] : memref<1x4x8x128xbf16, #tpu.memory_space<vmem>>, vector<1x4x8x128xbf16>
    %126 = vector.shape_cast %125 : vector<1x4x8x128xbf16> to vector<4x8x128xbf16>
    %127 = vector.shape_cast %124 : vector<4x8x128xbf16> to vector<1x4x8x128xbf16>
    tpu.vector_store %arg9[%c0_90, %c0_91, %c0_92, %c0_93], %127 {strides = array<i32>} : memref<1x4x8x128xbf16, #tpu.memory_space<vmem>>, vector<1x4x8x128xbf16>,
    return
  }
  func.func @transform_0(%arg0: i32, %arg1: i32) -> (i32, i32, i32, i32) {
    %c0_i32 = arith.constant 0 : i32
    %c0_i32_0 = arith.constant 0 : i32
    %c0_i32_1 = arith.constant 0 : i32
    return %arg0, %arg1, %c0_i32, %c0_i32_0 : i32, i32, i32, i32
  }
  func.func @transform_1(%arg0: i32, %arg1: i32) -> (i32, i32, i32, i32) {
    %c4_i32 = arith.constant 4 : i32
    %0 = arith.muli %arg1, %c4_i32 : i32
    %c1_i32 = arith.constant 1 : i32
    %1 = arith.subi %0, %c1_i32 : i32
    %c0_i32 = arith.constant 0 : i32
    %2 = arith.maxsi %1, %c0_i32 : i32
    %c0_i32_0 = arith.constant 0 : i32
    %c0_i32_1 = arith.constant 0 : i32
    %c0_i32_2 = arith.constant 0 : i32
    return %arg0, %2, %c0_i32_0, %c0_i32_1 : i32, i32, i32, i32
  }
  func.func @transform_2(%arg0: i32, %arg1: i32) -> (i32, i32, i32, i32) {
    %c4_i32 = arith.constant 4 : i32
    %0 = arith.muli %arg1, %c4_i32 : i32
    %c4_i32_0 = arith.constant 4 : i32
    %1 = arith.addi %0, %c4_i32_0 : i32
    %c7_i32 = arith.constant 7 : i32
    %2 = arith.minsi %1, %c7_i32 : i32
    %c0_i32 = arith.constant 0 : i32
    %c0_i32_1 = arith.constant 0 : i32
    %c0_i32_2 = arith.constant 0 : i32
    return %arg0, %2, %c0_i32, %c0_i32_1 : i32, i32, i32, i32
  }
  func.func @transform_3(%arg0: i32, %arg1: i32) -> (i32, i32, i32) {
    %c0_i32 = arith.constant 0 : i32
    %c0_i32_0 = arith.constant 0 : i32
    %c0_i32_1 = arith.constant 0 : i32
    return %arg0, %c0_i32, %c0_i32_0 : i32, i32, i32
  }
  func.func @transform_4(%arg0: i32, %arg1: i32) -> (i32, i32, i32) {
    %c0_i32 = arith.constant 0 : i32
    %c0_i32_0 = arith.constant 0 : i32
    %c0_i32_1 = arith.constant 0 : i32
    return %arg0, %c0_i32, %c0_i32_0 : i32, i32, i32
  }
  func.func @transform_5(%arg0: i32, %arg1: i32) -> (i32, i32, i32) {
    %c0_i32 = arith.constant 0 : i32
    %c0_i32_0 = arith.constant 0 : i32
    %c0_i32_1 = arith.constant 0 : i32
    %c0_i32_2 = arith.constant 0 : i32
    return %c0_i32, %c0_i32_0, %c0_i32_1 : i32, i32, i32
  }
  func.func @transform_6(%arg0: i32, %arg1: i32) -> (i32, i32) {
    %c0_i32 = arith.constant 0 : i32
    %c0_i32_0 = arith.constant 0 : i32
    %c0_i32_1 = arith.constant 0 : i32
    return %c0_i32, %c0_i32_0 : i32, i32
  }
  func.func @transform_7(%arg0: i32, %arg1: i32) -> (i32, i32, i32, i32) {
    %c0_i32 = arith.constant 0 : i32
    %c0_i32_0 = arith.constant 0 : i32
    %c0_i32_1 = arith.constant 0 : i32
    return %arg0, %arg1, %c0_i32, %c0_i32_0 : i32, i32, i32, i32
  }
}

module attributes {stable_mosaic.version = 11 : i64} {
  func.func @_gn_stats_kernel(%arg0: i32, %arg1: i32, %arg2: memref<1x4x8x128xbf16, #tpu.memory_space<vmem>>, %arg3: memref<1x2x128xf32, #tpu.memory_space<vmem>>) attributes {dimension_semantics = [#tpu.dimension_semantics<parallel>, #tpu.dimension_semantics<arbitrary>], iteration_bounds = array<i64: 2, 2>, scalar_prefetch = 0 : i64, scratch_operands = 0 : i64, tpu.core_type = #tpu.core_type<tc>, window_params = [{transform_indices = @transform_0, window_bounds = array<i64: 1, 4, 8, 128>}, {transform_indices = @transform_1, window_bounds = array<i64: 1, 2, 128>}]} {
    %c0_i32 = arith.constant 0 : i32
    %0 = arith.cmpi eq, %arg1, %c0_i32 : i32
    %1 = arith.extui %0 : i1 to i32
    %c0_i32_0 = arith.constant 0 : i32
    %2 = arith.cmpi ne, %1, %c0_i32_0 : i32
    scf.if %2 {
      %cst_16 = arith.constant 0.000000e+00 : f32
      %23 = vector.broadcast %cst_16 : f32 to vector<1x2x128xf32>
      %c0_17 = arith.constant 0 : index
      %c0_18 = arith.constant 0 : index
      %c0_19 = arith.constant 0 : index
      %24 = vector.load %arg3[%c0_17, %c0_18, %c0_19] : memref<1x2x128xf32, #tpu.memory_space<vmem>>, vector<1x2x128xf32>
      tpu.vector_store %arg3[%c0_17, %c0_18, %c0_19], %23 {strides = array<i32>} : memref<1x2x128xf32, #tpu.memory_space<vmem>>, vector<1x2x128xf32>,
    } else {
    }
    %c0 = arith.constant 0 : index
    %c0_1 = arith.constant 0 : index
    %c0_2 = arith.constant 0 : index
    %c0_3 = arith.constant 0 : index
    %3 = vector.load %arg2[%c0, %c0_1, %c0_2, %c0_3] : memref<1x4x8x128xbf16, #tpu.memory_space<vmem>>, vector<1x4x8x128xbf16>
    %4 = vector.shape_cast %3 : vector<1x4x8x128xbf16> to vector<4x8x128xbf16>
    %5 = arith.extf %4 : vector<4x8x128xbf16> to vector<4x8x128xf32>
    %cst = arith.constant dense<0.000000e+00> : vector<128xf32>
    %6 = vector.multi_reduction <add>, %5, %cst [0, 1] : vector<4x8x128xf32> to vector<128xf32>
    %7 = vector.shape_cast %6 : vector<128xf32> to vector<1x128xf32>
    %8 = arith.mulf %5, %5 : vector<4x8x128xf32>
    %cst_4 = arith.constant dense<0.000000e+00> : vector<128xf32>
    %9 = vector.multi_reduction <add>, %8, %cst_4 [0, 1] : vector<4x8x128xf32> to vector<128xf32>
    %10 = vector.shape_cast %9 : vector<128xf32> to vector<1x128xf32>
    %c0_5 = arith.constant 0 : index
    %c0_6 = arith.constant 0 : index
    %c0_7 = arith.constant 0 : index
    %11 = vector.load %arg3[%c0_5, %c0_6, %c0_7] : memref<1x2x128xf32, #tpu.memory_space<vmem>>, vector<1x1x128xf32>
    %12 = vector.shape_cast %11 : vector<1x1x128xf32> to vector<1x128xf32>
    %13 = arith.addf %12, %7 : vector<1x128xf32>
    %c0_8 = arith.constant 0 : index
    %c0_9 = arith.constant 0 : index
    %c0_10 = arith.constant 0 : index
    %14 = vector.load %arg3[%c0_8, %c0_9, %c0_10] : memref<1x2x128xf32, #tpu.memory_space<vmem>>, vector<1x1x128xf32>
    %15 = vector.shape_cast %14 : vector<1x1x128xf32> to vector<1x128xf32>
    %16 = vector.shape_cast %13 : vector<1x128xf32> to vector<1x1x128xf32>
    tpu.vector_store %arg3[%c0_8, %c0_9, %c0_10], %16 {strides = array<i32>} : memref<1x2x128xf32, #tpu.memory_space<vmem>>, vector<1x1x128xf32>,
    %c0_11 = arith.constant 0 : index
    %c1 = arith.constant 1 : index
    %c0_12 = arith.constant 0 : index
    %17 = vector.load %arg3[%c0_11, %c1, %c0_12] : memref<1x2x128xf32, #tpu.memory_space<vmem>>, vector<1x1x128xf32>
    %18 = vector.shape_cast %17 : vector<1x1x128xf32> to vector<1x128xf32>
    %19 = arith.addf %18, %10 : vector<1x128xf32>
    %c0_13 = arith.constant 0 : index
    %c1_14 = arith.constant 1 : index
    %c0_15 = arith.constant 0 : index
    %20 = vector.load %arg3[%c0_13, %c1_14, %c0_15] : memref<1x2x128xf32, #tpu.memory_space<vmem>>, vector<1x1x128xf32>
    %21 = vector.shape_cast %20 : vector<1x1x128xf32> to vector<1x128xf32>
    %22 = vector.shape_cast %19 : vector<1x128xf32> to vector<1x1x128xf32>
    tpu.vector_store %arg3[%c0_13, %c1_14, %c0_15], %22 {strides = array<i32>} : memref<1x2x128xf32, #tpu.memory_space<vmem>>, vector<1x1x128xf32>,
    return
  }
  func.func @transform_0(%arg0: i32, %arg1: i32) -> (i32, i32, i32, i32) {
    %c0_i32 = arith.constant 0 : i32
    %c0_i32_0 = arith.constant 0 : i32
    %c0_i32_1 = arith.constant 0 : i32
    return %arg0, %arg1, %c0_i32, %c0_i32_0 : i32, i32, i32, i32
  }
  func.func @transform_1(%arg0: i32, %arg1: i32) -> (i32, i32, i32) {
    %c0_i32 = arith.constant 0 : i32
    %c0_i32_0 = arith.constant 0 : i32
    %c0_i32_1 = arith.constant 0 : i32
    return %arg0, %c0_i32, %c0_i32_0 : i32, i32, i32
  }
}

module attributes {stable_mosaic.version = 11 : i64} {
  func.func @_gn_silu_conv3x3_kernel(%arg0: i32, %arg1: i32, %arg2: memref<1x4x8x128xbf16, #tpu.memory_space<vmem>>, %arg3: memref<1x1x8x128xbf16, #tpu.memory_space<vmem>>, %arg4: memref<1x1x8x128xbf16, #tpu.memory_space<vmem>>, %arg5: memref<1x1x128xf32, #tpu.memory_space<vmem>>, %arg6: memref<1x1x128xf32, #tpu.memory_space<vmem>>, %arg7: memref<9x128x128xbf16, #tpu.memory_space<vmem>>, %arg8: memref<1x128xf32, #tpu.memory_space<vmem>>, %arg9: memref<1x4x8x192xf32, #tpu.memory_space<vmem>>, %arg10: memref<192x128xbf16, #tpu.memory_space<vmem>>, %arg11: memref<1x128xf32, #tpu.memory_space<vmem>>, %arg12: memref<1x4x8x128xf32, #tpu.memory_space<vmem>>, %arg13: memref<6x24x128xbf16, #tpu.memory_space<vmem>>) attributes {dimension_semantics = [#tpu.dimension_semantics<parallel>, #tpu.dimension_semantics<parallel>], iteration_bounds = array<i64: 2, 2>, scalar_prefetch = 0 : i64, scratch_operands = 1 : i64, tpu.core_type = #tpu.core_type<tc>, window_params = [{transform_indices = @transform_0, window_bounds = array<i64: 1, 4, 8, 128>}, {transform_indices = @transform_1, window_bounds = array<i64: 1, 1, 8, 128>}, {transform_indices = @transform_2, window_bounds = array<i64: 1, 1, 8, 128>}, {transform_indices = @transform_3, window_bounds = array<i64: 1, 1, 128>}, {transform_indices = @transform_4, window_bounds = array<i64: 1, 1, 128>}, {pipeline_mode = #tpu.pipeline_mode<synchronous>, transform_indices = @transform_5, window_bounds = array<i64: 9, 128, 128>}, {pipeline_mode = #tpu.pipeline_mode<synchronous>, transform_indices = @transform_6, window_bounds = array<i64: 1, 128>}, {transform_indices = @transform_7, window_bounds = array<i64: 1, 4, 8, 192>}, {pipeline_mode = #tpu.pipeline_mode<synchronous>, transform_indices = @transform_8, window_bounds = array<i64: 192, 128>}, {pipeline_mode = #tpu.pipeline_mode<synchronous>, transform_indices = @transform_9, window_bounds = array<i64: 1, 128>}, {transform_indices = @transform_10, window_bounds = array<i64: 1, 4, 8, 128>}]} {
    %c0 = arith.constant 0 : index
    %c0_0 = arith.constant 0 : index
    %c0_1 = arith.constant 0 : index
    %0 = vector.load %arg5[%c0, %c0_0, %c0_1] : memref<1x1x128xf32, #tpu.memory_space<vmem>>, vector<1x1x128xf32>
    %1 = vector.shape_cast %0 : vector<1x1x128xf32> to vector<128xf32>
    %c0_2 = arith.constant 0 : index
    %c0_3 = arith.constant 0 : index
    %c0_4 = arith.constant 0 : index
    %2 = vector.load %arg6[%c0_2, %c0_3, %c0_4] : memref<1x1x128xf32, #tpu.memory_space<vmem>>, vector<1x1x128xf32>
    %3 = vector.shape_cast %2 : vector<1x1x128xf32> to vector<128xf32>
    %cst = arith.constant 0.000000e+00 : bf16
    %4 = vector.broadcast %cst : bf16 to vector<6x1x128xbf16>
    %c0_5 = arith.constant 0 : index
    %c7 = arith.constant 7 : index
    %c0_6 = arith.constant 0 : index
    %5 = vector.load %arg13[%c0_5, %c7, %c0_6] : memref<6x24x128xbf16, #tpu.memory_space<vmem>>, vector<6x1x128xbf16>
    tpu.vector_store %arg13[%c0_5, %c7, %c0_6], %4 {strides = array<i32>} : memref<6x24x128xbf16, #tpu.memory_space<vmem>>, vector<6x1x128xbf16>,
    %c0_7 = arith.constant 0 : index
    %c16 = arith.constant 16 : index
    %c0_8 = arith.constant 0 : index
    %6 = vector.load %arg13[%c0_7, %c16, %c0_8] : memref<6x24x128xbf16, #tpu.memory_space<vmem>>, vector<6x1x128xbf16>
    tpu.vector_store %arg13[%c0_7, %c16, %c0_8], %4 {strides = array<i32>} : memref<6x24x128xbf16, #tpu.memory_space<vmem>>, vector<6x1x128xbf16>,
    %c0_9 = arith.constant 0 : index
    %c0_10 = arith.constant 0 : index
    %c0_11 = arith.constant 0 : index
    %c0_12 = arith.constant 0 : index
    %7 = vector.load %arg2[%c0_9, %c0_10, %c0_11, %c0_12] : memref<1x4x8x128xbf16, #tpu.memory_space<vmem>>, vector<1x4x8x128xbf16>
    %8 = vector.shape_cast %7 : vector<1x4x8x128xbf16> to vector<4x8x128xbf16>
    %9 = arith.extf %8 : vector<4x8x128xbf16> to vector<4x8x128xf32>
    %10 = vector.shape_cast %1 : vector<128xf32> to vector<1x1x128xf32>
    %11 = vector.broadcast %10 : vector<1x1x128xf32> to vector<4x8x128xf32>
    %12 = arith.mulf %9, %11 : vector<4x8x128xf32>
    %13 = vector.shape_cast %3 : vector<128xf32> to vector<1x1x128xf32>
    %14 = vector.broadcast %13 : vector<1x1x128xf32> to vector<4x8x128xf32>
    %15 = arith.addf %12, %14 : vector<4x8x128xf32>
    %16 = arith.negf %15 : vector<4x8x128xf32>
    %17 = math.exp %16 : vector<4x8x128xf32>
    %cst_13 = arith.constant 1.000000e+00 : f32
    %18 = vector.broadcast %cst_13 : f32 to vector<4x8x128xf32>
    %19 = arith.addf %18, %17 : vector<4x8x128xf32>
    %20 = arith.divf %18, %19 : vector<4x8x128xf32>
    %21 = arith.mulf %15, %20 : vector<4x8x128xf32>
    %22 = arith.truncf %21 : vector<4x8x128xf32> to vector<4x8x128xbf16>
    %c1 = arith.constant 1 : index
    %c8 = arith.constant 8 : index
    %c0_14 = arith.constant 0 : index
    %23 = vector.load %arg13[%c1, %c8, %c0_14] : memref<6x24x128xbf16, #tpu.memory_space<vmem>>, vector<4x8x128xbf16>
    tpu.vector_store %arg13[%c1, %c8, %c0_14], %22 {strides = array<i32>} : memref<6x24x128xbf16, #tpu.memory_space<vmem>>, vector<4x8x128xbf16>,
    %c0_15 = arith.constant 0 : index
    %c0_16 = arith.constant 0 : index
    %c0_17 = arith.constant 0 : index
    %c0_18 = arith.constant 0 : index
    %24 = vector.load %arg3[%c0_15, %c0_16, %c0_17, %c0_18] : memref<1x1x8x128xbf16, #tpu.memory_space<vmem>>, vector<1x1x8x128xbf16>
    %25 = vector.shape_cast %24 : vector<1x1x8x128xbf16> to vector<1x8x128xbf16>
    %26 = arith.extf %25 : vector<1x8x128xbf16> to vector<1x8x128xf32>
    %27 = vector.shape_cast %1 : vector<128xf32> to vector<1x1x128xf32>
    %28 = vector.broadcast %27 : vector<1x1x128xf32> to vector<1x8x128xf32>
    %29 = arith.mulf %26, %28 : vector<1x8x128xf32>
    %30 = vector.shape_cast %3 : vector<128xf32> to vector<1x1x128xf32>
    %31 = vector.broadcast %30 : vector<1x1x128xf32> to vector<1x8x128xf32>
    %32 = arith.addf %29, %31 : vector<1x8x128xf32>
    %33 = arith.negf %32 : vector<1x8x128xf32>
    %34 = math.exp %33 : vector<1x8x128xf32>
    %cst_19 = arith.constant 1.000000e+00 : f32
    %35 = vector.broadcast %cst_19 : f32 to vector<1x8x128xf32>
    %36 = arith.addf %35, %34 : vector<1x8x128xf32>
    %37 = arith.divf %35, %36 : vector<1x8x128xf32>
    %38 = arith.mulf %32, %37 : vector<1x8x128xf32>
    %39 = arith.truncf %38 : vector<1x8x128xf32> to vector<1x8x128xbf16>
    %c0_i32 = arith.constant 0 : i32
    %40 = arith.cmpi sgt, %arg1, %c0_i32 : i32
    %41 = arith.extui %40 : i1 to i32
    %42 = arith.sitofp %41 : i32 to f32
    %43 = arith.truncf %42 : f32 to bf16
    %44 = vector.broadcast %43 : bf16 to vector<1x8x128xbf16>
    %45 = arith.mulf %39, %44 : vector<1x8x128xbf16>
    %c0_20 = arith.constant 0 : index
    %c8_21 = arith.constant 8 : index
    %c0_22 = arith.constant 0 : index
    %46 = vector.load %arg13[%c0_20, %c8_21, %c0_22] : memref<6x24x128xbf16, #tpu.memory_space<vmem>>, vector<1x8x128xbf16>
    tpu.vector_store %arg13[%c0_20, %c8_21, %c0_22], %45 {strides = array<i32>} : memref<6x24x128xbf16, #tpu.memory_space<vmem>>, vector<1x8x128xbf16>,
    %c0_23 = arith.constant 0 : index
    %c0_24 = arith.constant 0 : index
    %c0_25 = arith.constant 0 : index
    %c0_26 = arith.constant 0 : index
    %47 = vector.load %arg4[%c0_23, %c0_24, %c0_25, %c0_26] : memref<1x1x8x128xbf16, #tpu.memory_space<vmem>>, vector<1x1x8x128xbf16>
    %48 = vector.shape_cast %47 : vector<1x1x8x128xbf16> to vector<1x8x128xbf16>
    %49 = arith.extf %48 : vector<1x8x128xbf16> to vector<1x8x128xf32>
    %50 = vector.shape_cast %1 : vector<128xf32> to vector<1x1x128xf32>
    %51 = vector.broadcast %50 : vector<1x1x128xf32> to vector<1x8x128xf32>
    %52 = arith.mulf %49, %51 : vector<1x8x128xf32>
    %53 = vector.shape_cast %3 : vector<128xf32> to vector<1x1x128xf32>
    %54 = vector.broadcast %53 : vector<1x1x128xf32> to vector<1x8x128xf32>
    %55 = arith.addf %52, %54 : vector<1x8x128xf32>
    %56 = arith.negf %55 : vector<1x8x128xf32>
    %57 = math.exp %56 : vector<1x8x128xf32>
    %cst_27 = arith.constant 1.000000e+00 : f32
    %58 = vector.broadcast %cst_27 : f32 to vector<1x8x128xf32>
    %59 = arith.addf %58, %57 : vector<1x8x128xf32>
    %60 = arith.divf %58, %59 : vector<1x8x128xf32>
    %61 = arith.mulf %55, %60 : vector<1x8x128xf32>
    %62 = arith.truncf %61 : vector<1x8x128xf32> to vector<1x8x128xbf16>
    %c1_i32 = arith.constant 1 : i32
    %63 = arith.cmpi slt, %arg1, %c1_i32 : i32
    %64 = arith.extui %63 : i1 to i32
    %65 = arith.sitofp %64 : i32 to f32
    %66 = arith.truncf %65 : f32 to bf16
    %67 = vector.broadcast %66 : bf16 to vector<1x8x128xbf16>
    %68 = arith.mulf %62, %67 : vector<1x8x128xbf16>
    %c5 = arith.constant 5 : index
    %c8_28 = arith.constant 8 : index
    %c0_29 = arith.constant 0 : index
    %69 = vector.load %arg13[%c5, %c8_28, %c0_29] : memref<6x24x128xbf16, #tpu.memory_space<vmem>>, vector<1x8x128xbf16>
    tpu.vector_store %arg13[%c5, %c8_28, %c0_29], %68 {strides = array<i32>} : memref<6x24x128xbf16, #tpu.memory_space<vmem>>, vector<1x8x128xbf16>,
    %c0_30 = arith.constant 0 : index
    %c7_31 = arith.constant 7 : index
    %c0_32 = arith.constant 0 : index
    %70 = vector.load %arg13[%c0_30, %c7_31, %c0_32] : memref<6x24x128xbf16, #tpu.memory_space<vmem>>, vector<4x8x128xbf16>
    %71 = vector.shape_cast %70 : vector<4x8x128xbf16> to vector<32x128xbf16>
    %c0_33 = arith.constant 0 : index
    %c0_34 = arith.constant 0 : index
    %c0_35 = arith.constant 0 : index
    %72 = vector.load %arg7[%c0_33, %c0_34, %c0_35] : memref<9x128x128xbf16, #tpu.memory_space<vmem>>, vector<1x128x128xbf16>
    %73 = vector.shape_cast %72 : vector<1x128x128xbf16> to vector<128x128xbf16>
    %cst_36 = arith.constant dense<0.000000e+00> : vector<32x128xf32>
    %74 = tpu.matmul %71, %73, %cst_36 {dimension_numbers = #tpu.dot_dimension_numbers<[1], [0], [0], [1], [0, 0, 1, 1], [], []>} : vector<32x128xbf16>, vector<128x128xbf16>, vector<32x128xf32> -> vector<32x128xf32>
    %c0_37 = arith.constant 0 : index
    %c8_38 = arith.constant 8 : index
    %c0_39 = arith.constant 0 : index
    %75 = vector.load %arg13[%c0_37, %c8_38, %c0_39] : memref<6x24x128xbf16, #tpu.memory_space<vmem>>, vector<4x8x128xbf16>
    %76 = vector.shape_cast %75 : vector<4x8x128xbf16> to vector<32x128xbf16>
    %c1_40 = arith.constant 1 : index
    %c0_41 = arith.constant 0 : index
    %c0_42 = arith.constant 0 : index
    %77 = vector.load %arg7[%c1_40, %c0_41, %c0_42] : memref<9x128x128xbf16, #tpu.memory_space<vmem>>, vector<1x128x128xbf16>
    %78 = vector.shape_cast %77 : vector<1x128x128xbf16> to vector<128x128xbf16>
    %cst_43 = arith.constant dense<0.000000e+00> : vector<32x128xf32>
    %79 = tpu.matmul %76, %78, %cst_43 {dimension_numbers = #tpu.dot_dimension_numbers<[1], [0], [0], [1], [0, 0, 1, 1], [], []>} : vector<32x128xbf16>, vector<128x128xbf16>, vector<32x128xf32> -> vector<32x128xf32>
    %80 = arith.addf %74, %79 : vector<32x128xf32>
    %c0_44 = arith.constant 0 : index
    %c9 = arith.constant 9 : index
    %c0_45 = arith.constant 0 : index
    %81 = vector.load %arg13[%c0_44, %c9, %c0_45] : memref<6x24x128xbf16, #tpu.memory_space<vmem>>, vector<4x8x128xbf16>
    %82 = vector.shape_cast %81 : vector<4x8x128xbf16> to vector<32x128xbf16>
    %c2 = arith.constant 2 : index
    %c0_46 = arith.constant 0 : index
    %c0_47 = arith.constant 0 : index
    %83 = vector.load %arg7[%c2, %c0_46, %c0_47] : memref<9x128x128xbf16, #tpu.memory_space<vmem>>, vector<1x128x128xbf16>
    %84 = vector.shape_cast %83 : vector<1x128x128xbf16> to vector<128x128xbf16>
    %cst_48 = arith.constant dense<0.000000e+00> : vector<32x128xf32>
    %85 = tpu.matmul %82, %84, %cst_48 {dimension_numbers = #tpu.dot_dimension_numbers<[1], [0], [0], [1], [0, 0, 1, 1], [], []>} : vector<32x128xbf16>, vector<128x128xbf16>, vector<32x128xf32> -> vector<32x128xf32>
    %86 = arith.addf %80, %85 : vector<32x128xf32>
    %c1_49 = arith.constant 1 : index
    %c7_50 = arith.constant 7 : index
    %c0_51 = arith.constant 0 : index
    %87 = vector.load %arg13[%c1_49, %c7_50, %c0_51] : memref<6x24x128xbf16, #tpu.memory_space<vmem>>, vector<4x8x128xbf16>
    %88 = vector.shape_cast %87 : vector<4x8x128xbf16> to vector<32x128xbf16>
    %c3 = arith.constant 3 : index
    %c0_52 = arith.constant 0 : index
    %c0_53 = arith.constant 0 : index
    %89 = vector.load %arg7[%c3, %c0_52, %c0_53] : memref<9x128x128xbf16, #tpu.memory_space<vmem>>, vector<1x128x128xbf16>
    %90 = vector.shape_cast %89 : vector<1x128x128xbf16> to vector<128x128xbf16>
    %cst_54 = arith.constant dense<0.000000e+00> : vector<32x128xf32>
    %91 = tpu.matmul %88, %90, %cst_54 {dimension_numbers = #tpu.dot_dimension_numbers<[1], [0], [0], [1], [0, 0, 1, 1], [], []>} : vector<32x128xbf16>, vector<128x128xbf16>, vector<32x128xf32> -> vector<32x128xf32>
    %92 = arith.addf %86, %91 : vector<32x128xf32>
    %c1_55 = arith.constant 1 : index
    %c8_56 = arith.constant 8 : index
    %c0_57 = arith.constant 0 : index
    %93 = vector.load %arg13[%c1_55, %c8_56, %c0_57] : memref<6x24x128xbf16, #tpu.memory_space<vmem>>, vector<4x8x128xbf16>
    %94 = vector.shape_cast %93 : vector<4x8x128xbf16> to vector<32x128xbf16>
    %c4 = arith.constant 4 : index
    %c0_58 = arith.constant 0 : index
    %c0_59 = arith.constant 0 : index
    %95 = vector.load %arg7[%c4, %c0_58, %c0_59] : memref<9x128x128xbf16, #tpu.memory_space<vmem>>, vector<1x128x128xbf16>
    %96 = vector.shape_cast %95 : vector<1x128x128xbf16> to vector<128x128xbf16>
    %cst_60 = arith.constant dense<0.000000e+00> : vector<32x128xf32>
    %97 = tpu.matmul %94, %96, %cst_60 {dimension_numbers = #tpu.dot_dimension_numbers<[1], [0], [0], [1], [0, 0, 1, 1], [], []>} : vector<32x128xbf16>, vector<128x128xbf16>, vector<32x128xf32> -> vector<32x128xf32>
    %98 = arith.addf %92, %97 : vector<32x128xf32>
    %c1_61 = arith.constant 1 : index
    %c9_62 = arith.constant 9 : index
    %c0_63 = arith.constant 0 : index
    %99 = vector.load %arg13[%c1_61, %c9_62, %c0_63] : memref<6x24x128xbf16, #tpu.memory_space<vmem>>, vector<4x8x128xbf16>
    %100 = vector.shape_cast %99 : vector<4x8x128xbf16> to vector<32x128xbf16>
    %c5_64 = arith.constant 5 : index
    %c0_65 = arith.constant 0 : index
    %c0_66 = arith.constant 0 : index
    %101 = vector.load %arg7[%c5_64, %c0_65, %c0_66] : memref<9x128x128xbf16, #tpu.memory_space<vmem>>, vector<1x128x128xbf16>
    %102 = vector.shape_cast %101 : vector<1x128x128xbf16> to vector<128x128xbf16>
    %cst_67 = arith.constant dense<0.000000e+00> : vector<32x128xf32>
    %103 = tpu.matmul %100, %102, %cst_67 {dimension_numbers = #tpu.dot_dimension_numbers<[1], [0], [0], [1], [0, 0, 1, 1], [], []>} : vector<32x128xbf16>, vector<128x128xbf16>, vector<32x128xf32> -> vector<32x128xf32>
    %104 = arith.addf %98, %103 : vector<32x128xf32>
    %c2_68 = arith.constant 2 : index
    %c7_69 = arith.constant 7 : index
    %c0_70 = arith.constant 0 : index
    %105 = vector.load %arg13[%c2_68, %c7_69, %c0_70] : memref<6x24x128xbf16, #tpu.memory_space<vmem>>, vector<4x8x128xbf16>
    %106 = vector.shape_cast %105 : vector<4x8x128xbf16> to vector<32x128xbf16>
    %c6 = arith.constant 6 : index
    %c0_71 = arith.constant 0 : index
    %c0_72 = arith.constant 0 : index
    %107 = vector.load %arg7[%c6, %c0_71, %c0_72] : memref<9x128x128xbf16, #tpu.memory_space<vmem>>, vector<1x128x128xbf16>
    %108 = vector.shape_cast %107 : vector<1x128x128xbf16> to vector<128x128xbf16>
    %cst_73 = arith.constant dense<0.000000e+00> : vector<32x128xf32>
    %109 = tpu.matmul %106, %108, %cst_73 {dimension_numbers = #tpu.dot_dimension_numbers<[1], [0], [0], [1], [0, 0, 1, 1], [], []>} : vector<32x128xbf16>, vector<128x128xbf16>, vector<32x128xf32> -> vector<32x128xf32>
    %110 = arith.addf %104, %109 : vector<32x128xf32>
    %c2_74 = arith.constant 2 : index
    %c8_75 = arith.constant 8 : index
    %c0_76 = arith.constant 0 : index
    %111 = vector.load %arg13[%c2_74, %c8_75, %c0_76] : memref<6x24x128xbf16, #tpu.memory_space<vmem>>, vector<4x8x128xbf16>
    %112 = vector.shape_cast %111 : vector<4x8x128xbf16> to vector<32x128xbf16>
    %c7_77 = arith.constant 7 : index
    %c0_78 = arith.constant 0 : index
    %c0_79 = arith.constant 0 : index
    %113 = vector.load %arg7[%c7_77, %c0_78, %c0_79] : memref<9x128x128xbf16, #tpu.memory_space<vmem>>, vector<1x128x128xbf16>
    %114 = vector.shape_cast %113 : vector<1x128x128xbf16> to vector<128x128xbf16>
    %cst_80 = arith.constant dense<0.000000e+00> : vector<32x128xf32>
    %115 = tpu.matmul %112, %114, %cst_80 {dimension_numbers = #tpu.dot_dimension_numbers<[1], [0], [0], [1], [0, 0, 1, 1], [], []>} : vector<32x128xbf16>, vector<128x128xbf16>, vector<32x128xf32> -> vector<32x128xf32>
    %116 = arith.addf %110, %115 : vector<32x128xf32>
    %c2_81 = arith.constant 2 : index
    %c9_82 = arith.constant 9 : index
    %c0_83 = arith.constant 0 : index
    %117 = vector.load %arg13[%c2_81, %c9_82, %c0_83] : memref<6x24x128xbf16, #tpu.memory_space<vmem>>, vector<4x8x128xbf16>
    %118 = vector.shape_cast %117 : vector<4x8x128xbf16> to vector<32x128xbf16>
    %c8_84 = arith.constant 8 : index
    %c0_85 = arith.constant 0 : index
    %c0_86 = arith.constant 0 : index
    %119 = vector.load %arg7[%c8_84, %c0_85, %c0_86] : memref<9x128x128xbf16, #tpu.memory_space<vmem>>, vector<1x128x128xbf16>
    %120 = vector.shape_cast %119 : vector<1x128x128xbf16> to vector<128x128xbf16>
    %cst_87 = arith.constant dense<0.000000e+00> : vector<32x128xf32>
    %121 = tpu.matmul %118, %120, %cst_87 {dimension_numbers = #tpu.dot_dimension_numbers<[1], [0], [0], [1], [0, 0, 1, 1], [], []>} : vector<32x128xbf16>, vector<128x128xbf16>, vector<32x128xf32> -> vector<32x128xf32>
    %122 = arith.addf %116, %121 : vector<32x128xf32>
    %c0_88 = arith.constant 0 : index
    %c0_89 = arith.constant 0 : index
    %123 = vector.load %arg8[%c0_88, %c0_89] : memref<1x128xf32, #tpu.memory_space<vmem>>, vector<1x128xf32>
    %124 = vector.broadcast %123 : vector<1x128xf32> to vector<32x128xf32>
    %125 = arith.addf %122, %124 : vector<32x128xf32>
    %c0_90 = arith.constant 0 : index
    %c0_91 = arith.constant 0 : index
    %c0_92 = arith.constant 0 : index
    %c0_93 = arith.constant 0 : index
    %126 = vector.load %arg9[%c0_90, %c0_91, %c0_92, %c0_93] : memref<1x4x8x192xf32, #tpu.memory_space<vmem>>, vector<1x4x8x192xf32>
    %127 = vector.shape_cast %126 : vector<1x4x8x192xf32> to vector<4x8x192xf32>
    %128 = vector.shape_cast %127 : vector<4x8x192xf32> to vector<32x192xf32>
    %129 = arith.truncf %128 : vector<32x192xf32> to vector<32x192xbf16>
    %c0_94 = arith.constant 0 : index
    %c0_95 = arith.constant 0 : index
    %130 = vector.load %arg10[%c0_94, %c0_95] : memref<192x128xbf16, #tpu.memory_space<vmem>>, vector<192x128xbf16>
    %cst_96 = arith.constant dense<0.000000e+00> : vector<32x128xf32>
    %131 = tpu.matmul %129, %130, %cst_96 {dimension_numbers = #tpu.dot_dimension_numbers<[1], [0], [0], [1], [0, 0, 1, 1], [], []>} : vector<32x192xbf16>, vector<192x128xbf16>, vector<32x128xf32> -> vector<32x128xf32>
    %c0_97 = arith.constant 0 : index
    %c0_98 = arith.constant 0 : index
    %132 = vector.load %arg11[%c0_97, %c0_98] : memref<1x128xf32, #tpu.memory_space<vmem>>, vector<1x128xf32>
    %133 = vector.broadcast %132 : vector<1x128xf32> to vector<32x128xf32>
    %134 = arith.addf %131, %133 : vector<32x128xf32>
    %135 = arith.addf %125, %134 : vector<32x128xf32>
    %136 = vector.shape_cast %135 : vector<32x128xf32> to vector<4x8x128xf32>
    %c0_99 = arith.constant 0 : index
    %c0_100 = arith.constant 0 : index
    %c0_101 = arith.constant 0 : index
    %c0_102 = arith.constant 0 : index
    %137 = vector.load %arg12[%c0_99, %c0_100, %c0_101, %c0_102] : memref<1x4x8x128xf32, #tpu.memory_space<vmem>>, vector<1x4x8x128xf32>
    %138 = vector.shape_cast %137 : vector<1x4x8x128xf32> to vector<4x8x128xf32>
    %139 = vector.shape_cast %136 : vector<4x8x128xf32> to vector<1x4x8x128xf32>
    tpu.vector_store %arg12[%c0_99, %c0_100, %c0_101, %c0_102], %139 {strides = array<i32>} : memref<1x4x8x128xf32, #tpu.memory_space<vmem>>, vector<1x4x8x128xf32>,
    return
  }
  func.func @transform_0(%arg0: i32, %arg1: i32) -> (i32, i32, i32, i32) {
    %c0_i32 = arith.constant 0 : i32
    %c0_i32_0 = arith.constant 0 : i32
    %c0_i32_1 = arith.constant 0 : i32
    return %arg0, %arg1, %c0_i32, %c0_i32_0 : i32, i32, i32, i32
  }
  func.func @transform_1(%arg0: i32, %arg1: i32) -> (i32, i32, i32, i32) {
    %c4_i32 = arith.constant 4 : i32
    %0 = arith.muli %arg1, %c4_i32 : i32
    %c1_i32 = arith.constant 1 : i32
    %1 = arith.subi %0, %c1_i32 : i32
    %c0_i32 = arith.constant 0 : i32
    %2 = arith.maxsi %1, %c0_i32 : i32
    %c0_i32_0 = arith.constant 0 : i32
    %c0_i32_1 = arith.constant 0 : i32
    %c0_i32_2 = arith.constant 0 : i32
    return %arg0, %2, %c0_i32_0, %c0_i32_1 : i32, i32, i32, i32
  }
  func.func @transform_2(%arg0: i32, %arg1: i32) -> (i32, i32, i32, i32) {
    %c4_i32 = arith.constant 4 : i32
    %0 = arith.muli %arg1, %c4_i32 : i32
    %c4_i32_0 = arith.constant 4 : i32
    %1 = arith.addi %0, %c4_i32_0 : i32
    %c7_i32 = arith.constant 7 : i32
    %2 = arith.minsi %1, %c7_i32 : i32
    %c0_i32 = arith.constant 0 : i32
    %c0_i32_1 = arith.constant 0 : i32
    %c0_i32_2 = arith.constant 0 : i32
    return %arg0, %2, %c0_i32, %c0_i32_1 : i32, i32, i32, i32
  }
  func.func @transform_3(%arg0: i32, %arg1: i32) -> (i32, i32, i32) {
    %c0_i32 = arith.constant 0 : i32
    %c0_i32_0 = arith.constant 0 : i32
    %c0_i32_1 = arith.constant 0 : i32
    return %arg0, %c0_i32, %c0_i32_0 : i32, i32, i32
  }
  func.func @transform_4(%arg0: i32, %arg1: i32) -> (i32, i32, i32) {
    %c0_i32 = arith.constant 0 : i32
    %c0_i32_0 = arith.constant 0 : i32
    %c0_i32_1 = arith.constant 0 : i32
    return %arg0, %c0_i32, %c0_i32_0 : i32, i32, i32
  }
  func.func @transform_5(%arg0: i32, %arg1: i32) -> (i32, i32, i32) {
    %c0_i32 = arith.constant 0 : i32
    %c0_i32_0 = arith.constant 0 : i32
    %c0_i32_1 = arith.constant 0 : i32
    %c0_i32_2 = arith.constant 0 : i32
    return %c0_i32, %c0_i32_0, %c0_i32_1 : i32, i32, i32
  }
  func.func @transform_6(%arg0: i32, %arg1: i32) -> (i32, i32) {
    %c0_i32 = arith.constant 0 : i32
    %c0_i32_0 = arith.constant 0 : i32
    %c0_i32_1 = arith.constant 0 : i32
    return %c0_i32, %c0_i32_0 : i32, i32
  }
  func.func @transform_7(%arg0: i32, %arg1: i32) -> (i32, i32, i32, i32) {
    %c0_i32 = arith.constant 0 : i32
    %c0_i32_0 = arith.constant 0 : i32
    %c0_i32_1 = arith.constant 0 : i32
    return %arg0, %arg1, %c0_i32, %c0_i32_0 : i32, i32, i32, i32
  }
  func.func @transform_8(%arg0: i32, %arg1: i32) -> (i32, i32) {
    %c0_i32 = arith.constant 0 : i32
    %c0_i32_0 = arith.constant 0 : i32
    %c0_i32_1 = arith.constant 0 : i32
    return %c0_i32, %c0_i32_0 : i32, i32
  }
  func.func @transform_9(%arg0: i32, %arg1: i32) -> (i32, i32) {
    %c0_i32 = arith.constant 0 : i32
    %c0_i32_0 = arith.constant 0 : i32
    %c0_i32_1 = arith.constant 0 : i32
    return %c0_i32, %c0_i32_0 : i32, i32
  }
  func.func @transform_10(%arg0: i32, %arg1: i32) -> (i32, i32, i32, i32) {
    %c0_i32 = arith.constant 0 : i32
    %c0_i32_0 = arith.constant 0 : i32
    %c0_i32_1 = arith.constant 0 : i32
    return %arg0, %arg1, %c0_i32, %c0_i32_0 : i32, i32, i32, i32
  }
}

module attributes {stable_mosaic.version = 11 : i64} {
  func.func @_upsample2x_conv3x3_kernel(%arg0: i32, %arg1: i32, %arg2: memref<1x4x8x128xf32, #tpu.memory_space<vmem>>, %arg3: memref<1x1x8x128xf32, #tpu.memory_space<vmem>>, %arg4: memref<1x1x8x128xf32, #tpu.memory_space<vmem>>, %arg5: memref<4x2x2x128x128xbf16, #tpu.memory_space<vmem>>, %arg6: memref<1x128xf32, #tpu.memory_space<vmem>>, %arg7: memref<1x4x2x8x256xf32, #tpu.memory_space<vmem>>, %arg8: memref<6x24x128xbf16, #tpu.memory_space<vmem>>) attributes {dimension_semantics = [#tpu.dimension_semantics<parallel>, #tpu.dimension_semantics<parallel>], iteration_bounds = array<i64: 2, 2>, scalar_prefetch = 0 : i64, scratch_operands = 1 : i64, tpu.core_type = #tpu.core_type<tc>, window_params = [{transform_indices = @transform_0, window_bounds = array<i64: 1, 4, 8, 128>}, {transform_indices = @transform_1, window_bounds = array<i64: 1, 1, 8, 128>}, {transform_indices = @transform_2, window_bounds = array<i64: 1, 1, 8, 128>}, {pipeline_mode = #tpu.pipeline_mode<synchronous>, transform_indices = @transform_3, window_bounds = array<i64: 4, 2, 2, 128, 128>}, {pipeline_mode = #tpu.pipeline_mode<synchronous>, transform_indices = @transform_4, window_bounds = array<i64: 1, 128>}, {transform_indices = @transform_5, window_bounds = array<i64: 1, 4, 2, 8, 256>}]} {
    %cst = arith.constant 0.000000e+00 : bf16
    %0 = vector.broadcast %cst : bf16 to vector<6x1x128xbf16>
    %c0 = arith.constant 0 : index
    %c7 = arith.constant 7 : index
    %c0_0 = arith.constant 0 : index
    %1 = vector.load %arg8[%c0, %c7, %c0_0] : memref<6x24x128xbf16, #tpu.memory_space<vmem>>, vector<6x1x128xbf16>
    tpu.vector_store %arg8[%c0, %c7, %c0_0], %0 {strides = array<i32>} : memref<6x24x128xbf16, #tpu.memory_space<vmem>>, vector<6x1x128xbf16>,
    %c0_1 = arith.constant 0 : index
    %c16 = arith.constant 16 : index
    %c0_2 = arith.constant 0 : index
    %2 = vector.load %arg8[%c0_1, %c16, %c0_2] : memref<6x24x128xbf16, #tpu.memory_space<vmem>>, vector<6x1x128xbf16>
    tpu.vector_store %arg8[%c0_1, %c16, %c0_2], %0 {strides = array<i32>} : memref<6x24x128xbf16, #tpu.memory_space<vmem>>, vector<6x1x128xbf16>,
    %c0_3 = arith.constant 0 : index
    %c0_4 = arith.constant 0 : index
    %c0_5 = arith.constant 0 : index
    %c0_6 = arith.constant 0 : index
    %3 = vector.load %arg2[%c0_3, %c0_4, %c0_5, %c0_6] : memref<1x4x8x128xf32, #tpu.memory_space<vmem>>, vector<1x4x8x128xf32>
    %4 = vector.shape_cast %3 : vector<1x4x8x128xf32> to vector<4x8x128xf32>
    %5 = arith.truncf %4 : vector<4x8x128xf32> to vector<4x8x128xbf16>
    %c1 = arith.constant 1 : index
    %c8 = arith.constant 8 : index
    %c0_7 = arith.constant 0 : index
    %6 = vector.load %arg8[%c1, %c8, %c0_7] : memref<6x24x128xbf16, #tpu.memory_space<vmem>>, vector<4x8x128xbf16>
    tpu.vector_store %arg8[%c1, %c8, %c0_7], %5 {strides = array<i32>} : memref<6x24x128xbf16, #tpu.memory_space<vmem>>, vector<4x8x128xbf16>,
    %c0_8 = arith.constant 0 : index
    %c0_9 = arith.constant 0 : index
    %c0_10 = arith.constant 0 : index
    %c0_11 = arith.constant 0 : index
    %7 = vector.load %arg3[%c0_8, %c0_9, %c0_10, %c0_11] : memref<1x1x8x128xf32, #tpu.memory_space<vmem>>, vector<1x1x8x128xf32>
    %8 = vector.shape_cast %7 : vector<1x1x8x128xf32> to vector<1x8x128xf32>
    %9 = arith.truncf %8 : vector<1x8x128xf32> to vector<1x8x128xbf16>
    %c0_i32 = arith.constant 0 : i32
    %10 = arith.cmpi sgt, %arg1, %c0_i32 : i32
    %11 = arith.extui %10 : i1 to i32
    %12 = arith.sitofp %11 : i32 to f32
    %13 = arith.truncf %12 : f32 to bf16
    %14 = vector.broadcast %13 : bf16 to vector<1x8x128xbf16>
    %15 = arith.mulf %9, %14 : vector<1x8x128xbf16>
    %c0_12 = arith.constant 0 : index
    %c8_13 = arith.constant 8 : index
    %c0_14 = arith.constant 0 : index
    %16 = vector.load %arg8[%c0_12, %c8_13, %c0_14] : memref<6x24x128xbf16, #tpu.memory_space<vmem>>, vector<1x8x128xbf16>
    tpu.vector_store %arg8[%c0_12, %c8_13, %c0_14], %15 {strides = array<i32>} : memref<6x24x128xbf16, #tpu.memory_space<vmem>>, vector<1x8x128xbf16>,
    %c0_15 = arith.constant 0 : index
    %c0_16 = arith.constant 0 : index
    %c0_17 = arith.constant 0 : index
    %c0_18 = arith.constant 0 : index
    %17 = vector.load %arg4[%c0_15, %c0_16, %c0_17, %c0_18] : memref<1x1x8x128xf32, #tpu.memory_space<vmem>>, vector<1x1x8x128xf32>
    %18 = vector.shape_cast %17 : vector<1x1x8x128xf32> to vector<1x8x128xf32>
    %19 = arith.truncf %18 : vector<1x8x128xf32> to vector<1x8x128xbf16>
    %c1_i32 = arith.constant 1 : i32
    %20 = arith.cmpi slt, %arg1, %c1_i32 : i32
    %21 = arith.extui %20 : i1 to i32
    %22 = arith.sitofp %21 : i32 to f32
    %23 = arith.truncf %22 : f32 to bf16
    %24 = vector.broadcast %23 : bf16 to vector<1x8x128xbf16>
    %25 = arith.mulf %19, %24 : vector<1x8x128xbf16>
    %c5 = arith.constant 5 : index
    %c8_19 = arith.constant 8 : index
    %c0_20 = arith.constant 0 : index
    %26 = vector.load %arg8[%c5, %c8_19, %c0_20] : memref<6x24x128xbf16, #tpu.memory_space<vmem>>, vector<1x8x128xbf16>
    tpu.vector_store %arg8[%c5, %c8_19, %c0_20], %25 {strides = array<i32>} : memref<6x24x128xbf16, #tpu.memory_space<vmem>>, vector<1x8x128xbf16>,
    %c0_21 = arith.constant 0 : index
    %c7_22 = arith.constant 7 : index
    %c0_23 = arith.constant 0 : index
    %27 = vector.load %arg8[%c0_21, %c7_22, %c0_23] : memref<6x24x128xbf16, #tpu.memory_space<vmem>>, vector<4x8x128xbf16>
    %28 = vector.shape_cast %27 : vector<4x8x128xbf16> to vector<32x128xbf16>
    %c0_24 = arith.constant 0 : index
    %c0_25 = arith.constant 0 : index
    %c0_26 = arith.constant 0 : index
    %c0_27 = arith.constant 0 : index
    %c0_28 = arith.constant 0 : index
    %29 = vector.load %arg5[%c0_24, %c0_25, %c0_26, %c0_27, %c0_28] : memref<4x2x2x128x128xbf16, #tpu.memory_space<vmem>>, vector<1x1x1x128x128xbf16>
    %30 = vector.shape_cast %29 : vector<1x1x1x128x128xbf16> to vector<128x128xbf16>
    %cst_29 = arith.constant dense<0.000000e+00> : vector<32x128xf32>
    %31 = tpu.matmul %28, %30, %cst_29 {dimension_numbers = #tpu.dot_dimension_numbers<[1], [0], [0], [1], [0, 0, 1, 1], [], []>} : vector<32x128xbf16>, vector<128x128xbf16>, vector<32x128xf32> -> vector<32x128xf32>
    %c0_30 = arith.constant 0 : index
    %c8_31 = arith.constant 8 : index
    %c0_32 = arith.constant 0 : index
    %32 = vector.load %arg8[%c0_30, %c8_31, %c0_32] : memref<6x24x128xbf16, #tpu.memory_space<vmem>>, vector<4x8x128xbf16>
    %33 = vector.shape_cast %32 : vector<4x8x128xbf16> to vector<32x128xbf16>
    %c0_33 = arith.constant 0 : index
    %c0_34 = arith.constant 0 : index
    %c1_35 = arith.constant 1 : index
    %c0_36 = arith.constant 0 : index
    %c0_37 = arith.constant 0 : index
    %34 = vector.load %arg5[%c0_33, %c0_34, %c1_35, %c0_36, %c0_37] : memref<4x2x2x128x128xbf16, #tpu.memory_space<vmem>>, vector<1x1x1x128x128xbf16>
    %35 = vector.shape_cast %34 : vector<1x1x1x128x128xbf16> to vector<128x128xbf16>
    %cst_38 = arith.constant dense<0.000000e+00> : vector<32x128xf32>
    %36 = tpu.matmul %33, %35, %cst_38 {dimension_numbers = #tpu.dot_dimension_numbers<[1], [0], [0], [1], [0, 0, 1, 1], [], []>} : vector<32x128xbf16>, vector<128x128xbf16>, vector<32x128xf32> -> vector<32x128xf32>
    %37 = arith.addf %31, %36 : vector<32x128xf32>
    %c1_39 = arith.constant 1 : index
    %c7_40 = arith.constant 7 : index
    %c0_41 = arith.constant 0 : index
    %38 = vector.load %arg8[%c1_39, %c7_40, %c0_41] : memref<6x24x128xbf16, #tpu.memory_space<vmem>>, vector<4x8x128xbf16>
    %39 = vector.shape_cast %38 : vector<4x8x128xbf16> to vector<32x128xbf16>
    %c0_42 = arith.constant 0 : index
    %c1_43 = arith.constant 1 : index
    %c0_44 = arith.constant 0 : index
    %c0_45 = arith.constant 0 : index
    %c0_46 = arith.constant 0 : index
    %40 = vector.load %arg5[%c0_42, %c1_43, %c0_44, %c0_45, %c0_46] : memref<4x2x2x128x128xbf16, #tpu.memory_space<vmem>>, vector<1x1x1x128x128xbf16>
    %41 = vector.shape_cast %40 : vector<1x1x1x128x128xbf16> to vector<128x128xbf16>
    %cst_47 = arith.constant dense<0.000000e+00> : vector<32x128xf32>
    %42 = tpu.matmul %39, %41, %cst_47 {dimension_numbers = #tpu.dot_dimension_numbers<[1], [0], [0], [1], [0, 0, 1, 1], [], []>} : vector<32x128xbf16>, vector<128x128xbf16>, vector<32x128xf32> -> vector<32x128xf32>
    %43 = arith.addf %37, %42 : vector<32x128xf32>
    %c1_48 = arith.constant 1 : index
    %c8_49 = arith.constant 8 : index
    %c0_50 = arith.constant 0 : index
    %44 = vector.load %arg8[%c1_48, %c8_49, %c0_50] : memref<6x24x128xbf16, #tpu.memory_space<vmem>>, vector<4x8x128xbf16>
    %45 = vector.shape_cast %44 : vector<4x8x128xbf16> to vector<32x128xbf16>
    %c0_51 = arith.constant 0 : index
    %c1_52 = arith.constant 1 : index
    %c1_53 = arith.constant 1 : index
    %c0_54 = arith.constant 0 : index
    %c0_55 = arith.constant 0 : index
    %46 = vector.load %arg5[%c0_51, %c1_52, %c1_53, %c0_54, %c0_55] : memref<4x2x2x128x128xbf16, #tpu.memory_space<vmem>>, vector<1x1x1x128x128xbf16>
    %47 = vector.shape_cast %46 : vector<1x1x1x128x128xbf16> to vector<128x128xbf16>
    %cst_56 = arith.constant dense<0.000000e+00> : vector<32x128xf32>
    %48 = tpu.matmul %45, %47, %cst_56 {dimension_numbers = #tpu.dot_dimension_numbers<[1], [0], [0], [1], [0, 0, 1, 1], [], []>} : vector<32x128xbf16>, vector<128x128xbf16>, vector<32x128xf32> -> vector<32x128xf32>
    %49 = arith.addf %43, %48 : vector<32x128xf32>
    %c0_57 = arith.constant 0 : index
    %c0_58 = arith.constant 0 : index
    %50 = vector.load %arg6[%c0_57, %c0_58] : memref<1x128xf32, #tpu.memory_space<vmem>>, vector<1x128xf32>
    %51 = vector.broadcast %50 : vector<1x128xf32> to vector<32x128xf32>
    %52 = arith.addf %49, %51 : vector<32x128xf32>
    %53 = vector.shape_cast %52 : vector<32x128xf32> to vector<4x8x128xf32>
    %c0_59 = arith.constant 0 : index
    %c0_60 = arith.constant 0 : index
    %c0_61 = arith.constant 0 : index
    %c0_62 = arith.constant 0 : index
    %c0_63 = arith.constant 0 : index
    %54 = vector.load %arg7[%c0_59, %c0_60, %c0_61, %c0_62, %c0_63] : memref<1x4x2x8x256xf32, #tpu.memory_space<vmem>>, vector<1x4x1x8x128xf32>
    %55 = vector.shape_cast %54 : vector<1x4x1x8x128xf32> to vector<4x8x128xf32>
    %56 = vector.shape_cast %53 : vector<4x8x128xf32> to vector<1x4x1x8x128xf32>
    tpu.vector_store %arg7[%c0_59, %c0_60, %c0_61, %c0_62, %c0_63], %56 {strides = array<i32>} : memref<1x4x2x8x256xf32, #tpu.memory_space<vmem>>, vector<1x4x1x8x128xf32>,
    %c0_64 = arith.constant 0 : index
    %c8_65 = arith.constant 8 : index
    %c0_66 = arith.constant 0 : index
    %57 = vector.load %arg8[%c0_64, %c8_65, %c0_66] : memref<6x24x128xbf16, #tpu.memory_space<vmem>>, vector<4x8x128xbf16>
    %58 = vector.shape_cast %57 : vector<4x8x128xbf16> to vector<32x128xbf16>
    %c1_67 = arith.constant 1 : index
    %c0_68 = arith.constant 0 : index
    %c0_69 = arith.constant 0 : index
    %c0_70 = arith.constant 0 : index
    %c0_71 = arith.constant 0 : index
    %59 = vector.load %arg5[%c1_67, %c0_68, %c0_69, %c0_70, %c0_71] : memref<4x2x2x128x128xbf16, #tpu.memory_space<vmem>>, vector<1x1x1x128x128xbf16>
    %60 = vector.shape_cast %59 : vector<1x1x1x128x128xbf16> to vector<128x128xbf16>
    %cst_72 = arith.constant dense<0.000000e+00> : vector<32x128xf32>
    %61 = tpu.matmul %58, %60, %cst_72 {dimension_numbers = #tpu.dot_dimension_numbers<[1], [0], [0], [1], [0, 0, 1, 1], [], []>} : vector<32x128xbf16>, vector<128x128xbf16>, vector<32x128xf32> -> vector<32x128xf32>
    %c0_73 = arith.constant 0 : index
    %c9 = arith.constant 9 : index
    %c0_74 = arith.constant 0 : index
    %62 = vector.load %arg8[%c0_73, %c9, %c0_74] : memref<6x24x128xbf16, #tpu.memory_space<vmem>>, vector<4x8x128xbf16>
    %63 = vector.shape_cast %62 : vector<4x8x128xbf16> to vector<32x128xbf16>
    %c1_75 = arith.constant 1 : index
    %c0_76 = arith.constant 0 : index
    %c1_77 = arith.constant 1 : index
    %c0_78 = arith.constant 0 : index
    %c0_79 = arith.constant 0 : index
    %64 = vector.load %arg5[%c1_75, %c0_76, %c1_77, %c0_78, %c0_79] : memref<4x2x2x128x128xbf16, #tpu.memory_space<vmem>>, vector<1x1x1x128x128xbf16>
    %65 = vector.shape_cast %64 : vector<1x1x1x128x128xbf16> to vector<128x128xbf16>
    %cst_80 = arith.constant dense<0.000000e+00> : vector<32x128xf32>
    %66 = tpu.matmul %63, %65, %cst_80 {dimension_numbers = #tpu.dot_dimension_numbers<[1], [0], [0], [1], [0, 0, 1, 1], [], []>} : vector<32x128xbf16>, vector<128x128xbf16>, vector<32x128xf32> -> vector<32x128xf32>
    %67 = arith.addf %61, %66 : vector<32x128xf32>
    %c1_81 = arith.constant 1 : index
    %c8_82 = arith.constant 8 : index
    %c0_83 = arith.constant 0 : index
    %68 = vector.load %arg8[%c1_81, %c8_82, %c0_83] : memref<6x24x128xbf16, #tpu.memory_space<vmem>>, vector<4x8x128xbf16>
    %69 = vector.shape_cast %68 : vector<4x8x128xbf16> to vector<32x128xbf16>
    %c1_84 = arith.constant 1 : index
    %c1_85 = arith.constant 1 : index
    %c0_86 = arith.constant 0 : index
    %c0_87 = arith.constant 0 : index
    %c0_88 = arith.constant 0 : index
    %70 = vector.load %arg5[%c1_84, %c1_85, %c0_86, %c0_87, %c0_88] : memref<4x2x2x128x128xbf16, #tpu.memory_space<vmem>>, vector<1x1x1x128x128xbf16>
    %71 = vector.shape_cast %70 : vector<1x1x1x128x128xbf16> to vector<128x128xbf16>
    %cst_89 = arith.constant dense<0.000000e+00> : vector<32x128xf32>
    %72 = tpu.matmul %69, %71, %cst_89 {dimension_numbers = #tpu.dot_dimension_numbers<[1], [0], [0], [1], [0, 0, 1, 1], [], []>} : vector<32x128xbf16>, vector<128x128xbf16>, vector<32x128xf32> -> vector<32x128xf32>
    %73 = arith.addf %67, %72 : vector<32x128xf32>
    %c1_90 = arith.constant 1 : index
    %c9_91 = arith.constant 9 : index
    %c0_92 = arith.constant 0 : index
    %74 = vector.load %arg8[%c1_90, %c9_91, %c0_92] : memref<6x24x128xbf16, #tpu.memory_space<vmem>>, vector<4x8x128xbf16>
    %75 = vector.shape_cast %74 : vector<4x8x128xbf16> to vector<32x128xbf16>
    %c1_93 = arith.constant 1 : index
    %c1_94 = arith.constant 1 : index
    %c1_95 = arith.constant 1 : index
    %c0_96 = arith.constant 0 : index
    %c0_97 = arith.constant 0 : index
    %76 = vector.load %arg5[%c1_93, %c1_94, %c1_95, %c0_96, %c0_97] : memref<4x2x2x128x128xbf16, #tpu.memory_space<vmem>>, vector<1x1x1x128x128xbf16>
    %77 = vector.shape_cast %76 : vector<1x1x1x128x128xbf16> to vector<128x128xbf16>
    %cst_98 = arith.constant dense<0.000000e+00> : vector<32x128xf32>
    %78 = tpu.matmul %75, %77, %cst_98 {dimension_numbers = #tpu.dot_dimension_numbers<[1], [0], [0], [1], [0, 0, 1, 1], [], []>} : vector<32x128xbf16>, vector<128x128xbf16>, vector<32x128xf32> -> vector<32x128xf32>
    %79 = arith.addf %73, %78 : vector<32x128xf32>
    %c0_99 = arith.constant 0 : index
    %c0_100 = arith.constant 0 : index
    %80 = vector.load %arg6[%c0_99, %c0_100] : memref<1x128xf32, #tpu.memory_space<vmem>>, vector<1x128xf32>
    %81 = vector.broadcast %80 : vector<1x128xf32> to vector<32x128xf32>
    %82 = arith.addf %79, %81 : vector<32x128xf32>
    %83 = vector.shape_cast %82 : vector<32x128xf32> to vector<4x8x128xf32>
    %c0_101 = arith.constant 0 : index
    %c0_102 = arith.constant 0 : index
    %c0_103 = arith.constant 0 : index
    %c0_104 = arith.constant 0 : index
    %c128 = arith.constant 128 : index
    %84 = vector.load %arg7[%c0_101, %c0_102, %c0_103, %c0_104, %c128] : memref<1x4x2x8x256xf32, #tpu.memory_space<vmem>>, vector<1x4x1x8x128xf32>
    %85 = vector.shape_cast %84 : vector<1x4x1x8x128xf32> to vector<4x8x128xf32>
    %86 = vector.shape_cast %83 : vector<4x8x128xf32> to vector<1x4x1x8x128xf32>
    tpu.vector_store %arg7[%c0_101, %c0_102, %c0_103, %c0_104, %c128], %86 {strides = array<i32>} : memref<1x4x2x8x256xf32, #tpu.memory_space<vmem>>, vector<1x4x1x8x128xf32>,
    %c1_105 = arith.constant 1 : index
    %c7_106 = arith.constant 7 : index
    %c0_107 = arith.constant 0 : index
    %87 = vector.load %arg8[%c1_105, %c7_106, %c0_107] : memref<6x24x128xbf16, #tpu.memory_space<vmem>>, vector<4x8x128xbf16>
    %88 = vector.shape_cast %87 : vector<4x8x128xbf16> to vector<32x128xbf16>
    %c2 = arith.constant 2 : index
    %c0_108 = arith.constant 0 : index
    %c0_109 = arith.constant 0 : index
    %c0_110 = arith.constant 0 : index
    %c0_111 = arith.constant 0 : index
    %89 = vector.load %arg5[%c2, %c0_108, %c0_109, %c0_110, %c0_111] : memref<4x2x2x128x128xbf16, #tpu.memory_space<vmem>>, vector<1x1x1x128x128xbf16>
    %90 = vector.shape_cast %89 : vector<1x1x1x128x128xbf16> to vector<128x128xbf16>
    %cst_112 = arith.constant dense<0.000000e+00> : vector<32x128xf32>
    %91 = tpu.matmul %88, %90, %cst_112 {dimension_numbers = #tpu.dot_dimension_numbers<[1], [0], [0], [1], [0, 0, 1, 1], [], []>} : vector<32x128xbf16>, vector<128x128xbf16>, vector<32x128xf32> -> vector<32x128xf32>
    %c1_113 = arith.constant 1 : index
    %c8_114 = arith.constant 8 : index
    %c0_115 = arith.constant 0 : index
    %92 = vector.load %arg8[%c1_113, %c8_114, %c0_115] : memref<6x24x128xbf16, #tpu.memory_space<vmem>>, vector<4x8x128xbf16>
    %93 = vector.shape_cast %92 : vector<4x8x128xbf16> to vector<32x128xbf16>
    %c2_116 = arith.constant 2 : index
    %c0_117 = arith.constant 0 : index
    %c1_118 = arith.constant 1 : index
    %c0_119 = arith.constant 0 : index
    %c0_120 = arith.constant 0 : index
    %94 = vector.load %arg5[%c2_116, %c0_117, %c1_118, %c0_119, %c0_120] : memref<4x2x2x128x128xbf16, #tpu.memory_space<vmem>>, vector<1x1x1x128x128xbf16>
    %95 = vector.shape_cast %94 : vector<1x1x1x128x128xbf16> to vector<128x128xbf16>
    %cst_121 = arith.constant dense<0.000000e+00> : vector<32x128xf32>
    %96 = tpu.matmul %93, %95, %cst_121 {dimension_numbers = #tpu.dot_dimension_numbers<[1], [0], [0], [1], [0, 0, 1, 1], [], []>} : vector<32x128xbf16>, vector<128x128xbf16>, vector<32x128xf32> -> vector<32x128xf32>
    %97 = arith.addf %91, %96 : vector<32x128xf32>
    %c2_122 = arith.constant 2 : index
    %c7_123 = arith.constant 7 : index
    %c0_124 = arith.constant 0 : index
    %98 = vector.load %arg8[%c2_122, %c7_123, %c0_124] : memref<6x24x128xbf16, #tpu.memory_space<vmem>>, vector<4x8x128xbf16>
    %99 = vector.shape_cast %98 : vector<4x8x128xbf16> to vector<32x128xbf16>
    %c2_125 = arith.constant 2 : index
    %c1_126 = arith.constant 1 : index
    %c0_127 = arith.constant 0 : index
    %c0_128 = arith.constant 0 : index
    %c0_129 = arith.constant 0 : index
    %100 = vector.load %arg5[%c2_125, %c1_126, %c0_127, %c0_128, %c0_129] : memref<4x2x2x128x128xbf16, #tpu.memory_space<vmem>>, vector<1x1x1x128x128xbf16>
    %101 = vector.shape_cast %100 : vector<1x1x1x128x128xbf16> to vector<128x128xbf16>
    %cst_130 = arith.constant dense<0.000000e+00> : vector<32x128xf32>
    %102 = tpu.matmul %99, %101, %cst_130 {dimension_numbers = #tpu.dot_dimension_numbers<[1], [0], [0], [1], [0, 0, 1, 1], [], []>} : vector<32x128xbf16>, vector<128x128xbf16>, vector<32x128xf32> -> vector<32x128xf32>
    %103 = arith.addf %97, %102 : vector<32x128xf32>
    %c2_131 = arith.constant 2 : index
    %c8_132 = arith.constant 8 : index
    %c0_133 = arith.constant 0 : index
    %104 = vector.load %arg8[%c2_131, %c8_132, %c0_133] : memref<6x24x128xbf16, #tpu.memory_space<vmem>>, vector<4x8x128xbf16>
    %105 = vector.shape_cast %104 : vector<4x8x128xbf16> to vector<32x128xbf16>
    %c2_134 = arith.constant 2 : index
    %c1_135 = arith.constant 1 : index
    %c1_136 = arith.constant 1 : index
    %c0_137 = arith.constant 0 : index
    %c0_138 = arith.constant 0 : index
    %106 = vector.load %arg5[%c2_134, %c1_135, %c1_136, %c0_137, %c0_138] : memref<4x2x2x128x128xbf16, #tpu.memory_space<vmem>>, vector<1x1x1x128x128xbf16>
    %107 = vector.shape_cast %106 : vector<1x1x1x128x128xbf16> to vector<128x128xbf16>
    %cst_139 = arith.constant dense<0.000000e+00> : vector<32x128xf32>
    %108 = tpu.matmul %105, %107, %cst_139 {dimension_numbers = #tpu.dot_dimension_numbers<[1], [0], [0], [1], [0, 0, 1, 1], [], []>} : vector<32x128xbf16>, vector<128x128xbf16>, vector<32x128xf32> -> vector<32x128xf32>
    %109 = arith.addf %103, %108 : vector<32x128xf32>
    %c0_140 = arith.constant 0 : index
    %c0_141 = arith.constant 0 : index
    %110 = vector.load %arg6[%c0_140, %c0_141] : memref<1x128xf32, #tpu.memory_space<vmem>>, vector<1x128xf32>
    %111 = vector.broadcast %110 : vector<1x128xf32> to vector<32x128xf32>
    %112 = arith.addf %109, %111 : vector<32x128xf32>
    %113 = vector.shape_cast %112 : vector<32x128xf32> to vector<4x8x128xf32>
    %c0_142 = arith.constant 0 : index
    %c0_143 = arith.constant 0 : index
    %c1_144 = arith.constant 1 : index
    %c0_145 = arith.constant 0 : index
    %c0_146 = arith.constant 0 : index
    %114 = vector.load %arg7[%c0_142, %c0_143, %c1_144, %c0_145, %c0_146] : memref<1x4x2x8x256xf32, #tpu.memory_space<vmem>>, vector<1x4x1x8x128xf32>
    %115 = vector.shape_cast %114 : vector<1x4x1x8x128xf32> to vector<4x8x128xf32>
    %116 = vector.shape_cast %113 : vector<4x8x128xf32> to vector<1x4x1x8x128xf32>
    tpu.vector_store %arg7[%c0_142, %c0_143, %c1_144, %c0_145, %c0_146], %116 {strides = array<i32>} : memref<1x4x2x8x256xf32, #tpu.memory_space<vmem>>, vector<1x4x1x8x128xf32>,
    %c1_147 = arith.constant 1 : index
    %c8_148 = arith.constant 8 : index
    %c0_149 = arith.constant 0 : index
    %117 = vector.load %arg8[%c1_147, %c8_148, %c0_149] : memref<6x24x128xbf16, #tpu.memory_space<vmem>>, vector<4x8x128xbf16>
    %118 = vector.shape_cast %117 : vector<4x8x128xbf16> to vector<32x128xbf16>
    %c3 = arith.constant 3 : index
    %c0_150 = arith.constant 0 : index
    %c0_151 = arith.constant 0 : index
    %c0_152 = arith.constant 0 : index
    %c0_153 = arith.constant 0 : index
    %119 = vector.load %arg5[%c3, %c0_150, %c0_151, %c0_152, %c0_153] : memref<4x2x2x128x128xbf16, #tpu.memory_space<vmem>>, vector<1x1x1x128x128xbf16>
    %120 = vector.shape_cast %119 : vector<1x1x1x128x128xbf16> to vector<128x128xbf16>
    %cst_154 = arith.constant dense<0.000000e+00> : vector<32x128xf32>
    %121 = tpu.matmul %118, %120, %cst_154 {dimension_numbers = #tpu.dot_dimension_numbers<[1], [0], [0], [1], [0, 0, 1, 1], [], []>} : vector<32x128xbf16>, vector<128x128xbf16>, vector<32x128xf32> -> vector<32x128xf32>
    %c1_155 = arith.constant 1 : index
    %c9_156 = arith.constant 9 : index
    %c0_157 = arith.constant 0 : index
    %122 = vector.load %arg8[%c1_155, %c9_156, %c0_157] : memref<6x24x128xbf16, #tpu.memory_space<vmem>>, vector<4x8x128xbf16>
    %123 = vector.shape_cast %122 : vector<4x8x128xbf16> to vector<32x128xbf16>
    %c3_158 = arith.constant 3 : index
    %c0_159 = arith.constant 0 : index
    %c1_160 = arith.constant 1 : index
    %c0_161 = arith.constant 0 : index
    %c0_162 = arith.constant 0 : index
    %124 = vector.load %arg5[%c3_158, %c0_159, %c1_160, %c0_161, %c0_162] : memref<4x2x2x128x128xbf16, #tpu.memory_space<vmem>>, vector<1x1x1x128x128xbf16>
    %125 = vector.shape_cast %124 : vector<1x1x1x128x128xbf16> to vector<128x128xbf16>
    %cst_163 = arith.constant dense<0.000000e+00> : vector<32x128xf32>
    %126 = tpu.matmul %123, %125, %cst_163 {dimension_numbers = #tpu.dot_dimension_numbers<[1], [0], [0], [1], [0, 0, 1, 1], [], []>} : vector<32x128xbf16>, vector<128x128xbf16>, vector<32x128xf32> -> vector<32x128xf32>
    %127 = arith.addf %121, %126 : vector<32x128xf32>
    %c2_164 = arith.constant 2 : index
    %c8_165 = arith.constant 8 : index
    %c0_166 = arith.constant 0 : index
    %128 = vector.load %arg8[%c2_164, %c8_165, %c0_166] : memref<6x24x128xbf16, #tpu.memory_space<vmem>>, vector<4x8x128xbf16>
    %129 = vector.shape_cast %128 : vector<4x8x128xbf16> to vector<32x128xbf16>
    %c3_167 = arith.constant 3 : index
    %c1_168 = arith.constant 1 : index
    %c0_169 = arith.constant 0 : index
    %c0_170 = arith.constant 0 : index
    %c0_171 = arith.constant 0 : index
    %130 = vector.load %arg5[%c3_167, %c1_168, %c0_169, %c0_170, %c0_171] : memref<4x2x2x128x128xbf16, #tpu.memory_space<vmem>>, vector<1x1x1x128x128xbf16>
    %131 = vector.shape_cast %130 : vector<1x1x1x128x128xbf16> to vector<128x128xbf16>
    %cst_172 = arith.constant dense<0.000000e+00> : vector<32x128xf32>
    %132 = tpu.matmul %129, %131, %cst_172 {dimension_numbers = #tpu.dot_dimension_numbers<[1], [0], [0], [1], [0, 0, 1, 1], [], []>} : vector<32x128xbf16>, vector<128x128xbf16>, vector<32x128xf32> -> vector<32x128xf32>
    %133 = arith.addf %127, %132 : vector<32x128xf32>
    %c2_173 = arith.constant 2 : index
    %c9_174 = arith.constant 9 : index
    %c0_175 = arith.constant 0 : index
    %134 = vector.load %arg8[%c2_173, %c9_174, %c0_175] : memref<6x24x128xbf16, #tpu.memory_space<vmem>>, vector<4x8x128xbf16>
    %135 = vector.shape_cast %134 : vector<4x8x128xbf16> to vector<32x128xbf16>
    %c3_176 = arith.constant 3 : index
    %c1_177 = arith.constant 1 : index
    %c1_178 = arith.constant 1 : index
    %c0_179 = arith.constant 0 : index
    %c0_180 = arith.constant 0 : index
    %136 = vector.load %arg5[%c3_176, %c1_177, %c1_178, %c0_179, %c0_180] : memref<4x2x2x128x128xbf16, #tpu.memory_space<vmem>>, vector<1x1x1x128x128xbf16>
    %137 = vector.shape_cast %136 : vector<1x1x1x128x128xbf16> to vector<128x128xbf16>
    %cst_181 = arith.constant dense<0.000000e+00> : vector<32x128xf32>
    %138 = tpu.matmul %135, %137, %cst_181 {dimension_numbers = #tpu.dot_dimension_numbers<[1], [0], [0], [1], [0, 0, 1, 1], [], []>} : vector<32x128xbf16>, vector<128x128xbf16>, vector<32x128xf32> -> vector<32x128xf32>
    %139 = arith.addf %133, %138 : vector<32x128xf32>
    %c0_182 = arith.constant 0 : index
    %c0_183 = arith.constant 0 : index
    %140 = vector.load %arg6[%c0_182, %c0_183] : memref<1x128xf32, #tpu.memory_space<vmem>>, vector<1x128xf32>
    %141 = vector.broadcast %140 : vector<1x128xf32> to vector<32x128xf32>
    %142 = arith.addf %139, %141 : vector<32x128xf32>
    %143 = vector.shape_cast %142 : vector<32x128xf32> to vector<4x8x128xf32>
    %c0_184 = arith.constant 0 : index
    %c0_185 = arith.constant 0 : index
    %c1_186 = arith.constant 1 : index
    %c0_187 = arith.constant 0 : index
    %c128_188 = arith.constant 128 : index
    %144 = vector.load %arg7[%c0_184, %c0_185, %c1_186, %c0_187, %c128_188] : memref<1x4x2x8x256xf32, #tpu.memory_space<vmem>>, vector<1x4x1x8x128xf32>
    %145 = vector.shape_cast %144 : vector<1x4x1x8x128xf32> to vector<4x8x128xf32>
    %146 = vector.shape_cast %143 : vector<4x8x128xf32> to vector<1x4x1x8x128xf32>
    tpu.vector_store %arg7[%c0_184, %c0_185, %c1_186, %c0_187, %c128_188], %146 {strides = array<i32>} : memref<1x4x2x8x256xf32, #tpu.memory_space<vmem>>, vector<1x4x1x8x128xf32>,
    return
  }
  func.func @transform_0(%arg0: i32, %arg1: i32) -> (i32, i32, i32, i32) {
    %c0_i32 = arith.constant 0 : i32
    %c0_i32_0 = arith.constant 0 : i32
    %c0_i32_1 = arith.constant 0 : i32
    return %arg0, %arg1, %c0_i32, %c0_i32_0 : i32, i32, i32, i32
  }
  func.func @transform_1(%arg0: i32, %arg1: i32) -> (i32, i32, i32, i32) {
    %c4_i32 = arith.constant 4 : i32
    %0 = arith.muli %arg1, %c4_i32 : i32
    %c1_i32 = arith.constant 1 : i32
    %1 = arith.subi %0, %c1_i32 : i32
    %c0_i32 = arith.constant 0 : i32
    %2 = arith.maxsi %1, %c0_i32 : i32
    %c0_i32_0 = arith.constant 0 : i32
    %c0_i32_1 = arith.constant 0 : i32
    %c0_i32_2 = arith.constant 0 : i32
    return %arg0, %2, %c0_i32_0, %c0_i32_1 : i32, i32, i32, i32
  }
  func.func @transform_2(%arg0: i32, %arg1: i32) -> (i32, i32, i32, i32) {
    %c4_i32 = arith.constant 4 : i32
    %0 = arith.muli %arg1, %c4_i32 : i32
    %c4_i32_0 = arith.constant 4 : i32
    %1 = arith.addi %0, %c4_i32_0 : i32
    %c7_i32 = arith.constant 7 : i32
    %2 = arith.minsi %1, %c7_i32 : i32
    %c0_i32 = arith.constant 0 : i32
    %c0_i32_1 = arith.constant 0 : i32
    %c0_i32_2 = arith.constant 0 : i32
    return %arg0, %2, %c0_i32, %c0_i32_1 : i32, i32, i32, i32
  }
  func.func @transform_3(%arg0: i32, %arg1: i32) -> (i32, i32, i32, i32, i32) {
    %c0_i32 = arith.constant 0 : i32
    %c0_i32_0 = arith.constant 0 : i32
    %c0_i32_1 = arith.constant 0 : i32
    %c0_i32_2 = arith.constant 0 : i32
    %c0_i32_3 = arith.constant 0 : i32
    %c0_i32_4 = arith.constant 0 : i32
    return %c0_i32, %c0_i32_0, %c0_i32_1, %c0_i32_2, %c0_i32_3 : i32, i32, i32, i32, i32
  }
  func.func @transform_4(%arg0: i32, %arg1: i32) -> (i32, i32) {
    %c0_i32 = arith.constant 0 : i32
    %c0_i32_0 = arith.constant 0 : i32
    %c0_i32_1 = arith.constant 0 : i32
    return %c0_i32, %c0_i32_0 : i32, i32
  }
  func.func @transform_5(%arg0: i32, %arg1: i32) -> (i32, i32, i32, i32, i32) {
    %c0_i32 = arith.constant 0 : i32
    %c0_i32_0 = arith.constant 0 : i32
    %c0_i32_1 = arith.constant 0 : i32
    %c0_i32_2 = arith.constant 0 : i32
    return %arg0, %arg1, %c0_i32, %c0_i32_0, %c0_i32_1 : i32, i32, i32, i32, i32
  }
}

</mosaic_0001>

<bundles_post_ra>
// kernel: squeeze.40
= control target key start
LH: loop header
LB: loop body
LE: loop exit
PB: predicated region body
PF: predicated region fallthrough
CT: control target
= control target key end

     0   :  { %s381_s10 = smov 118   ;;  %vm269_vm0 = vcmask 1031168   ;;  %s382_s11 = smov 122   ;;  %vm12_vm1 = vcmask 48128   ;;  %vm273_vm2 = vcmask 15360   ;;  %vm278_vm3 = vcmask 48144   ;;  %s687_s0 = inlined_call_operand.vmem [shape: f32[2,192], index: 0, kind: input, shape index: {}]   ;;  %s688_s1 = inlined_call_operand.vmem [shape: f32[2,32,6], index: 1, kind: output, shape index: {}]  }
   0x1   :  { %v283_v0 = vld [vmem:[%s687_s0 + $0x2] sm:$0x3]  ;;  %v9_v1 = vld [vmem:[%s687_s0] sm:$0x3]  ;;  %s380_s0 = smov 124   ;;  %s383_s12 = smov 112  }
   0x2   :  { %8 = vst [vmem:[#allocation0 + $0x8] sm:$0x3] %v283_v0  ;;  %10 = vst [vmem:[#allocation0] sm:$0x3] %v9_v1  ;;  %s384_s13 = smov 116   ;;  %s385_s14 = smov 2  }
   0x3   :  { %s386_s15 = smov 110   ;;  %s387_s16 = smov 106  }
   0x4   :  { %s388_s17 = smov 104   ;;  %s389_s18 = smov 100  }
   0x5   :  { %s390_s19 = smov 98   ;;  %s391_s20 = smov 94  }
   0x6   :  { %s392_s21 = smov 92   ;;  %s393_s22 = smov 88  }
   0x7   :  { %s394_s23 = smov 86   ;;  %s395_s24 = smov 82  }
   0x8   :  { %s396_s25 = smov 80   ;;  %s397_s26 = smov 76  }
   0x9   :  { %v17_v2 = vld [vmem:[#allocation0 + $0x8] sm:$0x3]   ;;  %v25_v4 = vld [vmem:[#allocation0] sm:$0x3]   ;;  %s398_s27 = smov 74   ;;  %s399_s28 = smov 70  }
   0xa   :  { %v34_v3 = vld [vmem:[#allocation0 + $0x8] sm:$0x3]   ;;  %18 = vrot.lane.b32.xlu0 %v17_v2, %s380_s0  ;;  %v266_v6 = vld [vmem:[#allocation0] sm:$0x3]   ;;  %s400_s29 = smov 68   ;;  %s401_s30 = smov 62  }
   0xb   :  { %35 = vrot.lane.b32.xlu1 %v34_v3, %s381_s10  ;;  %v51_v5 = vld [vmem:[#allocation0 + $0x8] sm:$0x3]   ;;  %v42_v8 = vld [vmem:[#allocation0] sm:$0x3]   ;;  %s402_s2 = smov 56   ;;  %s403_s3 = smov 50  }
   0xc   :  { %v268_v7 = vld [vmem:[#allocation0 + $0x8] sm:$0x3]   ;;  %v59_v10 = vld [vmem:[#allocation0] sm:$0x3]   ;;  %s404_s8 = smov 44   ;;  %s405_s9 = smov 38  }
   0xd   :  { %v270_v9 = vsel %vm269_vm0, %v268_v7, %v266_v6  ;;  %v68_v11 = vld [vmem:[#allocation0 + $0x8] sm:$0x3]   ;;  %v76_v12 = vld [vmem:[#allocation0] sm:$0x3]   ;;  %s406_s0 = smov 32   ;;  %s407_s10 = smov 26  }
   0xe   :  { %26 = vrot.lane.b32.xlu0 %v25_v4, %s382_s11  ;;  %v85_v13 = vld [vmem:[#allocation0 + $0x8] sm:$0x3]   ;;  %v93_v14 = vld [vmem:[#allocation0] sm:$0x3]   ;;  %s408_s11 = smov 20  }
   0xf   :  { %52 = vrot.lane.b32.xlu1 %v51_v5, %s383_s12  ;;  %v102_v15 = vld [vmem:[#allocation0 + $0x8] sm:$0x3]   ;;  %v110_v16 = vld [vmem:[#allocation0] sm:$0x3]   ;;  %s409_s12 = smov 14  }
  0x10   :  { %v119_v17 = vld [vmem:[#allocation0 + $0x8] sm:$0x3]   ;;  %v127_v18 = vld [vmem:[#allocation0] sm:$0x3]  }
  0x11   :  { %v136_v19 = vld [vmem:[#allocation0 + $0x8] sm:$0x3]   ;;  %v144_v20 = vld [vmem:[#allocation0] sm:$0x3]  }
  0x12   :  { %43 = vrot.lane.b32.xlu0 %v42_v8, %s384_s13  ;;  %v153_v21 = vld [vmem:[#allocation0 + $0x8] sm:$0x3]   ;;  %v161_v22 = vld [vmem:[#allocation0] sm:$0x3]   ;;  %s410_s13 = smov 8  }
  0x13   :  { %271 = vrot.lane.b32.xlu1 %v270_v9, %s385_s14  ;;  %v170_v23 = vld [vmem:[#allocation0 + $0x8] sm:$0x3]   ;;  %v178_v24 = vld [vmem:[#allocation0] sm:$0x3]  }
  0x14   :  { %v186_v25 = vld [vmem:[#allocation0] sm:$0x3]  }
  0x15   :  { %v194_v26 = vld [vmem:[#allocation0] sm:$0x3]  }
  0x16   :  { %60 = vrot.lane.b32.xlu0 %v59_v10, %s386_s15  ;;  %v202_v27 = vld [vmem:[#allocation0] sm:$0x3]  }
  0x17   :  { %69 = vrot.lane.b32.xlu1 %v68_v11, %s387_s16  ;;  %v210_v28 = vld [vmem:[#allocation0] sm:$0x3]  }
  0x18   :  { %v218_v29 = vld [vmem:[#allocation0] sm:$0x3]  }
  0x19   :  { %v11_v30 = vld [vmem:[#allocation0] sm:$0x3]  }
  0x1a   :  { %77 = vrot.lane.b32.xlu0 %v76_v12, %s388_s17  ;;  %13 = vst.msk [vmem:[%s688_s1] sm:$0x1] %vm12_vm1, %v11_v30   ;;  %284 = vst.msk [vmem:[%s688_s1 + $0x1f] sm:$0x2] %vm12_vm1, %v11_v30   ;;  %v226_v31 = vld [vmem:[#allocation0] sm:$0x3]  }
  0x1b   :  { %86 = vrot.lane.b32.xlu1 %v85_v13, %s389_s18  ;;  %v234_v32 = vld [vmem:[#allocation0] sm:$0x3]  }
  0x1c   :  { %v242_v33 = vld [vmem:[#allocation0] sm:$0x3]  }
  0x1d   :  { %v250_v34 = vld [vmem:[#allocation0] sm:$0x3]  }
  0x1e   :  { %94 = vrot.lane.b32.xlu0 %v93_v14, %s390_s19  ;;  %v258_v35 = vld [vmem:[#allocation0] sm:$0x3]  }
  0x1f   :  { %103 = vrot.lane.b32.xlu1 %v102_v15, %s391_s20 }
  0x22   :  { %111 = vrot.lane.b32.xlu0 %v110_v16, %s392_s21 }
  0x23   :  { %120 = vrot.lane.b32.xlu1 %v119_v17, %s393_s22 }
  0x26   :  { %128 = vrot.lane.b32.xlu0 %v127_v18, %s394_s23 }
  0x27   :  { %137 = vrot.lane.b32.xlu1 %v136_v19, %s395_s24 }
  0x2a   :  { %145 = vrot.lane.b32.xlu0 %v144_v20, %s396_s25 }
  0x2b   :  { %154 = vrot.lane.b32.xlu1 %v153_v21, %s397_s26 }
  0x2e   :  { %162 = vrot.lane.b32.xlu0 %v161_v22, %s398_s27 }
  0x2f   :  { %171 = vrot.lane.b32.xlu1 %v170_v23, %s399_s28 }
  0x32   :  { %179 = vrot.lane.b32.xlu0 %v178_v24, %s400_s29 }
  0x33   :  { %187 = vrot.lane.b32.xlu1 %v186_v25, %s401_s30 }
  0x36   :  { %195 = vrot.lane.b32.xlu0 %v194_v26, %s402_s2 }
  0x37   :  { %203 = vrot.lane.b32.xlu1 %v202_v27, %s403_s3 }
  0x3a   :  { %211 = vrot.lane.b32.xlu0 %v210_v28, %s404_s8 }
  0x3b   :  { %219 = vrot.lane.b32.xlu1 %v218_v29, %s405_s9 }
  0x3e   :  { %227 = vrot.lane.b32.xlu0 %v226_v31, %s406_s0 }
  0x3f   :  { %235 = vrot.lane.b32.xlu1 %v234_v32, %s407_s10 }
  0x42   :  { %243 = vrot.lane.b32.xlu0 %v242_v33, %s408_s11 }
  0x43   :  { %251 = vrot.lane.b32.xlu1 %v250_v34, %s409_s12 }
  0x46   :  { %259 = vrot.lane.b32.xlu0 %v258_v35, %s410_s13 }
  0x7c   :  { %v19_v36 = vpop.permute.xlu0 %18  }
  0x7d   :  { %v36_v37 = vpop.permute.xlu1 %35   ;;  %285 = vst.msk [vmem:[%s688_s1 + $0x16] sm:$0x1] %vm12_vm1, %v19_v36   ;;  %286 = vst.msk [vmem:[%s688_s1 + $0x35] sm:$0x2] %vm12_vm1, %v19_v36  }
  0x7e   :  { %289 = vst.msk [vmem:[%s688_s1 + $0x17] sm:$0x1] %vm12_vm1, %v36_v37   ;;  %290 = vst.msk [vmem:[%s688_s1 + $0x36] sm:$0x2] %vm12_vm1, %v36_v37  }
  0x80   :  { %v27_v38 = vpop.permute.xlu0 %26  }
  0x81   :  { %v53_v39 = vpop.permute.xlu1 %52   ;;  %287 = vst.msk [vmem:[%s688_s1 + $0x1] sm:$0x1] %vm12_vm1, %v27_v38   ;;  %288 = vst.msk [vmem:[%s688_s1 + $0x20] sm:$0x2] %vm12_vm1, %v27_v38  }
  0x82   :  { %293 = vst.msk [vmem:[%s688_s1 + $0x18] sm:$0x1] %vm12_vm1, %v53_v39   ;;  %294 = vst.msk [vmem:[%s688_s1 + $0x37] sm:$0x2] %vm12_vm1, %v53_v39  }
  0x84   :  { %v44_v40 = vpop.permute.xlu0 %43  }
  0x85   :  { %v272_v41 = vpop.permute.xlu1 %271   ;;  %291 = vst.msk [vmem:[%s688_s1 + $0x2] sm:$0x1] %vm12_vm1, %v44_v40   ;;  %292 = vst.msk [vmem:[%s688_s1 + $0x21] sm:$0x2] %vm12_vm1, %v44_v40  }
  0x86   :  { %345 = vst.msk [vmem:[%s688_s1 + $0x15] sm:$0x1] %vm273_vm2, %v272_v41   ;;  %346 = vst.msk [vmem:[%s688_s1 + $0x34] sm:$0x2] %vm273_vm2, %v272_v41  }
  0x87   :  { %347 = vst.msk [vmem:[%s688_s1 + $0x15] sm:$0x1] %vm278_vm3, %v272_v41   ;;  %348 = vst.msk [vmem:[%s688_s1 + $0x34] sm:$0x2] %vm278_vm3, %v272_v41  }
  0x88   :  { %v61_v42 = vpop.permute.xlu0 %60  }
  0x89   :  { %v70_v43 = vpop.permute.xlu1 %69   ;;  %295 = vst.msk [vmem:[%s688_s1 + $0x3] sm:$0x1] %vm12_vm1, %v61_v42   ;;  %296 = vst.msk [vmem:[%s688_s1 + $0x22] sm:$0x2] %vm12_vm1, %v61_v42  }
  0x8a   :  { %297 = vst.msk [vmem:[%s688_s1 + $0x19] sm:$0x1] %vm12_vm1, %v70_v43   ;;  %298 = vst.msk [vmem:[%s688_s1 + $0x38] sm:$0x2] %vm12_vm1, %v70_v43  }
  0x8c   :  { %v78_v44 = vpop.permute.xlu0 %77  }
  0x8d   :  { %v87_v45 = vpop.permute.xlu1 %86   ;;  %299 = vst.msk [vmem:[%s688_s1 + $0x4] sm:$0x1] %vm12_vm1, %v78_v44   ;;  %300 = vst.msk [vmem:[%s688_s1 + $0x23] sm:$0x2] %vm12_vm1, %v78_v44  }
  0x8e   :  { %301 = vst.msk [vmem:[%s688_s1 + $0x1a] sm:$0x1] %vm12_vm1, %v87_v45   ;;  %302 = vst.msk [vmem:[%s688_s1 + $0x39] sm:$0x2] %vm12_vm1, %v87_v45  }
  0x90   :  { %v95_v46 = vpop.permute.xlu0 %94  }
  0x91   :  { %v104_v47 = vpop.permute.xlu1 %103   ;;  %303 = vst.msk [vmem:[%s688_s1 + $0x5] sm:$0x1] %vm12_vm1, %v95_v46   ;;  %304 = vst.msk [vmem:[%s688_s1 + $0x24] sm:$0x2] %vm12_vm1, %v95_v46  }
  0x92   :  { %305 = vst.msk [vmem:[%s688_s1 + $0x1b] sm:$0x1] %vm12_vm1, %v104_v47   ;;  %306 = vst.msk [vmem:[%s688_s1 + $0x3a] sm:$0x2] %vm12_vm1, %v104_v47  }
  0x94   :  { %v112_v48 = vpop.permute.xlu0 %111  }
  0x95   :  { %v121_v49 = vpop.permute.xlu1 %120   ;;  %307 = vst.msk [vmem:[%s688_s1 + $0x6] sm:$0x1] %vm12_vm1, %v112_v48   ;;  %308 = vst.msk [vmem:[%s688_s1 + $0x25] sm:$0x2] %vm12_vm1, %v112_v48  }
  0x96   :  { %309 = vst.msk [vmem:[%s688_s1 + $0x1c] sm:$0x1] %vm12_vm1, %v121_v49   ;;  %310 = vst.msk [vmem:[%s688_s1 + $0x3b] sm:$0x2] %vm12_vm1, %v121_v49  }
  0x98   :  { %v129_v50 = vpop.permute.xlu0 %128  }
  0x99   :  { %v138_v51 = vpop.permute.xlu1 %137   ;;  %311 = vst.msk [vmem:[%s688_s1 + $0x7] sm:$0x1] %vm12_vm1, %v129_v50   ;;  %312 = vst.msk [vmem:[%s688_s1 + $0x26] sm:$0x2] %vm12_vm1, %v129_v50  }
  0x9a   :  { %313 = vst.msk [vmem:[%s688_s1 + $0x1d] sm:$0x1] %vm12_vm1, %v138_v51   ;;  %314 = vst.msk [vmem:[%s688_s1 + $0x3c] sm:$0x2] %vm12_vm1, %v138_v51  }
  0x9c   :  { %v146_v52 = vpop.permute.xlu0 %145  }
  0x9d   :  { %v155_v53 = vpop.permute.xlu1 %154   ;;  %315 = vst.msk [vmem:[%s688_s1 + $0x8] sm:$0x1] %vm12_vm1, %v146_v52   ;;  %316 = vst.msk [vmem:[%s688_s1 + $0x27] sm:$0x2] %vm12_vm1, %v146_v52  }
  0x9e   :  { %317 = vst.msk [vmem:[%s688_s1 + $0x1e] sm:$0x1] %vm12_vm1, %v155_v53   ;;  %318 = vst.msk [vmem:[%s688_s1 + $0x3d] sm:$0x2] %vm12_vm1, %v155_v53  }
  0xa0   :  { %v163_v54 = vpop.permute.xlu0 %162  }
  0xa1   :  { %v172_v55 = vpop.permute.xlu1 %171   ;;  %319 = vst.msk [vmem:[%s688_s1 + $0x9] sm:$0x1] %vm12_vm1, %v163_v54   ;;  %320 = vst.msk [vmem:[%s688_s1 + $0x28] sm:$0x2] %vm12_vm1, %v163_v54  }
  0xa2   :  { %321 = vst.msk [vmem:[%s688_s1 + $0x1f] sm:$0x1] %vm12_vm1, %v172_v55   ;;  %322 = vst.msk [vmem:[%s688_s1 + $0x3e] sm:$0x2] %vm12_vm1, %v172_v55  }
  0xa4   :  { %v180_v56 = vpop.permute.xlu0 %179  }
  0xa5   :  { %v188_v57 = vpop.permute.xlu1 %187   ;;  %323 = vst.msk [vmem:[%s688_s1 + $0xa] sm:$0x1] %vm12_vm1, %v180_v56   ;;  %324 = vst.msk [vmem:[%s688_s1 + $0x29] sm:$0x2] %vm12_vm1, %v180_v56  }
  0xa6   :  { %325 = vst.msk [vmem:[%s688_s1 + $0xb] sm:$0x1] %vm12_vm1, %v188_v57   ;;  %326 = vst.msk [vmem:[%s688_s1 + $0x2a] sm:$0x2] %vm12_vm1, %v188_v57  }
  0xa8   :  { %v196_v58 = vpop.permute.xlu0 %195  }
  0xa9   :  { %v204_v59 = vpop.permute.xlu1 %203   ;;  %327 = vst.msk [vmem:[%s688_s1 + $0xc] sm:$0x1] %vm12_vm1, %v196_v58   ;;  %328 = vst.msk [vmem:[%s688_s1 + $0x2b] sm:$0x2] %vm12_vm1, %v196_v58  }
  0xaa   :  { %329 = vst.msk [vmem:[%s688_s1 + $0xd] sm:$0x1] %vm12_vm1, %v204_v59   ;;  %330 = vst.msk [vmem:[%s688_s1 + $0x2c] sm:$0x2] %vm12_vm1, %v204_v59  }
  0xac   :  { %v212_v60 = vpop.permute.xlu0 %211  }
  0xad   :  { %v220_v61 = vpop.permute.xlu1 %219   ;;  %331 = vst.msk [vmem:[%s688_s1 + $0xe] sm:$0x1] %vm12_vm1, %v212_v60   ;;  %332 = vst.msk [vmem:[%s688_s1 + $0x2d] sm:$0x2] %vm12_vm1, %v212_v60  }
  0xae   :  { %333 = vst.msk [vmem:[%s688_s1 + $0xf] sm:$0x1] %vm12_vm1, %v220_v61   ;;  %334 = vst.msk [vmem:[%s688_s1 + $0x2e] sm:$0x2] %vm12_vm1, %v220_v61  }
  0xb0   :  { %v228_v62 = vpop.permute.xlu0 %227  }
  0xb1   :  { %v236_v63 = vpop.permute.xlu1 %235   ;;  %335 = vst.msk [vmem:[%s688_s1 + $0x10] sm:$0x1] %vm12_vm1, %v228_v62   ;;  %336 = vst.msk [vmem:[%s688_s1 + $0x2f] sm:$0x2] %vm12_vm1, %v228_v62  }
  0xb2   :  { %337 = vst.msk [vmem:[%s688_s1 + $0x11] sm:$0x1] %vm12_vm1, %v236_v63   ;;  %338 = vst.msk [vmem:[%s688_s1 + $0x30] sm:$0x2] %vm12_vm1, %v236_v63  }
  0xb4   :  { %v244_v0 = vpop.permute.xlu0 %243  }
  0xb5   :  { %v252_v1 = vpop.permute.xlu1 %251   ;;  %339 = vst.msk [vmem:[%s688_s1 + $0x12] sm:$0x1] %vm12_vm1, %v244_v0   ;;  %340 = vst.msk [vmem:[%s688_s1 + $0x31] sm:$0x2] %vm12_vm1, %v244_v0  }
  0xb6   :  { %341 = vst.msk [vmem:[%s688_s1 + $0x13] sm:$0x1] %vm12_vm1, %v252_v1   ;;  %342 = vst.msk [vmem:[%s688_s1 + $0x32] sm:$0x2] %vm12_vm1, %v252_v1  }
  0xb8   :  { %v260_v2 = vpop.permute.xlu0 %259  }
  0xb9   :  { %343 = vst.msk [vmem:[%s688_s1 + $0x14] sm:$0x1] %vm12_vm1, %v260_v2   ;;  %344 = vst.msk [vmem:[%s688_s1 + $0x33] sm:$0x2] %vm12_vm1, %v260_v2  }

// kernel: up_decoder_block_2d.5
= control target key start
LH: loop header
LB: loop body
LE: loop exit
PB: predicated region body
PF: predicated region fallthrough
CT: control target
= control target key end

     0   :  { %s450_s6 = smov 0   ;;  %s452_s7 = smov 0   ;;  %s516_s0 = inlined_call_operand.vmem [shape: f32[2,8,8,192], index: 0, kind: input, shape index: {}]   ;;  %s517_s1 = inlined_call_operand.vmem [shape: f32[2,2,192], index: 1, kind: output, shape index: {}]  }
   0x1   :  { %s454_s8 = smov 0   ;;  %s456_s9 = smov 0  }
   0x2   :  { %s458_s10 = smov 0  }
   0x3 LB: > { %s20_s11 = sadd.s32 1, %s428_s8  ;;  %s23_s12 = sadd.s32 1, %s432_s9  ;;  %s436_s10 = sphi %s458_s10, %s11_s10   ;;  %s432_s9 = sphi %s456_s9, %s521_s9   ;;  %s428_s8 = sphi %s454_s8, %s520_s8   ;;  %s424_s7 = sphi %s452_s7, %s519_s7   ;;  %s420_s6 = sphi %s450_s6, %s518_s6  }
   0x4   : > { %p21_p0 = scmp.ge.s32.totalorder %s20_s11, 2  ;;  %p343_p1 = scmp.ge.s32.totalorder %s436_s10, 1 }
   0x5   : > { %p107_p2 = scmp.lt.s32.totalorder %s436_s10, 5 }
   0x6   : > { %s523_s11 = smov (%p21_p0, %s20_s11), 0  ;;  %s525_s12 = smov (!%p21_p0, %s23_s12), %s432_s9 }
   0x7   : > { %p108_p3 = pnand %p343_p1, %p107_p2  ;;  %p25_p4 = scmp.ge.s32.totalorder %s525_s12, 2 }
   0x8   : > { %s344_s13 = sshll.u32 (!%p108_p3), %s420_s6, 2  ;;  %p133_p5 = scmp.lt.s32.totalorder (!%p108_p3), %s424_s7, 1 }
   0x9   : > { %s527_s12 = smov (%p25_p4, %s525_s12), 0  ;;  %111 = sbr.rel (%p108_p3) target bundleno = 58 (0x3a), region = 24 }
   0xa   : > { %p135_p6 = scmp.lt.s32.totalorder (!%p108_p3), %s344_s13, 7  ;;  %p350_p7 = scmp.ne.s32.totalorder (!%p108_p3), %s420_s6, 0 }
   0xe   : > { %s529_s7 = smov (!%p133_p5, %s424_s7), 1  ;;  %s531_s13 = smov (!%p135_p6, %s344_s13), 7 }
   0xf   : > { %s346_s14 = sshll.u32 %s529_s7, 4  ;;  %s355_s15 = sshll.u32 %s529_s7, 2 }
  0x10   : > { %s345_s16 = sshll.u32 %s531_s13, 1  ;;  %s483_s19 = scalar_lea.vmem %s517_s1, %s355_s15 }
  0x11   : > { %s139_s20 = sadd.s32 %s346_s14, %s345_s16  ;;  %151 = sbr.rel (%p350_p7) target bundleno = 25 (0x19), region = 28 }
  0x12   : > { %s347_s21 = sshll.u32 %s139_s20, 3 }
  0x13   : > { %s141_s24 = scalar_lea.vmem %s516_s0, %s347_s21 }
  0x16   : > { %vm152_vm0 = vcmask 1041408   ;;  %vm153_vm1 = vcmask 519170   ;;  %v438_v0 = vmov 0.0  }
  0x17   : > { %vm154_vm2 = vmor %vm153_vm1, %vm152_vm0 }
  0x18   : > { %155 = vst.msk [vmem:[%s483_s19] sm:$0xf] %vm154_vm2, %v438_v0 }
  0x19 PF: > { %v156_v1 = vld [vmem:[%s141_s24] sm:$0xff]  ;;  %v157_v2 = vld [vmem:[%s141_s24 + $0x8] sm:$0xff]  ;;  %v158_v3 = vld [vmem:[%s141_s24 + $0x10] sm:$0xff]  ;;  %vm173_vm3 = vcmask 523264   ;;  %v439_v41 = vmov 1966171168   ;;  %v224_v43 = vlaneseq }
  0x1a   : > { %v159_v4 = vld [vmem:[%s141_s24 + $0x18] sm:$0xff]  ;;  %v160_v5 = vld [vmem:[%s141_s24 + $0x20] sm:$0xff]  ;;  %v161_v6 = vld [vmem:[%s141_s24 + $0x28] sm:$0xff]  ;;  %v164_v7 = vadd.f32 %v158_v3, %v156_v1  ;;  %v174_v8 = vsel %vm173_vm3, %v157_v2, 0.0  ;;  %v187_v12 = vmul.f32 %v156_v1, %v156_v1  ;;  %v188_v17 = vmul.f32 %v157_v2, %v157_v2 }
  0x1b   : > { %v163_v9 = vld [vmem:[%s141_s24 + $0x38] sm:$0xff]  ;;  %v175_v10 = vsel %vm173_vm3, %v159_v4, 0.0  ;;  %v177_v11 = vsel %vm173_vm3, %v161_v6, 0.0  ;;  %v162_v13 = vld [vmem:[%s141_s24 + $0x30] sm:$0xff]  ;;  %v189_v18 = vmul.f32 %v158_v3, %v158_v3  ;;  %v190_v19 = vmul.f32 %v159_v4, %v159_v4 }
  0x1c   : > { %v165_v14 = vadd.f32 %v164_v7, %v160_v5  ;;  %v176_v15 = vadd.f32 %v175_v10, %v174_v8  ;;  %v179_v16 = vsel %vm173_vm3, %v163_v9, 0.0  ;;  %v191_v20 = vmul.f32 %v160_v5, %v160_v5 }
  0x1d   : > { %v192_v23 = vmul.f32 %v161_v6, %v161_v6  ;;  %v193_v24 = vmul.f32 %v162_v13, %v162_v13  ;;  %v194_v25 = vmul.f32 %v163_v9, %v163_v9  ;;  %v195_v26 = vadd.f32 %v189_v18, %v187_v12 }
  0x1e   : > { %v166_v21 = vadd.f32 %v165_v14, %v162_v13  ;;  %v178_v22 = vadd.f32 %v177_v11, %v176_v15  ;;  %v204_v27 = vsel %vm173_vm3, %v188_v17, 0.0  ;;  %v205_v30 = vsel %vm173_vm3, %v190_v19, 0.0 }
  0x1f   : > { %v207_v31 = vsel %vm173_vm3, %v192_v23, 0.0  ;;  %v196_v32 = vadd.f32 %v195_v26, %v191_v20  ;;  %v206_v33 = vadd.f32 %v205_v30, %v204_v27  ;;  %v209_v36 = vsel %vm173_vm3, %v194_v25, 0.0  ;;  %v217_v4 = vld [vmem:[%s483_s19] ss:$2 sm:$0x3] }
  0x20   : > { %v167_v28 = vrot.slane %v166_v21, 4  ;;  %v180_v29 = vadd.f32 %v179_v16, %v178_v22  ;;  %v222_v42 = vunpack.c.l.s4 %v439_v41  ;;  %v225_v53 = vshrl.u32 %v224_v43, 7  ;;  %v351_v10 = vld [vmem:[%s483_s19 + $0x1] ss:$2 sm:$0x3] }
  0x21   : > { %v197_v37 = vadd.f32 %v196_v32, %v193_v24  ;;  %v208_v38 = vadd.f32 %v207_v31, %v206_v33  ;;  %vm239_vm4 = vcmp.lt.s32.totalorder %v224_v43, 192 }
  0x22   : > { %v168_v34 = vadd.f32 %v167_v28, %v166_v21  ;;  %v181_v35 = vrot.slane %v180_v29, 4  ;;  %v223_v52 = vunpack.c.0.s8 %v222_v42 }
  0x23   : > { %v198_v44 = vrot.slane %v197_v37, 4  ;;  %v210_v45 = vadd.f32 %v209_v36, %v208_v38 }
  0x24   : > { %v169_v39 = vrot.slane %v168_v34, 2  ;;  %v182_v40 = vadd.f32 %v181_v35, %v180_v29  ;;  %v226_v61 = vsub.s32 %v223_v52, %v225_v53 }
  0x25   : > { %v199_v48 = vadd.f32 %v198_v44, %v197_v37  ;;  %v211_v49 = vrot.slane %v210_v45, 4 }
  0x26   : > { %v170_v46 = vadd.f32 %v169_v39, %v168_v34  ;;  %v183_v47 = vrot.slane %v182_v40, 2 }
  0x27   : > { %v200_v54 = vrot.slane %v199_v48, 2  ;;  %v212_v55 = vadd.f32 %v211_v49, %v210_v45 }
  0x28   : > { %v171_v50 = vrot.slane %v170_v46, 1  ;;  %v184_v51 = vadd.f32 %v183_v47, %v182_v40 }
  0x29   : > { %v201_v58 = vadd.f32 %v200_v54, %v199_v48  ;;  %v213_v59 = vrot.slane %v212_v55, 2 }
  0x2a   : > { %v172_v56 = vadd.f32 %v171_v50, %v170_v46  ;;  %v185_v57 = vrot.slane %v184_v51, 1 }
  0x2b   : > { %v202_v62 = vrot.slane %v201_v58, 1  ;;  %v214_v63 = vadd.f32 %v213_v59, %v212_v55 }
  0x2c   : > { %v186_v60 = vadd.f32 %v185_v57, %v184_v51 }
  0x2d   : > { %v203_v1 = vadd.f32 %v202_v62, %v201_v58  ;;  %v215_v2 = vrot.slane %v214_v63, 1 }
  0x2e   : > { %v220_v0 = vcombine.low %v172_v56, %v186_v60 }
  0x2f   : > { %v216_v5 = vadd.f32 %v215_v2, %v214_v63 }
  0x30   : > { %v227_v3 = vrot.slane %v220_v0, %v226_v61 }
  0x31   : > { %v246_v7 = vcombine.low %v203_v1, %v216_v5 }
  0x32   : > { %v234_v6 = vrot.slane %v227_v3, %v226_v61 }
  0x33   : > { %v253_v9 = vrot.slane %v246_v7, %v226_v61 }
  0x34   : > { %v236_v8 = vadd.f32 %v234_v6, %v217_v4 }
  0x35   : > { %v260_v11 = vrot.slane %v253_v9, %v226_v61 }
  0x36   : > { %241 = vst.msk [vmem:[%s483_s19] ss:$2 sm:$0x3] %vm239_vm4, %v236_v8 }
  0x37   : > { %v262_v12 = vadd.f32 %v351_v10, %v260_v11 }
  0x39   : > { %352 = vst.msk [vmem:[%s483_s19 + $0x1] ss:$2 sm:$0x3] %vm239_vm4, %v262_v12 }
  0x3a PF: > { %s11_s10 = sadd.s32 1, %s436_s10   ;;  %s518_s6 = smov %s428_s8 }
  0x3b   : > { %p8_p8 = scmp.ge.s32.totalorder %s11_s10, 6   ;;  %s519_s7 = smov %s432_s9 }
  0x3c   : > { %s520_s8 = smov %s523_s11  ;;  %s521_s9 = smov %s527_s12 }
  0x3d   :  { %10 = sbr.rel (!%p8_p8) target bundleno = 3 (0x3), region = 59 }

// kernel: squeeze.42
= control target key start
LH: loop header
LB: loop body
LE: loop exit
PB: predicated region body
PF: predicated region fallthrough
CT: control target
= control target key end

     0   :  { %s355_s8 = smov 116   ;;  %s356_s9 = smov 120   ;;  %vm8_vm0 = vcmask 31744   ;;  %s654_s0 = inlined_call_operand.vmem [shape: f32[2,128], index: 0, kind: input, shape index: {}]   ;;  %s655_s1 = inlined_call_operand.vmem [shape: f32[2,32,4], index: 1, kind: output, shape index: {}]  }
   0x1   :  { %v5_v0 = vld [vmem:[%s654_s0] sm:$0x3]  ;;  %s354_s0 = smov 124   ;;  %s357_s10 = smov 112  }
   0x2   :  { %6 = vst [vmem:[#allocation0] sm:$0x3] %v5_v0  ;;  %s358_s11 = smov 108   ;;  %s359_s12 = smov 104  }
   0x3   :  { %s360_s13 = smov 100   ;;  %s361_s14 = smov 96  }
   0x4   :  { %s362_s15 = smov 92   ;;  %s363_s16 = smov 88  }
   0x5   :  { %s364_s17 = smov 84   ;;  %s365_s18 = smov 80  }
   0x6   :  { %s366_s19 = smov 76   ;;  %s367_s20 = smov 72  }
   0x7   :  { %s368_s21 = smov 68   ;;  %s369_s22 = smov 64  }
   0x8   :  { %s370_s23 = smov 60   ;;  %s371_s24 = smov 56  }
   0x9   :  { %v12_v1 = vld [vmem:[#allocation0] sm:$0x3]   ;;  %s372_s25 = smov 52   ;;  %s373_s26 = smov 48  }
   0xa   :  { %v28_v2 = vld [vmem:[#allocation0] sm:$0x3]   ;;  %13 = vrot.lane.b32.xlu0 %v12_v1, %s354_s0  ;;  %s374_s27 = smov 44   ;;  %s375_s28 = smov 40  }
   0xb   :  { %29 = vrot.lane.b32.xlu1 %v28_v2, %s355_s8  ;;  %v20_v3 = vld [vmem:[#allocation0] sm:$0x3]   ;;  %s376_s29 = smov 36   ;;  %s377_s30 = smov 32  }
   0xc   :  { %v36_v4 = vld [vmem:[#allocation0] sm:$0x3]   ;;  %s378_s6 = smov 28   ;;  %s379_s7 = smov 24  }
   0xd   :  { %v44_v5 = vld [vmem:[#allocation0] sm:$0x3]   ;;  %s380_s0 = smov 20   ;;  %s381_s8 = smov 16  }
   0xe   :  { %21 = vrot.lane.b32.xlu0 %v20_v3, %s356_s9  ;;  %v52_v6 = vld [vmem:[#allocation0] sm:$0x3]   ;;  %s382_s9 = smov 12  }
   0xf   :  { %37 = vrot.lane.b32.xlu1 %v36_v4, %s357_s10  ;;  %v60_v7 = vld [vmem:[#allocation0] sm:$0x3]   ;;  %s383_s10 = smov 8  }
  0x10   :  { %v68_v8 = vld [vmem:[#allocation0] sm:$0x3]  }
  0x11   :  { %v76_v9 = vld [vmem:[#allocation0] sm:$0x3]  }
  0x12   :  { %45 = vrot.lane.b32.xlu0 %v44_v5, %s358_s11  ;;  %v84_v10 = vld [vmem:[#allocation0] sm:$0x3]   ;;  %s384_s11 = smov 4  }
  0x13   :  { %53 = vrot.lane.b32.xlu1 %v52_v6, %s359_s12  ;;  %v92_v11 = vld [vmem:[#allocation0] sm:$0x3]  }
  0x14   :  { %v100_v12 = vld [vmem:[#allocation0] sm:$0x3]  }
  0x15   :  { %v108_v13 = vld [vmem:[#allocation0] sm:$0x3]  }
  0x16   :  { %61 = vrot.lane.b32.xlu0 %v60_v7, %s360_s13  ;;  %v116_v14 = vld [vmem:[#allocation0] sm:$0x3]  }
  0x17   :  { %69 = vrot.lane.b32.xlu1 %v68_v8, %s361_s14  ;;  %v124_v15 = vld [vmem:[#allocation0] sm:$0x3]  }
  0x18   :  { %v132_v16 = vld [vmem:[#allocation0] sm:$0x3]  }
  0x19   :  { %v140_v17 = vld [vmem:[#allocation0] sm:$0x3]  }
  0x1a   :  { %77 = vrot.lane.b32.xlu0 %v76_v9, %s362_s15  ;;  %v148_v18 = vld [vmem:[#allocation0] sm:$0x3]  }
  0x1b   :  { %85 = vrot.lane.b32.xlu1 %v84_v10, %s363_s16  ;;  %v156_v19 = vld [vmem:[#allocation0] sm:$0x3]  }
  0x1c   :  { %v164_v20 = vld [vmem:[#allocation0] sm:$0x3]  }
  0x1d   :  { %v172_v21 = vld [vmem:[#allocation0] sm:$0x3]  }
  0x1e   :  { %93 = vrot.lane.b32.xlu0 %v92_v11, %s364_s17  ;;  %v180_v22 = vld [vmem:[#allocation0] sm:$0x3]  }
  0x1f   :  { %101 = vrot.lane.b32.xlu1 %v100_v12, %s365_s18  ;;  %v188_v23 = vld [vmem:[#allocation0] sm:$0x3]  }
  0x20   :  { %v196_v24 = vld [vmem:[#allocation0] sm:$0x3]  }
  0x21   :  { %v204_v25 = vld [vmem:[#allocation0] sm:$0x3]  }
  0x22   :  { %109 = vrot.lane.b32.xlu0 %v108_v13, %s366_s19  ;;  %v212_v26 = vld [vmem:[#allocation0] sm:$0x3]  }
  0x23   :  { %117 = vrot.lane.b32.xlu1 %v116_v14, %s367_s20  ;;  %v7_v27 = vld [vmem:[#allocation0] sm:$0x3]  }
  0x24   :  { %9 = vst.msk [vmem:[%s655_s1] sm:$0x1] %vm8_vm0, %v7_v27   ;;  %260 = vst.msk [vmem:[%s655_s1 + $0x1f] sm:$0x2] %vm8_vm0, %v7_v27   ;;  %v220_v28 = vld [vmem:[#allocation0] sm:$0x3]  }
  0x25   :  { %v228_v29 = vld [vmem:[#allocation0] sm:$0x3]  }
  0x26   :  { %125 = vrot.lane.b32.xlu0 %v124_v15, %s368_s21  ;;  %v236_v30 = vld [vmem:[#allocation0] sm:$0x3]  }
  0x27   :  { %133 = vrot.lane.b32.xlu1 %v132_v16, %s369_s22  ;;  %v244_v31 = vld [vmem:[#allocation0] sm:$0x3]  }
  0x28   :  { %v252_v32 = vld [vmem:[#allocation0] sm:$0x3]  }
  0x2a   :  { %141 = vrot.lane.b32.xlu0 %v140_v17, %s370_s23 }
  0x2b   :  { %149 = vrot.lane.b32.xlu1 %v148_v18, %s371_s24 }
  0x2e   :  { %157 = vrot.lane.b32.xlu0 %v156_v19, %s372_s25 }
  0x2f   :  { %165 = vrot.lane.b32.xlu1 %v164_v20, %s373_s26 }
  0x32   :  { %173 = vrot.lane.b32.xlu0 %v172_v21, %s374_s27 }
  0x33   :  { %181 = vrot.lane.b32.xlu1 %v180_v22, %s375_s28 }
  0x36   :  { %189 = vrot.lane.b32.xlu0 %v188_v23, %s376_s29 }
  0x37   :  { %197 = vrot.lane.b32.xlu1 %v196_v24, %s377_s30 }
  0x3a   :  { %205 = vrot.lane.b32.xlu0 %v204_v25, %s378_s6 }
  0x3b   :  { %213 = vrot.lane.b32.xlu1 %v212_v26, %s379_s7 }
  0x3e   :  { %221 = vrot.lane.b32.xlu0 %v220_v28, %s380_s0 }
  0x3f   :  { %229 = vrot.lane.b32.xlu1 %v228_v29, %s381_s8 }
  0x42   :  { %237 = vrot.lane.b32.xlu0 %v236_v30, %s382_s9 }
  0x43   :  { %245 = vrot.lane.b32.xlu1 %v244_v31, %s383_s10 }
  0x46   :  { %253 = vrot.lane.b32.xlu0 %v252_v32, %s384_s11 }
  0x7c   :  { %v14_v33 = vpop.permute.xlu0 %13  }
  0x7d   :  { %v30_v34 = vpop.permute.xlu1 %29   ;;  %261 = vst.msk [vmem:[%s655_s1 + $0x1] sm:$0x1] %vm8_vm0, %v14_v33   ;;  %262 = vst.msk [vmem:[%s655_s1 + $0x20] sm:$0x2] %vm8_vm0, %v14_v33  }
  0x7e   :  { %265 = vst.msk [vmem:[%s655_s1 + $0x3] sm:$0x1] %vm8_vm0, %v30_v34   ;;  %266 = vst.msk [vmem:[%s655_s1 + $0x22] sm:$0x2] %vm8_vm0, %v30_v34  }
  0x80   :  { %v22_v35 = vpop.permute.xlu0 %21  }
  0x81   :  { %v38_v36 = vpop.permute.xlu1 %37   ;;  %263 = vst.msk [vmem:[%s655_s1 + $0x2] sm:$0x1] %vm8_vm0, %v22_v35   ;;  %264 = vst.msk [vmem:[%s655_s1 + $0x21] sm:$0x2] %vm8_vm0, %v22_v35  }
  0x82   :  { %267 = vst.msk [vmem:[%s655_s1 + $0x4] sm:$0x1] %vm8_vm0, %v38_v36   ;;  %268 = vst.msk [vmem:[%s655_s1 + $0x23] sm:$0x2] %vm8_vm0, %v38_v36  }
  0x84   :  { %v46_v37 = vpop.permute.xlu0 %45  }
  0x85   :  { %v54_v38 = vpop.permute.xlu1 %53   ;;  %269 = vst.msk [vmem:[%s655_s1 + $0x5] sm:$0x1] %vm8_vm0, %v46_v37   ;;  %270 = vst.msk [vmem:[%s655_s1 + $0x24] sm:$0x2] %vm8_vm0, %v46_v37  }
  0x86   :  { %271 = vst.msk [vmem:[%s655_s1 + $0x6] sm:$0x1] %vm8_vm0, %v54_v38   ;;  %272 = vst.msk [vmem:[%s655_s1 + $0x25] sm:$0x2] %vm8_vm0, %v54_v38  }
  0x88   :  { %v62_v39 = vpop.permute.xlu0 %61  }
  0x89   :  { %v70_v40 = vpop.permute.xlu1 %69   ;;  %273 = vst.msk [vmem:[%s655_s1 + $0x7] sm:$0x1] %vm8_vm0, %v62_v39   ;;  %274 = vst.msk [vmem:[%s655_s1 + $0x26] sm:$0x2] %vm8_vm0, %v62_v39  }
  0x8a   :  { %275 = vst.msk [vmem:[%s655_s1 + $0x8] sm:$0x1] %vm8_vm0, %v70_v40   ;;  %276 = vst.msk [vmem:[%s655_s1 + $0x27] sm:$0x2] %vm8_vm0, %v70_v40  }
  0x8c   :  { %v78_v41 = vpop.permute.xlu0 %77  }
  0x8d   :  { %v86_v42 = vpop.permute.xlu1 %85   ;;  %277 = vst.msk [vmem:[%s655_s1 + $0x9] sm:$0x1] %vm8_vm0, %v78_v41   ;;  %278 = vst.msk [vmem:[%s655_s1 + $0x28] sm:$0x2] %vm8_vm0, %v78_v41  }
  0x8e   :  { %279 = vst.msk [vmem:[%s655_s1 + $0xa] sm:$0x1] %vm8_vm0, %v86_v42   ;;  %280 = vst.msk [vmem:[%s655_s1 + $0x29] sm:$0x2] %vm8_vm0, %v86_v42  }
  0x90   :  { %v94_v43 = vpop.permute.xlu0 %93  }
  0x91   :  { %v102_v44 = vpop.permute.xlu1 %101   ;;  %281 = vst.msk [vmem:[%s655_s1 + $0xb] sm:$0x1] %vm8_vm0, %v94_v43   ;;  %282 = vst.msk [vmem:[%s655_s1 + $0x2a] sm:$0x2] %vm8_vm0, %v94_v43  }
  0x92   :  { %283 = vst.msk [vmem:[%s655_s1 + $0xc] sm:$0x1] %vm8_vm0, %v102_v44   ;;  %284 = vst.msk [vmem:[%s655_s1 + $0x2b] sm:$0x2] %vm8_vm0, %v102_v44  }
  0x94   :  { %v110_v45 = vpop.permute.xlu0 %109  }
  0x95   :  { %v118_v46 = vpop.permute.xlu1 %117   ;;  %285 = vst.msk [vmem:[%s655_s1 + $0xd] sm:$0x1] %vm8_vm0, %v110_v45   ;;  %286 = vst.msk [vmem:[%s655_s1 + $0x2c] sm:$0x2] %vm8_vm0, %v110_v45  }
  0x96   :  { %287 = vst.msk [vmem:[%s655_s1 + $0xe] sm:$0x1] %vm8_vm0, %v118_v46   ;;  %288 = vst.msk [vmem:[%s655_s1 + $0x2d] sm:$0x2] %vm8_vm0, %v118_v46  }
  0x98   :  { %v126_v47 = vpop.permute.xlu0 %125  }
  0x99   :  { %v134_v48 = vpop.permute.xlu1 %133   ;;  %289 = vst.msk [vmem:[%s655_s1 + $0xf] sm:$0x1] %vm8_vm0, %v126_v47   ;;  %290 = vst.msk [vmem:[%s655_s1 + $0x2e] sm:$0x2] %vm8_vm0, %v126_v47  }
  0x9a   :  { %291 = vst.msk [vmem:[%s655_s1 + $0x10] sm:$0x1] %vm8_vm0, %v134_v48   ;;  %292 = vst.msk [vmem:[%s655_s1 + $0x2f] sm:$0x2] %vm8_vm0, %v134_v48  }
  0x9c   :  { %v142_v49 = vpop.permute.xlu0 %141  }
  0x9d   :  { %v150_v50 = vpop.permute.xlu1 %149   ;;  %293 = vst.msk [vmem:[%s655_s1 + $0x11] sm:$0x1] %vm8_vm0, %v142_v49   ;;  %294 = vst.msk [vmem:[%s655_s1 + $0x30] sm:$0x2] %vm8_vm0, %v142_v49  }
  0x9e   :  { %295 = vst.msk [vmem:[%s655_s1 + $0x12] sm:$0x1] %vm8_vm0, %v150_v50   ;;  %296 = vst.msk [vmem:[%s655_s1 + $0x31] sm:$0x2] %vm8_vm0, %v150_v50  }
  0xa0   :  { %v158_v51 = vpop.permute.xlu0 %157  }
  0xa1   :  { %v166_v52 = vpop.permute.xlu1 %165   ;;  %297 = vst.msk [vmem:[%s655_s1 + $0x13] sm:$0x1] %vm8_vm0, %v158_v51   ;;  %298 = vst.msk [vmem:[%s655_s1 + $0x32] sm:$0x2] %vm8_vm0, %v158_v51  }
  0xa2   :  { %299 = vst.msk [vmem:[%s655_s1 + $0x14] sm:$0x1] %vm8_vm0, %v166_v52   ;;  %300 = vst.msk [vmem:[%s655_s1 + $0x33] sm:$0x2] %vm8_vm0, %v166_v52  }
  0xa4   :  { %v174_v53 = vpop.permute.xlu0 %173  }
  0xa5   :  { %v182_v54 = vpop.permute.xlu1 %181   ;;  %301 = vst.msk [vmem:[%s655_s1 + $0x15] sm:$0x1] %vm8_vm0, %v174_v53   ;;  %302 = vst.msk [vmem:[%s655_s1 + $0x34] sm:$0x2] %vm8_vm0, %v174_v53  }
  0xa6   :  { %303 = vst.msk [vmem:[%s655_s1 + $0x16] sm:$0x1] %vm8_vm0, %v182_v54   ;;  %304 = vst.msk [vmem:[%s655_s1 + $0x35] sm:$0x2] %vm8_vm0, %v182_v54  }
  0xa8   :  { %v190_v55 = vpop.permute.xlu0 %189  }
  0xa9   :  { %v198_v56 = vpop.permute.xlu1 %197   ;;  %305 = vst.msk [vmem:[%s655_s1 + $0x17] sm:$0x1] %vm8_vm0, %v190_v55   ;;  %306 = vst.msk [vmem:[%s655_s1 + $0x36] sm:$0x2] %vm8_vm0, %v190_v55  }
  0xaa   :  { %307 = vst.msk [vmem:[%s655_s1 + $0x18] sm:$0x1] %vm8_vm0, %v198_v56   ;;  %308 = vst.msk [vmem:[%s655_s1 + $0x37] sm:$0x2] %vm8_vm0, %v198_v56  }
  0xac   :  { %v206_v57 = vpop.permute.xlu0 %205  }
  0xad   :  { %v214_v58 = vpop.permute.xlu1 %213   ;;  %309 = vst.msk [vmem:[%s655_s1 + $0x19] sm:$0x1] %vm8_vm0, %v206_v57   ;;  %310 = vst.msk [vmem:[%s655_s1 + $0x38] sm:$0x2] %vm8_vm0, %v206_v57  }
  0xae   :  { %311 = vst.msk [vmem:[%s655_s1 + $0x1a] sm:$0x1] %vm8_vm0, %v214_v58   ;;  %312 = vst.msk [vmem:[%s655_s1 + $0x39] sm:$0x2] %vm8_vm0, %v214_v58  }
  0xb0   :  { %v222_v59 = vpop.permute.xlu0 %221  }
  0xb1   :  { %v230_v60 = vpop.permute.xlu1 %229   ;;  %313 = vst.msk [vmem:[%s655_s1 + $0x1b] sm:$0x1] %vm8_vm0, %v222_v59   ;;  %314 = vst.msk [vmem:[%s655_s1 + $0x3a] sm:$0x2] %vm8_vm0, %v222_v59  }
  0xb2   :  { %315 = vst.msk [vmem:[%s655_s1 + $0x1c] sm:$0x1] %vm8_vm0, %v230_v60   ;;  %316 = vst.msk [vmem:[%s655_s1 + $0x3b] sm:$0x2] %vm8_vm0, %v230_v60  }
  0xb4   :  { %v238_v61 = vpop.permute.xlu0 %237  }
  0xb5   :  { %v246_v62 = vpop.permute.xlu1 %245   ;;  %317 = vst.msk [vmem:[%s655_s1 + $0x1d] sm:$0x1] %vm8_vm0, %v238_v61   ;;  %318 = vst.msk [vmem:[%s655_s1 + $0x3c] sm:$0x2] %vm8_vm0, %v238_v61  }
  0xb6   :  { %319 = vst.msk [vmem:[%s655_s1 + $0x1e] sm:$0x1] %vm8_vm0, %v246_v62   ;;  %320 = vst.msk [vmem:[%s655_s1 + $0x3d] sm:$0x2] %vm8_vm0, %v246_v62  }
  0xb8   :  { %v254_v63 = vpop.permute.xlu0 %253  }
  0xb9   :  { %321 = vst.msk [vmem:[%s655_s1 + $0x1f] sm:$0x1] %vm8_vm0, %v254_v63   ;;  %322 = vst.msk [vmem:[%s655_s1 + $0x3e] sm:$0x2] %vm8_vm0, %v254_v63  }

// kernel: up_decoder_block_2d.7
= control target key start
LH: loop header
LB: loop body
LE: loop exit
PB: predicated region body
PF: predicated region fallthrough
CT: control target
= control target key end

     0   :  { %s367_s6 = smov 0   ;;  %s369_s7 = smov 0   ;;  %s425_s0 = inlined_call_operand.vmem [shape: bf16[2,8,8,128], index: 0, kind: input, shape index: {}]   ;;  %s426_s1 = inlined_call_operand.vmem [shape: f32[2,2,128], index: 1, kind: output, shape index: {}]  }
   0x1   :  { %s371_s8 = smov 0   ;;  %s373_s9 = smov 0  }
   0x2   :  { %s375_s10 = smov 0  }
   0x3 LB: > { %s20_s11 = sadd.s32 1, %s346_s8  ;;  %s23_s12 = sadd.s32 1, %s350_s9  ;;  %s354_s10 = sphi %s375_s10, %s11_s10   ;;  %s350_s9 = sphi %s373_s9, %s430_s9   ;;  %s346_s8 = sphi %s371_s8, %s429_s8   ;;  %s342_s7 = sphi %s369_s7, %s428_s7   ;;  %s338_s6 = sphi %s367_s6, %s427_s6  }
   0x4   : > { %p21_p0 = scmp.ge.s32.totalorder %s20_s11, 2  ;;  %p258_p1 = scmp.ge.s32.totalorder %s354_s10, 1 }
   0x5   : > { %p106_p2 = scmp.lt.s32.totalorder %s354_s10, 5 }
   0x6   : > { %s432_s11 = smov (%p21_p0, %s20_s11), 0  ;;  %s434_s12 = smov (!%p21_p0, %s23_s12), %s350_s9 }
   0x7   : > { %p107_p3 = pnand %p258_p1, %p106_p2  ;;  %p25_p4 = scmp.ge.s32.totalorder %s434_s12, 2 }
   0x8   : > { %s259_s13 = sshll.u32 (!%p107_p3), %s338_s6, 2  ;;  %p130_p5 = scmp.lt.s32.totalorder (!%p107_p3), %s342_s7, 1 }
   0x9   : > { %s436_s12 = smov (%p25_p4, %s434_s12), 0  ;;  %110 = sbr.rel (%p107_p3) target bundleno = 50 (0x32), region = 24 }
   0xa   : > { %p132_p6 = scmp.lt.s32.totalorder (!%p107_p3), %s259_s13, 7  ;;  %p263_p7 = scmp.ne.s32.totalorder (!%p107_p3), %s338_s6, 0 }
   0xe   : > { %s438_s7 = smov (!%p130_p5, %s342_s7), 1  ;;  %s440_s13 = smov (!%p132_p6, %s259_s13), 7 }
   0xf   : > { %s260_s14 = sshll.u32 %s438_s7, 3  ;;  %s262_s15 = sshll.u32 %s438_s7, 1 }
  0x10   : > { %s135_s16 = sadd.s32 %s260_s14, %s440_s13  ;;  %s400_s19 = scalar_lea.vmem %s426_s1, %s262_s15 }
  0x11   : > { %s261_s20 = sshll.u32 %s135_s16, 2  ;;  %146 = sbr.rel (%p263_p7) target bundleno = 24 (0x18), region = 28 }
  0x12   : > { %s137_s23 = scalar_lea.vmem %s425_s0, %s261_s20 }
  0x16   : > { %v356_v0 = vmov 0.0  }
  0x17   : > { %147 = vst [vmem:[%s400_s19] sm:$0x3] %v356_v0 }
  0x18 PF: > { %v267_v1 = vld [vmem:[%s137_s23] sm:$0xff]   ;;  %v274_v2 = vld [vmem:[%s137_s23 + $0x8] sm:$0xff]  }
  0x19   : > { %v268_v3 = vunpack.c.l.bf16 %v267_v1  ;;  %v269_v4 = vunpack.c.h.bf16 %v267_v1  ;;  %v272_v5 = vunpack.c.l.bf16 %v274_v2  ;;  %v273_v6 = vunpack.c.h.bf16 %v274_v2 }
  0x1b   : > { %v156_v7 = vadd.f32 %v269_v4, %v268_v3  ;;  %v165_v8 = vmul.f32 %v268_v3, %v268_v3  ;;  %v166_v9 = vmul.f32 %v269_v4, %v269_v4  ;;  %v167_v10 = vmul.f32 %v272_v5, %v272_v5 }
  0x1c   : > { %v168_v12 = vmul.f32 %v273_v6, %v273_v6 }
  0x1d   : > { %v157_v11 = vadd.f32 %v272_v5, %v156_v7  ;;  %v169_v13 = vadd.f32 %v166_v9, %v165_v8 }
  0x1e   : > { %v178_v26 = vld [vmem:[%s400_s19] sm:$0x1]  ;;  %v181_v29 = vld [vmem:[%s400_s19 + $0x1] sm:$0x1] }
  0x1f   : > { %v158_v14 = vadd.f32 %v273_v6, %v157_v11  ;;  %v170_v15 = vadd.f32 %v169_v13, %v167_v10 }
  0x21   : > { %v159_v16 = vrot.slane %v158_v14, 4  ;;  %v171_v17 = vadd.f32 %v170_v15, %v168_v12 }
  0x23   : > { %v160_v18 = vadd.f32 %v159_v16, %v158_v14  ;;  %v172_v19 = vrot.slane %v171_v17, 4 }
  0x25   : > { %v161_v20 = vrot.slane %v160_v18, 2  ;;  %v173_v21 = vadd.f32 %v172_v19, %v171_v17 }
  0x27   : > { %v162_v22 = vadd.f32 %v161_v20, %v160_v18  ;;  %v174_v23 = vrot.slane %v173_v21, 2 }
  0x29   : > { %v163_v24 = vrot.slane %v162_v22, 1  ;;  %v175_v25 = vadd.f32 %v174_v23, %v173_v21 }
  0x2b   : > { %v164_v27 = vadd.f32 %v163_v24, %v162_v22  ;;  %v176_v28 = vrot.slane %v175_v25, 1 }
  0x2d   : > { %v179_v30 = vadd.f32 %v178_v26, %v164_v27  ;;  %v177_v31 = vadd.f32 %v176_v28, %v175_v25 }
  0x2f   : > { %180 = vst [vmem:[%s400_s19] sm:$0x1] %v179_v30  ;;  %v182_v32 = vadd.f32 %v181_v29, %v177_v31 }
  0x31   : > { %183 = vst [vmem:[%s400_s19 + $0x1] sm:$0x1] %v182_v32 }
  0x32 PF: > { %s11_s10 = sadd.s32 1, %s354_s10   ;;  %s427_s6 = smov %s346_s8 }
  0x33   : > { %p8_p8 = scmp.ge.s32.totalorder %s11_s10, 6   ;;  %s428_s7 = smov %s350_s9 }
  0x34   : > { %s429_s8 = smov %s432_s11  ;;  %s430_s9 = smov %s436_s12 }
  0x35   :  { %10 = sbr.rel (!%p8_p8) target bundleno = 3 (0x3), region = 58 }

// kernel: up_decoder_block_2d.6
= control target key start
LH: loop header
LB: loop body
LE: loop exit
PB: predicated region body
PF: predicated region fallthrough
CT: control target
= control target key end

     0   :  { %s3608_s24 = smov 0   ;;  %s3610_s25 = smov 0   ;;  %s4554_s0 = inlined_call_operand.vmem [shape: f32[2,8,8,192], index: 0, kind: input, shape index: {}, may-alias: {0,1,2}]   ;;  %s4555_s1 = inlined_call_operand.vmem [shape: f32[2,8,8,192], index: 1, kind: input, shape index: {}, may-alias: {0,1,2}]   ;;  %s4556_s2 = inlined_call_operand.vmem [shape: f32[2,8,8,192], index: 2, kind: input, shape index: {}, may-alias: {0,1,2}]   ;;  %s4557_s3 = inlined_call_operand.vmem [shape: f32[2,1,192], index: 3, kind: input, shape index: {}]   ;;  %s4558_s4 = inlined_call_operand.vmem [shape: f32[2,1,192], index: 4, kind: input, shape index: {}]   ;;  %s4559_s5 = inlined_call_operand.vmem [shape: bf16[9,192,128], index: 5, kind: input, shape index: {}]   ;;  %s4560_s6 = inlined_call_operand.vmem [shape: f32[1,128], index: 6, kind: input, shape index: {}]   ;;  %s4561_s7 = inlined_call_operand.vmem [shape: bf16[2,8,8,128], index: 7, kind: output, shape index: {}]  }
   0x1   :  { %4562 = sst [smem:[#allocation5_spill]] %s4554_s0  ;;  %s3612_s26 = smov 0  }
   0x2   :  { %s3614_s27 = smov 0   ;;  %s3616_s28 = smov 0  }
   0x3 LB: > { %s26_s29 = sadd.s32 1, %s3557_s26  ;;  %s29_s30 = sadd.s32 1, %s3561_s27  ;;  %s3565_s28 = sphi %s3616_s28, %s17_s28   ;;  %s3561_s27 = sphi %s3614_s27, %s4586_s27   ;;  %s3557_s26 = sphi %s3612_s26, %s4585_s26   ;;  %s3553_s25 = sphi %s3610_s25, %s4584_s25   ;;  %s3549_s24 = sphi %s3608_s24, %s4583_s24  }
   0x4   : > { %p27_p0 = scmp.ge.s32.totalorder %s26_s29, 2  ;;  %p2871_p1 = scmp.ge.s32.totalorder %s3565_s28, 1 }
   0x5   : > { %p341_p2 = scmp.lt.s32.totalorder %s3565_s28, 5 }
   0x6   : > { %s4588_s29 = smov (%p27_p0, %s26_s29), 0  ;;  %s4590_s30 = smov (!%p27_p0, %s29_s30), %s3561_s27 }
   0x7   : > { %4563 = sst [smem:[#allocation3_spill]] %s4588_s29  ;;  %p342_p3 = pnand %p2871_p1, %p341_p2 }
   0x8   : > { %p31_p4 = scmp.ge.s32.totalorder %s4590_s30, 2  ;;  %s3649_s12 = sshll.u32 (!%p342_p3), %s3549_s24, 2 }
   0x9   : > { %345 = sbr.rel (%p342_p3) target bundleno = 486 (0x1e6), region = 48  ;;  %p417_p5 = scmp.lt.s32.totalorder (!%p342_p3), %s3553_s25, 1 }
   0xa   : > { %s4592_s30 = smov (%p31_p4, %s4590_s30), 0  ;;  %p419_p6 = scmp.lt.s32.totalorder (!%p342_p3), %s3649_s12, 7 }
   0xb   : > { %4564 = sst [smem:[#allocation4_spill]] %s4592_s30  ;;  %s2877_s9 = sadd.s32 (!%p342_p3), 4294967295, %s3649_s12 }
   0xc   : > { %p429_p7 = scmp.gt.s32.totalorder (!%p342_p3), %s2877_s9, 0  ;;  %p2878_p8 = scmp.lt.s32.totalorder (!%p342_p3), %s2877_s9, 7 }
   0xd   : > { %s445_s16 = sadd.s32 (!%p342_p3), 4, %s3649_s12  ;;  %s4565_s0 = sld [smem:[#allocation5_spill]] (!%p342_p3) }
   0xe   : > { %v3367_v0 = vld [vmem:[%s4559_s5 + $0x98] sm:$0xff]   ;;  %v3567_v1 = vmov 0   ;;  %v3368_v2 = vld [vmem:[%s4559_s5 + $0x90] sm:$0xff]   ;;  %s4594_s25 = smov (!%p417_p5, %s3553_s25), 1  ;;  %v3370_v5 = vld [vmem:[%s4559_s5 + $0x88] sm:$0xff]   ;;  %s4596_s9 = smov (!%p429_p7, %s2877_s9), 0  ;;  %v541_v11 = vlaneseq }
   0xf   : > { %979 = vmatprep.subr.bf16.mxu0 %v3567_v1  ;;  %1120 = vmatprep.subr.bf16.mxu1 %v3567_v1  ;;  %v3369_v3 = vld [vmem:[%s4559_s5 + $0x38] sm:$0xff]   ;;  %v3371_v4 = vld [vmem:[%s4559_s5 + $0x30] sm:$0xff]   ;;  %s3663_s17 = scalar_select %p419_p6, %s3649_s12, 7  ;;  %v3373_v6 = vld [vmem:[%s4559_s5 + $0x28] sm:$0xff]   ;;  %vm482_vm0 = vcmask 1043459   ;;  %vm485_vm3 = vcmask 523271  }
  0x10   : > { %980 = vmatpush1.bf16.msra.mxu0 %v3367_v0  ;;  %1121 = vmatpush1.bf16.msra.mxu1 %v3369_v3  ;;  %s3671_s21 = sshll.u32 %s4594_s25, 4  ;;  %v3372_v7 = vld [vmem:[%s4559_s5 + $0x80] sm:$0xff]   ;;  %v3374_v9 = vld [vmem:[%s4559_s5 + $0x78] sm:$0xff]   ;;  %s4598_s9 = smov (!%p2878_p8, %s4596_s9), 7  ;;  %v3376_v12 = vld [vmem:[%s4559_s5 + $0x70] sm:$0xff]   ;;  %v542_v13 = vshrl.u32 %v541_v11, 7 }
  0x11   : > { %981 = vmatprep.subr.bf16.mxu0 %v3567_v1  ;;  %1122 = vmatprep.subr.bf16.mxu1 %v3567_v1  ;;  %s2873_s20 = sshll.u32 %s3663_s17, 1  ;;  %v3375_v8 = vld [vmem:[%s4559_s5 + $0x20] sm:$0xff]   ;;  %v3377_v10 = vld [vmem:[%s4559_s5 + $0x18] sm:$0xff]   ;;  %s2883_s12 = sshll.u32 %s4598_s9, 1  ;;  %v3379_v14 = vld [vmem:[%s4559_s5 + $0x10] sm:$0xff]   ;;  %vm507_vm7 = vcmask 1040384  }
  0x12   : > { %s423_s8 = sadd.s32 %s3671_s21, %s2873_s20  ;;  %p3700_p9 = scmp.lt.s32.totalorder %s445_s16, 7  ;;  %v3378_v15 = vld [vmem:[%s4559_s5 + $0x68] sm:$0xff]   ;;  %v543_v16 = vsub.s32 0, %v542_v13  ;;  %v547_v22 = vsub.s32 1, %v542_v13  ;;  %v3380_v31 = vld [vmem:[%s4559_s5 + $0x60] sm:$0xff]   ;;  %v3382_v43 = vld [vmem:[%s4559_s5 + $0xb8] sm:$0xff]  }
  0x13   : > { %s2875_s13 = sshll.u32 %s423_s8, 3  ;;  %s437_s14 = sadd.s32 %s2883_s12, %s3671_s21  ;;  %v3381_v20 = vld [vmem:[%s4559_s5 + $0x8] sm:$0xff]   ;;  %v3383_v32 = vld [vmem:[%s4559_s5] sm:$0xff]   ;;  %vm483_vm1 = vsmask.f32 7950  ;;  %v3385_v46 = vld [vmem:[%s4559_s5 + $0x58] sm:$0xff]  }
  0x14   : > { %982 = vmatpush1.bf16.msra.mxu0 %v3368_v2  ;;  %1123 = vmatpush1.bf16.msra.mxu1 %v3371_v4  ;;  %s3698_s10 = scalar_lea.vmem %s4565_s0, %s2875_s13  ;;  %s2893_s15 = sshll.u32 %s4594_s25, 1  ;;  %vm484_vm2 = vmand %vm482_vm0, %vm483_vm1  ;;  %vm486_vm4 = vsmask.f32 7966  ;;  %v489_v49 = vld [vmem:[#allocation2] sm:$0x88]  ;;  %v3384_v51 = vld [vmem:[%s4559_s5 + $0xb0] sm:$0xff]  }
  0x15   : > { %983 = vmatprep.subr.bf16.mxu0 %v3567_v1  ;;  %1124 = vmatprep.subr.bf16.mxu1 %v3567_v1  ;;  %s2885_s13 = sshll.u32 %s437_s14, 3  ;;  %s464_s9 = scalar_lea.vmem %s4557_s3, %s2893_s15  ;;  %v532_v19 = vld [vmem:[%s3698_s10] sm:$0xff]  ;;  %v533_v25 = vld [vmem:[%s3698_s10 + $0x8] sm:$0xff]  ;;  %v492_v50 = vld [vmem:[#allocation2 + $0x18] sm:$0x88]  ;;  %vm510_vm9 = vcmask 520196  }
  0x16   : > { %s439_s0 = scalar_lea.vmem %s4555_s1, %s2885_s13  ;;  %s468_s29 = scalar_lea.vmem %s4558_s4, %s2893_s15  ;;  %v480_v17 = vld [vmem:[%s464_s9] sm:$0x3]  ;;  %vm487_vm5 = vmand %vm485_vm3, %vm486_vm4  ;;  %v3387_v55 = vld [vmem:[%s4559_s5 + $0x50] sm:$0xff]   ;;  %vm508_vm8 = vsmask.f32 256  ;;  %vm667_vm14 = vcmask 1043456  }
  0x17   : > { %s4600_s16 = smov (!%p3700_p9, %s445_s16), 7  ;;  %v481_v18 = vld [vmem:[%s468_s29] sm:$0x3]  ;;  %v3736_v21 = vrot.slane %v480_v17, %v543_v16  ;;  %v675_v26 = vld [vmem:[%s439_s0 + $0x8] sm:$0xff]  ;;  %p696_p10 = scmp.gt.s32.totalorder %s3549_s24, 0  ;;  %v3744_v27 = vrot.slane %v480_v17, %v547_v22  ;;  %vm3797_vm6 = vmor %vm487_vm5, %vm484_vm2  ;;  %vm668_vm15 = vcmask 523268  }
  0x18   : > { %984 = vmatpush1.bf16.msra.mxu0 %v3370_v5  ;;  %1125 = vmatpush1.bf16.msra.mxu1 %v3373_v6  ;;  %s4602_s16 = smov (!%p3700_p9, %s4600_s16), 7  ;;  %v3738_v23 = vrot.slane %v481_v18, %v543_v16  ;;  %v674_v24 = vld [vmem:[%s439_s0] sm:$0xff]  ;;  %v3747_v29 = vrot.slane %v481_v18, %v547_v22  ;;  %v490_v53 = vsel %vm3797_vm6, 0, %v489_v49  ;;  %v493_v54 = vsel %vm3797_vm6, 0, %v492_v50  ;;  %v3386_v56 = vld [vmem:[%s4559_s5 + $0xa8] sm:$0xff]   ;;  %vm3844_vm11 = vmand %vm507_vm7, %vm508_vm8  ;;  %p744_p12 = scmp.lt.s32.totalorder %s3549_s24, 1 }
  0x19   : > { %985 = vmatprep.subr.bf16.mxu0 %v3567_v1  ;;  %1126 = vmatprep.subr.bf16.mxu1 %v3567_v1  ;;  %s2890_s13 = sshll.u32 %s4602_s16, 1  ;;  %v551_v28 = vmul.f32 %v3736_v21, %v532_v19  ;;  %v676_v30 = vmul.f32 %v674_v24, %v3736_v21  ;;  %v552_v33 = vmul.f32 %v3744_v27, %v533_v25  ;;  %v3390_v57 = vld [vmem:[%s4559_s5 + $0x48] sm:$0xff]   ;;  %v3388_v58 = vld [vmem:[%s4559_s5 + $0xa0] sm:$0xff]   ;;  %vm511_vm10 = vsmask.f32 4352  ;;  %vm3899_vm0 = vmor %vm668_vm15, %vm667_vm14 }
  0x1a   : > { %s454_s29 = sadd.s32 %s2890_s13, %s3671_s21  ;;  %v677_v35 = vmul.f32 %v675_v26, %v3744_v27  ;;  %491 = vst [vmem:[#allocation2] sm:$0x88] %v490_v53  ;;  %494 = vst [vmem:[#allocation2 + $0x18] sm:$0x88] %v493_v54  ;;  %v3393_v60 = vld [vmem:[%s4559_s5 + $0x40] sm:$0xff]   ;;  %v537_v11 = vld [vmem:[%s3698_s10 + $0x28] sm:$0xff] }
  0x1b   : > { %s2892_s16 = sshll.u32 %s454_s29, 3  ;;  %v3762_v34 = vadd.f32 %v3738_v23, %v551_v28  ;;  %v3766_v36 = vadd.f32 %v676_v30, %v3738_v23  ;;  %v3772_v39 = vadd.f32 %v3747_v29, %v552_v33  ;;  %vm3855_vm12 = vmand %vm510_vm9, %vm511_vm10  ;;  %v556_v16 = vmul.f32 %v3744_v27, %v537_v11  ;;  %v495_v18 = vld [vmem:[#allocation2 + $0x30] sm:$0x88]  ;;  %v498_v19 = vld [vmem:[#allocation2 + $0x48] sm:$0x88] }
  0x1c   : > { %986 = vmatpush1.bf16.msra.mxu0 %v3372_v7  ;;  %1127 = vmatpush1.bf16.msra.mxu1 %v3375_v8  ;;  %s456_s8 = scalar_lea.vmem %s4556_s2, %s2892_s16  ;;  %v3776_v41 = vadd.f32 %v677_v35, %v3747_v29  ;;  %v534_v8 = vld [vmem:[%s3698_s10 + $0x10] sm:$0xff]  ;;  %v496_v25 = vsel %vm3797_vm6, 0, %v495_v18  ;;  %v499_v28 = vsel %vm3797_vm6, 0, %v498_v19  ;;  %vm3883_vm13 = vmor %vm3855_vm12, %vm3844_vm11  ;;  %v520_v54 = vld [vmem:[#allocation2 + $0x40] sm:$0x11]  ;;  %vm972_vm1 = vcmask 523264  }
  0x1d   : > { %987 = vmatprep.subr.bf16.mxu0 %v3567_v1  ;;  %1128 = vmatprep.subr.bf16.mxu1 %v3567_v1  ;;  %s697_s12 = scalar_select %p696_p10, 1, 0  ;;  %v722_v37 = vld [vmem:[%s456_s8] sm:$0xff]  ;;  %v723_v38 = vld [vmem:[%s456_s8 + $0x8] sm:$0xff]  ;;  %v2898_v40 = vmul.f32 -1.442695, %v3762_v34  ;;  %v3872_v24 = vadd.f32 %v3747_v29, %v556_v16 }
  0x1e   : > { %v2910_v42 = vmul.f32 -1.442695, %v3766_v36  ;;  %v724_v44 = vmul.f32 %v722_v37, %v3736_v21  ;;  %v725_v45 = vmul.f32 %v723_v38, %v3744_v27  ;;  %v2899_v47 = vmul.f32 -1.442695, %v3772_v39  ;;  %497 = vst [vmem:[#allocation2 + $0x30] sm:$0x88] %v496_v25 }
  0x1f   : > { %s3782_s14 = scvt.s32.f32 %s697_s12  ;;  %3479 = vpow2.f32 %v2898_v40  ;;  %v2911_v48 = vmul.f32 -1.442695, %v3776_v41  ;;  %v2903_v33 = vmul.f32 -1.442695, %v3872_v24  ;;  %500 = vst [vmem:[#allocation2 + $0x48] sm:$0x88] %v499_v28 }
  0x20   : > { %988 = vmatpush1.bf16.msra.mxu0 %v3374_v9  ;;  %1129 = vmatpush1.bf16.msra.mxu1 %v3377_v10  ;;  %3481 = vpow2.f32 %v2910_v42  ;;  %v3831_v4 = vadd.f32 %v724_v44, %v3738_v23  ;;  %v3834_v5 = vadd.f32 %v725_v45, %v3747_v29  ;;  %v535_v9 = vld [vmem:[%s3698_s10 + $0x18] sm:$0xff]  ;;  %v536_v10 = vld [vmem:[%s3698_s10 + $0x20] sm:$0xff]  ;;  %v514_v35 = vld [vmem:[#allocation2 + $0x10] sm:$0x11]  ;;  %vm779_vm2 = vsmask.f32 4368 }
  0x21   : > { %989 = vmatprep.subr.bf16.mxu0 %v3567_v1  ;;  %1130 = vmatprep.subr.bf16.mxu1 %v3567_v1  ;;  %3483 = vpow2.f32 %v2899_v47  ;;  %s701_s15 = sshrl.u32 %s3782_s14, 16  ;;  %p700_p11 = scmp.ne.f32.partialorder %s3782_s14, %s3782_s14  ;;  %v517_v37 = vld [vmem:[#allocation2 + $0x28] sm:$0x11]  ;;  %v515_v40 = vsel %vm3883_vm13, 0, %v514_v35  ;;  %v539_v7 = vld [vmem:[%s3698_s10 + $0x38] sm:$0xff]  ;;  %vm3938_vm3 = vmor %vm508_vm8, %vm779_vm2 }
  0x22   : > { %3485 = vpow2.f32 %v2911_v48  ;;  %s702_s16 = sand.u32 1, %s701_s15  ;;  %v518_v42 = vsel %vm3883_vm13, 0, %v517_v37  ;;  %516 = vst [vmem:[#allocation2 + $0x10] sm:$0x11] %v515_v40  ;;  %v558_v13 = vmul.f32 %v3744_v27, %v539_v7  ;;  %vm1177_vm4 = vsmask.f32 3328 }
  0x23   : > { %s703_s21 = sadd.s32 32767, %s702_s16  ;;  %519 = vst [vmem:[#allocation2 + $0x28] sm:$0x11] %v518_v42  ;;  %vm1178_vm5 = vsmask.f32 7440  ;;  %v3427_v30 = vld [vmem:[%s4559_s5 + $0x200] sm:$0xff]  }
  0x24   : > { %990 = vmatpush1.bf16.msra.mxu0 %v3376_v12  ;;  %1131 = vmatpush1.bf16.msra.mxu1 %v3379_v14  ;;  %s704_s19 = sadd.s32 %s703_s21, %s3782_s14  ;;  %v553_v12 = vmul.f32 %v3736_v21, %v534_v8  ;;  %v554_v14 = vmul.f32 %v3744_v27, %v535_v9  ;;  %v3392_v27 = vld [vmem:[%s4559_s5 + $0xf8] sm:$0xff]   ;;  %vm3987_vm7 = vmor %vm1177_vm4, %vm1178_vm5  ;;  %s2896_s12 = sshll.u32 %s4594_s25, 3 }
  0x25   : > { %991 = vmatprep.subr.bf16.mxu0 %v3567_v1  ;;  %1132 = vmatprep.subr.bf16.mxu1 %v3567_v1  ;;  %s705_s15 = sand.u32 4294901760, %s704_s19 }
  0x26   : > { %s4604_s15 = smov (%p700_p11, %s705_s15), 2143289344  ;;  %v3863_v17 = vadd.f32 %v3738_v23, %v553_v12 }
  0x27   : > { %s708_s14 = sshrl.u32 %s4604_s15, 16 }
  0x28   : > { %992 = vmatpush1.bf16.msra.mxu0 %v3378_v15  ;;  %1133 = vmatpush1.bf16.msra.mxu1 %v3381_v20  ;;  %v555_v15 = vmul.f32 %v3736_v21, %v536_v10  ;;  %v3866_v20 = vadd.f32 %v3747_v29, %v554_v14  ;;  %s709_s13 = sshll.u32 %s708_s14, 16  ;;  %v2900_v26 = vmul.f32 -1.442695, %v3863_v17  ;;  %v771_v14 = vld [vmem:[#allocation2] sm:$0x88] }
  0x29   : > { %993 = vmatprep.subr.bf16.mxu0 %v3567_v1  ;;  %1134 = vmatprep.subr.bf16.mxu1 %v3567_v1  ;;  %s710_s29 = sor.u32 %s709_s13, %s708_s14 }
  0x2a   : > { %v3869_v22 = vadd.f32 %v3738_v23, %v555_v15  ;;  %v711_v49 = vstv %s710_s29  ;;  %s745_s20 = scalar_select %p744_p12, 1, 0 }
  0x2c   : > { %994 = vmatpush1.bf16.msra.mxu0 %v3380_v31  ;;  %1135 = vmatpush1.bf16.msra.mxu1 %v3383_v32  ;;  %v3480_v59 = vpop.eup %3479  ;;  %v2901_v31 = vmul.f32 -1.442695, %v3866_v20  ;;  %v2902_v32 = vmul.f32 -1.442695, %v3869_v22  ;;  %s4162_s24 = scvt.s32.f32 %s745_s20 }
  0x2d   : > { %1003 = vmatprep.subr.bf16.mxu0 %v3567_v1  ;;  %1144 = vmatprep.subr.bf16.mxu1 %v3567_v1  ;;  %v3482_v61 = vpop.eup %3481  ;;  %v602_v62 = vadd.f32 1.0, %v3480_v59 }
  0x2e   : > { %v3484_v63 = vpop.eup %3483  ;;  %v686_v0 = vadd.f32 1.0, %v3482_v61  ;;  %s749_s29 = sshrl.u32 %s4162_s24, 16  ;;  %p748_p13 = scmp.ne.f32.partialorder %s4162_s24, %s4162_s24 }
  0x2f   : > { %v3486_v2 = vpop.eup %3485  ;;  %v603_v3 = vadd.f32 1.0, %v3484_v63  ;;  %3487 = vrcp.f32 %v602_v62  ;;  %v501_v63 = vld [vmem:[#allocation2 + $0x60] sm:$0x88]  ;;  %s750_s0 = sand.u32 1, %s749_s29 }
  0x30   : > { %1004 = vmatpush2.bf16.msra.mxu0 %v3382_v43  ;;  %1145 = vmatpush2.bf16.msra.mxu1 %v3385_v46  ;;  %v687_v6 = vadd.f32 1.0, %v3486_v2  ;;  %3489 = vrcp.f32 %v686_v0  ;;  %v538_v0 = vld [vmem:[%s3698_s10 + $0x30] sm:$0xff]  ;;  %s751_s9 = sadd.s32 32767, %s750_s0 }
  0x31   : > { %1005 = vmatprep.subr.bf16.mxu0 %v3567_v1  ;;  %1146 = vmatprep.subr.bf16.mxu1 %v3567_v1  ;;  %3491 = vrcp.f32 %v603_v3  ;;  %v557_v8 = vmul.f32 %v3736_v21, %v538_v0  ;;  %v3926_v21 = vadd.f32 %v3747_v29, %v558_v13  ;;  %s752_s18 = sadd.s32 %s751_s9, %s4162_s24 }
  0x32   : > { %3493 = vrcp.f32 %v687_v6  ;;  %v502_v6 = vsel %vm3797_vm6, 0, %v501_v63  ;;  %s753_s30 = sand.u32 4294901760, %s752_s18  ;;  %s475_s18 = sadd.s32 %s2896_s12, %s3663_s17 }
  0x33   : > { %3495 = vpow2.f32 %v2900_v26  ;;  %503 = vst [vmem:[#allocation2 + $0x60] sm:$0x88] %v502_v6  ;;  %v3923_v19 = vadd.f32 %v3738_v23, %v557_v8  ;;  %v782_v26 = vshrl.u32 %v771_v14, 16  ;;  %v1406_v14 = vld [vmem:[#allocation2 + $0x18] sm:$0x88]  ;;  %s4606_s30 = smov (%p748_p13, %s753_s30), 2143289344 }
  0x34   : > { %1006 = vmatpush2.bf16.msra.mxu0 %v3384_v51  ;;  %1147 = vmatpush2.bf16.msra.mxu1 %v3387_v55  ;;  %3497 = vpow2.f32 %v2901_v31  ;;  %v2905_v31 = vmul.f32 -1.442695, %v3926_v21  ;;  %s756_s24 = sshrl.u32 %s4606_s30, 16  ;;  %s2897_s30 = sshll.u32 %s475_s18, 2 }
  0x35   : > { %1007 = vmatprep.subr.bf16.mxu0 %v3567_v1  ;;  %1148 = vmatprep.subr.bf16.mxu1 %v3567_v1  ;;  %3499 = vpow2.f32 %v2902_v32  ;;  %v2904_v28 = vmul.f32 -1.442695, %v3923_v19  ;;  %v2916_v42 = vrot.slane %v782_v26, 11  ;;  %s757_s21 = sshll.u32 %s756_s24, 16  ;;  %v3472_v26 = vld [vmem:[%s4559_s5 + $0x310] sm:$0xff]   ;;  %s477_s17 = scalar_lea.vmem %s4561_s7, %s2897_s30 }
  0x36   : > { %3501 = vpow2.f32 %v2903_v33  ;;  %s758_s19 = sor.u32 %s757_s21, %s756_s24 }
  0x38   : > { %1008 = vmatpush2.bf16.msra.mxu0 %v3386_v56  ;;  %1149 = vmatpush2.bf16.msra.mxu1 %v3390_v57  ;;  %v523_v57 = vld [vmem:[#allocation2 + $0x58] sm:$0x11] }
  0x39   : > { %1009 = vmatprep.subr.bf16.mxu0 %v3567_v1  ;;  %1150 = vmatprep.subr.bf16.mxu1 %v3567_v1 }
  0x3c   : > { %1010 = vmatpush2.bf16.msra.mxu0 %v3388_v58  ;;  %1151 = vmatpush2.bf16.msra.mxu1 %v3393_v60  ;;  %v3488_v38 = vpop.eup %3487  ;;  %v773_v60 = vld [vmem:[#allocation2 + $0x18] sm:$0x88] }
  0x3d   : > { %1353 = vmatprep.subr.bf16.mxu0 %v3567_v1  ;;  %1583 = vmatprep.subr.bf16.mxu1 %v3567_v1  ;;  %v3490_v43 = vpop.eup %3489  ;;  %v626_v44 = vmul.f32 %v3488_v38, %v3762_v34  ;;  %v795_v11 = vshrl.u32 %v773_v60, 16  ;;  %v3397_v60 = vld [vmem:[%s4559_s5 + $0x150] sm:$0xff]  }
  0x3e   : > { %v3492_v45 = vpop.eup %3491  ;;  %v692_v46 = vmul.f32 %v3490_v43, %v3766_v36  ;;  %v521_v36 = vsel %vm3883_vm13, 0, %v520_v54 }
  0x3f   : > { %v3494_v47 = vpop.eup %3493  ;;  %v627_v48 = vmul.f32 %v3492_v45, %v3772_v39  ;;  %v524_v39 = vsel %vm3883_vm13, 0, %v523_v57  ;;  %522 = vst [vmem:[#allocation2 + $0x40] sm:$0x11] %v521_v36  ;;  %v2917_v33 = vrot.slane %v795_v11, 11  ;;  %v777_v11 = vld [vmem:[#allocation2 + $0x48] sm:$0x88] }
  0x40   : > { %v693_v51 = vmul.f32 %v3494_v47, %v3776_v41  ;;  %v694_v53 = vpack.c.bf16 %v692_v46, %v692_v46  ;;  %525 = vst [vmem:[#allocation2 + $0x58] sm:$0x11] %v524_v39  ;;  %v3496_v59 = vpop.eup %3495  ;;  %v3395_v47 = vld [vmem:[%s4559_s5 + $0x158] sm:$0xff]  }
  0x41   : > { %v3287_v34 = vpack.c.bf16 %v627_v48, %v626_v44  ;;  %v3498_v61 = vpop.eup %3497  ;;  %v604_v62 = vadd.f32 1.0, %v3496_v59  ;;  %v3394_v44 = vld [vmem:[%s4559_s5 + $0xf0] sm:$0xff]  }
  0x42   : > { %v695_v55 = vpack.c.bf16 %v693_v51, %v693_v51  ;;  %v713_v56 = vmul.bf16 %v711_v49, %v694_v53  ;;  %v3500_v2 = vpop.eup %3499  ;;  %v605_v3 = vadd.f32 1.0, %v3498_v61  ;;  %v1170_v48 = vld [vmem:[#allocation2 + $0x10] sm:$0x11] }
  0x43   : > { %670 = vst.msk [vmem:[#allocation2 + $0x20] sm:$0xff] %vm3899_vm0, %v3287_v34  ;;  %v3502_v9 = vpop.eup %3501  ;;  %v606_v12 = vadd.f32 1.0, %v3500_v2  ;;  %3503 = vrcp.f32 %v604_v62  ;;  %v1190_v0 = vshll.u32 %v1170_v48, 16 }
  0x44   : > { %v714_v58 = vmul.bf16 %v711_v49, %v695_v55  ;;  %v607_v18 = vadd.f32 1.0, %v3502_v9  ;;  %3505 = vrcp.f32 %v605_v3  ;;  %v1172_v49 = vld [vmem:[#allocation2 + $0x28] sm:$0x11]  ;;  %v775_v9 = vld [vmem:[#allocation2 + $0x30] sm:$0x88] }
  0x45   : > { %3507 = vrcp.f32 %v606_v12  ;;  %v1204_v2 = vshll.u32 %v1172_v49, 16  ;;  %v1192_v12 = vrot.slane %v1190_v0, 5  ;;  %v3406_v0 = vld [vmem:[%s4559_s5 + $0xc0] sm:$0xff]  }
  0x46   : > { %v2912_v41 = vcombine.low %v713_v56, %v714_v58  ;;  %3509 = vrcp.f32 %v607_v18  ;;  %v3396_v58 = vld [vmem:[%s4559_s5 + $0xe8] sm:$0xff]  }
  0x47   : > { %3511 = vpow2.f32 %v2904_v28  ;;  %v1206_v13 = vrot.slane %v1204_v2, 5 }
  0x48   : > { %721 = vst.msk [vmem:[#allocation2 + $0x8] sm:$0xff] %vm3899_vm0, %v2912_v41  ;;  %3513 = vpow2.f32 %v2905_v31 }
  0x4a   : > { %v3917_v10 = vld [vmem:[#allocation2 + $0x20] sm:$0xff] }
  0x4b   : > { %v800_v15 = vshrl.u32 %v3917_v10, 16  ;;  %v803_v16 = vshll.u32 %v3917_v10, 16 }
  0x4d   : > { %v802_v25 = vrot.slane %v800_v15, 7  ;;  %v1197_v53 = vrot.slane %v800_v15, 4  ;;  %v1200_v34 = vrot.slane %v803_v16, 5 }
  0x4f   : > { %v772_v32 = vld [vmem:[#allocation2 + $0x8] sm:$0xff]  ;;  %v3933_v23 = vor.u32 %v803_v16, %v802_v25  ;;  %v1201_v8 = vor.u32 %v1200_v34, %v1197_v53  ;;  %v1408_v25 = vld [vmem:[#allocation2 + $0x30] sm:$0x88]  ;;  %v3403_v53 = vld [vmem:[%s4559_s5 + $0x138] sm:$0xff]  }
  0x50   : > { %v2945_v29 = vcombine.high %v772_v32, %v3917_v10  ;;  %v2944_v35 = vcombine.low %v772_v32, %v3917_v10  ;;  %v787_v37 = vshrl.u32 %v772_v32, 16  ;;  %v790_v38 = vshll.u32 %v772_v32, 16  ;;  %v3504_v54 = vpop.eup %3503 }
  0x51   : > { %v806_v46 = vsel %vm3938_vm3, %v2917_v33, %v3933_v23  ;;  %v3506_v39 = vpop.eup %3505  ;;  %v628_v41 = vmul.f32 %v3504_v54, %v3863_v17  ;;  %v3398_v17 = vld [vmem:[%s4559_s5 + $0xe0] sm:$0xff]   ;;  %v3982_v18 = vrot.slane %v1201_v8, 4  ;;  %v808_v32 = vshrl.u32 %v775_v9, 16  ;;  %v1176_v9 = vld [vmem:[#allocation2 + $0x58] sm:$0x11] }
  0x52   : > { %2960 = vmatprep.mubr.msk.bf16.mxu0 %vm972_vm1, %v2945_v29  ;;  %v789_v43 = vrot.slane %v787_v37, 7  ;;  %v1183_v57 = vrot.slane %v787_v37, 4  ;;  %v1186_v36 = vrot.slane %v790_v38, 5  ;;  %v3508_v59 = vpop.eup %3507  ;;  %v629_v61 = vmul.f32 %v3506_v39, %v3866_v20  ;;  %v3399_v20 = vld [vmem:[%s4559_s5 + $0x148] sm:$0xff]   ;;  %v3401_v29 = vld [vmem:[%s4559_s5 + $0x140] sm:$0xff]  }
  0x53   : > { %1012 = vmatmul.mubr.bf16.vlgmr.msra.gmra.mxu0 %v2944_v35  ;;  %v3510_v62 = vpop.eup %3509  ;;  %v630_v63 = vmul.f32 %v3508_v59, %v3869_v22  ;;  %v821_v33 = vshrl.u32 %v777_v11, 16  ;;  %v3402_v35 = vld [vmem:[%s4559_s5 + $0xd0] sm:$0xff]   ;;  %v2918_v49 = vrot.slane %v808_v32, 11  ;;  %v2913_v8 = vmul.f32 -1.442695, %v3831_v4  ;;  %v3409_v32 = vld [vmem:[%s4559_s5 + $0x120] sm:$0xff]  }
  0x54   : > { %1354 = vmatpush1.bf16.msra.mxu0 %v3392_v27  ;;  %v792_v45 = vor.u32 %v790_v38, %v789_v43  ;;  %v631_v3 = vmul.f32 %v3510_v62, %v3872_v24  ;;  %v3288_v6 = vpack.c.bf16 %v629_v61, %v628_v41  ;;  %v1187_v7 = vor.u32 %v1186_v36, %v1183_v57  ;;  %v3400_v24 = vld [vmem:[%s4559_s5 + $0xd8] sm:$0xff]   ;;  %v3512_v15 = vpop.eup %3511  ;;  %v3404_v57 = vld [vmem:[%s4559_s5 + $0xc8] sm:$0xff]   ;;  %v526_v41 = vld [vmem:[#allocation2 + $0x70] sm:$0x11] }
  0x55   : > { %1355 = vmatprep.subr.bf16.mxu0 %v3567_v1  ;;  %v3514_v27 = vpop.eup %3513  ;;  %v608_v28 = vadd.f32 1.0, %v3512_v15  ;;  %v4005_v38 = vsel %vm3987_vm7, %v3982_v18, %v1206_v13  ;;  %v3405_v62 = vld [vmem:[%s4559_s5 + $0x130] sm:$0xff]   ;;  %v3408_v15 = vld [vmem:[%s4559_s5 + $0x118] sm:$0xff]  }
  0x56   : > { %v793_v51 = vsel %vm3938_vm3, %v2916_v42, %v792_v45  ;;  %v3289_v22 = vpack.c.bf16 %v631_v3, %v630_v63  ;;  %671 = vst.msk [vmem:[#allocation2 + $0x38] sm:$0xff] %vm3899_vm0, %v3288_v6  ;;  %v1188_v16 = vrot.slane %v1187_v7, 4  ;;  %v609_v31 = vadd.f32 1.0, %v3514_v27 }
  0x57   : > { %v2962_v55 = vcombine.low %v793_v51, %v806_v46  ;;  %v2963_v56 = vcombine.high %v793_v51, %v806_v46  ;;  %3515 = vrcp.f32 %v608_v28  ;;  %v1415_v42 = vshrl.u32 %v1406_v14, 16 }
  0x58   : > { %1356 = vmatpush1.bf16.msra.mxu0 %v3394_v44  ;;  %672 = vst.msk [vmem:[#allocation2 + $0x50] sm:$0xff] %vm3899_vm0, %v3289_v22  ;;  %v4000_v37 = vsel %vm3987_vm7, %v1188_v16, %v1192_v12  ;;  %3517 = vrcp.f32 %v609_v31  ;;  %v1428_v44 = vshrl.u32 %v1408_v25, 16  ;;  %v527_v63 = vsel %vm3883_vm13, 0, %v526_v41  ;;  %v1174_v22 = vld [vmem:[#allocation2 + $0x40] sm:$0x11] }
  0x59   : > { %2978 = vmatprep.mubr.msk.bf16.mxu1 %vm972_vm1, %v2963_v56  ;;  %1357 = vmatprep.subr.bf16.mxu0 %v3567_v1  ;;  %v3005_v51 = vcombine.high %v4000_v37, %v4005_v38  ;;  %v3022_v39 = vrot.slane %v1415_v42, 11  ;;  %528 = vst [vmem:[#allocation2 + $0x70] sm:$0x11] %v527_v63  ;;  %v1232_v42 = vshll.u32 %v1176_v9, 16  ;;  %3519 = vpow2.f32 %v2913_v8  ;;  %v2045_v41 = vld [vmem:[#allocation2 + $0x30] sm:$0x88] }
  0x5a   : > { %1153 = vmatmul.mubr.bf16.vlgmr.msra.gmra.mxu1 %v2962_v55  ;;  %v2054_v63 = vshrl.u32 %v2045_v41, 16  ;;  %v529_v41 = vld [vmem:[#allocation2 + $0x88] sm:$0x11] }
  0x5b   : > { %1584 = vmatpush1.bf16.msra.mxu1 %v3395_v47  ;;  %v4060_v6 = vsel %vm3938_vm3, %v3022_v39, %v3933_v23  ;;  %v3407_v23 = vld [vmem:[%s4559_s5 + $0x128] sm:$0xff]  }
  0x5c   : > { %1358 = vmatpush1.bf16.msra.mxu0 %v3396_v58  ;;  %1585 = vmatprep.subr.bf16.mxu1 %v3567_v1  ;;  %v3023_v58 = vrot.slane %v1428_v44, 11  ;;  %v1410_v44 = vld [vmem:[#allocation2 + $0x48] sm:$0x88] }
  0x5d   : > { %1359 = vmatprep.subr.bf16.mxu0 %v3567_v1  ;;  %v4008_v43 = vld [vmem:[#allocation2 + $0x38] sm:$0xff] }
  0x5e   : > { %v813_v45 = vshrl.u32 %v4008_v43, 16  ;;  %v816_v46 = vshll.u32 %v4008_v43, 16  ;;  %v3092_v47 = vcombine.low %v3917_v10, %v4008_v43 }
  0x5f   : > { %1586 = vmatpush1.bf16.msra.mxu1 %v3397_v60  ;;  %v4015_v48 = vld [vmem:[#allocation2 + $0x50] sm:$0xff]  ;;  %v2919_v60 = vrot.slane %v821_v33, 11 }
  0x60   : > { %1360 = vmatpush1.bf16.msra.mxu0 %v3398_v17  ;;  %1587 = vmatprep.subr.bf16.mxu1 %v3567_v1  ;;  %v4024_v34 = vcombine.high %v4008_v43, %v4015_v48  ;;  %v4028_v54 = vcombine.low %v4008_v43, %v4015_v48  ;;  %v815_v55 = vrot.slane %v813_v45, 7  ;;  %v826_v56 = vshrl.u32 %v4015_v48, 16 }
  0x61   : > { %1361 = vmatprep.subr.bf16.mxu0 %v3567_v1  ;;  %v829_v36 = vshll.u32 %v4015_v48, 16  ;;  %v1211_v13 = vrot.slane %v813_v45, 4  ;;  %v1214_v25 = vrot.slane %v816_v46, 5  ;;  %v1412_v45 = vld [vmem:[#allocation2 + $0x60] sm:$0x88] }
  0x62   : > { %2961 = vmatprep.mubr.msk.bf16.mxu0 %vm972_vm1, %v4024_v34  ;;  %v4039_v59 = vor.u32 %v816_v46, %v815_v55  ;;  %v828_v61 = vrot.slane %v826_v56, 7  ;;  %v1849_v3 = vrot.slane %v826_v56, 4  ;;  %v1234_v56 = vrot.slane %v1232_v42, 5  ;;  %v3420_v42 = vld [vmem:[%s4559_s5 + $0x1b0] sm:$0xff]  }
  0x63   : > { %1588 = vmatpush1.bf16.msra.mxu1 %v3399_v20  ;;  %1020 = vmatmul.mubr.bf16.gmra.mxu0 %v4028_v54  ;;  %v1852_v11 = vrot.slane %v829_v36, 5  ;;  %v1215_v46 = vor.u32 %v1214_v25, %v1211_v13  ;;  %v3418_v13 = vld [vmem:[%s4559_s5 + $0x1b8] sm:$0xff]  }
  0x64   : > { %1362 = vmatpush1.bf16.msra.mxu0 %v3400_v24  ;;  %1589 = vmatprep.subr.bf16.mxu1 %v3567_v1  ;;  %v819_v2 = vsel %vm3938_vm3, %v2918_v49, %v4039_v59  ;;  %v4053_v17 = vor.u32 %v829_v36, %v828_v61  ;;  %v4065_v7 = vsel %vm3938_vm3, %v3023_v58, %v4039_v59  ;;  %v3516_v14 = vpop.eup %3515  ;;  %v3414_v49 = vld [vmem:[%s4559_s5 + $0x108] sm:$0xff]   ;;  %v3416_v58 = vld [vmem:[%s4559_s5 + $0x100] sm:$0xff]  }
  0x65   : > { %1363 = vmatprep.subr.bf16.mxu0 %v3567_v1  ;;  %3020 = vmatprep.mubr.msk.bf16.mxu0 %vm972_vm1, %v3005_v51  ;;  %v3051_v16 = vcombine.high %v4060_v6, %v4065_v7  ;;  %v1853_v27 = vor.u32 %v1852_v11, %v1849_v3  ;;  %v3518_v28 = vpop.eup %3517  ;;  %v632_v31 = vmul.f32 %v3516_v14, %v3923_v19  ;;  %v1441_v51 = vshrl.u32 %v1410_v44, 16  ;;  %v3421_v44 = vld [vmem:[%s4559_s5 + $0x218] sm:$0xff]  }
  0x66   : > { %v832_v20 = vsel %vm3938_vm3, %v2919_v60, %v4053_v17  ;;  %v633_v33 = vmul.f32 %v3518_v28, %v3926_v21  ;;  %v3413_v21 = vld [vmem:[%s4559_s5 + $0x178] sm:$0xff]   ;;  %v4108_v36 = vrot.slane %v1215_v46, 4  ;;  %v2047_v60 = vld [vmem:[#allocation2 + $0x48] sm:$0x88] }
  0x67   : > { %1590 = vmatpush1.bf16.msra.mxu1 %v3401_v29  ;;  %v2965_v24 = vcombine.high %v819_v2, %v832_v20  ;;  %v2964_v12 = vcombine.low %v819_v2, %v832_v20  ;;  %v3410_v29 = vld [vmem:[%s4559_s5 + $0x110] sm:$0xff]   ;;  %v4110_v39 = vrot.slane %v1853_v27, 4  ;;  %v3024_v61 = vrot.slane %v1441_v51, 11  ;;  %v1811_v20 = vld [vmem:[#allocation2 + $0x28] sm:$0x11] }
  0x68   : > { %1364 = vmatpush1.bf16.msra.mxu0 %v3402_v35  ;;  %1591 = vmatprep.subr.bf16.mxu1 %v3567_v1  ;;  %v1218_v35 = vshll.u32 %v1174_v22, 16  ;;  %v3290_v19 = vpack.c.bf16 %v633_v33, %v632_v31  ;;  %v3417_v22 = vld [vmem:[%s4559_s5 + $0x168] sm:$0xff]   ;;  %v1813_v27 = vld [vmem:[#allocation2 + $0x40] sm:$0x11]  ;;  %v3520_v31 = vpop.eup %3519  ;;  %v1828_v33 = vshll.u32 %v1811_v20, 16 }
  0x69   : > { %1365 = vmatprep.subr.bf16.mxu0 %v3567_v1  ;;  %2979 = vmatprep.mubr.msk.bf16.mxu1 %vm972_vm1, %v2965_v24  ;;  %v1235_v9 = vsel %vm3987_vm7, %v4110_v39, %v1234_v56  ;;  %v1842_v52 = vshll.u32 %v1813_v27, 16  ;;  %v1452_v46 = vsel %vm3938_vm3, %v3024_v61, %v4053_v17  ;;  %v3424_v56 = vld [vmem:[%s4559_s5 + $0x1a0] sm:$0xff]  }
  0x6a   : > { %1161 = vmatmul.mubr.bf16.gmra.mxu1 %v2964_v12  ;;  %673 = vst.msk [vmem:[#allocation2 + $0x68] sm:$0xff] %vm3899_vm0, %v3290_v19  ;;  %v1220_v55 = vrot.slane %v1218_v35, 5  ;;  %v3004_v12 = vcombine.low %v4000_v37, %v4005_v38  ;;  %v504_v37 = vld [vmem:[#allocation2 + $0x78] sm:$0x88]  ;;  %v2914_v38 = vmul.f32 -1.442695, %v3834_v5 }
  0x6b   : > { %1592 = vmatpush1.bf16.msra.mxu1 %v3403_v53  ;;  %3066 = vmatprep.mubr.msk.bf16.mxu1 %vm972_vm1, %v3051_v16  ;;  %v1454_v53 = vshrl.u32 %v1412_v45, 16  ;;  %v3419_v35 = vld [vmem:[%s4559_s5 + $0x160] sm:$0xff]   ;;  %v734_v19 = vadd.f32 1.0, %v3520_v31  ;;  %v3050_v45 = vcombine.low %v4060_v6, %v4065_v7  ;;  %v1830_v51 = vrot.slane %v1828_v33, 5 }
  0x6c   : > { %1366 = vmatpush1.bf16.msra.mxu0 %v3404_v57  ;;  %1593 = vmatprep.subr.bf16.mxu1 %v3567_v1  ;;  %v3415_v57 = vld [vmem:[%s4559_s5 + $0x170] sm:$0xff]   ;;  %v1221_v3 = vsel %vm3987_vm7, %v4108_v36, %v1220_v55  ;;  %3521 = vpow2.f32 %v2914_v38  ;;  %v1844_v6 = vrot.slane %v1842_v52, 5  ;;  %v759_v38 = vstv %s758_s19  ;;  %v3437_v52 = vld [vmem:[%s4559_s5 + $0x238] sm:$0xff]  }
  0x6d   : > { %1367 = vmatprep.subr.bf16.mxu0 %v3567_v1  ;;  %v3007_v25 = vcombine.high %v1221_v3, %v1235_v9  ;;  %3523 = vrcp.f32 %v734_v19  ;;  %v3423_v55 = vld [vmem:[%s4559_s5 + $0x210] sm:$0xff]  }
  0x6e   : > { %v3439_v19 = vld [vmem:[%s4559_s5 + $0x230] sm:$0xff]  }
  0x6f   : > { %1594 = vmatpush1.bf16.msra.mxu1 %v3405_v62  ;;  %v3025_v62 = vrot.slane %v1454_v53, 11  ;;  %v3006_v53 = vcombine.low %v1221_v3, %v1235_v9 }
  0x70   : > { %1368 = vmatpush1.bf16.msra.mxu0 %v3406_v0  ;;  %1595 = vmatprep.subr.bf16.mxu1 %v3567_v1  ;;  %v2067_v0 = vshrl.u32 %v2047_v60, 16 }
  0x71   : > { %1377 = vmatprep.subr.bf16.mxu0 %v3567_v1  ;;  %v4116_v2 = vld [vmem:[#allocation2 + $0x68] sm:$0xff] }
  0x72   : > { %v1459_v8 = vshrl.u32 %v4116_v2, 16  ;;  %v1462_v11 = vshll.u32 %v4116_v2, 16  ;;  %v3153_v24 = vrot.slane %v2067_v0, 11  ;;  %v530_v0 = vsel %vm3883_vm13, 0, %v529_v41  ;;  %v3444_v41 = vld [vmem:[%s4559_s5 + $0x270] sm:$0xff]  }
  0x73   : > { %1596 = vmatpush1.bf16.msra.mxu1 %v3407_v23  ;;  %v3152_v23 = vrot.slane %v2054_v63, 11  ;;  %531 = vst [vmem:[#allocation2 + $0x88] sm:$0x11] %v530_v0  ;;  %v3453_v0 = vld [vmem:[%s4559_s5 + $0x2b8] sm:$0xff]  }
  0x74   : > { %1378 = vmatpush2.bf16.msra.mxu0 %v3408_v15  ;;  %1597 = vmatprep.subr.bf16.mxu1 %v3567_v1  ;;  %v1461_v14 = vrot.slane %v1459_v8, 7  ;;  %v4146_v16 = vsel %vm3938_vm3, %v3153_v24, %v4053_v17  ;;  %v3093_v17 = vcombine.high %v3917_v10, %v4008_v43  ;;  %v4229_v3 = vrot.slane %v1459_v8, 4  ;;  %v3428_v8 = vld [vmem:[%s4559_s5 + $0x190] sm:$0xff]  }
  0x75   : > { %1379 = vmatprep.subr.bf16.mxu0 %v3567_v1  ;;  %v4141_v15 = vsel %vm3938_vm3, %v3152_v23, %v4039_v59  ;;  %v4233_v20 = vrot.slane %v1462_v11, 5  ;;  %v3430_v23 = vld [vmem:[%s4559_s5 + $0x188] sm:$0xff]  }
  0x76   : > { %v3180_v28 = vcombine.low %v4141_v15, %v4146_v16  ;;  %v3181_v59 = vcombine.high %v4141_v15, %v4146_v16 }
  0x77   : > { %1598 = vmatpush1.bf16.msra.mxu1 %v3409_v32  ;;  %v4158_v32 = vor.u32 %v1462_v11, %v1461_v14  ;;  %v3429_v11 = vld [vmem:[%s4559_s5 + $0x1f8] sm:$0xff]  }
  0x78   : > { %1380 = vmatpush2.bf16.msra.mxu0 %v3410_v29  ;;  %1607 = vmatprep.subr.bf16.mxu1 %v3567_v1  ;;  %v505_v29 = vsel %vm3797_vm6, 0, %v504_v37 }
  0x79   : > { %1381 = vmatprep.subr.bf16.mxu0 %v3567_v1  ;;  %506 = vst [vmem:[#allocation2 + $0x78] sm:$0x88] %v505_v29  ;;  %v3522_v61 = vpop.eup %3521  ;;  %v3435_v29 = vld [vmem:[%s4559_s5 + $0x1e0] sm:$0xff]  }
  0x7a   : > { %v735_v63 = vadd.f32 1.0, %v3522_v61  ;;  %v3524_v9 = vpop.eup %3523  ;;  %v3445_v61 = vld [vmem:[%s4559_s5 + $0x2d8] sm:$0xff]  }
  0x7b   : > { %1608 = vmatpush2.bf16.msra.mxu1 %v3413_v21  ;;  %v3422_v21 = vld [vmem:[%s4559_s5 + $0x1a8] sm:$0xff]   ;;  %v740_v24 = vmul.f32 %v3524_v9, %v3831_v4 }
  0x7c   : > { %1382 = vmatpush2.bf16.msra.mxu0 %v3414_v49  ;;  %1609 = vmatprep.subr.bf16.mxu1 %v3567_v1  ;;  %v1465_v49 = vsel %vm3938_vm3, %v3025_v62, %v4158_v32  ;;  %v3426_v62 = vld [vmem:[%s4559_s5 + $0x198] sm:$0xff]   ;;  %3525 = vrcp.f32 %v735_v63  ;;  %v3433_v4 = vld [vmem:[%s4559_s5 + $0x1e8] sm:$0xff]   ;;  %v3452_v63 = vld [vmem:[%s4559_s5 + $0x250] sm:$0xff]  }
  0x7d   : > { %1383 = vmatprep.subr.bf16.mxu0 %v3567_v1  ;;  %v3053_v7 = vcombine.high %v1452_v46, %v1465_v49  ;;  %v3052_v60 = vcombine.low %v1452_v46, %v1465_v49  ;;  %v742_v14 = vpack.c.bf16 %v740_v24, %v740_v24  ;;  %v3440_v46 = vld [vmem:[%s4559_s5 + $0x1c0] sm:$0xff]  }
  0x7f   : > { %1610 = vmatpush2.bf16.msra.mxu1 %v3415_v57  ;;  %v4202_v57 = vsel %vm3987_vm7, %v3982_v18, %v1830_v51  ;;  %v3425_v18 = vld [vmem:[%s4559_s5 + $0x208] sm:$0xff]   ;;  %v761_v33 = vmul.bf16 %v759_v38, %v742_v14  ;;  %v2451_v14 = vld [vmem:[#allocation2 + $0x50] sm:$0xff] }
  0x80   : > { %1384 = vmatpush2.bf16.msra.mxu0 %v3416_v58  ;;  %1611 = vmatprep.subr.bf16.mxu1 %v3567_v1  ;;  %v4207_v58 = vsel %vm3987_vm7, %v4108_v36, %v1844_v6  ;;  %v3441_v51 = vld [vmem:[%s4559_s5 + $0x228] sm:$0xff]   ;;  %v3095_v6 = vcombine.high %v4015_v48, %v4116_v2  ;;  %v2051_v24 = vld [vmem:[#allocation2 + $0x78] sm:$0x88] }
  0x81   : > { %1757 = vmatprep.subr.bf16.mxu0 %v3567_v1  ;;  %v3135_v36 = vcombine.high %v4202_v57, %v4207_v58  ;;  %v3134_v10 = vcombine.low %v4202_v57, %v4207_v58  ;;  %v3446_v57 = vld [vmem:[%s4559_s5 + $0x268] sm:$0xff]   ;;  %v3448_v58 = vld [vmem:[%s4559_s5 + $0x260] sm:$0xff]  }
  0x83   : > { %1386 = vmatmul.mubr.bf16.vlgmr.msra.gmra.mxu0 %v3004_v12  ;;  %1612 = vmatpush2.bf16.msra.mxu1 %v3417_v22  ;;  %v2492_v22 = vor.u32 %v4233_v20, %v4229_v3  ;;  %v3431_v12 = vld [vmem:[%s4559_s5 + $0x1f0] sm:$0xff]   ;;  %v3456_v20 = vld [vmem:[%s4559_s5 + $0x240] sm:$0xff]  }
  0x84   : > { %1758 = vmatpush1.bf16.msra.mxu0 %v3418_v13  ;;  %1613 = vmatprep.subr.bf16.mxu1 %v3567_v1  ;;  %v3432_v13 = vld [vmem:[%s4559_s5 + $0x180] sm:$0xff]   ;;  %v3455_v3 = vld [vmem:[%s4559_s5 + $0x2b0] sm:$0xff]  }
  0x85   : > { %1759 = vmatprep.subr.bf16.mxu0 %v3567_v1  ;;  %3021 = vmatprep.mubr.msk.bf16.mxu0 %vm972_vm1, %v3007_v25  ;;  %v3434_v25 = vld [vmem:[%s4559_s5 + $0x1d8] sm:$0xff]  }
  0x87   : > { %1614 = vmatpush2.bf16.msra.mxu1 %v3419_v35  ;;  %v3436_v35 = vld [vmem:[%s4559_s5 + $0x1d0] sm:$0xff]  }
  0x88   : > { %1760 = vmatpush1.bf16.msra.mxu0 %v3420_v42  ;;  %1991 = vmatprep.subr.bf16.mxu1 %v3567_v1 }
  0x89   : > { %1761 = vmatprep.subr.bf16.mxu0 %v3567_v1  ;;  %v3526_v37 = vpop.eup %3525 }
  0x8a   : > { %1616 = vmatmul.mubr.bf16.vlgmr.msra.gmra.mxu1 %v3050_v45  ;;  %v741_v27 = vmul.f32 %v3526_v37, %v3834_v5  ;;  %v1815_v45 = vld [vmem:[#allocation2 + $0x58] sm:$0x11] }
  0x8b   : > { %1394 = vmatmul.mubr.bf16.gmra.mxu0 %v3006_v53  ;;  %1992 = vmatpush1.bf16.msra.mxu1 %v3421_v44  ;;  %v3438_v44 = vld [vmem:[%s4559_s5 + $0x1c8] sm:$0xff]   ;;  %v1856_v50 = vshll.u32 %v1815_v45, 16  ;;  %v3442_v53 = vld [vmem:[%s4559_s5 + $0x278] sm:$0xff]  }
  0x8c   : > { %1762 = vmatpush1.bf16.msra.mxu0 %v3422_v21  ;;  %1993 = vmatprep.subr.bf16.mxu1 %v3567_v1  ;;  %v743_v31 = vpack.c.bf16 %v741_v27, %v741_v27  ;;  %v1817_v21 = vld [vmem:[#allocation2 + $0x70] sm:$0x11]  ;;  %v3461_v27 = vld [vmem:[%s4559_s5 + $0x2f8] sm:$0xff]  }
  0x8d   : > { %1763 = vmatprep.subr.bf16.mxu0 %v3567_v1  ;;  %3067 = vmatprep.mubr.msk.bf16.mxu1 %vm972_vm1, %v3053_v7  ;;  %v1870_v49 = vshll.u32 %v1817_v21, 16  ;;  %v1858_v7 = vrot.slane %v1856_v50, 5 }
  0x8e   : > { %3108 = vmatprep.mubr.msk.bf16.mxu0 %vm972_vm1, %v3093_v17  ;;  %v762_v42 = vmul.bf16 %v759_v38, %v743_v31  ;;  %v4314_v17 = vrot.slane %v2492_v22, 4 }
  0x8f   : > { %1994 = vmatpush1.bf16.msra.mxu1 %v3423_v55  ;;  %v1872_v55 = vrot.slane %v1870_v49, 5  ;;  %v1859_v43 = vsel %vm3987_vm7, %v4110_v39, %v1858_v7  ;;  %v3464_v49 = vld [vmem:[%s4559_s5 + $0x280] sm:$0xff]  }
  0x90   : > { %1764 = vmatpush1.bf16.msra.mxu0 %v3424_v56  ;;  %1995 = vmatprep.subr.bf16.mxu1 %v3567_v1  ;;  %v2915_v5 = vcombine.low %v761_v33, %v762_v42  ;;  %v3443_v56 = vld [vmem:[%s4559_s5 + $0x220] sm:$0xff]   ;;  %v3462_v42 = vld [vmem:[%s4559_s5 + $0x288] sm:$0xff]  }
  0x91   : > { %1765 = vmatprep.subr.bf16.mxu0 %v3567_v1 }
  0x92   : > { %1624 = vmatmul.mubr.bf16.gmra.mxu1 %v3052_v60  ;;  %770 = vst.msk [vmem:[#allocation2 + $0x80] sm:$0xff] %vm3899_vm0, %v2915_v5  ;;  %v3094_v60 = vcombine.low %v4015_v48, %v4116_v2  ;;  %v3447_v48 = vld [vmem:[%s4559_s5 + $0x2d0] sm:$0xff]  }
  0x93   : > { %1996 = vmatpush1.bf16.msra.mxu1 %v3425_v18  ;;  %3150 = vmatprep.mubr.msk.bf16.mxu1 %vm972_vm1, %v3135_v36  ;;  %v3449_v36 = vld [vmem:[%s4559_s5 + $0x2c8] sm:$0xff]  }
  0x94   : > { %1766 = vmatpush1.bf16.msra.mxu0 %v3426_v62  ;;  %1997 = vmatprep.subr.bf16.mxu1 %v3567_v1  ;;  %v3450_v62 = vld [vmem:[%s4559_s5 + $0x258] sm:$0xff]  }
  0x95   : > { %1767 = vmatprep.subr.bf16.mxu0 %v3567_v1 }
  0x97   : > { %1998 = vmatpush1.bf16.msra.mxu1 %v3427_v30  ;;  %v3457_v30 = vld [vmem:[%s4559_s5 + $0x2a8] sm:$0xff]  }
  0x98   : > { %1768 = vmatpush1.bf16.msra.mxu0 %v3428_v8  ;;  %1999 = vmatprep.subr.bf16.mxu1 %v3567_v1  ;;  %v3458_v8 = vld [vmem:[%s4559_s5 + $0x298] sm:$0xff]  }
  0x99   : > { %1769 = vmatprep.subr.bf16.mxu0 %v3567_v1  ;;  %v4396_v22 = vld [vmem:[#allocation2 + $0x80] sm:$0xff] }
  0x9a   : > { %v2098_v9 = vshrl.u32 %v4396_v22, 16 }
  0x9b   : > { %2000 = vmatpush1.bf16.msra.mxu1 %v3429_v11  ;;  %v3459_v11 = vld [vmem:[%s4559_s5 + $0x2a0] sm:$0xff]  }
  0x9c   : > { %1770 = vmatpush1.bf16.msra.mxu0 %v3430_v23  ;;  %2001 = vmatprep.subr.bf16.mxu1 %v3567_v1  ;;  %v2049_v23 = vld [vmem:[#allocation2 + $0x60] sm:$0x88]  ;;  %v2100_v38 = vrot.slane %v2098_v9, 7 }
  0x9d   : > { %1771 = vmatprep.subr.bf16.mxu0 %v3567_v1  ;;  %v2080_v37 = vshrl.u32 %v2049_v23, 16 }
  0x9f   : > { %2002 = vmatpush1.bf16.msra.mxu1 %v3431_v12  ;;  %v3460_v12 = vld [vmem:[%s4559_s5 + $0x290] sm:$0xff]   ;;  %v3154_v5 = vrot.slane %v2080_v37, 11  ;;  %v3477_v37 = vld [vmem:[%s4559_s5 + $0x348] sm:$0xff]  }
  0xa0   : > { %1772 = vmatpush1.bf16.msra.mxu0 %v3432_v13  ;;  %2003 = vmatprep.subr.bf16.mxu1 %v3567_v1  ;;  %v2449_v13 = vld [vmem:[#allocation2 + $0x38] sm:$0xff] }
  0xa1   : > { %1781 = vmatprep.subr.bf16.mxu0 %v3567_v1  ;;  %v2458_v31 = vshrl.u32 %v2449_v13, 16  ;;  %v2461_v33 = vshll.u32 %v2449_v13, 16  ;;  %v3475_v13 = vld [vmem:[%s4559_s5 + $0x358] sm:$0xff]  }
  0xa3   : > { %2004 = vmatpush1.bf16.msra.mxu1 %v3433_v4  ;;  %v2093_v4 = vshrl.u32 %v2051_v24, 16  ;;  %v2460_v45 = vrot.slane %v2458_v31, 4  ;;  %v2463_v21 = vrot.slane %v2461_v33, 5 }
  0xa4   : > { %1782 = vmatpush2.bf16.msra.mxu0 %v3434_v25  ;;  %2005 = vmatprep.subr.bf16.mxu1 %v3567_v1  ;;  %v2101_v25 = vshll.u32 %v4396_v22, 16 }
  0xa5   : > { %1783 = vmatprep.subr.bf16.mxu0 %v3567_v1 }
  0xa7   : > { %2006 = vmatpush1.bf16.msra.mxu1 %v3435_v29  ;;  %v2472_v29 = vshrl.u32 %v2451_v14, 16 }
  0xa8   : > { %1784 = vmatpush2.bf16.msra.mxu0 %v3436_v35  ;;  %2015 = vmatprep.subr.bf16.mxu1 %v3567_v1  ;;  %v2475_v35 = vshll.u32 %v2451_v14, 16  ;;  %v3476_v14 = vld [vmem:[%s4559_s5 + $0x350] sm:$0xff]  }
  0xa9   : > { %1785 = vmatprep.subr.bf16.mxu0 %v3567_v1 }
  0xaa   : > { %v2477_v50 = vrot.slane %v2475_v35, 5 }
  0xab   : > { %2016 = vmatpush2.bf16.msra.mxu1 %v3437_v52  ;;  %v3155_v52 = vrot.slane %v2093_v4, 11  ;;  %v3478_v4 = vld [vmem:[%s4559_s5 + $0x340] sm:$0xff]  }
  0xac   : > { %1786 = vmatpush2.bf16.msra.mxu0 %v3438_v44  ;;  %2017 = vmatprep.subr.bf16.mxu1 %v3567_v1  ;;  %v2103_v44 = vor.u32 %v2101_v25, %v2100_v38 }
  0xad   : > { %1787 = vmatprep.subr.bf16.mxu0 %v3567_v1 }
  0xae   : > { %v2104_v7 = vsel %vm3938_vm3, %v3155_v52, %v2103_v44 }
  0xaf   : > { %2018 = vmatpush2.bf16.msra.mxu1 %v3439_v19  ;;  %v3463_v19 = vld [vmem:[%s4559_s5 + $0x2f0] sm:$0xff]  }
  0xb0   : > { %1788 = vmatpush2.bf16.msra.mxu0 %v3440_v46  ;;  %2019 = vmatprep.subr.bf16.mxu1 %v3567_v1  ;;  %v2474_v46 = vrot.slane %v2472_v29, 4 }
  0xb1   : > { %2222 = vmatprep.subr.bf16.mxu0 %v3567_v1 }
  0xb3   : > { %1790 = vmatmul.mubr.bf16.vlgmr.msra.gmra.mxu0 %v3092_v47  ;;  %2020 = vmatpush2.bf16.msra.mxu1 %v3441_v51  ;;  %v1873_v47 = vsel %vm3987_vm7, %v4314_v17, %v1872_v55  ;;  %v2450_v51 = vld [vmem:[#allocation2 + $0x40] sm:$0x11]  ;;  %v3465_v55 = vld [vmem:[%s4559_s5 + $0x2e8] sm:$0xff]  }
  0xb4   : > { %2223 = vmatpush1.bf16.msra.mxu0 %v3442_v53  ;;  %2021 = vmatprep.subr.bf16.mxu1 %v3567_v1  ;;  %v3137_v39 = vcombine.high %v1859_v43, %v1873_v47  ;;  %v3136_v18 = vcombine.low %v1859_v43, %v1873_v47  ;;  %v2452_v53 = vld [vmem:[#allocation2 + $0x58] sm:$0x11] }
  0xb5   : > { %2224 = vmatprep.subr.bf16.mxu0 %v3567_v1  ;;  %3109 = vmatprep.mubr.msk.bf16.mxu0 %vm972_vm1, %v3095_v6  ;;  %v2091_v6 = vsel %vm3938_vm3, %v3154_v5, %v4158_v32  ;;  %v2481_v43 = vshll.u32 %v2452_v53, 16  ;;  %v3466_v47 = vld [vmem:[%s4559_s5 + $0x338] sm:$0xff]   ;;  %v2502_v32 = vrot.slane %v2098_v9, 4 }
  0xb6   : > { %v3183_v40 = vcombine.high %v2091_v6, %v2104_v7  ;;  %v3182_v16 = vcombine.low %v2091_v6, %v2104_v7 }
  0xb7   : > { %2022 = vmatpush2.bf16.msra.mxu1 %v3443_v56  ;;  %v2464_v56 = vor.u32 %v2463_v21, %v2460_v45 }
  0xb8   : > { %2225 = vmatpush1.bf16.msra.mxu0 %v3444_v41  ;;  %2396 = vmatprep.subr.bf16.mxu1 %v3567_v1  ;;  %v2467_v41 = vshll.u32 %v2450_v51, 16 }
  0xb9   : > { %2226 = vmatprep.subr.bf16.mxu0 %v3567_v1 }
  0xba   : > { %2024 = vmatmul.mubr.bf16.vlgmr.msra.gmra.mxu1 %v3134_v10  ;;  %v2478_v10 = vor.u32 %v2477_v50, %v2474_v46 }
  0xbb   : > { %1798 = vmatmul.mubr.bf16.gmra.mxu0 %v3094_v60  ;;  %2397 = vmatpush1.bf16.msra.mxu1 %v3445_v61  ;;  %v2505_v60 = vrot.slane %v2101_v25, 5  ;;  %v2454_v61 = vld [vmem:[#allocation2 + $0x70] sm:$0x11] }
  0xbc   : > { %2227 = vmatpush1.bf16.msra.mxu0 %v3446_v57  ;;  %2398 = vmatprep.subr.bf16.mxu1 %v3567_v1  ;;  %v2456_v57 = vld [vmem:[#allocation2 + $0x88] sm:$0x11] }
  0xbd   : > { %2228 = vmatprep.subr.bf16.mxu0 %v3567_v1  ;;  %3151 = vmatprep.mubr.msk.bf16.mxu1 %vm972_vm1, %v3137_v39  ;;  %v3467_v39 = vld [vmem:[%s4559_s5 + $0x2e0] sm:$0xff]   ;;  %v2509_v15 = vshll.u32 %v2456_v57, 16 }
  0xbe   : > { %3196 = vmatprep.mubr.msk.bf16.mxu0 %vm972_vm1, %v3181_v59  ;;  %v3451_v59 = vld [vmem:[%s4559_s5 + $0x2c0] sm:$0xff]  }
  0xbf   : > { %2399 = vmatpush1.bf16.msra.mxu1 %v3447_v48  ;;  %v2465_v48 = vrot.slane %v2464_v56, 4 }
  0xc0   : > { %2229 = vmatpush1.bf16.msra.mxu0 %v3448_v58  ;;  %2400 = vmatprep.subr.bf16.mxu1 %v3567_v1  ;;  %v2469_v58 = vrot.slane %v2467_v41, 5 }
  0xc1   : > { %2230 = vmatprep.subr.bf16.mxu0 %v3567_v1 }
  0xc2   : > { %2032 = vmatmul.mubr.bf16.gmra.mxu1 %v3136_v18  ;;  %v2479_v18 = vrot.slane %v2478_v10, 4 }
  0xc3   : > { %2401 = vmatpush1.bf16.msra.mxu1 %v3449_v36  ;;  %3238 = vmatprep.mubr.msk.bf16.mxu1 %vm972_vm1, %v4024_v34  ;;  %v3454_v34 = vld [vmem:[%s4559_s5 + $0x248] sm:$0xff]   ;;  %v2483_v36 = vrot.slane %v2481_v43, 5 }
  0xc4   : > { %2231 = vmatpush1.bf16.msra.mxu0 %v3450_v62  ;;  %2402 = vmatprep.subr.bf16.mxu1 %v3567_v1  ;;  %v3468_v62 = vld [vmem:[%s4559_s5 + $0x330] sm:$0xff]  }
  0xc5   : > { %2232 = vmatprep.subr.bf16.mxu0 %v3567_v1 }
  0xc7   : > { %2403 = vmatpush1.bf16.msra.mxu1 %v3451_v59  ;;  %v2495_v59 = vshll.u32 %v2454_v61, 16 }
  0xc8   : > { %2233 = vmatpush1.bf16.msra.mxu0 %v3452_v63  ;;  %2404 = vmatprep.subr.bf16.mxu1 %v3567_v1  ;;  %v2506_v63 = vor.u32 %v2505_v60, %v2502_v32 }
  0xc9   : > { %2234 = vmatprep.subr.bf16.mxu0 %v3567_v1 }
  0xcb   : > { %2405 = vmatpush1.bf16.msra.mxu1 %v3453_v0  ;;  %v4460_v0 = vsel %vm3987_vm7, %v2479_v18, %v2483_v36 }
  0xcc   : > { %2235 = vmatpush1.bf16.msra.mxu0 %v3454_v34  ;;  %2406 = vmatprep.subr.bf16.mxu1 %v3567_v1  ;;  %v3469_v34 = vld [vmem:[%s4559_s5 + $0x328] sm:$0xff]  }
  0xcd   : > { %2236 = vmatprep.subr.bf16.mxu0 %v3567_v1 }
  0xcf   : > { %2407 = vmatpush1.bf16.msra.mxu1 %v3455_v3  ;;  %v2497_v3 = vrot.slane %v2495_v59, 5 }
  0xd0   : > { %2237 = vmatpush1.bf16.msra.mxu0 %v3456_v20  ;;  %2408 = vmatprep.subr.bf16.mxu1 %v3567_v1  ;;  %v2507_v20 = vrot.slane %v2506_v63, 4 }
  0xd1   : > { %2246 = vmatprep.subr.bf16.mxu0 %v3567_v1  ;;  %v2498_v23 = vsel %vm3987_vm7, %v4314_v17, %v2497_v3  ;;  %v3471_v17 = vld [vmem:[%s4559_s5 + $0x318] sm:$0xff]  }
  0xd3   : > { %2409 = vmatpush1.bf16.msra.mxu1 %v3457_v30  ;;  %v2511_v30 = vrot.slane %v2509_v15, 5 }
  0xd4   : > { %2247 = vmatpush2.bf16.msra.mxu0 %v3458_v8  ;;  %2410 = vmatprep.subr.bf16.mxu1 %v3567_v1  ;;  %v3225_v8 = vcombine.high %v4116_v2, %v4396_v22 }
  0xd5   : > { %2248 = vmatprep.subr.bf16.mxu0 %v3567_v1  ;;  %v2512_v24 = vsel %vm3987_vm7, %v2507_v20, %v2511_v30 }
  0xd6   : > { %v3266_v31 = vcombine.low %v2498_v23, %v2512_v24 }
  0xd7   : > { %2411 = vmatpush1.bf16.msra.mxu1 %v3459_v11  ;;  %v3470_v11 = vld [vmem:[%s4559_s5 + $0x320] sm:$0xff]  }
  0xd8   : > { %2249 = vmatpush2.bf16.msra.mxu0 %v3460_v12  ;;  %2420 = vmatprep.subr.bf16.mxu1 %v3567_v1  ;;  %v3267_v12 = vcombine.high %v2498_v23, %v2512_v24 }
  0xd9   : > { %2250 = vmatprep.subr.bf16.mxu0 %v3567_v1 }
  0xdb   : > { %2421 = vmatpush2.bf16.msra.mxu1 %v3461_v27 }
  0xdc   : > { %2251 = vmatpush2.bf16.msra.mxu0 %v3462_v42  ;;  %2422 = vmatprep.subr.bf16.mxu1 %v3567_v1 }
  0xdd   : > { %2252 = vmatprep.subr.bf16.mxu0 %v3567_v1 }
  0xdf   : > { %2423 = vmatpush2.bf16.msra.mxu1 %v3463_v19 }
  0xe0   : > { %2253 = vmatpush2.bf16.msra.mxu0 %v3464_v49  ;;  %2424 = vmatprep.subr.bf16.mxu1 %v3567_v1 }
  0xe1   : > { %2630 = vmatprep.subr.bf16.mxu0 %v3567_v1 }
  0xe3   : > { %2255 = vmatmul.mubr.bf16.vlgmr.msra.gmra.mxu0 %v3180_v28  ;;  %2425 = vmatpush2.bf16.msra.mxu1 %v3465_v55  ;;  %v4456_v28 = vsel %vm3987_vm7, %v2465_v48, %v2469_v58 }
  0xe4   : > { %2631 = vmatpush1.bf16.msra.mxu0 %v3466_v47  ;;  %2426 = vmatprep.subr.bf16.mxu1 %v3567_v1  ;;  %v3265_v9 = vcombine.high %v4456_v28, %v4460_v0  ;;  %v3264_v38 = vcombine.low %v4456_v28, %v4460_v0 }
  0xe5   : > { %2632 = vmatprep.subr.bf16.mxu0 %v3567_v1  ;;  %3197 = vmatprep.mubr.msk.bf16.mxu0 %vm972_vm1, %v3183_v40 }
  0xe7   : > { %2427 = vmatpush2.bf16.msra.mxu1 %v3467_v39 }
  0xe8   : > { %2633 = vmatpush1.bf16.msra.mxu0 %v3468_v62  ;;  %3302 = vmatprep.subr.bf16.mxu1 %v3567_v1 }
  0xe9   : > { %2634 = vmatprep.subr.bf16.mxu0 %v3567_v1 }
  0xea   : > { %2429 = vmatmul.mubr.bf16.vlgmr.msra.gmra.mxu1 %v4028_v54  ;;  %v3224_v54 = vcombine.low %v4116_v2, %v4396_v22  ;;  %v3473_v2 = vld [vmem:[%s4559_s5 + $0x308] sm:$0xff]   ;;  %v3474_v22 = vld [vmem:[%s4559_s5 + $0x300] sm:$0xff]  }
  0xeb   : > { %2263 = vmatmul.mubr.bf16.gmra.mxu0 %v3182_v16  ;;  %3314 = vmatpush1.bf16.msra.mxu1 %v3466_v47 }
  0xec   : > { %2635 = vmatpush1.bf16.msra.mxu0 %v3469_v34  ;;  %3303 = vmatprep.subr.bf16.mxu1 %v3567_v1 }
  0xed   : > { %2636 = vmatprep.subr.bf16.mxu0 %v3567_v1  ;;  %3239 = vmatprep.mubr.msk.bf16.mxu1 %vm972_vm1, %v3225_v8 }
  0xee   : > { %3280 = vmatprep.mubr.msk.bf16.mxu0 %vm972_vm1, %v3265_v9 }
  0xef   : > { %3315 = vmatpush1.bf16.msra.mxu1 %v3468_v62 }
  0xf0   : > { %2637 = vmatpush1.bf16.msra.mxu0 %v3470_v11  ;;  %3304 = vmatprep.subr.bf16.mxu1 %v3567_v1 }
  0xf1   : > { %2638 = vmatprep.subr.bf16.mxu0 %v3567_v1 }
  0xf2   : > { %2437 = vmatmul.mubr.bf16.gmra.mxu1 %v3224_v54 }
  0xf3   : > { %3316 = vmatpush1.bf16.msra.mxu1 %v3469_v34  ;;  %3281 = vmatprep.mubr.msk.bf16.mxu1 %vm972_vm1, %v3267_v12 }
  0xf4   : > { %2639 = vmatpush1.bf16.msra.mxu0 %v3471_v17  ;;  %3305 = vmatprep.subr.bf16.mxu1 %v3567_v1 }
  0xf5   : > { %2640 = vmatprep.subr.bf16.mxu0 %v3567_v1 }
  0xf7   : > { %3317 = vmatpush1.bf16.msra.mxu1 %v3470_v11 }
  0xf8   : > { %2641 = vmatpush1.bf16.msra.mxu0 %v3472_v26  ;;  %3306 = vmatprep.subr.bf16.mxu1 %v3567_v1 }
  0xf9   : > { %2642 = vmatprep.subr.bf16.mxu0 %v3567_v1 }
  0xfb   : > { %3318 = vmatpush1.bf16.msra.mxu1 %v3471_v17 }
  0xfc   : > { %2643 = vmatpush1.bf16.msra.mxu0 %v3473_v2  ;;  %3307 = vmatprep.subr.bf16.mxu1 %v3567_v1 }
  0xfd   : > { %2644 = vmatprep.subr.bf16.mxu0 %v3567_v1 }
  0xff   : > { %3319 = vmatpush1.bf16.msra.mxu1 %v3472_v26 }
 0x100   : > { %2645 = vmatpush1.bf16.msra.mxu0 %v3474_v22  ;;  %3308 = vmatprep.subr.bf16.mxu1 %v3567_v1 }
 0x101   : > { %2654 = vmatprep.subr.bf16.mxu0 %v3567_v1 }
 0x103   : > { %3320 = vmatpush1.bf16.msra.mxu1 %v3473_v2 }
 0x104   : > { %2655 = vmatpush2.bf16.msra.mxu0 %v3475_v13  ;;  %3309 = vmatprep.subr.bf16.mxu1 %v3567_v1 }
 0x105   : > { %2656 = vmatprep.subr.bf16.mxu0 %v3567_v1 }
 0x107   : > { %3321 = vmatpush1.bf16.msra.mxu1 %v3474_v22 }
 0x108   : > { %2657 = vmatpush2.bf16.msra.mxu0 %v3476_v14  ;;  %3310 = vmatprep.subr.bf16.mxu1 %v3567_v1 }
 0x109   : > { %2658 = vmatprep.subr.bf16.mxu0 %v3567_v1 }
 0x10b   : > { %3322 = vmatpush2.bf16.msra.mxu1 %v3475_v13 }
 0x10c   : > { %2659 = vmatpush2.bf16.msra.mxu0 %v3477_v37  ;;  %3311 = vmatprep.subr.bf16.mxu1 %v3567_v1 }
 0x10d   : > { %2660 = vmatprep.subr.bf16.mxu0 %v3567_v1 }
 0x10f   : > { %3323 = vmatpush2.bf16.msra.mxu1 %v3476_v14 }
 0x110   : > { %2661 = vmatpush2.bf16.msra.mxu0 %v3478_v4  ;;  %3312 = vmatprep.subr.bf16.mxu1 %v3567_v1 }
 0x113   : > { %3324 = vmatpush2.bf16.msra.mxu1 %v3477_v37  ;;  %2663 = vmatmul.mubr.bf16.vlgmr.msra.gmra.mxu0 %v3264_v38  ;;  %v1013_v25 = vpop.f32.mrf.mxu0 }
 0x114   : > { %3313 = vmatprep.subr.bf16.mxu1 %v3567_v1 }
 0x115   : > { %v1015_v27 = vpop.f32.mrf.mxu0 }
 0x117   : > { %3325 = vmatpush2.bf16.msra.mxu1 %v3478_v4  ;;  %v1016_v33 = vpop.f32.mrf.mxu0 }
 0x119   : > { %v1018_v29 = vpop.f32.mrf.mxu0 }
 0x11a   : > { %2671 = vmatmul.mubr.bf16.vlgmr.msra.gmra.mxu1 %v3266_v31  ;;  %v1154_v35 = vpop.f32.mrf.mxu1 }
 0x11b   : > { %v1155_v42 = vadd.f32 %v1154_v35, %v1013_v25 }
 0x11c   : > { %v1156_v5 = vpop.f32.mrf.mxu1 }
 0x11e   : > { %v1157_v52 = vpop.f32.mrf.mxu1 }
 0x11f   : > { %v1158_v44 = vadd.f32 %v1157_v52, %v1016_v33 }
 0x120   : > { %v1159_v19 = vpop.f32.mrf.mxu1 }
 0x123   : > { %v1021_v45 = vpop.f32.mrf.mxu0 }
 0x125   : > { %v1023_v21 = vpop.f32.mrf.mxu0 }
 0x127   : > { %v1024_v46 = vpop.f32.mrf.mxu0 }
 0x129   : > { %v1026_v50 = vpop.f32.mrf.mxu0 }
 0x12a   : > { %v1162_v49 = vpop.f32.mrf.mxu1 }
 0x12b   : > { %v1163_v51 = vadd.f32 %v1162_v49, %v1021_v45 }
 0x12c   : > { %v1164_v53 = vpop.f32.mrf.mxu1 }
 0x12e   : > { %v1165_v1 = vpop.f32.mrf.mxu1 }
 0x12f   : > { %v1166_v6 = vadd.f32 %v1165_v1, %v1024_v46 }
 0x130   : > { %v1167_v7 = vpop.f32.mrf.mxu1 }
 0x143   : > { %v1387_v55 = vpop.f32.mrf.mxu0 }
 0x144   : > { %v1402_v56 = vadd.f32 %v1387_v55, %v1155_v42 }
 0x145   : > { %v1389_v41 = vpop.f32.mrf.mxu0 }
 0x147   : > { %v1390_v10 = vpop.f32.mrf.mxu0 }
 0x148   : > { %v1403_v43 = vadd.f32 %v1390_v10, %v1158_v44 }
 0x149   : > { %v1392_v47 = vpop.f32.mrf.mxu0 }
 0x14a   : > { %v1617_v32 = vpop.f32.mrf.mxu1 }
 0x14b   : > { %v1632_v60 = vadd.f32 %v1617_v32, %v1402_v56  ;;  %v1395_v40 = vpop.f32.mrf.mxu0 }
 0x14c   : > { %v1404_v61 = vadd.f32 %v1395_v40, %v1163_v51  ;;  %v1619_v57 = vpop.f32.mrf.mxu1 }
 0x14d   : > { %v1397_v39 = vpop.f32.mrf.mxu0 }
 0x14e   : > { %v1620_v48 = vpop.f32.mrf.mxu1 }
 0x14f   : > { %v1633_v58 = vadd.f32 %v1620_v48, %v1403_v43  ;;  %v1398_v18 = vpop.f32.mrf.mxu0 }
 0x150   : > { %v1405_v36 = vadd.f32 %v1398_v18, %v1166_v6  ;;  %v1622_v62 = vpop.f32.mrf.mxu1 }
 0x151   : > { %v1400_v59 = vpop.f32.mrf.mxu0 }
 0x152   : > { %v1625_v63 = vpop.f32.mrf.mxu1 }
 0x153   : > { %v1634_v15 = vadd.f32 %v1625_v63, %v1404_v61 }
 0x154   : > { %v1627_v16 = vpop.f32.mrf.mxu1 }
 0x156   : > { %v1628_v28 = vpop.f32.mrf.mxu1 }
 0x157   : > { %v1635_v0 = vadd.f32 %v1628_v28, %v1405_v36 }
 0x158   : > { %v1630_v34 = vpop.f32.mrf.mxu1 }
 0x173   : > { %v1791_v3 = vpop.f32.mrf.mxu0 }
 0x174   : > { %v1806_v20 = vadd.f32 %v1791_v3, %v1632_v60  ;;  %v3282_v60 = vld [vmem:[%s4560_s6] ss:$0 sm:$0xff] }
 0x175   : > { %v1793_v30 = vpop.f32.mrf.mxu0 }
 0x177   : > { %v1794_v8 = vpop.f32.mrf.mxu0 }
 0x178   : > { %v1807_v9 = vadd.f32 %v1794_v8, %v1633_v58 }
 0x179   : > { %v1796_v11 = vpop.f32.mrf.mxu0 }
 0x17a   : > { %v2025_v23 = vpop.f32.mrf.mxu1 }
 0x17b   : > { %v2040_v24 = vadd.f32 %v2025_v23, %v1806_v20  ;;  %v1799_v54 = vpop.f32.mrf.mxu0 }
 0x17c   : > { %v1808_v12 = vadd.f32 %v1799_v54, %v1634_v15  ;;  %v2027_v17 = vpop.f32.mrf.mxu1 }
 0x17d   : > { %v1801_v26 = vpop.f32.mrf.mxu0 }
 0x17e   : > { %v2028_v2 = vpop.f32.mrf.mxu1 }
 0x17f   : > { %v2041_v22 = vadd.f32 %v2028_v2, %v1807_v9  ;;  %v1802_v13 = vpop.f32.mrf.mxu0 }
 0x180   : > { %v1809_v14 = vadd.f32 %v1802_v13, %v1635_v0  ;;  %v2030_v37 = vpop.f32.mrf.mxu1 }
 0x181   : > { %v1804_v4 = vpop.f32.mrf.mxu0 }
 0x182   : > { %v2033_v38 = vpop.f32.mrf.mxu1 }
 0x183   : > { %v2042_v25 = vadd.f32 %v2033_v38, %v1808_v12 }
 0x184   : > { %v2035_v27 = vpop.f32.mrf.mxu1 }
 0x186   : > { %v2036_v31 = vpop.f32.mrf.mxu1 }
 0x187   : > { %v2043_v33 = vadd.f32 %v2036_v31, %v1809_v14 }
 0x188   : > { %v2038_v29 = vpop.f32.mrf.mxu1 }
 0x1a3   : > { %v2256_v35 = vpop.f32.mrf.mxu0 }
 0x1a4   : > { %v2271_v55 = vadd.f32 %v2256_v35, %v2040_v24 }
 0x1a5   : > { %v2258_v42 = vpop.f32.mrf.mxu0 }
 0x1a7   : > { %v2259_v5 = vpop.f32.mrf.mxu0 }
 0x1a8   : > { %v2272_v41 = vadd.f32 %v2259_v5, %v2041_v22 }
 0x1a9   : > { %v2261_v52 = vpop.f32.mrf.mxu0 }
 0x1aa   : > { %v2430_v44 = vpop.f32.mrf.mxu1 }
 0x1ab   : > { %v2264_v19 = vpop.f32.mrf.mxu0  ;;  %v2445_v10 = vadd.f32 %v2430_v44, %v2271_v55 }
 0x1ac   : > { %v2432_v45 = vpop.f32.mrf.mxu1  ;;  %v2273_v57 = vadd.f32 %v2264_v19, %v2042_v25 }
 0x1ad   : > { %v2266_v21 = vpop.f32.mrf.mxu0 }
 0x1ae   : > { %v2433_v46 = vpop.f32.mrf.mxu1 }
 0x1af   : > { %v2267_v50 = vpop.f32.mrf.mxu0  ;;  %v2446_v47 = vadd.f32 %v2433_v46, %v2272_v41 }
 0x1b0   : > { %v2435_v49 = vpop.f32.mrf.mxu1  ;;  %v2274_v36 = vadd.f32 %v2267_v50, %v2043_v33 }
 0x1b1   : > { %v2269_v51 = vpop.f32.mrf.mxu0 }
 0x1b2   : > { %v2438_v53 = vpop.f32.mrf.mxu1 }
 0x1b3   : > { %v2447_v62 = vadd.f32 %v2438_v53, %v2273_v57 }
 0x1b4   : > { %v2440_v1 = vpop.f32.mrf.mxu1 }
 0x1b6   : > { %v2441_v6 = vpop.f32.mrf.mxu1 }
 0x1b7   : > { %v2448_v15 = vadd.f32 %v2441_v6, %v2274_v36 }
 0x1b8   : > { %v2443_v7 = vpop.f32.mrf.mxu1 }
 0x1d3   : > { %v2664_v56 = vpop.f32.mrf.mxu0 }
 0x1d4   : > { %v2679_v32 = vadd.f32 %v2664_v56, %v2445_v10 }
 0x1d5   : > { %v2666_v43 = vpop.f32.mrf.mxu0 }
 0x1d6   : > { %v2690_v48 = vadd.f32 %v3282_v60, %v2679_v32 }
 0x1d7   : > { %v2667_v40 = vpop.f32.mrf.mxu0 }
 0x1d8   : > { %v2680_v61 = vadd.f32 %v2667_v40, %v2446_v47 }
 0x1d9   : > { %v2669_v39 = vpop.f32.mrf.mxu0 }
 0x1da   : > { %v2691_v58 = vadd.f32 %v3282_v60, %v2680_v61  ;;  %v2672_v18 = vpop.f32.mrf.mxu1 }
 0x1db   : > { %v2681_v16 = vadd.f32 %v2672_v18, %v2447_v62 }
 0x1dc   : > { %v3294_v59 = vpack.c.bf16 %v2691_v58, %v2690_v48  ;;  %v2674_v63 = vpop.f32.mrf.mxu1 }
 0x1dd   : > { %v2692_v3 = vadd.f32 %v3282_v60, %v2681_v16 }
 0x1de   : > { %3295 = vst [vmem:[%s477_s17] sm:$0xff] %v3294_v59   ;;  %v2675_v28 = vpop.f32.mrf.mxu1 }
 0x1df   : > { %v2682_v0 = vadd.f32 %v2675_v28, %v2448_v15 }
 0x1e0   : > { %v2677_v34 = vpop.f32.mrf.mxu1 }
 0x1e1   : > { %v2693_v20 = vadd.f32 %v3282_v60, %v2682_v0 }
 0x1e3   : > { %v3299_v30 = vpack.c.bf16 %v2693_v20, %v2692_v3 }
 0x1e5   : > { %3301 = vst [vmem:[%s477_s17 + $0x8] sm:$0xff] %v3299_v30  }
 0x1e6 PF: > { %s17_s28 = sadd.s32 1, %s3565_s28   ;;  %s4581_s14 = sld [smem:[#allocation3_spill]] }
 0x1e7   : > { %p14_p0 = scmp.ge.s32.totalorder %s17_s28, 6   ;;  %s4582_s13 = sld [smem:[#allocation4_spill]] }
 0x1e8   : > { %s4583_s24 = smov %s3557_s26  ;;  %s4584_s25 = smov %s3561_s27 }
 0x1e9   :  { %16 = sbr.rel (!%p14_p0) target bundleno = 3 (0x3), region = 101 }
 0x1ec   : > { %s4585_s26 = smov %s4581_s14 }
 0x1ed   : > { %s4586_s27 = smov %s4582_s13 }

// kernel: up_decoder_block_2d.8
= control target key start
LH: loop header
LB: loop body
LE: loop exit
PB: predicated region body
PF: predicated region fallthrough
CT: control target
= control target key end

     0   :  { %s3451_s13 = smov 0   ;;  %s3453_s14 = smov 0   ;;  %s4055_s0 = inlined_call_operand.vmem [shape: bf16[2,8,8,128], index: 0, kind: input, shape index: {}, may-alias: {0,1,2}]   ;;  %s4056_s1 = inlined_call_operand.vmem [shape: bf16[2,8,8,128], index: 1, kind: input, shape index: {}, may-alias: {0,1,2}]   ;;  %s4057_s2 = inlined_call_operand.vmem [shape: bf16[2,8,8,128], index: 2, kind: input, shape index: {}, may-alias: {0,1,2}]   ;;  %s4058_s3 = inlined_call_operand.vmem [shape: f32[2,1,128], index: 3, kind: input, shape index: {}]   ;;  %s4059_s4 = inlined_call_operand.vmem [shape: f32[2,1,128], index: 4, kind: input, shape index: {}]   ;;  %s4060_s5 = inlined_call_operand.vmem [shape: bf16[9,128,128], index: 5, kind: input, shape index: {}]   ;;  %s4061_s6 = inlined_call_operand.vmem [shape: f32[1,128], index: 6, kind: input, shape index: {}]   ;;  %s4062_s7 = inlined_call_operand.vmem [shape: f32[2,8,8,192], index: 7, kind: input, shape index: {}]   ;;  %s4063_s8 = inlined_call_operand.vmem [shape: bf16[192,128], index: 8, kind: input, shape index: {}]   ;;  %s4064_s9 = inlined_call_operand.vmem [shape: f32[1,128], index: 9, kind: input, shape index: {}]   ;;  %s4065_s10 = inlined_call_operand.vmem [shape: f32[2,8,8,128], index: 10, kind: output, shape index: {}]  }
   0x1   :  { %4069 = sst [smem:[#allocation8_spill]] %s4055_s0  ;;  %s3455_s15 = smov 0  }
   0x2   :  { %s3457_s16 = smov 0   ;;  %s3459_s17 = smov 0  }
   0x3 LB: > { %4070 = sst [smem:[#allocation3_spill]] %s3385_s15  ;;  %s29_s18 = sadd.s32 1, %s3385_s15  ;;  %s3393_s17 = sphi %s3459_s17, %s20_s17   ;;  %s3389_s16 = sphi %s3457_s16, %s4089_s16   ;;  %s3385_s15 = sphi %s3455_s15, %s4088_s15   ;;  %s3381_s14 = sphi %s3453_s14, %s4087_s14   ;;  %s3377_s13 = sphi %s3451_s13, %s4086_s13  }
   0x4   : > { %4071 = sst [smem:[#allocation4_spill]] %s3389_s16  ;;  %s32_s19 = sadd.s32 1, %s3389_s16 }
   0x5   : > { %4072 = sst [smem:[#allocation5_spill]] %s3393_s17  ;;  %p30_p0 = scmp.ge.s32.totalorder %s29_s18, 2 }
   0x6   : > { %p2637_p1 = scmp.ge.s32.totalorder %s3393_s17, 1  ;;  %p429_p2 = scmp.lt.s32.totalorder %s3393_s17, 5 }
   0x7   : > { %s4091_s18 = smov (%p30_p0, %s29_s18), 0  ;;  %s4093_s19 = smov (!%p30_p0, %s32_s19), %s3389_s16 }
   0x8   : > { %4073 = sst [smem:[#allocation6_spill]] %s4091_s18  ;;  %p430_p3 = pnand %p2637_p1, %p429_p2 }
   0x9   : > { %p34_p4 = scmp.ge.s32.totalorder %s4093_s19, 2  ;;  %s3487_s22 = sshll.u32 (!%p430_p3), %s3377_s13, 2 }
   0xa   : > { %433 = sbr.rel (%p430_p3) target bundleno = 440 (0x1b8), region = 60  ;;  %p516_p5 = scmp.lt.s32.totalorder (!%p430_p3), %s3381_s14, 1 }
   0xb   : > { %s4095_s19 = smov (%p34_p4, %s4093_s19), 0  ;;  %p518_p6 = scmp.lt.s32.totalorder (!%p430_p3), %s3487_s22, 7 }
   0xc   : > { %4074 = sst [smem:[#allocation7_spill]] %s4095_s19  ;;  %s2642_s24 = sadd.s32 (!%p430_p3), 4294967295, %s3487_s22 }
   0xd   : > { %p527_p7 = scmp.gt.s32.totalorder (!%p430_p3), %s2642_s24, 0  ;;  %p2643_p8 = scmp.lt.s32.totalorder (!%p430_p3), %s2642_s24, 7 }
   0xe   : > { %s4075_s0 = sld [smem:[#allocation8_spill]] (!%p430_p3)  ;;  %s542_s20 = sadd.s32 (!%p430_p3), 4, %s3487_s22 }
   0xf   : > { %v3241_v0 = vld [vmem:[%s4060_s5 + $0x78] sm:$0xff]   ;;  %v3242_v1 = vld [vmem:[%s4060_s5 + $0x70] sm:$0xff]   ;;  %v3244_v3 = vld [vmem:[%s4060_s5 + $0x68] sm:$0xff]   ;;  %s4097_s14 = smov (!%p516_p5, %s3381_s14), 1  ;;  %s4099_s24 = smov (!%p527_p7, %s2642_s24), 0  ;;  %vm587_vm0 = vcmask 1043459  }
  0x10   : > { %3020 = vmatprep.subr.bf16.mxu0 %v3241_v0  ;;  %v3243_v2 = vld [vmem:[%s4060_s5 + $0x38] sm:$0xff]   ;;  %v3245_v4 = vld [vmem:[%s4060_s5 + $0x30] sm:$0xff]   ;;  %s3505_s11 = scalar_select %p518_p6, %s3487_s22, 7  ;;  %v3247_v5 = vld [vmem:[%s4060_s5 + $0x28] sm:$0xff]   ;;  %vm588_vm1 = vsmask.f32 7950 }
  0x11   : > { %3021 = vmatpush3.bf16.msra.mxu0 %v3241_v0  ;;  %3040 = vmatprep.subr.bf16.mxu1 %v3243_v2  ;;  %s3508_s12 = sshll.u32 %s4097_s14, 3  ;;  %v3246_v6 = vld [vmem:[%s4060_s5 + $0x60] sm:$0xff]   ;;  %v3248_v8 = vld [vmem:[%s4060_s5 + $0x58] sm:$0xff]   ;;  %s4101_s24 = smov (!%p2643_p8, %s4099_s24), 7  ;;  %v3250_v10 = vld [vmem:[%s4060_s5 + $0x50] sm:$0xff]   ;;  %vm608_vm3 = vcmask 1040384  }
  0x12   : > { %3022 = vmatprep.subr.bf16.mxu0 %v3242_v1  ;;  %3041 = vmatpush3.bf16.msra.mxu1 %v3243_v2  ;;  %s3515_s23 = sadd.s32 %s3508_s12, %s3505_s11  ;;  %v3249_v7 = vld [vmem:[%s4060_s5 + $0x20] sm:$0xff]   ;;  %s559_s16 = scalar_lea.vmem %s4058_s3, %s4097_s14  ;;  %v3251_v9 = vld [vmem:[%s4060_s5 + $0x18] sm:$0xff]   ;;  %v3253_v12 = vld [vmem:[%s4060_s5 + $0x10] sm:$0xff]   ;;  %vm609_vm4 = vsmask.f32 256  ;;  %vm2398_vm11 = vcmask 523264  }
  0x13   : > { %3042 = vmatprep.subr.bf16.mxu1 %v3245_v4  ;;  %s2640_s27 = sshll.u32 %s3515_s23, 2  ;;  %s562_s15 = scalar_lea.vmem %s4059_s4, %s4097_s14  ;;  %v3554_v16 = vld [vmem:[%s559_s16] ss:$0 sm:$0xff]  ;;  %v3252_v20 = vld [vmem:[%s4060_s5 + $0x48] sm:$0xff]   ;;  %v590_v30 = vld [vmem:[#allocation2] sm:$0x8] }
  0x14   : > { %s523_s21 = scalar_lea.vmem %s4075_s0, %s2640_s27  ;;  %s534_s27 = sadd.s32 %s4101_s24, %s3508_s12  ;;  %v3565_v21 = vld [vmem:[%s562_s15] ss:$0 sm:$0xff]  ;;  %v593_v31 = vld [vmem:[#allocation2 + $0xc] sm:$0x8]  ;;  %vm3587_vm2 = vmand %vm587_vm0, %vm588_vm1  ;;  %vm765_vm6 = vsmask.f32 4368 }
  0x15   : > { %3023 = vmatpush3.bf16.msra.mxu0 %v3242_v1  ;;  %s2649_s0 = sshll.u32 %s534_s27, 2  ;;  %v2922_v11 = vld [vmem:[%s523_s21] sm:$0xff]   ;;  %p706_p9 = scmp.gt.s32.totalorder %s3377_s13, 0  ;;  %v2929_v15 = vld [vmem:[%s523_s21 + $0x8] sm:$0xff]   ;;  %v591_v38 = vsel %vm3587_vm2, 0, %v590_v30  ;;  %v594_v41 = vsel %vm3587_vm2, 0, %v593_v31  ;;  %vm3642_vm5 = vmand %vm608_vm3, %vm609_vm4 }
  0x16   : > { %3024 = vmatprep.subr.bf16.mxu0 %v3244_v3  ;;  %3043 = vmatpush3.bf16.msra.mxu1 %v3245_v4  ;;  %s536_s17 = scalar_lea.vmem %s4056_s1, %s2649_s0  ;;  %v2923_v13 = vunpack.c.l.bf16 %v2922_v11  ;;  %v2924_v14 = vunpack.c.h.bf16 %v2922_v11  ;;  %v2928_v17 = vunpack.c.h.bf16 %v2929_v15  ;;  %v2927_v19 = vunpack.c.l.bf16 %v2929_v15  ;;  %p3561_p10 = scmp.lt.s32.totalorder %s542_s20, 7  ;;  %v3255_v35 = vld [vmem:[%s4060_s5 + $0x8] sm:$0xff]   ;;  %592 = vst [vmem:[#allocation2] sm:$0x8] %v591_v38  ;;  %v3254_v42 = vld [vmem:[%s4060_s5 + $0x40] sm:$0xff]   ;;  %v3631_v50 = vld [vmem:[%s4060_s5 + $0xb8] sm:$0xff]  }
  0x17   : > { %3044 = vmatprep.subr.bf16.mxu1 %v3247_v5  ;;  %v694_v18 = vld [vmem:[%s536_s17] sm:$0xf]  ;;  %s707_s0 = scalar_select %p706_p9, 1, 0  ;;  %595 = vst [vmem:[#allocation2 + $0xc] sm:$0x8] %v594_v41  ;;  %vm3690_vm9 = vmor %vm609_vm4, %vm765_vm6 }
  0x18   : > { %v643_v22 = vmul.f32 %v2923_v13, %v3554_v16  ;;  %v695_v23 = vunpack.c.l.bf16 %v694_v18  ;;  %v644_v24 = vmul.f32 %v2924_v14, %v3554_v16  ;;  %v646_v25 = vmul.f32 %v2928_v17, %v3554_v16  ;;  %s4103_s20 = smov (!%p3561_p10, %s542_s20), 7  ;;  %v596_v45 = vld [vmem:[#allocation2 + $0x18] sm:$0x8]  ;;  %v3259_v46 = vld [vmem:[%s4060_s5] sm:$0xff]   ;;  %v611_v58 = vld [vmem:[#allocation2 + $0x8] sm:$0x1] }
  0x19   : > { %3025 = vmatpush3.bf16.msra.mxu0 %v3244_v3  ;;  %v645_v26 = vmul.f32 %v2927_v19, %v3554_v16  ;;  %s3614_s22 = scvt.s32.f32 %s707_s0  ;;  %v597_v47 = vsel %vm3587_vm2, 0, %v596_v45  ;;  %v599_v48 = vld [vmem:[#allocation2 + $0x24] sm:$0x8]  ;;  %s4105_s20 = smov (!%p3561_p10, %s4103_s20), 7  ;;  %v3636_v51 = vld [vmem:[%s4060_s5 + $0xf8] sm:$0xff]   ;;  %v612_v61 = vsel %vm3642_vm5, 0, %v611_v58 }
  0x1a   : > { %3026 = vmatprep.subr.bf16.mxu0 %v3246_v6  ;;  %3045 = vmatpush3.bf16.msra.mxu1 %v3247_v5  ;;  %v3574_v27 = vadd.f32 %v3565_v21, %v643_v22  ;;  %v696_v28 = vmul.f32 %v3554_v16, %v695_v23  ;;  %v3578_v29 = vadd.f32 %v3565_v21, %v644_v24  ;;  %v600_v49 = vsel %vm3587_vm2, 0, %v599_v48  ;;  %s550_s27 = sadd.s32 %s3508_s12, %s4105_s20  ;;  %v614_v62 = vld [vmem:[#allocation2 + $0x14] sm:$0x1]  ;;  %v617_v4 = vld [vmem:[#allocation2 + $0x20] sm:$0x1]  ;;  %p737_p12 = scmp.lt.s32.totalorder %s3377_s13, 1 }
  0x1b   : > { %3046 = vmatprep.subr.bf16.mxu1 %v3249_v7  ;;  %v3581_v32 = vadd.f32 %v3565_v21, %v646_v25  ;;  %v3584_v33 = vadd.f32 %v3565_v21, %v645_v26  ;;  %598 = vst [vmem:[#allocation2 + $0x18] sm:$0x8] %v597_v47  ;;  %s711_s19 = sshrl.u32 %s3614_s22, 16  ;;  %601 = vst [vmem:[#allocation2 + $0x24] sm:$0x8] %v600_v49  ;;  %s2655_s15 = sshll.u32 %s550_s27, 2 }
  0x1c   : > { %v2665_v36 = vmul.f32 -1.442695, %v3574_v27  ;;  %v3596_v37 = vadd.f32 %v3565_v21, %v696_v28  ;;  %v2666_v40 = vmul.f32 -1.442695, %v3578_v29  ;;  %s712_s30 = sand.u32 1, %s711_s19  ;;  %s552_s20 = scalar_lea.vmem %s4057_s2, %s2655_s15  ;;  %v615_v1 = vsel %vm3642_vm5, 0, %v614_v62 }
  0x1d   : > { %3027 = vmatpush3.bf16.msra.mxu0 %v3246_v6  ;;  %v2668_v39 = vmul.f32 -1.442695, %v3581_v32  ;;  %v2667_v44 = vmul.f32 -1.442695, %v3584_v33  ;;  %s713_s0 = sadd.s32 32767, %s712_s30  ;;  %p710_p11 = scmp.ne.f32.partialorder %s3614_s22, %s3614_s22  ;;  %v618_v6 = vsel %vm3642_vm5, 0, %v617_v4 }
  0x1e   : > { %3028 = vmatprep.subr.bf16.mxu0 %v3248_v8  ;;  %3047 = vmatpush3.bf16.msra.mxu1 %v3249_v7  ;;  %3331 = vpow2.f32 %v2665_v36  ;;  %v2669_v43 = vmul.f32 -1.442695, %v3596_v37  ;;  %s714_s16 = sadd.s32 %s713_s0, %s3614_s22  ;;  %613 = vst [vmem:[#allocation2 + $0x8] sm:$0x1] %v612_v61  ;;  %v725_v2 = vld [vmem:[%s552_s20] sm:$0xf] }
  0x1f   : > { %3048 = vmatprep.subr.bf16.mxu1 %v3251_v9  ;;  %3333 = vpow2.f32 %v2668_v39  ;;  %s715_s25 = sand.u32 4294901760, %s714_s16  ;;  %616 = vst [vmem:[#allocation2 + $0x14] sm:$0x1] %v615_v1  ;;  %v620_v5 = vld [vmem:[#allocation2 + $0x2c] sm:$0x1]  ;;  %v3276_v34 = vld [vmem:[%s4060_s5 + $0x130] sm:$0xff]  }
  0x20   : > { %3335 = vpow2.f32 %v2669_v43  ;;  %s4107_s25 = smov (%p710_p11, %s715_s25), 2143289344  ;;  %v621_v7 = vsel %vm3642_vm5, 0, %v620_v5  ;;  %619 = vst [vmem:[#allocation2 + $0x20] sm:$0x1] %v618_v6  ;;  %v759_v13 = vld [vmem:[#allocation2 + $0xc] sm:$0x8] }
  0x21   : > { %3029 = vmatpush3.bf16.msra.mxu0 %v3248_v8  ;;  %3337 = vpow2.f32 %v2666_v40  ;;  %622 = vst [vmem:[#allocation2 + $0x2c] sm:$0x1] %v621_v7  ;;  %v726_v8 = vunpack.c.l.bf16 %v725_v2  ;;  %s718_s26 = sshrl.u32 %s4107_s25, 16  ;;  %v781_v22 = vshrl.u32 %v759_v13, 16  ;;  %vm1074_vm7 = vsmask.f32 3328 }
  0x22   : > { %3030 = vmatprep.subr.bf16.mxu0 %v3250_v10  ;;  %3049 = vmatpush3.bf16.msra.mxu1 %v3251_v9  ;;  %3339 = vpow2.f32 %v2667_v44  ;;  %v602_v9 = vld [vmem:[#allocation2 + $0x30] sm:$0x8]  ;;  %s719_s22 = sshll.u32 %s718_s26, 16  ;;  %v761_v26 = vld [vmem:[#allocation2 + $0x18] sm:$0x8]  ;;  %s2658_s15 = sshll.u32 %s4097_s14, 4 }
  0x23   : > { %3050 = vmatprep.subr.bf16.mxu1 %v3253_v12  ;;  %v727_v11 = vmul.f32 %v3554_v16, %v726_v8  ;;  %s720_s18 = sor.u32 %s719_s22, %s718_s26  ;;  %v3677_v40 = vrot.slane %v781_v22, 11  ;;  %v3679_v44 = vld [vmem:[#allocation2 + $0xc] sm:$0x8]  ;;  %vm1075_vm8 = vsmask.f32 7440 }
  0x24   : > { %v721_v30 = vstv %s720_s18  ;;  %v1268_v58 = vshrl.u32 %v3679_v44, 16  ;;  %vm3710_vm10 = vmor %vm1074_vm7, %vm1075_vm8  ;;  %s738_s12 = scalar_select %p737_p12, 1, 0 }
  0x25   : > { %3031 = vmatpush3.bf16.msra.mxu0 %v3250_v10  ;;  %v603_v10 = vsel %vm3587_vm2, 0, %v602_v9  ;;  %v3668_v18 = vadd.f32 %v3565_v21, %v727_v11  ;;  %v1067_v45 = vld [vmem:[#allocation2 + $0x8] sm:$0x1]  ;;  %v3309_v9 = vld [vmem:[%s4060_s5 + $0x1c0] sm:$0xff]  }
  0x26   : > { %3032 = vmatprep.subr.bf16.mxu0 %v3252_v20  ;;  %3051 = vmatpush3.bf16.msra.mxu1 %v3253_v12  ;;  %604 = vst [vmem:[#allocation2 + $0x30] sm:$0x8] %v603_v10  ;;  %v757_v12 = vld [vmem:[#allocation2] sm:$0x8]  ;;  %s739_s26 = scvt.s32.f32 %s738_s12 }
  0x27   : > { %3052 = vmatprep.subr.bf16.mxu1 %v3255_v35  ;;  %v2670_v21 = vmul.f32 -1.442695, %v3668_v18 }
  0x28   : > { %s742_s13 = sshrl.u32 %s739_s26, 16  ;;  %p741_p13 = scmp.ne.f32.partialorder %s739_s26, %s739_s26 }
  0x29   : > { %3033 = vmatpush3.bf16.msra.mxu0 %v3252_v20  ;;  %v768_v20 = vshrl.u32 %v757_v12, 16  ;;  %s743_s29 = sand.u32 1, %s742_s13 }
  0x2a   : > { %3034 = vmatprep.subr.bf16.mxu0 %v3254_v42  ;;  %3053 = vmatpush3.bf16.msra.mxu1 %v3255_v35  ;;  %v763_v35 = vld [vmem:[#allocation2 + $0x24] sm:$0x8]  ;;  %s744_s30 = sadd.s32 32767, %s743_s29  ;;  %s2662_s29 = sshll.u32 %s3515_s23, 3 }
  0x2b   : > { %3054 = vmatprep.subr.bf16.mxu1 %v3259_v46  ;;  %v3332_v52 = vpop.eup %3331  ;;  %v807_v43 = vshrl.u32 %v763_v35, 16  ;;  %s745_s27 = sadd.s32 %s744_s30, %s739_s26 }
  0x2c   : > { %v3334_v54 = vpop.eup %3333  ;;  %v669_v55 = vadd.f32 1.0, %v3332_v52  ;;  %s746_s0 = sand.u32 4294901760, %s745_s27 }
  0x2d   : > { %3035 = vmatpush3.bf16.msra.mxu0 %v3254_v42  ;;  %v3336_v56 = vpop.eup %3335  ;;  %v672_v57 = vadd.f32 1.0, %v3334_v54  ;;  %v794_v42 = vshrl.u32 %v761_v26, 16  ;;  %s4109_s0 = smov (%p741_p13, %s746_s0), 2143289344 }
  0x2e   : > { %3060 = vmatprep.subr.bf16.mxu0 %v3631_v50  ;;  %3055 = vmatpush3.bf16.msra.mxu1 %v3259_v46  ;;  %v3338_v59 = vpop.eup %3337  ;;  %3341 = vrcp.f32 %v669_v55  ;;  %v701_v60 = vadd.f32 1.0, %v3336_v56  ;;  %v2674_v56 = vrot.slane %v807_v43, 11  ;;  %s749_s20 = sshrl.u32 %s4109_s0, 16  ;;  %s2657_s0 = sshll.u32 %s3505_s11, 1 }
  0x2f   : > { %3080 = vmatprep.subr.bf16.mxu1 %v3636_v51  ;;  %v3340_v63 = vpop.eup %3339  ;;  %3343 = vrcp.f32 %v672_v57  ;;  %v670_v0 = vadd.f32 1.0, %v3338_v59  ;;  %v3681_v46 = vrot.slane %v794_v42, 11  ;;  %v1087_v57 = vshll.u32 %v1067_v45, 16  ;;  %v3263_v45 = vld [vmem:[%s4060_s5 + $0xf0] sm:$0xff]   ;;  %s750_s25 = sshll.u32 %s749_s20, 16  ;;  %s570_s12 = sadd.s32 %s2658_s15, %s2657_s0 }
  0x30   : > { %3345 = vrcp.f32 %v701_v60  ;;  %v671_v3 = vadd.f32 1.0, %v3340_v63  ;;  %s751_s22 = sor.u32 %s750_s25, %s749_s20  ;;  %s582_s15 = scalar_lea.vmem %s4065_s10, %s2662_s29 }
  0x31   : > { %3347 = vrcp.f32 %v670_v0 }
  0x32   : > { %3349 = vrcp.f32 %v671_v3 }
  0x33   : > { %3351 = vpow2.f32 %v2670_v21  ;;  %v3327_v21 = vld [vmem:[%s4063_s8 + $0x58] sm:$0xff]  }
  0x3b   : > { %v3342_v14 = vpop.eup %3341 }
  0x3c   : > { %v3344_v15 = vpop.eup %3343  ;;  %v681_v17 = vmul.f32 %v3342_v14, %v3574_v27  ;;  %v3260_v14 = vld [vmem:[%s4060_s5 + $0xb0] sm:$0xff]  }
  0x3d   : > { %v3346_v19 = vpop.eup %3345  ;;  %v684_v23 = vmul.f32 %v3344_v15, %v3581_v32  ;;  %v3675_v32 = vrot.slane %v768_v20, 11 }
  0x3e   : > { %v3348_v24 = vpop.eup %3347  ;;  %v685_v25 = vpack.c.bf16 %v681_v17, %v681_v17  ;;  %v704_v16 = vmul.f32 %v3346_v19, %v3596_v37 }
  0x3f   : > { %v3350_v28 = vpop.eup %3349  ;;  %v682_v31 = vmul.f32 %v3348_v24, %v3578_v29  ;;  %v688_v27 = vpack.c.bf16 %v684_v23, %v684_v23  ;;  %v1069_v29 = vld [vmem:[#allocation2 + $0x14] sm:$0x1] }
  0x40   : > { %690 = vst [vmem:[#allocation2 + $0x10] sm:$0xf] %v685_v25  ;;  %v705_v36 = vpack.c.bf16 %v704_v16, %v704_v16  ;;  %v683_v38 = vmul.f32 %v3350_v28, %v3584_v33  ;;  %v1101_v33 = vshll.u32 %v1069_v29, 16  ;;  %v1261_v16 = vld [vmem:[#allocation2 + $0x18] sm:$0x8] }
  0x41   : > { %v686_v39 = vpack.c.bf16 %v682_v31, %v682_v31  ;;  %693 = vst [vmem:[#allocation2 + $0x34] sm:$0xf] %v688_v27 }
  0x42   : > { %v723_v37 = vmul.bf16 %v721_v30, %v705_v36  ;;  %v687_v41 = vpack.c.bf16 %v683_v38, %v683_v38  ;;  %v3684_v63 = vrot.slane %v1101_v33, 5  ;;  %v3262_v36 = vld [vmem:[%s4060_s5 + $0xa8] sm:$0xff]   ;;  %v1281_v33 = vshrl.u32 %v1261_v16, 16 }
  0x43   : > { %691 = vst [vmem:[#allocation2 + $0x1c] sm:$0xf] %v686_v39 }
  0x44   : > { %724 = vst [vmem:[#allocation2 + $0x4] sm:$0xf] %v723_v37  ;;  %692 = vst [vmem:[#allocation2 + $0x28] sm:$0xf] %v687_v41 }
  0x47   : > { %v760_v47 = vld [vmem:[#allocation2 + $0x10] sm:$0xf] }
  0x48   : > { %v1068_v48 = vld [vmem:[#allocation2 + $0x10] sm:$0xf]  ;;  %v786_v49 = vshrl.u32 %v760_v47, 16  ;;  %v789_v55 = vshll.u32 %v760_v47, 16 }
  0x49   : > { %v1092_v52 = vshrl.u32 %v1068_v48, 16  ;;  %v1095_v54 = vshll.u32 %v1068_v48, 16  ;;  %v3686_v0 = vld [vmem:[#allocation2 + $0x10] sm:$0xf] }
  0x4a   : > { %v788_v59 = vrot.slane %v786_v49, 7  ;;  %v762_v60 = vld [vmem:[#allocation2 + $0x1c] sm:$0xf]  ;;  %v1273_v26 = vshrl.u32 %v3686_v0, 16  ;;  %v1276_v43 = vshll.u32 %v3686_v0, 16 }
  0x4b   : > { %v1094_v61 = vrot.slane %v1092_v52, 4  ;;  %v1097_v62 = vrot.slane %v1095_v54, 5  ;;  %v758_v1 = vld [vmem:[#allocation2 + $0x4] sm:$0xf]  ;;  %v764_v2 = vld [vmem:[#allocation2 + $0x28] sm:$0xf] }
  0x4c   : > { %v799_v3 = vshrl.u32 %v762_v60, 16  ;;  %v802_v4 = vshll.u32 %v762_v60, 16  ;;  %v773_v5 = vshrl.u32 %v758_v1, 16  ;;  %v776_v6 = vshll.u32 %v758_v1, 16  ;;  %v1066_v10 = vld [vmem:[#allocation2 + $0x4] sm:$0xf] }
  0x4d   : > { %v2691_v7 = vcombine.low %v758_v1, %v760_v47  ;;  %v812_v8 = vshrl.u32 %v764_v2, 16  ;;  %v815_v12 = vshll.u32 %v764_v2, 16  ;;  %v2692_v13 = vcombine.low %v762_v60, %v764_v2  ;;  %v1070_v41 = vld [vmem:[#allocation2 + $0x1c] sm:$0xf]  ;;  %v3352_v47 = vpop.eup %3351  ;;  %v1071_v52 = vld [vmem:[#allocation2 + $0x20] sm:$0x1] }
  0x4e   : > { %v801_v11 = vrot.slane %v799_v3, 7  ;;  %v791_v15 = vor.u32 %v789_v55, %v788_v59  ;;  %v775_v17 = vrot.slane %v773_v5, 7  ;;  %v1078_v20 = vshrl.u32 %v1066_v10, 16  ;;  %v3719_v42 = vld [vmem:[#allocation2 + $0x1c] sm:$0xf] }
  0x4f   : > { %3036 = vmatprep.mubr.bf16.mxu0 %v2691_v7  ;;  %v814_v19 = vrot.slane %v812_v8, 7  ;;  %v1081_v22 = vshll.u32 %v1066_v10, 16  ;;  %v1098_v25 = vor.u32 %v1097_v62, %v1094_v61  ;;  %v2737_v54 = vrot.slane %v1268_v58, 11  ;;  %v3265_v62 = vld [vmem:[%s4060_s5 + $0xe8] sm:$0xff]   ;;  %v1577_v16 = vld [vmem:[#allocation2 + $0x1c] sm:$0xf] }
  0x50   : > { %3037 = vmatmul.mubr.bf16.vlgmr.msra.gmra.mxu0 %v2692_v13  ;;  %v792_v23 = vsel %vm3690_vm9, %v3677_v40, %v791_v15  ;;  %v804_v24 = vor.u32 %v802_v4, %v801_v11  ;;  %v778_v28 = vor.u32 %v776_v6, %v775_v17  ;;  %v1080_v31 = vrot.slane %v1078_v20, 4  ;;  %v3266_v4 = vld [vmem:[%s4060_s5 + $0x98] sm:$0xff]  }
  0x51   : > { %3061 = vmatpush3.bf16.msra.mxu0 %v3631_v50  ;;  %v817_v30 = vor.u32 %v815_v12, %v814_v19  ;;  %v1083_v35 = vrot.slane %v1081_v22, 5  ;;  %v1089_v50 = vrot.slane %v1087_v57, 5  ;;  %v1099_v38 = vrot.slane %v1098_v25, 4  ;;  %v3268_v19 = vld [vmem:[%s4060_s5 + $0x90] sm:$0xff]   ;;  %v623_v22 = vld [vmem:[#allocation2 + $0x38] sm:$0x1] }
  0x52   : > { %3062 = vmatprep.subr.bf16.mxu0 %v3260_v14  ;;  %v805_v27 = vsel %vm3690_vm9, %v3681_v46, %v804_v24  ;;  %v779_v39 = vsel %vm3690_vm9, %v3675_v32, %v778_v28  ;;  %v1072_v46 = vld [vmem:[#allocation2 + $0x28] sm:$0xf]  ;;  %v3264_v32 = vld [vmem:[%s4060_s5 + $0xa0] sm:$0xff]   ;;  %v1275_v55 = vrot.slane %v1273_v26, 7  ;;  %v1106_v57 = vshrl.u32 %v1070_v41, 16 }
  0x53   : > { %v818_v40 = vsel %vm3690_vm9, %v2674_v56, %v817_v30  ;;  %v1084_v37 = vor.u32 %v1083_v35, %v1080_v31  ;;  %v2701_v29 = vcombine.low %v779_v39, %v792_v23  ;;  %v1104_v49 = vsel %vm3710_vm10, %v1099_v38, %v3684_v63  ;;  %v1073_v56 = vld [vmem:[#allocation2 + $0x2c] sm:$0x1]  ;;  %v3752_v24 = vld [vmem:[#allocation2 + $0x34] sm:$0xf]  ;;  %v1575_v25 = vld [vmem:[#allocation2 + $0x10] sm:$0xf] }
  0x54   : > { %v2702_v44 = vcombine.low %v805_v27, %v818_v40  ;;  %v1109_v59 = vshll.u32 %v1070_v41, 16  ;;  %v1286_v60 = vshrl.u32 %v3719_v42, 16  ;;  %v1289_v61 = vshll.u32 %v3719_v42, 16  ;;  %v3754_v30 = vld [vmem:[#allocation2 + $0x28] sm:$0xf]  ;;  %v3269_v35 = vld [vmem:[%s4060_s5 + $0xd8] sm:$0xff]  }
  0x55   : > { %3063 = vmatpush3.bf16.msra.mxu0 %v3260_v14  ;;  %v1085_v48 = vrot.slane %v1084_v37, 4  ;;  %3056 = vmatprep.mubr.bf16.mxu1 %v2701_v29  ;;  %v1120_v1 = vshrl.u32 %v1072_v46, 16  ;;  %v1123_v58 = vshll.u32 %v1072_v46, 16  ;;  %v1278_v2 = vor.u32 %v1276_v43, %v1275_v55  ;;  %v3270_v27 = vld [vmem:[%s4060_s5 + $0x88] sm:$0xff]   ;;  %v1263_v41 = vld [vmem:[#allocation2 + $0x24] sm:$0x8] }
  0x56   : > { %3064 = vmatprep.subr.bf16.mxu0 %v3262_v36  ;;  %3057 = vmatmul.mubr.bf16.vlgmr.msra.gmra.mxu1 %v2702_v44  ;;  %v732_v3 = vadd.f32 1.0, %v3352_v47  ;;  %v2738_v6 = vrot.slane %v1281_v33, 11  ;;  %v1288_v7 = vrot.slane %v1286_v60, 7  ;;  %v1115_v8 = vshll.u32 %v1071_v52, 16  ;;  %v1265_v43 = vld [vmem:[#allocation2 + $0x30] sm:$0x8] }
  0x57   : > { %v1090_v63 = vsel %vm3710_vm10, %v1085_v48, %v1089_v50  ;;  %3081 = vmatpush3.bf16.msra.mxu1 %v3636_v51  ;;  %v1129_v10 = vshll.u32 %v1073_v56, 16  ;;  %v1108_v11 = vrot.slane %v1106_v57, 4  ;;  %v1111_v12 = vrot.slane %v1109_v59, 5  ;;  %v3267_v51 = vld [vmem:[%s4060_s5 + $0xe0] sm:$0xff]   ;;  %v1576_v47 = vld [vmem:[#allocation2 + $0x14] sm:$0x1] }
  0x58   : > { %v2727_v5 = vcombine.low %v1090_v63, %v1104_v49  ;;  %3082 = vmatprep.subr.bf16.mxu1 %v3263_v45  ;;  %v1279_v13 = vsel %vm3690_vm9, %v2737_v54, %v1278_v2  ;;  %v1291_v14 = vor.u32 %v1289_v61, %v1288_v7  ;;  %v1122_v15 = vrot.slane %v1120_v1, 4  ;;  %v3272_v54 = vld [vmem:[%s4060_s5 + $0x80] sm:$0xff]   ;;  %v605_v7 = vld [vmem:[#allocation2 + $0x3c] sm:$0x8] }
  0x59   : > { %3065 = vmatpush3.bf16.msra.mxu0 %v3262_v36  ;;  %v1125_v17 = vrot.slane %v1123_v58, 5  ;;  %v1112_v26 = vor.u32 %v1111_v12, %v1108_v11  ;;  %v624_v31 = vsel %vm3642_vm5, 0, %v623_v22  ;;  %v1584_v36 = vshrl.u32 %v1575_v25, 16  ;;  %v1578_v55 = vld [vmem:[#allocation2 + $0x20] sm:$0x1]  ;;  %v3273_v58 = vld [vmem:[%s4060_s5 + $0xc8] sm:$0xff]  }
  0x5a   : > { %3066 = vmatprep.subr.bf16.mxu0 %v3264_v32  ;;  %3076 = vmatprep.mubr.bf16.mxu0 %v2727_v5  ;;  %v1292_v20 = vsel %vm3690_vm9, %v2738_v6, %v1291_v14  ;;  %v1587_v50 = vshll.u32 %v1575_v25, 16  ;;  %625 = vst [vmem:[#allocation2 + $0x38] sm:$0x1] %v624_v31  ;;  %v1117_v38 = vrot.slane %v1115_v8, 5  ;;  %v1131_v39 = vrot.slane %v1129_v10, 5  ;;  %v3274_v6 = vld [vmem:[%s4060_s5 + $0x138] sm:$0xff]  }
  0x5b   : > { %3083 = vmatpush3.bf16.msra.mxu1 %v3263_v45  ;;  %v2757_v23 = vcombine.low %v1279_v13, %v1292_v20  ;;  %v1126_v28 = vor.u32 %v1125_v17, %v1122_v15  ;;  %v1598_v40 = vshrl.u32 %v1577_v16, 16  ;;  %v1601_v37 = vshll.u32 %v1577_v16, 16  ;;  %v3271_v45 = vld [vmem:[%s4060_s5 + $0xd0] sm:$0xff]   ;;  %v3275_v14 = vld [vmem:[%s4060_s5 + $0xc0] sm:$0xff]  }
  0x5c   : > { %3084 = vmatprep.subr.bf16.mxu1 %v3265_v62  ;;  %3353 = vrcp.f32 %v732_v3  ;;  %v1299_v29 = vshrl.u32 %v3754_v30, 16  ;;  %v1312_v44 = vshrl.u32 %v3752_v24, 16  ;;  %v1113_v46 = vrot.slane %v1112_v26, 4  ;;  %v3277_v26 = vld [vmem:[%s4060_s5 + $0x178] sm:$0xff]  }
  0x5d   : > { %3067 = vmatpush3.bf16.msra.mxu0 %v3264_v32  ;;  %3096 = vmatprep.mubr.bf16.mxu1 %v2757_v23  ;;  %v1127_v33 = vrot.slane %v1126_v28, 4  ;;  %v1586_v32 = vrot.slane %v1584_v36, 4  ;;  %v1589_v48 = vrot.slane %v1587_v50, 5  ;;  %v1600_v49 = vrot.slane %v1598_v40, 4  ;;  %v3279_v36 = vld [vmem:[%s4060_s5 + $0x170] sm:$0xff]   ;;  %v3280_v50 = vld [vmem:[%s4060_s5 + $0x120] sm:$0xff]  }
  0x5e   : > { %3068 = vmatprep.subr.bf16.mxu0 %v3266_v4  ;;  %v1603_v52 = vrot.slane %v1601_v37, 5  ;;  %v1294_v56 = vshrl.u32 %v1263_v41, 16  ;;  %v1301_v57 = vrot.slane %v1299_v29, 7  ;;  %v1302_v59 = vshll.u32 %v3754_v30, 16  ;;  %v3282_v40 = vld [vmem:[%s4060_s5 + $0x118] sm:$0xff]   ;;  %v3283_v29 = vld [vmem:[%s4060_s5 + $0x160] sm:$0xff]  }
  0x5f   : > { %3085 = vmatpush3.bf16.msra.mxu1 %v3265_v62  ;;  %v1307_v60 = vshrl.u32 %v1265_v43, 16  ;;  %v1314_v61 = vrot.slane %v1312_v44, 7  ;;  %v1315_v62 = vshll.u32 %v3752_v24, 16  ;;  %v1590_v63 = vor.u32 %v1589_v48, %v1586_v32  ;;  %v3825_v41 = vld [vmem:[#allocation2 + $0x1c] sm:$0xf] }
  0x60   : > { %3086 = vmatprep.subr.bf16.mxu1 %v3267_v51  ;;  %v1593_v1 = vshll.u32 %v1576_v47, 16  ;;  %v1118_v2 = vsel %vm3710_vm10, %v1113_v46, %v1117_v38  ;;  %v1132_v3 = vsel %vm3710_vm10, %v1127_v33, %v1131_v39  ;;  %v1607_v5 = vshll.u32 %v1578_v55, 16  ;;  %v3827_v43 = vld [vmem:[#allocation2 + $0x28] sm:$0xf]  ;;  %v3284_v46 = vld [vmem:[%s4060_s5 + $0x110] sm:$0xff]  }
  0x61   : > { %3069 = vmatpush3.bf16.msra.mxu0 %v3266_v4  ;;  %v1604_v4 = vor.u32 %v1603_v52, %v1600_v49  ;;  %v2739_v8 = vrot.slane %v1294_v56, 11  ;;  %v1304_v10 = vor.u32 %v1302_v59, %v1301_v57  ;;  %v2740_v11 = vrot.slane %v1307_v60, 11  ;;  %v1579_v44 = vld [vmem:[#allocation2 + $0x28] sm:$0xf]  ;;  %v626_v33 = vld [vmem:[#allocation2 + $0x44] sm:$0x1] }
  0x62   : > { %3070 = vmatprep.subr.bf16.mxu0 %v3268_v19  ;;  %v606_v12 = vsel %vm3587_vm2, 0, %v605_v7  ;;  %v2728_v13 = vcombine.low %v1118_v2, %v1132_v3  ;;  %v1591_v15 = vrot.slane %v1590_v63, 4  ;;  %v1595_v17 = vrot.slane %v1593_v1, 5  ;;  %v1766_v47 = vld [vmem:[#allocation2 + $0x18] sm:$0x8]  ;;  %v3286_v60 = vld [vmem:[%s4060_s5 + $0x108] sm:$0xff]  }
  0x63   : > { %3087 = vmatpush3.bf16.msra.mxu1 %v3267_v51  ;;  %v1317_v51 = vor.u32 %v1315_v62, %v1314_v61  ;;  %607 = vst [vmem:[#allocation2 + $0x3c] sm:$0x8] %v606_v12  ;;  %v1609_v20 = vrot.slane %v1607_v5, 5  ;;  %v2783_v22 = vcombine.low %v3686_v0, %v3719_v42  ;;  %v1305_v25 = vsel %vm3690_vm9, %v2739_v8, %v1304_v10  ;;  %v3278_v0 = vld [vmem:[%s4060_s5 + $0x128] sm:$0xff]   ;;  %v1768_v57 = vld [vmem:[#allocation2 + $0x24] sm:$0x8] }
  0x64   : > { %3088 = vmatprep.subr.bf16.mxu1 %v3269_v35  ;;  %v1596_v42 = vsel %vm3710_vm10, %v1591_v15, %v1595_v17  ;;  %v752_v39 = vstv %s751_s22  ;;  %v1780_v32 = vshrl.u32 %v3825_v41, 16  ;;  %v1793_v48 = vshrl.u32 %v3827_v43, 16  ;;  %v3285_v59 = vld [vmem:[%s4060_s5 + $0x158] sm:$0xff]   ;;  %v3287_v62 = vld [vmem:[%s4060_s5 + $0x150] sm:$0xff]   ;;  %v1580_v7 = vld [vmem:[#allocation2 + $0x2c] sm:$0x1] }
  0x65   : > { %3071 = vmatpush3.bf16.msra.mxu0 %v3268_v19  ;;  %v1605_v19 = vrot.slane %v1604_v4, 4  ;;  %v1318_v16 = vsel %vm3690_vm9, %v2740_v11, %v1317_v51  ;;  %v627_v49 = vsel %vm3642_vm5, 0, %v626_v33  ;;  %v1612_v52 = vshrl.u32 %v1579_v44, 16  ;;  %v1582_v8 = vld [vmem:[#allocation2 + $0x38] sm:$0x1]  ;;  %v3288_v10 = vld [vmem:[%s4060_s5 + $0x100] sm:$0xff]  }
  0x66   : > { %3072 = vmatprep.subr.bf16.mxu0 %v3270_v27  ;;  %628 = vst [vmem:[#allocation2 + $0x44] sm:$0x1] %v627_v49  ;;  %v1775_v53 = vshrl.u32 %v1766_v47, 16  ;;  %v1783_v61 = vshll.u32 %v3825_v41, 16  ;;  %v1782_v63 = vrot.slane %v1780_v32, 7  ;;  %v1788_v1 = vshrl.u32 %v1768_v57, 16 }
  0x67   : > { %3089 = vmatpush3.bf16.msra.mxu1 %v3269_v35  ;;  %v1610_v28 = vsel %vm3710_vm10, %v1605_v19, %v1609_v20  ;;  %v2758_v35 = vcombine.low %v1305_v25, %v1318_v16  ;;  %v1796_v2 = vshll.u32 %v3827_v43, 16  ;;  %v1614_v3 = vrot.slane %v1612_v52, 4  ;;  %v3290_v20 = vld [vmem:[%s4060_s5 + $0x148] sm:$0xff]   ;;  %v3301_v32 = vld [vmem:[%s4060_s5 + $0x1e0] sm:$0xff]   ;;  %s2659_s22 = sshll.u32 %s570_s12, 3 }
  0x68   : > { %3090 = vmatprep.subr.bf16.mxu1 %v3271_v45  ;;  %v2819_v11 = vrot.slane %v1775_v53, 11  ;;  %v1785_v12 = vor.u32 %v1783_v61, %v1782_v63  ;;  %v1621_v15 = vshll.u32 %v1580_v7, 16  ;;  %v1635_v19 = vshll.u32 %v1582_v8, 16  ;;  %v2085_v63 = vld [vmem:[#allocation2 + $0x2c] sm:$0x1]  ;;  %s3946_s17 = scalar_lea.vmem %s4062_s7, %s2659_s22 }
  0x69   : > { %3073 = vmatpush3.bf16.msra.mxu0 %v3270_v27  ;;  %v3354_v23 = vpop.eup %3353  ;;  %v2809_v27 = vcombine.low %v1596_v42, %v1610_v28  ;;  %v3293_v28 = vld [vmem:[%s4060_s5 + $0x140] sm:$0xff]  }
  0x6a   : > { %3074 = vmatprep.subr.bf16.mxu0 %v3272_v54  ;;  %v735_v31 = vmul.f32 %v3354_v23, %v3668_v18  ;;  %v3281_v18 = vld [vmem:[%s4060_s5 + $0x168] sm:$0xff]   ;;  %v1786_v23 = vsel %vm3690_vm9, %v2819_v11, %v1785_v12  ;;  %v1637_v42 = vrot.slane %v1635_v19, 5  ;;  %v3305_v11 = vld [vmem:[%s4060_s5 + $0x1d0] sm:$0xff]  }
  0x6b   : > { %3091 = vmatpush3.bf16.msra.mxu1 %v3271_v45  ;;  %v1581_v45 = vld [vmem:[#allocation2 + $0x34] sm:$0xf] }
  0x6c   : > { %3092 = vmatprep.subr.bf16.mxu1 %v3273_v58  ;;  %v736_v38 = vpack.c.bf16 %v735_v31, %v735_v31  ;;  %v1626_v55 = vshrl.u32 %v1581_v45, 16  ;;  %v1629_v56 = vshll.u32 %v1581_v45, 16 }
  0x6d   : > { %3075 = vmatpush3.bf16.msra.mxu0 %v3272_v54  ;;  %v1615_v54 = vshll.u32 %v1579_v44, 16 }
  0x6e   : > { %3100 = vmatprep.subr.bf16.mxu0 %v3274_v6  ;;  %v754_v37 = vmul.bf16 %v752_v39, %v736_v38  ;;  %v1628_v5 = vrot.slane %v1626_v55, 4  ;;  %v2865_v38 = vcombine.low %v3825_v41, %v3827_v43  ;;  %v3298_v39 = vld [vmem:[%s4060_s5 + $0x1a0] sm:$0xff]   ;;  %v3299_v41 = vld [vmem:[%s4060_s5 + $0x1e8] sm:$0xff]   ;;  %v3300_v43 = vld [vmem:[%s4060_s5 + $0x198] sm:$0xff]  }
  0x6f   : > { %3093 = vmatpush3.bf16.msra.mxu1 %v3273_v58  ;;  %v1795_v58 = vrot.slane %v1793_v48, 7  ;;  %v1617_v4 = vrot.slane %v1615_v54, 5  ;;  %v1770_v48 = vld [vmem:[#allocation2 + $0x30] sm:$0x8]  ;;  %v1772_v55 = vld [vmem:[#allocation2 + $0x3c] sm:$0x8] }
  0x70   : > { %3077 = vmatmul.mubr.bf16.vlgmr.msra.gmra.mxu0 %v2728_v13  ;;  %3094 = vmatprep.subr.bf16.mxu1 %v3275_v14  ;;  %756 = vst [vmem:[#allocation2 + $0x40] sm:$0xf] %v754_v37  ;;  %v2820_v13 = vrot.slane %v1788_v1, 11  ;;  %v2084_v37 = vld [vmem:[#allocation2 + $0x28] sm:$0xf]  ;;  %v3302_v54 = vld [vmem:[%s4060_s5 + $0x190] sm:$0xff]  }
  0x71   : > { %3101 = vmatpush3.bf16.msra.mxu0 %v3274_v6  ;;  %3116 = vmatprep.mubr.bf16.mxu0 %v2783_v22  ;;  %v1631_v6 = vrot.slane %v1629_v56, 5  ;;  %v1618_v51 = vor.u32 %v1617_v4, %v1614_v3  ;;  %v2784_v22 = vcombine.low %v3754_v30, %v3752_v24  ;;  %v3294_v24 = vld [vmem:[%s4060_s5 + $0x1b0] sm:$0xff]   ;;  %v2105_v33 = vshrl.u32 %v2084_v37, 16  ;;  %v3303_v1 = vld [vmem:[%s4060_s5 + $0x1d8] sm:$0xff]  }
  0x72   : > { %3102 = vmatprep.subr.bf16.mxu0 %v3276_v34  ;;  %v2108_v47 = vshll.u32 %v2084_v37, 16  ;;  %v1801_v53 = vshrl.u32 %v1770_v48, 16  ;;  %v3316_v37 = vld [vmem:[%s4063_s8 + $0x30] sm:$0xff]  }
  0x73   : > { %3095 = vmatpush3.bf16.msra.mxu1 %v3275_v14  ;;  %v1798_v14 = vor.u32 %v1796_v2, %v1795_v58  ;;  %v1632_v17 = vor.u32 %v1631_v6, %v1628_v5  ;;  %v1619_v16 = vrot.slane %v1618_v51, 4  ;;  %v1814_v2 = vshrl.u32 %v1772_v55, 16  ;;  %v3304_v5 = vld [vmem:[%s4060_s5 + $0x188] sm:$0xff]   ;;  %v3320_v55 = vld [vmem:[%s4063_s8 + $0x20] sm:$0xff]  }
  0x74   : > { %3120 = vmatprep.subr.bf16.mxu1 %v3277_v26  ;;  %v2821_v12 = vrot.slane %v1801_v53, 11  ;;  %v3321_v53 = vld [vmem:[%s4060_s5 + $0x208] sm:$0xff]  }
  0x75   : > { %3103 = vmatpush3.bf16.msra.mxu0 %v3276_v34  ;;  %v3292_v34 = vld [vmem:[%s4060_s5 + $0x1b8] sm:$0xff]   ;;  %v1799_v25 = vsel %vm3690_vm9, %v2820_v13, %v1798_v14  ;;  %v2822_v14 = vrot.slane %v1814_v2, 11  ;;  %v3323_v2 = vld [vmem:[%s4060_s5 + $0x200] sm:$0xff]  }
  0x76   : > { %3104 = vmatprep.subr.bf16.mxu0 %v3278_v0  ;;  %3097 = vmatmul.mubr.bf16.vlgmr.msra.gmra.mxu1 %v2758_v35  ;;  %v2839_v30 = vcombine.low %v1786_v23, %v1799_v25 }
  0x77   : > { %3121 = vmatpush3.bf16.msra.mxu1 %v3277_v26  ;;  %3136 = vmatprep.mubr.bf16.mxu1 %v2809_v27  ;;  %v1623_v26 = vrot.slane %v1621_v15, 5  ;;  %v3295_v27 = vld [vmem:[%s4060_s5 + $0x1f8] sm:$0xff]   ;;  %v3897_v44 = vld [vmem:[#allocation2 + $0x40] sm:$0xf] }
  0x78   : > { %3122 = vmatprep.subr.bf16.mxu1 %v3279_v36  ;;  %v1819_v52 = vshrl.u32 %v3897_v44, 16  ;;  %v1822_v4 = vshll.u32 %v3897_v44, 16  ;;  %v3306_v15 = vld [vmem:[%s4060_s5 + $0x180] sm:$0xff]  }
  0x79   : > { %3105 = vmatpush3.bf16.msra.mxu0 %v3278_v0  ;;  %v1633_v0 = vrot.slane %v1632_v17, 4  ;;  %v1624_v31 = vsel %vm3710_vm10, %v1619_v16, %v1623_v26  ;;  %v3308_v16 = vld [vmem:[%s4060_s5 + $0x238] sm:$0xff]  }
  0x7a   : > { %3106 = vmatprep.subr.bf16.mxu0 %v3280_v50  ;;  %v1821_v3 = vrot.slane %v1819_v52, 7  ;;  %v2087_v52 = vld [vmem:[#allocation2 + $0x38] sm:$0x1] }
  0x7b   : > { %3123 = vmatpush3.bf16.msra.mxu1 %v3279_v36  ;;  %v1638_v35 = vsel %vm3710_vm10, %v1633_v0, %v1637_v42  ;;  %v3296_v36 = vld [vmem:[%s4060_s5 + $0x1a8] sm:$0xff]  }
  0x7c   : > { %3124 = vmatprep.subr.bf16.mxu1 %v3281_v18  ;;  %v1824_v51 = vor.u32 %v1822_v4, %v1821_v3  ;;  %v3324_v3 = vld [vmem:[%s4063_s8 + $0x10] sm:$0xff]  }
  0x7d   : > { %3107 = vmatpush3.bf16.msra.mxu0 %v3280_v50  ;;  %v2810_v50 = vcombine.low %v1624_v31, %v1638_v35  ;;  %v2286_v31 = vld [vmem:[%s3946_s17 + $0x18] sm:$0xff]  ;;  %v3313_v35 = vld [vmem:[%s4060_s5 + $0x228] sm:$0xff]  }
  0x7e   : > { %3108 = vmatprep.subr.bf16.mxu0 %v3282_v40  ;;  %v1825_v25 = vsel %vm3690_vm9, %v2822_v14, %v1824_v51  ;;  %v2285_v14 = vld [vmem:[%s3946_s17 + $0x10] sm:$0xff]  ;;  %v2288_v51 = vld [vmem:[%s3946_s17 + $0x28] sm:$0xff] }
  0x7f   : > { %3125 = vmatpush3.bf16.msra.mxu1 %v3281_v18  ;;  %v3297_v18 = vld [vmem:[%s4060_s5 + $0x1f0] sm:$0xff]  }
  0x80   : > { %3126 = vmatprep.subr.bf16.mxu1 %v3283_v29 }
  0x81   : > { %3109 = vmatpush3.bf16.msra.mxu0 %v3282_v40  ;;  %v2082_v40 = vld [vmem:[#allocation2 + $0x1c] sm:$0xf] }
  0x82   : > { %3110 = vmatprep.subr.bf16.mxu0 %v3284_v46  ;;  %v2091_v45 = vshrl.u32 %v2082_v40, 16 }
  0x83   : > { %3127 = vmatpush3.bf16.msra.mxu1 %v3283_v29  ;;  %v3895_v29 = vld [vmem:[#allocation2 + $0x34] sm:$0xf] }
  0x84   : > { %3128 = vmatprep.subr.bf16.mxu1 %v3285_v59  ;;  %v1806_v49 = vshrl.u32 %v3895_v29, 16  ;;  %v2093_v56 = vrot.slane %v2091_v45, 4  ;;  %v1809_v61 = vshll.u32 %v3895_v29, 16  ;;  %v3317_v45 = vld [vmem:[%s4060_s5 + $0x218] sm:$0xff]  }
  0x85   : > { %3111 = vmatpush3.bf16.msra.mxu0 %v3284_v46  ;;  %v2094_v46 = vshll.u32 %v2082_v40, 16  ;;  %v2088_v40 = vld [vmem:[#allocation2 + $0x40] sm:$0xf] }
  0x86   : > { %3112 = vmatprep.subr.bf16.mxu0 %v3286_v60  ;;  %v1808_v58 = vrot.slane %v1806_v49, 7  ;;  %v3319_v49 = vld [vmem:[%s4060_s5 + $0x210] sm:$0xff]  }
  0x87   : > { %3129 = vmatpush3.bf16.msra.mxu1 %v3285_v59  ;;  %v2096_v57 = vrot.slane %v2094_v46, 5  ;;  %v2107_v59 = vrot.slane %v2105_v33, 4  ;;  %v3318_v46 = vld [vmem:[%s4063_s8 + $0x28] sm:$0xff]  }
  0x88   : > { %3130 = vmatprep.subr.bf16.mxu1 %v3287_v62  ;;  %v1811_v13 = vor.u32 %v1809_v61, %v1808_v58  ;;  %v3322_v61 = vld [vmem:[%s4063_s8 + $0x18] sm:$0xff]  }
  0x89   : > { %3113 = vmatpush3.bf16.msra.mxu0 %v3286_v60  ;;  %v2110_v60 = vrot.slane %v2108_v47, 5  ;;  %v2097_v6 = vor.u32 %v2096_v57, %v2093_v56  ;;  %v2128_v57 = vshll.u32 %v2087_v52, 16 }
  0x8a   : > { %3114 = vmatprep.subr.bf16.mxu0 %v3288_v10  ;;  %v1812_v23 = vsel %vm3690_vm9, %v2821_v12, %v1811_v13  ;;  %v3330_v12 = vld [vmem:[%s4063_s8 + $0x40] sm:$0xff]  }
  0x8b   : > { %3131 = vmatpush3.bf16.msra.mxu1 %v3287_v62  ;;  %v2083_v62 = vld [vmem:[#allocation2 + $0x20] sm:$0x1]  ;;  %v2111_v8 = vor.u32 %v2110_v60, %v2107_v59  ;;  %v2098_v17 = vrot.slane %v2097_v6, 4  ;;  %v2840_v42 = vcombine.low %v1812_v23, %v1825_v25 }
  0x8c   : > { %3132 = vmatprep.subr.bf16.mxu1 %v3290_v20  ;;  %v2100_v7 = vshll.u32 %v2083_v62, 16  ;;  %v2283_v13 = vld [vmem:[%s3946_s17] sm:$0xff] }
  0x8d   : > { %3115 = vmatpush3.bf16.msra.mxu0 %v3288_v10  ;;  %v2114_v10 = vshll.u32 %v2085_v63, 16  ;;  %v2130_v63 = vrot.slane %v2128_v57, 5 }
  0x8e   : > { %3140 = vmatprep.subr.bf16.mxu0 %v3292_v34  ;;  %v2102_v19 = vrot.slane %v2100_v7, 5  ;;  %v3325_v7 = vld [vmem:[%s4063_s8 + $0x8] sm:$0xff]  }
  0x8f   : > { %3133 = vmatpush3.bf16.msra.mxu1 %v3290_v20  ;;  %v2112_v20 = vrot.slane %v2111_v8, 4  ;;  %v3326_v8 = vld [vmem:[%s4063_s8] sm:$0xff]  }
  0x90   : > { %3117 = vmatmul.mubr.bf16.vlgmr.msra.gmra.mxu0 %v2784_v22  ;;  %3134 = vmatprep.subr.bf16.mxu1 %v3293_v28  ;;  %v3307_v22 = vld [vmem:[%s4060_s5 + $0x1c8] sm:$0xff]   ;;  %v2103_v26 = vsel %vm3710_vm10, %v2098_v17, %v2102_v19  ;;  %v2291_v17 = vpack.c.bf16 %v2285_v14, %v2283_v13 }
  0x91   : > { %3141 = vmatpush3.bf16.msra.mxu0 %v3292_v34  ;;  %3156 = vmatprep.mubr.bf16.mxu0 %v2839_v30  ;;  %v2116_v34 = vrot.slane %v2114_v10, 5  ;;  %v2284_v30 = vld [vmem:[%s3946_s17 + $0x8] sm:$0xff]  ;;  %v3328_v10 = vld [vmem:[%s4063_s8 + $0x50] sm:$0xff]  }
  0x92   : > { %3142 = vmatprep.subr.bf16.mxu0 %v3294_v24 }
  0x93   : > { %3135 = vmatpush3.bf16.msra.mxu1 %v3293_v28  ;;  %v2117_v0 = vsel %vm3710_vm10, %v2112_v20, %v2116_v34  ;;  %v3310_v28 = vld [vmem:[%s4060_s5 + $0x230] sm:$0xff]   ;;  %v2287_v20 = vld [vmem:[%s3946_s17 + $0x20] sm:$0xff] }
  0x94   : > { %3160 = vmatprep.subr.bf16.mxu1 %v3295_v27  ;;  %v2289_v34 = vld [vmem:[%s3946_s17 + $0x30] sm:$0xff] }
  0x95   : > { %3143 = vmatpush3.bf16.msra.mxu0 %v3294_v24  ;;  %v2891_v24 = vcombine.low %v2103_v26, %v2117_v0 }
  0x96   : > { %3144 = vmatprep.subr.bf16.mxu0 %v3296_v36  ;;  %3137 = vmatmul.mubr.bf16.vlgmr.msra.gmra.mxu1 %v2810_v50  ;;  %v2292_v50 = vpack.c.bf16 %v2286_v31, %v2284_v30 }
  0x97   : > { %3161 = vmatpush3.bf16.msra.mxu1 %v3295_v27  ;;  %3176 = vmatprep.mubr.bf16.mxu1 %v2865_v38  ;;  %v2866_v27 = vcombine.low %v3895_v29, %v3897_v44  ;;  %v3395_v38 = vmov 0   ;;  %v2133_v29 = vshrl.u32 %v2088_v40, 16  ;;  %v2136_v44 = vshll.u32 %v2088_v40, 16 }
  0x98   : > { %3162 = vmatprep.subr.bf16.mxu1 %v3297_v18 }
  0x99   : > { %3145 = vmatpush3.bf16.msra.mxu0 %v3296_v36  ;;  %v3314_v36 = vld [vmem:[%s4063_s8 + $0x38] sm:$0xff]   ;;  %v2138_v48 = vrot.slane %v2136_v44, 5 }
  0x9a   : > { %3146 = vmatprep.subr.bf16.mxu0 %v3298_v39 }
  0x9b   : > { %3163 = vmatpush3.bf16.msra.mxu1 %v3297_v18  ;;  %v3315_v18 = vld [vmem:[%s4060_s5 + $0x220] sm:$0xff]  }
  0x9c   : > { %3164 = vmatprep.subr.bf16.mxu1 %v3299_v41 }
  0x9d   : > { %3147 = vmatpush3.bf16.msra.mxu0 %v3298_v39  ;;  %v2086_v39 = vld [vmem:[#allocation2 + $0x34] sm:$0xf] }
  0x9e   : > { %3148 = vmatprep.subr.bf16.mxu0 %v3300_v43 }
  0x9f   : > { %3165 = vmatpush3.bf16.msra.mxu1 %v3299_v41  ;;  %v2119_v41 = vshrl.u32 %v2086_v39, 16 }
  0xa0   : > { %3166 = vmatprep.subr.bf16.mxu1 %v3301_v32 }
  0xa1   : > { %3149 = vmatpush3.bf16.msra.mxu0 %v3300_v43  ;;  %v2122_v43 = vshll.u32 %v2086_v39, 16  ;;  %v2121_v33 = vrot.slane %v2119_v41, 4 }
  0xa2   : > { %3150 = vmatprep.subr.bf16.mxu0 %v3302_v54 }
  0xa3   : > { %3167 = vmatpush3.bf16.msra.mxu1 %v3301_v32  ;;  %v2124_v47 = vrot.slane %v2122_v43, 5  ;;  %v2135_v32 = vrot.slane %v2133_v29, 4 }
  0xa4   : > { %3168 = vmatprep.subr.bf16.mxu1 %v3303_v1 }
  0xa5   : > { %3151 = vmatpush3.bf16.msra.mxu0 %v3302_v54  ;;  %v2089_v54 = vld [vmem:[#allocation2 + $0x44] sm:$0x1]  ;;  %v2125_v56 = vor.u32 %v2124_v47, %v2121_v33  ;;  %v2139_v59 = vor.u32 %v2138_v48, %v2135_v32 }
  0xa6   : > { %3152 = vmatprep.subr.bf16.mxu0 %v3304_v5  ;;  %v2142_v60 = vshll.u32 %v2089_v54, 16 }
  0xa7   : > { %3169 = vmatpush3.bf16.msra.mxu1 %v3303_v1  ;;  %v2126_v62 = vrot.slane %v2125_v56, 4  ;;  %v2140_v1 = vrot.slane %v2139_v59, 4 }
  0xa8   : > { %3170 = vmatprep.subr.bf16.mxu1 %v3305_v11  ;;  %v2144_v58 = vrot.slane %v2142_v60, 5 }
  0xa9   : > { %3153 = vmatpush3.bf16.msra.mxu0 %v3304_v5  ;;  %v2131_v4 = vsel %vm3710_vm10, %v2126_v62, %v2130_v63 }
  0xaa   : > { %3154 = vmatprep.subr.bf16.mxu0 %v3306_v15  ;;  %v2145_v5 = vsel %vm3710_vm10, %v2140_v1, %v2144_v58 }
  0xab   : > { %3171 = vmatpush3.bf16.msra.mxu1 %v3305_v11  ;;  %v2892_v6 = vcombine.low %v2131_v4, %v2145_v5  ;;  %v3329_v11 = vld [vmem:[%s4063_s8 + $0x48] sm:$0xff]  }
  0xac   : > { %3172 = vmatprep.subr.bf16.mxu1 %v3307_v22 }
  0xad   : > { %3155 = vmatpush3.bf16.msra.mxu0 %v3306_v15  ;;  %v2290_v15 = vld [vmem:[%s3946_s17 + $0x38] sm:$0xff] }
  0xae   : > { %3180 = vmatprep.subr.bf16.mxu0 %v3308_v16  ;;  %v2294_v19 = vpack.c.bf16 %v2290_v15, %v2288_v51  ;;  %v2902_v51 = vld [vmem:[%s4064_s9] ss:$0 sm:$0xff] }
  0xaf   : > { %3173 = vmatpush3.bf16.msra.mxu1 %v3307_v22  ;;  %v2293_v22 = vpack.c.bf16 %v2289_v34, %v2287_v20  ;;  %v2901_v20 = vld [vmem:[%s4061_s6] ss:$0 sm:$0xff] }
  0xb0   : > { %3157 = vmatmul.mubr.bf16.vlgmr.msra.gmra.mxu0 %v2840_v42  ;;  %3174 = vmatprep.subr.bf16.mxu1 %v3309_v9 }
  0xb1   : > { %3181 = vmatpush3.bf16.msra.mxu0 %v3308_v16  ;;  %3196 = vmatprep.mubr.bf16.mxu0 %v2891_v24 }
  0xb2   : > { %3182 = vmatprep.subr.bf16.mxu0 %v3310_v28 }
  0xb3   : > { %3175 = vmatpush3.bf16.msra.mxu1 %v3309_v9 }
  0xb4   : > { %2405 = vmatprep.subr.bf16.mxu1 %v3395_v38 }
  0xb5   : > { %3183 = vmatpush3.bf16.msra.mxu0 %v3310_v28 }
  0xb6   : > { %3184 = vmatprep.subr.bf16.mxu0 %v3313_v35  ;;  %3177 = vmatmul.mubr.bf16.vlgmr.msra.gmra.mxu1 %v2866_v27 }
  0xb7   : > { %2406 = vmatpush1.bf16.msra.mxu1 %v3314_v36  ;;  %2915 = vmatprep.mubr.msk.bf16.mxu1 %vm2398_vm11, %v2292_v50 }
  0xb8   : > { %2407 = vmatprep.subr.bf16.mxu1 %v3395_v38 }
  0xb9   : > { %3185 = vmatpush3.bf16.msra.mxu0 %v3313_v35 }
  0xba   : > { %3186 = vmatprep.subr.bf16.mxu0 %v3315_v18 }
  0xbb   : > { %2408 = vmatpush1.bf16.msra.mxu1 %v3316_v37 }
  0xbc   : > { %2409 = vmatprep.subr.bf16.mxu1 %v3395_v38 }
  0xbd   : > { %3187 = vmatpush3.bf16.msra.mxu0 %v3315_v18 }
  0xbe   : > { %3188 = vmatprep.subr.bf16.mxu0 %v3317_v45 }
  0xbf   : > { %2410 = vmatpush1.bf16.msra.mxu1 %v3318_v46 }
  0xc0   : > { %2411 = vmatprep.subr.bf16.mxu1 %v3395_v38 }
  0xc1   : > { %3189 = vmatpush3.bf16.msra.mxu0 %v3317_v45 }
  0xc2   : > { %3190 = vmatprep.subr.bf16.mxu0 %v3319_v49 }
  0xc3   : > { %2412 = vmatpush1.bf16.msra.mxu1 %v3320_v55 }
  0xc4   : > { %2413 = vmatprep.subr.bf16.mxu1 %v3395_v38 }
  0xc5   : > { %3191 = vmatpush3.bf16.msra.mxu0 %v3319_v49 }
  0xc6   : > { %3192 = vmatprep.subr.bf16.mxu0 %v3321_v53 }
  0xc7   : > { %2414 = vmatpush1.bf16.msra.mxu1 %v3322_v61 }
  0xc8   : > { %2415 = vmatprep.subr.bf16.mxu1 %v3395_v38 }
  0xc9   : > { %3193 = vmatpush3.bf16.msra.mxu0 %v3321_v53 }
  0xca   : > { %3194 = vmatprep.subr.bf16.mxu0 %v3323_v2 }
  0xcb   : > { %2416 = vmatpush1.bf16.msra.mxu1 %v3324_v3 }
  0xcc   : > { %2417 = vmatprep.subr.bf16.mxu1 %v3395_v38 }
  0xcd   : > { %3195 = vmatpush3.bf16.msra.mxu0 %v3323_v2 }
  0xcf   : > { %2418 = vmatpush1.bf16.msra.mxu1 %v3325_v7 }
  0xd0   : > { %3197 = vmatmul.mubr.bf16.vlgmr.msra.gmra.mxu0 %v2892_v6  ;;  %2419 = vmatprep.subr.bf16.mxu1 %v3395_v38 }
  0xd3   : > { %2420 = vmatpush1.bf16.msra.mxu1 %v3326_v8 }
  0xd4   : > { %2429 = vmatprep.subr.bf16.mxu1 %v3395_v38 }
  0xd7   : > { %2430 = vmatpush2.bf16.msra.mxu1 %v3327_v21 }
  0xd8   : > { %2431 = vmatprep.subr.bf16.mxu1 %v3395_v38 }
  0xdb   : > { %2432 = vmatpush2.bf16.msra.mxu1 %v3328_v10 }
  0xdc   : > { %2433 = vmatprep.subr.bf16.mxu1 %v3395_v38 }
  0xdf   : > { %2434 = vmatpush2.bf16.msra.mxu1 %v3329_v11 }
  0xe0   : > { %2435 = vmatprep.subr.bf16.mxu1 %v3395_v38 }
  0xe3   : > { %2436 = vmatpush2.bf16.msra.mxu1 %v3330_v12 }
  0xe6   : > { %2438 = vmatmul.mubr.bf16.vlgmr.msra.gmra.mxu1 %v2291_v17 }
  0xe7   : > { %2916 = vmatprep.mubr.msk.bf16.mxu1 %vm2398_vm11, %v2294_v19 }
  0xee   : > { %2446 = vmatmul.mubr.bf16.gmra.mxu1 %v2293_v22 }
 0x110   : > { %v3038_v23 = vpop.f32.mrf.mxu0 }
 0x112   : > { %v946_v25 = vpop.f32.mrf.mxu0 }
 0x114   : > { %v3039_v16 = vpop.f32.mrf.mxu0 }
 0x116   : > { %v3058_v26 = vpop.f32.mrf.mxu1  ;;  %v949_v0 = vpop.f32.mrf.mxu0 }
 0x117   : > { %v1060_v53 = vadd.f32 %v3058_v26, %v3038_v23 }
 0x118   : > { %v1051_v9 = vpop.f32.mrf.mxu1 }
 0x119   : > { %v1052_v47 = vadd.f32 %v1051_v9, %v946_v25 }
 0x11a   : > { %v3059_v24 = vpop.f32.mrf.mxu1 }
 0x11b   : > { %v1063_v3 = vadd.f32 %v3059_v24, %v3039_v16 }
 0x11c   : > { %v1054_v31 = vpop.f32.mrf.mxu1 }
 0x11d   : > { %v1055_v54 = vadd.f32 %v1054_v31, %v949_v0 }
 0x130   : > { %v3078_v42 = vpop.f32.mrf.mxu0 }
 0x131   : > { %v1257_v1 = vadd.f32 %v3078_v42, %v1060_v53 }
 0x132   : > { %v1240_v28 = vpop.f32.mrf.mxu0 }
 0x133   : > { %v1255_v49 = vadd.f32 %v1240_v28, %v1052_v47 }
 0x134   : > { %v3079_v30 = vpop.f32.mrf.mxu0 }
 0x135   : > { %v1258_v8 = vadd.f32 %v3079_v30, %v1063_v3 }
 0x136   : > { %v1243_v35 = vpop.f32.mrf.mxu0  ;;  %v3098_v27 = vpop.f32.mrf.mxu1 }
 0x137   : > { %v1256_v57 = vadd.f32 %v1243_v35, %v1055_v54  ;;  %v1443_v5 = vadd.f32 %v3098_v27, %v1257_v1 }
 0x138   : > { %v1426_v50 = vpop.f32.mrf.mxu1 }
 0x139   : > { %v1441_v55 = vadd.f32 %v1426_v50, %v1255_v49 }
 0x13a   : > { %v3099_v18 = vpop.f32.mrf.mxu1 }
 0x13b   : > { %v1444_v13 = vadd.f32 %v3099_v18, %v1258_v8 }
 0x13c   : > { %v1429_v40 = vpop.f32.mrf.mxu1 }
 0x13d   : > { %v1442_v61 = vadd.f32 %v1429_v40, %v1256_v57 }
 0x150   : > { %v3118_v36 = vpop.f32.mrf.mxu0 }
 0x151   : > { %v1573_v10 = vadd.f32 %v3118_v36, %v1443_v5 }
 0x152   : > { %v1556_v38 = vpop.f32.mrf.mxu0 }
 0x153   : > { %v1571_v59 = vadd.f32 %v1556_v38, %v1441_v55 }
 0x154   : > { %v3119_v39 = vpop.f32.mrf.mxu0 }
 0x155   : > { %v1574_v19 = vadd.f32 %v3119_v39, %v1444_v13 }
 0x156   : > { %v1559_v37 = vpop.f32.mrf.mxu0  ;;  %v3138_v41 = vpop.f32.mrf.mxu1 }
 0x157   : > { %v1572_v58 = vadd.f32 %v1559_v37, %v1442_v61  ;;  %v1763_v15 = vadd.f32 %v3138_v41, %v1573_v10 }
 0x158   : > { %v1746_v29 = vpop.f32.mrf.mxu1 }
 0x159   : > { %v1761_v62 = vadd.f32 %v1746_v29, %v1571_v59 }
 0x15a   : > { %v3139_v45 = vpop.f32.mrf.mxu1 }
 0x15b   : > { %v1764_v0 = vadd.f32 %v3139_v45, %v1574_v19 }
 0x15c   : > { %v1749_v33 = vpop.f32.mrf.mxu1 }
 0x15d   : > { %v1762_v6 = vadd.f32 %v1749_v33, %v1572_v58 }
 0x170   : > { %v3158_v43 = vpop.f32.mrf.mxu0 }
 0x171   : > { %v1950_v22 = vadd.f32 %v3158_v43, %v1763_v15 }
 0x172   : > { %v1933_v44 = vpop.f32.mrf.mxu0 }
 0x173   : > { %v1948_v2 = vadd.f32 %v1933_v44, %v1761_v62 }
 0x174   : > { %v3159_v46 = vpop.f32.mrf.mxu0 }
 0x175   : > { %v1951_v24 = vadd.f32 %v3159_v46, %v1764_v0 }
 0x176   : > { %v1936_v32 = vpop.f32.mrf.mxu0  ;;  %v3178_v48 = vpop.f32.mrf.mxu1 }
 0x177   : > { %v1949_v11 = vadd.f32 %v1936_v32, %v1762_v6  ;;  %v2080_v42 = vadd.f32 %v3178_v48, %v1950_v22 }
 0x178   : > { %v2063_v56 = vpop.f32.mrf.mxu1 }
 0x179   : > { %v2078_v7 = vadd.f32 %v2063_v56, %v1948_v2 }
 0x17a   : > { %v3179_v63 = vpop.f32.mrf.mxu1 }
 0x17b   : > { %v2081_v36 = vadd.f32 %v3179_v63, %v1951_v24 }
 0x17c   : > { %v2066_v21 = vpop.f32.mrf.mxu1 }
 0x17d   : > { %v2079_v17 = vadd.f32 %v2066_v21, %v1949_v11 }
 0x190   : > { %v3198_v52 = vpop.f32.mrf.mxu0 }
 0x191   : > { %v2270_v30 = vadd.f32 %v3198_v52, %v2080_v42 }
 0x192   : > { %v2253_v60 = vpop.f32.mrf.mxu0 }
 0x193   : > { %v2268_v12 = vadd.f32 %v2253_v60, %v2078_v7  ;;  %v2281_v18 = vadd.f32 %v2901_v20, %v2270_v30 }
 0x194   : > { %v3199_v4 = vpop.f32.mrf.mxu0 }
 0x195   : > { %v2279_v23 = vadd.f32 %v2901_v20, %v2268_v12  ;;  %v2271_v39 = vadd.f32 %v3199_v4, %v2081_v36 }
 0x196   : > { %v2256_v14 = vpop.f32.mrf.mxu0 }
 0x197   : > { %v2269_v25 = vadd.f32 %v2256_v14, %v2079_v17  ;;  %v2282_v29 = vadd.f32 %v2901_v20, %v2271_v39 }
 0x199   : > { %v2280_v31 = vadd.f32 %v2901_v20, %v2269_v25 }
 0x1a6   : > { %v2439_v34 = vpop.f32.mrf.mxu1 }
 0x1a7   : > { %v2440_v16 = vadd.f32 %v2902_v51, %v2439_v34 }
 0x1a8   : > { %v2441_v26 = vpop.f32.mrf.mxu1 }
 0x1a9   : > { %v2454_v9 = vadd.f32 %v2440_v16, %v2279_v23 }
 0x1aa   : > { %v2442_v28 = vpop.f32.mrf.mxu1 }
 0x1ab   : > { %2458 = vst [vmem:[%s582_s15] sm:$0xff] %v2454_v9  ;;  %v2443_v35 = vadd.f32 %v2902_v51, %v2442_v28 }
 0x1ac   : > { %v2444_v27 = vpop.f32.mrf.mxu1 }
 0x1ad   : > { %v2455_v50 = vadd.f32 %v2443_v35, %v2280_v31 }
 0x1ae   : > { %v2447_v38 = vpop.f32.mrf.mxu1 }
 0x1af   : > { %2459 = vst [vmem:[%s582_s15 + $0x8] sm:$0xff] %v2455_v50  ;;  %v2448_v40 = vadd.f32 %v2902_v51, %v2447_v38 }
 0x1b0   : > { %v2449_v37 = vpop.f32.mrf.mxu1 }
 0x1b1   : > { %v2456_v41 = vadd.f32 %v2448_v40, %v2281_v18 }
 0x1b2   : > { %v2450_v43 = vpop.f32.mrf.mxu1 }
 0x1b3   : > { %2460 = vst [vmem:[%s582_s15 + $0x10] sm:$0xff] %v2456_v41  ;;  %v2451_v44 = vadd.f32 %v2902_v51, %v2450_v43 }
 0x1b4   : > { %v2452_v45 = vpop.f32.mrf.mxu1 }
 0x1b5   : > { %v2457_v46 = vadd.f32 %v2451_v44, %v2282_v29 }
 0x1b7   : > { %2461 = vst [vmem:[%s582_s15 + $0x18] sm:$0xff] %v2457_v46 }
 0x1b8 PF: > { %s4085_s23 = sld [smem:[#allocation5_spill]] }
 0x1b9   : > { %s4086_s13 = sld [smem:[#allocation3_spill]] }
 0x1ba   : > { %s4087_s14 = sld [smem:[#allocation4_spill]] }
 0x1bb   : > { %s4088_s15 = sld [smem:[#allocation6_spill]] }
 0x1bc   : > { %s4089_s16 = sld [smem:[#allocation7_spill]] }
 0x1be   : > { %s20_s17 = sadd.s32 1, %s4085_s23  }
 0x1bf   : > { %p17_p0 = scmp.ge.s32.totalorder %s20_s17, 6  }
 0x1c1   :  { %19 = sbr.rel (!%p17_p0) target bundleno = 3 (0x3), region = 116 }

// kernel: up_decoder_block_2d.9
= control target key start
LH: loop header
LB: loop body
LE: loop exit
PB: predicated region body
PF: predicated region fallthrough
CT: control target
= control target key end

     0   :  { %s4400_s18 = smov 0   ;;  %s4402_s19 = smov 0   ;;  %s5151_s0 = inlined_call_operand.vmem [shape: f32[2,8,8,128], index: 0, kind: input, shape index: {}, may-alias: {0,1,2}]   ;;  %s5152_s1 = inlined_call_operand.vmem [shape: f32[2,8,8,128], index: 1, kind: input, shape index: {}, may-alias: {0,1,2}]   ;;  %s5153_s2 = inlined_call_operand.vmem [shape: f32[2,8,8,128], index: 2, kind: input, shape index: {}, may-alias: {0,1,2}]   ;;  %s5154_s3 = inlined_call_operand.vmem [shape: bf16[4,2,2,128,128], index: 3, kind: input, shape index: {}]   ;;  %s5155_s4 = inlined_call_operand.vmem [shape: f32[1,128], index: 4, kind: input, shape index: {}]   ;;  %s5156_s5 = inlined_call_operand.vmem [shape: f32[2,8,2,8,256], index: 5, kind: output, shape index: {}]  }
   0x1   :  { %s4404_s20 = smov 0   ;;  %s4406_s21 = smov 0  }
   0x2   :  { %s4408_s22 = smov 0  }
   0x3 LB: > { %s24_s23 = sadd.s32 1, %s4360_s20  ;;  %s27_s24 = sadd.s32 1, %s4364_s21  ;;  %s4368_s22 = sphi %s4408_s22, %s15_s22   ;;  %s4364_s21 = sphi %s4406_s21, %s5169_s21   ;;  %s4360_s20 = sphi %s4404_s20, %s5168_s20   ;;  %s4356_s19 = sphi %s4402_s19, %s5167_s19   ;;  %s4352_s18 = sphi %s4400_s18, %s5166_s18  }
   0x4   : > { %p25_p0 = scmp.ge.s32.totalorder %s24_s23, 2  ;;  %p3211_p1 = scmp.ge.s32.totalorder %s4368_s22, 1 }
   0x5   : > { %p270_p2 = scmp.lt.s32.totalorder %s4368_s22, 5 }
   0x6   : > { %s5171_s23 = smov (%p25_p0, %s24_s23), 0  ;;  %s5173_s24 = smov (!%p25_p0, %s27_s24), %s4364_s21 }
   0x7   : > { %p271_p3 = pnand %p3211_p1, %p270_p2  ;;  %p29_p4 = scmp.ge.s32.totalorder %s5173_s24, 2 }
   0x8   : > { %s4436_s27 = sshll.u32 (!%p271_p3), %s4352_s18, 2  ;;  %p332_p5 = scmp.lt.s32.totalorder (!%p271_p3), %s4356_s19, 1 }
   0x9   : > { %s5175_s24 = smov (%p29_p4, %s5173_s24), 0  ;;  %274 = sbr.rel (%p271_p3) target bundleno = 486 (0x1e6), region = 40 }
   0xa   : > { %p334_p6 = scmp.lt.s32.totalorder (!%p271_p3), %s4436_s27, 7  ;;  %s3216_s16 = sadd.s32 (!%p271_p3), 4294967295, %s4436_s27 }
   0xb   : > { %p343_p7 = scmp.gt.s32.totalorder (!%p271_p3), %s3216_s16, 0  ;;  %p3217_p8 = scmp.lt.s32.totalorder (!%p271_p3), %s3216_s16, 7 }
   0xc   : > { %s358_s30 = sadd.s32 (!%p271_p3), 4, %s4436_s27  ;;  %p442_p10 = scmp.gt.s32.totalorder (!%p271_p3), %s4352_s18, 0 }
   0xd   : > { %p4481_p9 = scmp.lt.s32.totalorder (!%p271_p3), %s358_s30, 7  ;;  %p463_p11 = scmp.lt.s32.totalorder (!%p271_p3), %s4352_s18, 1 }
   0xe   : > { %v4186_v0 = vld [vmem:[%s5154_s3 + $0x78] sm:$0xff]   ;;  %v4188_v2 = vld [vmem:[%s5154_s3 + $0x70] sm:$0xff]   ;;  %s5177_s19 = smov (!%p332_p5, %s4356_s19), 1  ;;  %v4190_v4 = vld [vmem:[%s5154_s3 + $0x68] sm:$0xff]   ;;  %s5179_s16 = smov (!%p343_p7, %s3216_s16), 0  ;;  %vm385_vm0 = vcmask 1043459  }
   0xf   : > { %v4187_v1 = vld [vmem:[%s5154_s3 + $0x38] sm:$0xff]   ;;  %3826 = vmatprep.subr.bf16.mxu0 %v4186_v0  ;;  %v4189_v3 = vld [vmem:[%s5154_s3 + $0x30] sm:$0xff]   ;;  %s4454_s11 = scalar_select %p334_p6, %s4436_s27, 7  ;;  %v4191_v5 = vld [vmem:[%s5154_s3 + $0x28] sm:$0xff]   ;;  %vm386_vm1 = vsmask.f32 7950 }
  0x10   : > { %3827 = vmatpush3.bf16.msra.mxu0 %v4186_v0  ;;  %3846 = vmatprep.subr.bf16.mxu1 %v4187_v1  ;;  %s4460_s14 = sshll.u32 %s5177_s19, 3  ;;  %v4192_v6 = vld [vmem:[%s5154_s3 + $0x60] sm:$0xff]   ;;  %v4194_v8 = vld [vmem:[%s5154_s3 + $0x58] sm:$0xff]   ;;  %s5181_s16 = smov (!%p3217_p8, %s5179_s16), 7  ;;  %v4196_v10 = vld [vmem:[%s5154_s3 + $0x50] sm:$0xff]   ;;  %vm406_vm6 = vcmask 1040384  }
  0x11   : > { %3847 = vmatpush3.bf16.msra.mxu1 %v4187_v1  ;;  %3828 = vmatprep.subr.bf16.mxu0 %v4188_v2  ;;  %s337_s15 = sadd.s32 %s4460_s14, %s4454_s11  ;;  %v4193_v7 = vld [vmem:[%s5154_s3 + $0x20] sm:$0xff]   ;;  %v4195_v9 = vld [vmem:[%s5154_s3 + $0x18] sm:$0xff]   ;;  %s3231_s25 = sshll.u32 %s4454_s11, 2  ;;  %v4197_v14 = vld [vmem:[%s5154_s3 + $0x10] sm:$0xff]   ;;  %vm407_vm3 = vsmask.f32 256 }
  0x12   : > { %3848 = vmatprep.subr.bf16.mxu1 %v4189_v3  ;;  %s3214_s29 = sshll.u32 %s337_s15, 3  ;;  %s3232_s26 = sshll.u32 %s5177_s19, 5  ;;  %vm4504_vm2 = vmand %vm385_vm0, %vm386_vm1  ;;  %v388_v21 = vld [vmem:[#allocation2] sm:$0x8]  ;;  %v391_v22 = vld [vmem:[#allocation2 + $0xc] sm:$0x8] }
  0x13   : > { %s339_s13 = scalar_lea.vmem %s5151_s0, %s3214_s29  ;;  %s5183_s30 = smov (!%p4481_p9, %s358_s30), 7  ;;  %v4198_v23 = vld [vmem:[%s5154_s3 + $0x48] sm:$0xff]   ;;  %v389_v24 = vsel %vm4504_vm2, 0, %v388_v21  ;;  %v392_v25 = vsel %vm4504_vm2, 0, %v391_v22  ;;  %v4200_v27 = vld [vmem:[%s5154_s3 + $0x40] sm:$0xff]   ;;  %v4551_v33 = vld [vmem:[%s5154_s3 + $0xb8] sm:$0xff]  }
  0x14   : > { %3829 = vmatpush3.bf16.msra.mxu0 %v4188_v2  ;;  %v427_v11 = vld [vmem:[%s339_s13] sm:$0xff]  ;;  %v430_v12 = vld [vmem:[%s339_s13 + $0x18] sm:$0xff]  ;;  %v428_v13 = vld [vmem:[%s339_s13 + $0x8] sm:$0xff]  ;;  %s350_s11 = sadd.s32 %s5181_s16, %s4460_s14  ;;  %s4499_s6 = sadd.s32 %s3232_s26, %s3231_s25  ;;  %390 = vst [vmem:[#allocation2] sm:$0x8] %v389_v24 }
  0x15   : > { %3849 = vmatpush3.bf16.msra.mxu1 %v4189_v3  ;;  %3830 = vmatprep.subr.bf16.mxu0 %v4190_v4  ;;  %v431_v15 = vpack.c.bf16 %v427_v11, %v427_v11  ;;  %v434_v16 = vpack.c.bf16 %v430_v12, %v430_v12  ;;  %v429_v17 = vld [vmem:[%s339_s13 + $0x10] sm:$0xff]  ;;  %v432_v18 = vpack.c.bf16 %v428_v13, %v428_v13  ;;  %s5185_s30 = smov (!%p4481_p9, %s5183_s30), 7  ;;  %v4199_v26 = vld [vmem:[%s5154_s3 + $0x8] sm:$0xff]   ;;  %s4524_s13 = sshll.u32 %s350_s11, 3  ;;  %v394_v28 = vld [vmem:[#allocation2 + $0x18] sm:$0x8] }
  0x16   : > { %3850 = vmatprep.subr.bf16.mxu1 %v4191_v5  ;;  %v433_v19 = vpack.c.bf16 %v429_v17, %v429_v17  ;;  %s366_s9 = sadd.s32 %s4460_s14, %s5185_s30  ;;  %393 = vst [vmem:[#allocation2 + $0xc] sm:$0x8] %v392_v25  ;;  %v395_v29 = vsel %vm4504_vm2, 0, %v394_v28  ;;  %v397_v30 = vld [vmem:[#allocation2 + $0x24] sm:$0x8]  ;;  %s352_s29 = scalar_lea.vmem %s5152_s1, %s4524_s13  ;;  %v4558_v35 = vld [vmem:[%s5154_s3 + $0xf8] sm:$0xff]   ;;  %vm4638_vm7 = vmand %vm406_vm6, %vm407_vm3 }
  0x17   : > { %436 = vst [vmem:[#allocation2 + $0x10] sm:$0xf] %v431_v15  ;;  %439 = vst [vmem:[#allocation2 + $0x34] sm:$0xf] %v434_v16  ;;  %s3229_s15 = sshll.u32 %s366_s9, 3  ;;  %v4201_v31 = vld [vmem:[%s5154_s3] sm:$0xff]  }
  0x18   : > { %3831 = vmatpush3.bf16.msra.mxu0 %v4190_v4  ;;  %437 = vst [vmem:[#allocation2 + $0x1c] sm:$0xf] %v432_v18  ;;  %438 = vst [vmem:[#allocation2 + $0x28] sm:$0xf] %v433_v19  ;;  %s443_s27 = scalar_select %p442_p10, 1, 0 }
  0x19   : > { %3851 = vmatpush3.bf16.msra.mxu1 %v4191_v5  ;;  %3832 = vmatprep.subr.bf16.mxu0 %v4192_v6  ;;  %396 = vst [vmem:[#allocation2 + $0x18] sm:$0x8] %v395_v29  ;;  %v398_v32 = vsel %vm4504_vm2, 0, %v397_v30  ;;  %s464_s17 = scalar_select %p463_p11, 1, 0  ;;  %v440_v37 = vld [vmem:[%s352_s29] sm:$0xff] }
  0x1a   : > { %3852 = vmatprep.subr.bf16.mxu1 %v4193_v7  ;;  %399 = vst [vmem:[#allocation2 + $0x24] sm:$0x8] %v398_v32  ;;  %s444_s25 = scvt.s32.f32 %s443_s27  ;;  %s4546_s7 = scalar_lea.vmem %s5153_s2, %s3229_s15  ;;  %v441_v43 = vpack.c.bf16 %v440_v37, %v440_v37  ;;  %vm491_vm4 = vsmask.f32 4368  ;;  %v400_v12 = vld [vmem:[#allocation2 + $0x30] sm:$0x8] }
  0x1b   : > { %s4541_s11 = scvt.s32.f32 %s464_s17  ;;  %v461_v44 = vld [vmem:[%s4546_s7] sm:$0xff]  ;;  %v401_v16 = vsel %vm4504_vm2, 0, %v400_v12  ;;  %vm4588_vm5 = vmor %vm407_vm3, %vm491_vm4  ;;  %v4206_v28 = vld [vmem:[%s5154_s3 + $0xb0] sm:$0xff]   ;;  %vm1148_vm8 = vsmask.f32 3328 }
  0x1c   : > { %3833 = vmatpush3.bf16.msra.mxu0 %v4192_v6  ;;  %s447_s8 = sshrl.u32 %s444_s25, 16  ;;  %p446_p12 = scmp.ne.f32.partialorder %s444_s25, %s444_s25  ;;  %v483_v51 = vld [vmem:[#allocation2] sm:$0x8]  ;;  %v462_v55 = vpack.c.bf16 %v461_v44, %v461_v44  ;;  %402 = vst [vmem:[#allocation2 + $0x30] sm:$0x8] %v401_v16  ;;  %v4216_v12 = vld [vmem:[%s5154_s3 + $0x88] sm:$0xff]  }
  0x1d   : > { %3853 = vmatpush3.bf16.msra.mxu1 %v4193_v7  ;;  %3834 = vmatprep.subr.bf16.mxu0 %v4194_v8  ;;  %s448_s10 = sand.u32 1, %s447_s8  ;;  %s468_s15 = sshrl.u32 %s4541_s11, 16  ;;  %v485_v48 = vld [vmem:[#allocation2 + $0xc] sm:$0x8]  ;;  %v494_v59 = vshrl.u32 %v483_v51, 16  ;;  %v4212_v51 = vld [vmem:[%s5154_s3 + $0x98] sm:$0xff]  }
  0x1e   : > { %3854 = vmatprep.subr.bf16.mxu1 %v4195_v9  ;;  %v4553_v34 = vld [vmem:[#allocation2 + $0x10] sm:$0xf]  ;;  %s449_s14 = sadd.s32 32767, %s448_s10  ;;  %s469_s27 = sand.u32 1, %s468_s15  ;;  %v507_v56 = vshrl.u32 %v485_v48, 16  ;;  %v4209_v48 = vld [vmem:[%s5154_s3 + $0xe8] sm:$0xff]  }
  0x1f   : > { %s450_s30 = sadd.s32 %s449_s14, %s444_s25  ;;  %v4561_v36 = vld [vmem:[#allocation2 + $0x1c] sm:$0xf]  ;;  %s470_s26 = sadd.s32 32767, %s469_s27  ;;  %v512_v38 = vshrl.u32 %v4553_v34, 16  ;;  %v4564_v39 = vld [vmem:[#allocation2 + $0x28] sm:$0xf] }
  0x20   : > { %3835 = vmatpush3.bf16.msra.mxu0 %v4194_v8  ;;  %s451_s17 = sand.u32 4294901760, %s450_s30  ;;  %v515_v40 = vshll.u32 %v4553_v34, 16  ;;  %p467_p13 = scmp.ne.f32.partialorder %s4541_s11, %s4541_s11  ;;  %v525_v41 = vshrl.u32 %v4561_v36, 16  ;;  %v528_v42 = vshll.u32 %v4561_v36, 16  ;;  %v538_v45 = vshrl.u32 %v4564_v39, 16 }
  0x21   : > { %3855 = vmatpush3.bf16.msra.mxu1 %v4195_v9  ;;  %3836 = vmatprep.subr.bf16.mxu0 %v4196_v10  ;;  %s5187_s17 = smov (%p446_p12, %s451_s17), 2143289344  ;;  %s471_s28 = sadd.s32 %s470_s26, %s4541_s11  ;;  %v541_v46 = vshll.u32 %v4564_v39, 16  ;;  %v514_v47 = vrot.slane %v512_v38, 7  ;;  %v487_v52 = vld [vmem:[#allocation2 + $0x18] sm:$0x8]  ;;  %v3235_v62 = vrot.slane %v507_v56, 11  ;;  %v3255_v1 = vcombine.low %v4561_v36, %v4564_v39 }
  0x22   : > { %3856 = vmatprep.subr.bf16.mxu1 %v4197_v14  ;;  %s454_s29 = sshrl.u32 %s5187_s17, 16  ;;  %s472_s19 = sand.u32 4294901760, %s471_s28  ;;  %v527_v50 = vrot.slane %v525_v41, 7  ;;  %v489_v54 = vld [vmem:[#allocation2 + $0x24] sm:$0x8]  ;;  %v540_v57 = vrot.slane %v538_v45, 7 }
  0x23   : > { %s455_s25 = sshll.u32 %s454_s29, 16  ;;  %s5189_s19 = smov (%p467_p13, %s472_s19), 2143289344  ;;  %v520_v60 = vshrl.u32 %v487_v52, 16  ;;  %v533_v63 = vshrl.u32 %v489_v54, 16  ;;  %v792_v0 = vld [vmem:[#allocation2 + $0xc] sm:$0x8]  ;;  %v517_v2 = vor.u32 %v515_v40, %v514_v47 }
  0x24   : > { %3837 = vmatpush3.bf16.msra.mxu0 %v4196_v10  ;;  %s456_s16 = sor.u32 %s455_s25, %s454_s29  ;;  %s475_s7 = sshrl.u32 %s5189_s19, 16  ;;  %v530_v3 = vor.u32 %v528_v42, %v527_v50  ;;  %v543_v4 = vor.u32 %v541_v46, %v540_v57  ;;  %v793_v5 = vld [vmem:[#allocation2 + $0x10] sm:$0xf]  ;;  %v794_v6 = vld [vmem:[#allocation2 + $0x18] sm:$0x8]  ;;  %v801_v8 = vshrl.u32 %v792_v0, 16 }
  0x25   : > { %3857 = vmatpush3.bf16.msra.mxu1 %v4197_v14  ;;  %3838 = vmatprep.subr.bf16.mxu0 %v4198_v23  ;;  %v457_v49 = vstv %s456_s16  ;;  %s476_s8 = sshll.u32 %s475_s7, 16  ;;  %v795_v7 = vld [vmem:[#allocation2 + $0x1c] sm:$0xf]  ;;  %v806_v9 = vshrl.u32 %v793_v5, 16  ;;  %v809_v10 = vshll.u32 %v793_v5, 16  ;;  %v814_v11 = vshrl.u32 %v794_v6, 16 }
  0x26   : > { %3858 = vmatprep.subr.bf16.mxu1 %v4199_v26  ;;  %v459_v53 = vmul.bf16 %v457_v49, %v441_v43  ;;  %s477_s18 = sor.u32 %s476_s8, %s475_s7  ;;  %v3236_v13 = vrot.slane %v520_v60, 11  ;;  %v819_v14 = vshrl.u32 %v795_v7, 16  ;;  %v822_v15 = vshll.u32 %v795_v7, 16  ;;  %v4208_v40 = vld [vmem:[%s5154_s3 + $0xa8] sm:$0xff]   ;;  %v4207_v46 = vld [vmem:[%s5154_s3 + $0xf0] sm:$0xff]   ;;  %v4210_v47 = vld [vmem:[%s5154_s3 + $0xa0] sm:$0xff]  }
  0x27   : > { %v478_v58 = vstv %s477_s18  ;;  %v3237_v18 = vrot.slane %v533_v63, 11  ;;  %v3274_v19 = vrot.slane %v801_v8, 11  ;;  %v808_v21 = vrot.slane %v806_v9, 7  ;;  %v4621_v49 = vld [vmem:[#allocation2 + $0x28] sm:$0xf]  ;;  %v4211_v52 = vld [vmem:[%s5154_s3 + $0xe0] sm:$0xff]  }
  0x28   : > { %3839 = vmatpush3.bf16.msra.mxu0 %v4198_v23  ;;  %460 = vst [vmem:[#allocation2 + $0x4] sm:$0xf] %v459_v53  ;;  %v480_v61 = vmul.bf16 %v478_v58, %v462_v55  ;;  %v3275_v22 = vrot.slane %v814_v11, 11  ;;  %v518_v39 = vsel %vm4588_vm5, %v3235_v62, %v517_v2  ;;  %v4623_v50 = vld [vmem:[#allocation2 + $0x34] sm:$0xf]  ;;  %v832_v54 = vshrl.u32 %v4621_v49, 16 }
  0x29   : > { %3859 = vmatpush3.bf16.msra.mxu1 %v4199_v26  ;;  %3840 = vmatprep.subr.bf16.mxu0 %v4200_v27  ;;  %v811_v29 = vor.u32 %v809_v10, %v808_v21  ;;  %v544_v36 = vsel %vm4588_vm5, %v3237_v18, %v543_v4  ;;  %v796_v53 = vld [vmem:[#allocation2 + $0x24] sm:$0x8]  ;;  %v845_v55 = vshrl.u32 %v4623_v50, 16  ;;  %v798_v57 = vld [vmem:[#allocation2 + $0x30] sm:$0x8]  ;;  %v848_v62 = vshll.u32 %v4623_v50, 16 }
  0x2a   : > { %3860 = vmatprep.subr.bf16.mxu1 %v4201_v31  ;;  %482 = vst [vmem:[#allocation2 + $0x40] sm:$0xf] %v480_v61  ;;  %v827_v58 = vshrl.u32 %v796_v53, 16  ;;  %v409_v60 = vld [vmem:[#allocation2 + $0x8] sm:$0x1]  ;;  %v4213_v61 = vld [vmem:[%s5154_s3 + $0xd8] sm:$0xff]  }
  0x2b   : > { %v812_v37 = vsel %vm4588_vm5, %v3274_v19, %v811_v29  ;;  %v410_v63 = vsel %vm4638_vm7, 0, %v409_v60  ;;  %v412_v0 = vld [vmem:[#allocation2 + $0x14] sm:$0x1]  ;;  %v834_v2 = vrot.slane %v832_v54, 7  ;;  %v415_v11 = vld [vmem:[#allocation2 + $0x20] sm:$0x1] }
  0x2c   : > { %3841 = vmatpush3.bf16.msra.mxu0 %v4200_v27  ;;  %v821_v27 = vrot.slane %v819_v14, 7  ;;  %411 = vst [vmem:[#allocation2 + $0x8] sm:$0x1] %v410_v63  ;;  %v413_v4 = vsel %vm4638_vm7, 0, %v412_v0  ;;  %v416_v14 = vsel %vm4638_vm7, 0, %v415_v11  ;;  %v4215_v21 = vld [vmem:[%s5154_s3 + $0xd0] sm:$0xff]  }
  0x2d   : > { %3861 = vmatpush3.bf16.msra.mxu1 %v4201_v31  ;;  %3866 = vmatprep.subr.bf16.mxu0 %v4551_v33  ;;  %v3234_v31 = vrot.slane %v494_v59, 11  ;;  %v835_v59 = vshll.u32 %v4621_v49, 16  ;;  %414 = vst [vmem:[#allocation2 + $0x14] sm:$0x1] %v413_v4  ;;  %417 = vst [vmem:[#allocation2 + $0x20] sm:$0x1] %v416_v14 }
  0x2e   : > { %3886 = vmatprep.subr.bf16.mxu1 %v4558_v35  ;;  %v824_v32 = vor.u32 %v822_v15, %v821_v27  ;;  %v418_v15 = vld [vmem:[#allocation2 + $0x2c] sm:$0x1]  ;;  %v4218_v29 = vld [vmem:[%s5154_s3 + $0x80] sm:$0xff]   ;;  %vm1149_vm9 = vsmask.f32 7440  ;;  %s3233_s28 = sshll.u32 %s4499_s6, 3 }
  0x2f   : > { %v484_v17 = vld [vmem:[#allocation2 + $0x4] sm:$0xf]  ;;  %v419_v19 = vsel %vm4638_vm7, 0, %v418_v15  ;;  %vm4680_vm10 = vmor %vm1148_vm8, %vm1149_vm9  ;;  %v4700_v53 = vld [vmem:[#allocation2 + $0x1c] sm:$0xf]  ;;  %s5102_s7 = scalar_lea.vmem %s5156_s5, %s3233_s28 }
  0x30   : > { %v499_v23 = vshrl.u32 %v484_v17, 16  ;;  %v502_v24 = vshll.u32 %v484_v17, 16  ;;  %v3254_v25 = vcombine.low %v484_v17, %v4553_v34  ;;  %v531_v34 = vsel %vm4588_vm5, %v3236_v13, %v530_v3  ;;  %420 = vst [vmem:[#allocation2 + $0x2c] sm:$0x1] %v419_v19  ;;  %v4226_v54 = vld [vmem:[%s5154_s3 + $0x168] sm:$0xff]   ;;  %v4291_v26 = vld [vmem:[%s5154_s3 + $0x2c0] sm:$0xff]  }
  0x31   : > { %v825_v41 = vsel %vm4588_vm5, %v3275_v22, %v824_v32  ;;  %v3265_v44 = vcombine.low %v531_v34, %v544_v36  ;;  %v840_v3 = vshrl.u32 %v798_v57, 16  ;;  %v3276_v22 = vrot.slane %v827_v58, 11  ;;  %v1572_v11 = vld [vmem:[#allocation2 + $0x10] sm:$0xf]  ;;  %v1574_v14 = vld [vmem:[#allocation2 + $0x1c] sm:$0xf] }
  0x32   : > { %v501_v30 = vrot.slane %v499_v23, 7  ;;  %3842 = vmatprep.mubr.bf16.mxu0 %v3254_v25  ;;  %v3294_v42 = vcombine.low %v812_v37, %v825_v41  ;;  %v837_v23 = vor.u32 %v835_v59, %v834_v2  ;;  %v1180_v57 = vshrl.u32 %v4700_v53, 16  ;;  %v4257_v20 = vld [vmem:[#allocation2 + $0x28] ss:$12 sps:$4 sm:$0xff]  }
  0x33   : > { %3843 = vmatmul.mubr.bf16.vlgmr.msra.gmra.mxu0 %v3255_v1  ;;  %v4649_v1 = vld [vmem:[#allocation2 + $0x4] sm:$0xf]  ;;  %v1183_v58 = vshll.u32 %v4700_v53, 16  ;;  %v4927_v56 = vld [vmem:[#allocation2 + $0x34] sm:$0xf] }
  0x34   : > { %v504_v38 = vor.u32 %v502_v24, %v501_v30  ;;  %3867 = vmatpush3.bf16.msra.mxu0 %v4551_v33  ;;  %3882 = vmatprep.mubr.bf16.mxu0 %v3294_v42  ;;  %v3320_v33 = vcombine.low %v793_v5, %v795_v7  ;;  %v4653_v5 = vld [vmem:[#allocation2 + $0x10] sm:$0xf]  ;;  %v1152_v6 = vshrl.u32 %v4649_v1, 16  ;;  %v847_v7 = vrot.slane %v845_v55, 7  ;;  %v4217_v30 = vld [vmem:[%s5154_s3 + $0xc8] sm:$0xff]   ;;  %v4221_v42 = vld [vmem:[%s5154_s3 + $0x178] sm:$0xff]  }
  0x35   : > { %3868 = vmatprep.subr.bf16.mxu0 %v4206_v28  ;;  %v1155_v8 = vshll.u32 %v4649_v1, 16  ;;  %v1166_v9 = vshrl.u32 %v4653_v5, 16  ;;  %v1169_v10 = vshll.u32 %v4653_v5, 16  ;;  %v3277_v24 = vrot.slane %v840_v3, 11  ;;  %v1145_v32 = vld [vmem:[#allocation2 + $0x14] sm:$0x1] }
  0x36   : > { %v505_v43 = vsel %vm4588_vm5, %v3234_v31, %v504_v38  ;;  %v1154_v13 = vrot.slane %v1152_v6, 4  ;;  %v850_v25 = vor.u32 %v848_v62, %v847_v7  ;;  %v1144_v31 = vld [vmem:[#allocation2 + $0x8] sm:$0x1]  ;;  %v838_v37 = vsel %vm4588_vm5, %v3276_v22, %v837_v23  ;;  %v4225_v62 = vld [vmem:[%s5154_s3 + $0x130] sm:$0xff]   ;;  %v4230_v3 = vld [vmem:[%s5154_s3 + $0x158] sm:$0xff]  }
  0x37   : > { %v3264_v45 = vcombine.low %v505_v43, %v518_v39  ;;  %v1157_v16 = vrot.slane %v1155_v8, 5  ;;  %v1168_v17 = vrot.slane %v1166_v9, 4  ;;  %v1171_v18 = vrot.slane %v1169_v10, 5  ;;  %v1146_v4 = vld [vmem:[#allocation2 + $0x20] sm:$0x1] }
  0x38   : > { %3869 = vmatpush3.bf16.msra.mxu0 %v4206_v28  ;;  %v1161_v36 = vshll.u32 %v1144_v31, 16  ;;  %v851_v38 = vsel %vm4588_vm5, %v3277_v24, %v850_v25  ;;  %v1175_v41 = vshll.u32 %v1145_v32, 16  ;;  %v3321_v55 = vcombine.low %v4621_v49, %v4623_v50  ;;  %v4228_v49 = vld [vmem:[%s5154_s3 + $0x160] sm:$0xff]  }
  0x39   : > { %3862 = vmatprep.mubr.bf16.mxu1 %v3264_v45  ;;  %3870 = vmatprep.subr.bf16.mxu0 %v4208_v40  ;;  %v1158_v27 = vor.u32 %v1157_v16, %v1154_v13  ;;  %v1172_v28 = vor.u32 %v1171_v18, %v1168_v17  ;;  %v3295_v45 = vcombine.low %v838_v37, %v851_v38  ;;  %v1182_v50 = vrot.slane %v1180_v57, 4  ;;  %v4229_v6 = vld [vmem:[%s5154_s3 + $0x120] sm:$0xff]   ;;  %v4232_v13 = vld [vmem:[%s5154_s3 + $0x150] sm:$0xff]   ;;  %v4231_v16 = vld [vmem:[%s5154_s3 + $0x118] sm:$0xff]  }
  0x3a   : > { %3863 = vmatmul.mubr.bf16.vlgmr.msra.gmra.mxu1 %v3265_v44  ;;  %v1163_v43 = vrot.slane %v1161_v36, 5  ;;  %v1177_v44 = vrot.slane %v1175_v41, 5  ;;  %v1185_v63 = vrot.slane %v1183_v58, 5  ;;  %v1189_v9 = vshll.u32 %v1146_v4, 16  ;;  %v4234_v17 = vld [vmem:[%s5154_s3 + $0x148] sm:$0xff]   ;;  %v4236_v37 = vld [vmem:[%s5154_s3 + $0x140] sm:$0xff]  }
  0x3b   : > { %3887 = vmatpush3.bf16.msra.mxu1 %v4558_v35  ;;  %3902 = vmatprep.mubr.bf16.mxu1 %v3320_v33  ;;  %v4214_v35 = vld [vmem:[%s5154_s3 + $0x90] sm:$0xff]   ;;  %v1159_v34 = vrot.slane %v1158_v27, 4  ;;  %v4219_v33 = vld [vmem:[%s5154_s3 + $0xc0] sm:$0xff]   ;;  %v1584_v22 = vshll.u32 %v1572_v11, 16  ;;  %v1595_v25 = vshrl.u32 %v1574_v14, 16  ;;  %v1598_v27 = vshll.u32 %v1574_v14, 16 }
  0x3c   : > { %3888 = vmatprep.subr.bf16.mxu1 %v4207_v46  ;;  %3871 = vmatpush3.bf16.msra.mxu0 %v4208_v40  ;;  %v1173_v40 = vrot.slane %v1172_v28, 4  ;;  %v1186_v7 = vor.u32 %v1185_v63, %v1182_v50  ;;  %v1191_v23 = vrot.slane %v1189_v9, 5  ;;  %v1573_v28 = vld [vmem:[#allocation2 + $0x14] sm:$0x1]  ;;  %v4256_v57 = vld [vmem:[#allocation2 + $0x10] ss:$12 sps:$4 sm:$0xff]  }
  0x3d   : > { %3872 = vmatprep.subr.bf16.mxu0 %v4210_v47  ;;  %v1586_v32 = vrot.slane %v1584_v22, 5  ;;  %v1600_v36 = vrot.slane %v1598_v27, 5  ;;  %v1590_v38 = vshll.u32 %v1573_v28, 16  ;;  %v4241_v58 = vld [vmem:[%s5154_s3 + $0x1f8] sm:$0xff]   ;;  %v4243_v50 = vld [vmem:[%s5154_s3 + $0x1f0] sm:$0xff]   ;;  %v4246_v63 = vld [vmem:[%s5154_s3 + $0x1a0] sm:$0xff]  }
  0x3e   : > { %v1187_v18 = vrot.slane %v1186_v7, 4  ;;  %v4249_v4 = vld [vmem:[%s5154_s3 + $0x1d8] sm:$0xff]   ;;  %v4252_v7 = vld [vmem:[%s5154_s3 + $0x188] sm:$0xff]  }
  0x3f   : > { %3889 = vmatpush3.bf16.msra.mxu1 %v4207_v46  ;;  %v1164_v46 = vsel %vm4680_vm10, %v1159_v34, %v1163_v43  ;;  %v1597_v34 = vrot.slane %v1595_v25, 4  ;;  %v1577_v14 = vld [vmem:[#allocation2 + $0x2c] sm:$0x1]  ;;  %v403_v25 = vld [vmem:[#allocation2 + $0x3c] sm:$0x8] }
  0x40   : > { %3890 = vmatprep.subr.bf16.mxu1 %v4209_v48  ;;  %3873 = vmatpush3.bf16.msra.mxu0 %v4210_v47  ;;  %v1178_v47 = vsel %vm4680_vm10, %v1173_v40, %v1177_v44  ;;  %v1192_v41 = vsel %vm4680_vm10, %v1187_v18, %v1191_v23  ;;  %v4254_v18 = vld [vmem:[%s5154_s3 + $0x180] sm:$0xff]   ;;  %v1777_v23 = vld [vmem:[#allocation2 + $0xc] sm:$0x8]  ;;  %v1618_v28 = vshll.u32 %v1577_v14, 16 }
  0x41   : > { %3874 = vmatprep.subr.bf16.mxu0 %v4212_v51 }
  0x43   : > { %3891 = vmatpush3.bf16.msra.mxu1 %v4209_v48  ;;  %v4224_v48 = vld [vmem:[%s5154_s3 + $0x170] sm:$0xff]  }
  0x44   : > { %3892 = vmatprep.subr.bf16.mxu1 %v4211_v52  ;;  %3875 = vmatpush3.bf16.msra.mxu0 %v4212_v51  ;;  %v3363_v51 = vcombine.low %v1164_v46, %v1178_v47  ;;  %v4239_v46 = vld [vmem:[%s5154_s3 + $0x1b8] sm:$0xff]  }
  0x45   : > { %3876 = vmatprep.subr.bf16.mxu0 %v4214_v35 }
  0x47   : > { %3893 = vmatpush3.bf16.msra.mxu1 %v4211_v52  ;;  %v4223_v52 = vld [vmem:[%s5154_s3 + $0x138] sm:$0xff]  }
  0x48   : > { %3894 = vmatprep.subr.bf16.mxu1 %v4213_v61  ;;  %3877 = vmatpush3.bf16.msra.mxu0 %v4214_v35  ;;  %v4702_v35 = vld [vmem:[#allocation2 + $0x28] sm:$0xf] }
  0x49   : > { %3878 = vmatprep.subr.bf16.mxu0 %v4216_v12  ;;  %v1194_v59 = vshrl.u32 %v4702_v35, 16  ;;  %v1197_v60 = vshll.u32 %v4702_v35, 16 }
  0x4b   : > { %3895 = vmatpush3.bf16.msra.mxu1 %v4213_v61  ;;  %v3373_v61 = vcombine.low %v4649_v1, %v4653_v5  ;;  %v1196_v0 = vrot.slane %v1194_v59, 4  ;;  %v1199_v2 = vrot.slane %v1197_v60, 5  ;;  %v4227_v1 = vld [vmem:[%s5154_s3 + $0x128] sm:$0xff]  }
  0x4c   : > { %3896 = vmatprep.subr.bf16.mxu1 %v4215_v21  ;;  %3879 = vmatpush3.bf16.msra.mxu0 %v4216_v12  ;;  %v1147_v5 = vld [vmem:[#allocation2 + $0x2c] sm:$0x1]  ;;  %v421_v12 = vld [vmem:[#allocation2 + $0x38] sm:$0x1] }
  0x4d   : > { %3880 = vmatprep.subr.bf16.mxu0 %v4218_v29  ;;  %v1200_v8 = vor.u32 %v1199_v2, %v1196_v0  ;;  %v1203_v10 = vshll.u32 %v1147_v5, 16  ;;  %v422_v15 = vsel %vm4638_vm7, 0, %v421_v12  ;;  %v4245_v0 = vld [vmem:[%s5154_s3 + $0x1e8] sm:$0xff]  }
  0x4e   : > { %423 = vst [vmem:[#allocation2 + $0x38] sm:$0x1] %v422_v15  ;;  %v1576_v2 = vld [vmem:[#allocation2 + $0x28] sm:$0xf] }
  0x4f   : > { %3897 = vmatpush3.bf16.msra.mxu1 %v4215_v21  ;;  %v1201_v19 = vrot.slane %v1200_v8, 4  ;;  %v1581_v21 = vshrl.u32 %v1572_v11, 16  ;;  %v1205_v24 = vrot.slane %v1203_v10, 5  ;;  %v1609_v5 = vshrl.u32 %v1576_v2, 16  ;;  %v4799_v10 = vld [vmem:[#allocation2 + $0x10] sm:$0xf] }
  0x50   : > { %3898 = vmatprep.subr.bf16.mxu1 %v4217_v30  ;;  %3881 = vmatpush3.bf16.msra.mxu0 %v4218_v29  ;;  %v1575_v29 = vld [vmem:[#allocation2 + $0x20] sm:$0x1]  ;;  %v4801_v11 = vld [vmem:[#allocation2 + $0x1c] sm:$0xf] }
  0x51   : > { %3906 = vmatprep.subr.bf16.mxu0 %v4221_v42  ;;  %v1583_v31 = vrot.slane %v1581_v21, 4  ;;  %v1604_v40 = vshll.u32 %v1575_v29, 16  ;;  %v1206_v43 = vsel %vm4680_vm10, %v1201_v19, %v1205_v24  ;;  %v1611_v12 = vrot.slane %v1609_v5, 4  ;;  %v1779_v24 = vld [vmem:[#allocation2 + $0x18] sm:$0x8]  ;;  %v4268_v5 = vld [vmem:[%s5154_s3 + $0x250] sm:$0xff]  }
  0x52   : > { %v3364_v47 = vcombine.low %v1192_v41, %v1206_v43  ;;  %v1791_v21 = vshrl.u32 %v4799_v10, 16  ;;  %v1804_v22 = vshrl.u32 %v4801_v11, 16  ;;  %v404_v29 = vsel %vm4504_vm2, 0, %v403_v25  ;;  %v4255_v43 = vld [vmem:[%s5154_s3 + $0x1c0] sm:$0xff]  }
  0x53   : > { %3899 = vmatpush3.bf16.msra.mxu1 %v4217_v30  ;;  %3883 = vmatmul.mubr.bf16.vlgmr.msra.gmra.mxu0 %v3295_v45  ;;  %v4233_v30 = vld [vmem:[%s5154_s3 + $0x110] sm:$0xff]   ;;  %v1587_v44 = vor.u32 %v1586_v32, %v1583_v31  ;;  %v1601_v45 = vor.u32 %v1600_v36, %v1597_v34  ;;  %v1794_v34 = vshll.u32 %v4799_v10, 16  ;;  %v1807_v36 = vshll.u32 %v4801_v11, 16  ;;  %405 = vst [vmem:[#allocation2 + $0x3c] sm:$0x8] %v404_v29  ;;  %v4272_v25 = vld [vmem:[%s5154_s3 + $0x240] sm:$0xff]  }
  0x54   : > { %3900 = vmatprep.subr.bf16.mxu1 %v4219_v33  ;;  %3907 = vmatpush3.bf16.msra.mxu0 %v4221_v42  ;;  %v4235_v42 = vld [vmem:[%s5154_s3 + $0x108] sm:$0xff]   ;;  %v1799_v41 = vshrl.u32 %v1779_v24, 16 }
  0x55   : > { %3908 = vmatprep.subr.bf16.mxu0 %v4224_v48  ;;  %3922 = vmatprep.mubr.bf16.mxu0 %v3363_v51  ;;  %v1592_v51 = vrot.slane %v1590_v38, 5  ;;  %v1579_v19 = vld [vmem:[#allocation2 + $0x38] sm:$0x1]  ;;  %v1806_v38 = vrot.slane %v1804_v22, 7  ;;  %v4269_v22 = vld [vmem:[%s5154_s3 + $0x210] sm:$0xff]  }
  0x56   : > { %v1632_v32 = vshll.u32 %v1579_v19, 16 }
  0x57   : > { %3901 = vmatpush3.bf16.msra.mxu1 %v4219_v33  ;;  %v4237_v33 = vld [vmem:[%s5154_s3 + $0x100] sm:$0xff]  }
  0x58   : > { %3926 = vmatprep.subr.bf16.mxu1 %v4223_v52  ;;  %3909 = vmatpush3.bf16.msra.mxu0 %v4224_v48  ;;  %v4242_v48 = vld [vmem:[%s5154_s3 + $0x1b0] sm:$0xff]  }
  0x59   : > { %3910 = vmatprep.subr.bf16.mxu0 %v4226_v54 }
  0x5a   : > { %3903 = vmatmul.mubr.bf16.vlgmr.msra.gmra.mxu1 %v3321_v55  ;;  %v1602_v55 = vrot.slane %v1601_v45, 4  ;;  %v1620_v45 = vrot.slane %v1618_v28, 5  ;;  %v1783_v28 = vld [vmem:[#allocation2 + $0x30] sm:$0x8] }
  0x5b   : > { %3927 = vmatpush3.bf16.msra.mxu1 %v4223_v52  ;;  %3942 = vmatprep.mubr.bf16.mxu1 %v3373_v61  ;;  %v1606_v52 = vrot.slane %v1604_v40, 5  ;;  %v4244_v61 = vld [vmem:[%s5154_s3 + $0x1a8] sm:$0xff]   ;;  %v1786_v40 = vshrl.u32 %v1777_v23, 16 }
  0x5c   : > { %3928 = vmatprep.subr.bf16.mxu1 %v4225_v62  ;;  %3911 = vmatpush3.bf16.msra.mxu0 %v4226_v54  ;;  %v1588_v54 = vrot.slane %v1587_v44, 4 }
  0x5d   : > { %3912 = vmatprep.subr.bf16.mxu0 %v4228_v49  ;;  %v1607_v60 = vsel %vm4680_vm10, %v1602_v55, %v1606_v52  ;;  %v1809_v52 = vor.u32 %v1807_v36, %v1806_v38  ;;  %v3472_v55 = vcombine.low %v4799_v10, %v4801_v11  ;;  %v4267_v11 = vld [vmem:[%s5154_s3 + $0x218] sm:$0xff]   ;;  %v1825_v38 = vshrl.u32 %v1783_v28, 16 }
  0x5e   : > { %v1593_v59 = vsel %vm4680_vm10, %v1588_v54, %v1592_v51  ;;  %v3437_v51 = vrot.slane %v1799_v41, 11  ;;  %v4260_v54 = vld [vmem:[%s5154_s3 + $0x270] sm:$0xff]   ;;  %v4276_v41 = vld [vmem:[%s5154_s3 + $0x2b8] sm:$0xff]  }
  0x5f   : > { %3929 = vmatpush3.bf16.msra.mxu1 %v4225_v62  ;;  %v3374_v62 = vcombine.low %v4700_v53, %v4702_v35  ;;  %v4248_v53 = vld [vmem:[%s5154_s3 + $0x198] sm:$0xff]   ;;  %v4247_v35 = vld [vmem:[%s5154_s3 + $0x1e0] sm:$0xff]  }
  0x60   : > { %3930 = vmatprep.subr.bf16.mxu1 %v4227_v1  ;;  %3913 = vmatpush3.bf16.msra.mxu0 %v4228_v49  ;;  %v3425_v49 = vcombine.low %v1593_v59, %v1607_v60  ;;  %v4259_v59 = vld [vmem:[%s5154_s3 + $0x238] sm:$0xff]  }
  0x61   : > { %3914 = vmatprep.subr.bf16.mxu0 %v4230_v3 }
  0x63   : > { %3931 = vmatpush3.bf16.msra.mxu1 %v4227_v1  ;;  %v1578_v1 = vld [vmem:[#allocation2 + $0x34] sm:$0xf] }
  0x64   : > { %3932 = vmatprep.subr.bf16.mxu1 %v4229_v6  ;;  %3915 = vmatpush3.bf16.msra.mxu0 %v4230_v3  ;;  %v4250_v3 = vld [vmem:[%s5154_s3 + $0x190] sm:$0xff]   ;;  %v1623_v8 = vshrl.u32 %v1578_v1, 16  ;;  %v1626_v9 = vshll.u32 %v1578_v1, 16  ;;  %v4857_v1 = vld [vmem:[#allocation2 + $0x28] sm:$0xf] }
  0x65   : > { %3916 = vmatprep.subr.bf16.mxu0 %v4232_v13  ;;  %v2113_v10 = vshrl.u32 %v4857_v1, 16 }
  0x66   : > { %v1625_v15 = vrot.slane %v1623_v8, 4  ;;  %v2088_v8 = vld [vmem:[#allocation2 + $0x24] sm:$0x8] }
  0x67   : > { %3933 = vmatpush3.bf16.msra.mxu1 %v4229_v6  ;;  %v1612_v6 = vshll.u32 %v1576_v2, 16  ;;  %v4855_v2 = vld [vmem:[#allocation2 + $0x1c] sm:$0xf]  ;;  %v2108_v19 = vshrl.u32 %v2088_v8, 16  ;;  %v2115_v24 = vrot.slane %v2113_v10, 7 }
  0x68   : > { %3934 = vmatprep.subr.bf16.mxu1 %v4231_v16  ;;  %3917 = vmatpush3.bf16.msra.mxu0 %v4232_v13  ;;  %v2092_v10 = vld [vmem:[#allocation2 + $0x3c] sm:$0x8] }
  0x69   : > { %3918 = vmatprep.subr.bf16.mxu0 %v4234_v17  ;;  %v1614_v13 = vrot.slane %v1612_v6, 5  ;;  %v1784_v6 = vld [vmem:[#allocation2 + $0x34] sm:$0xf] }
  0x6b   : > { %3935 = vmatpush3.bf16.msra.mxu1 %v4231_v16  ;;  %v1628_v16 = vrot.slane %v1626_v9, 5  ;;  %v1615_v27 = vor.u32 %v1614_v13, %v1611_v12  ;;  %v2100_v9 = vshrl.u32 %v4855_v2, 16  ;;  %v4270_v12 = vld [vmem:[%s5154_s3 + $0x248] sm:$0xff]  }
  0x6c   : > { %3936 = vmatprep.subr.bf16.mxu1 %v4233_v30  ;;  %3919 = vmatpush3.bf16.msra.mxu0 %v4234_v17  ;;  %v4251_v17 = vld [vmem:[%s5154_s3 + $0x1d0] sm:$0xff]  }
  0x6d   : > { %3920 = vmatprep.subr.bf16.mxu0 %v4236_v37  ;;  %v1629_v31 = vor.u32 %v1628_v16, %v1625_v15  ;;  %v1616_v44 = vrot.slane %v1615_v27, 4  ;;  %v1830_v15 = vshrl.u32 %v1784_v6, 16  ;;  %v1833_v16 = vshll.u32 %v1784_v6, 16  ;;  %v1781_v27 = vld [vmem:[#allocation2 + $0x24] sm:$0x8] }
  0x6e   : > { %v2102_v23 = vrot.slane %v2100_v9, 7  ;;  %v4286_v9 = vld [vmem:[%s5154_s3 + $0x290] sm:$0xff]  }
  0x6f   : > { %3937 = vmatpush3.bf16.msra.mxu1 %v4233_v30  ;;  %v4253_v30 = vld [vmem:[%s5154_s3 + $0x1c8] sm:$0xff]  }
  0x70   : > { %3938 = vmatprep.subr.bf16.mxu1 %v4235_v42  ;;  %3921 = vmatpush3.bf16.msra.mxu0 %v4236_v37  ;;  %v1793_v37 = vrot.slane %v1791_v21, 7  ;;  %v2116_v21 = vshll.u32 %v4857_v1, 16 }
  0x71   : > { %3946 = vmatprep.subr.bf16.mxu0 %v4239_v46 }
  0x72   : > { %v2118_v36 = vor.u32 %v2116_v21, %v2115_v24 }
  0x73   : > { %3939 = vmatpush3.bf16.msra.mxu1 %v4235_v42  ;;  %3923 = vmatmul.mubr.bf16.vlgmr.msra.gmra.mxu0 %v3364_v47  ;;  %v4258_v42 = vld [vmem:[%s5154_s3 + $0x278] sm:$0xff]   ;;  %v3436_v47 = vrot.slane %v1786_v40, 11  ;;  %v4271_v40 = vld [vmem:[%s5154_s3 + $0x208] sm:$0xff]  }
  0x74   : > { %3940 = vmatprep.subr.bf16.mxu1 %v4237_v33  ;;  %3947 = vmatpush3.bf16.msra.mxu0 %v4239_v46  ;;  %v1630_v46 = vrot.slane %v1629_v31, 4 }
  0x75   : > { %3948 = vmatprep.subr.bf16.mxu0 %v4242_v48  ;;  %3962 = vmatprep.mubr.bf16.mxu0 %v4256_v57  ;;  %v1621_v57 = vsel %vm4680_vm10, %v1616_v44, %v1620_v45 }
  0x77   : > { %3941 = vmatpush3.bf16.msra.mxu1 %v4237_v33  ;;  %v1634_v33 = vrot.slane %v1632_v32, 5 }
  0x78   : > { %3966 = vmatprep.subr.bf16.mxu1 %v4241_v58  ;;  %3949 = vmatpush3.bf16.msra.mxu0 %v4242_v48  ;;  %v1796_v48 = vor.u32 %v1794_v34, %v1793_v37  ;;  %v3493_v34 = vrot.slane %v2108_v19, 11  ;;  %v1812_v37 = vshrl.u32 %v1781_v27, 16  ;;  %v4285_v19 = vld [vmem:[%s5154_s3 + $0x2d8] sm:$0xff]  }
  0x79   : > { %3950 = vmatprep.subr.bf16.mxu0 %v4244_v61 }
  0x7a   : > { %3943 = vmatmul.mubr.bf16.vlgmr.msra.gmra.mxu1 %v3374_v62  ;;  %v1797_v60 = vsel %vm4588_vm5, %v3436_v47, %v1796_v48  ;;  %v4262_v62 = vld [vmem:[%s5154_s3 + $0x268] sm:$0xff]   ;;  %v3438_v44 = vrot.slane %v1812_v37, 11  ;;  %v4273_v47 = vld [vmem:[%s5154_s3 + $0x200] sm:$0xff]   ;;  %v4278_v48 = vld [vmem:[%s5154_s3 + $0x2b0] sm:$0xff]  }
  0x7b   : > { %3967 = vmatpush3.bf16.msra.mxu1 %v4241_v58  ;;  %3982 = vmatprep.mubr.bf16.mxu1 %v3425_v49  ;;  %v1635_v58 = vsel %vm4680_vm10, %v1630_v46, %v1634_v33  ;;  %v3439_v46 = vrot.slane %v1825_v38, 11  ;;  %v4290_v38 = vld [vmem:[%s5154_s3 + $0x280] sm:$0xff]  }
  0x7c   : > { %3968 = vmatprep.subr.bf16.mxu1 %v4243_v50  ;;  %3951 = vmatpush3.bf16.msra.mxu0 %v4244_v61  ;;  %v1810_v61 = vsel %vm4588_vm5, %v3437_v51, %v1809_v52  ;;  %v3426_v49 = vcombine.low %v1621_v57, %v1635_v58  ;;  %v4280_v57 = vld [vmem:[%s5154_s3 + $0x2a8] sm:$0xff]  }
  0x7d   : > { %3952 = vmatprep.subr.bf16.mxu0 %v4246_v63 }
  0x7f   : > { %3969 = vmatpush3.bf16.msra.mxu1 %v4243_v50  ;;  %v3482_v50 = vcombine.low %v1797_v60, %v1810_v61  ;;  %v4279_v60 = vld [vmem:[%s5154_s3 + $0x2f0] sm:$0xff]   ;;  %v424_v61 = vld [vmem:[#allocation2 + $0x44] sm:$0x1] }
  0x80   : > { %3970 = vmatprep.subr.bf16.mxu1 %v4245_v0  ;;  %3953 = vmatpush3.bf16.msra.mxu0 %v4246_v63  ;;  %v4261_v63 = vld [vmem:[%s5154_s3 + $0x230] sm:$0xff]  }
  0x81   : > { %3954 = vmatprep.subr.bf16.mxu0 %v4248_v53 }
  0x83   : > { %3971 = vmatpush3.bf16.msra.mxu1 %v4245_v0  ;;  %v4264_v0 = vld [vmem:[%s5154_s3 + $0x260] sm:$0xff]  }
  0x84   : > { %3972 = vmatprep.subr.bf16.mxu1 %v4247_v35  ;;  %3955 = vmatpush3.bf16.msra.mxu0 %v4248_v53  ;;  %v4263_v53 = vld [vmem:[%s5154_s3 + $0x228] sm:$0xff]  }
  0x85   : > { %3956 = vmatprep.subr.bf16.mxu0 %v4250_v3 }
  0x87   : > { %3973 = vmatpush3.bf16.msra.mxu1 %v4247_v35  ;;  %v4266_v35 = vld [vmem:[%s5154_s3 + $0x258] sm:$0xff]  }
  0x88   : > { %3974 = vmatprep.subr.bf16.mxu1 %v4249_v4  ;;  %3957 = vmatpush3.bf16.msra.mxu0 %v4250_v3  ;;  %v4265_v3 = vld [vmem:[%s5154_s3 + $0x220] sm:$0xff]  }
  0x89   : > { %3958 = vmatprep.subr.bf16.mxu0 %v4252_v7 }
  0x8b   : > { %3975 = vmatpush3.bf16.msra.mxu1 %v4249_v4  ;;  %v1782_v4 = vld [vmem:[#allocation2 + $0x28] sm:$0xf] }
  0x8c   : > { %3976 = vmatprep.subr.bf16.mxu1 %v4251_v17  ;;  %3959 = vmatpush3.bf16.msra.mxu0 %v4252_v7  ;;  %v2086_v7 = vld [vmem:[#allocation2 + $0x18] sm:$0x8]  ;;  %v1817_v13 = vshrl.u32 %v1782_v4, 16  ;;  %v1820_v14 = vshll.u32 %v1782_v4, 16 }
  0x8d   : > { %3960 = vmatprep.subr.bf16.mxu0 %v4254_v18 }
  0x8e   : > { %v1819_v29 = vrot.slane %v1817_v13, 7 }
  0x8f   : > { %3977 = vmatpush3.bf16.msra.mxu1 %v4251_v17  ;;  %v2095_v17 = vshrl.u32 %v2086_v7, 16  ;;  %v2126_v7 = vshrl.u32 %v4927_v56, 16 }
  0x90   : > { %3978 = vmatprep.subr.bf16.mxu1 %v4253_v30  ;;  %3961 = vmatpush3.bf16.msra.mxu0 %v4254_v18  ;;  %v2103_v18 = vshll.u32 %v4855_v2, 16  ;;  %v1822_v45 = vor.u32 %v1820_v14, %v1819_v29 }
  0x91   : > { %3986 = vmatprep.subr.bf16.mxu0 %v4258_v42  ;;  %v3492_v31 = vrot.slane %v2095_v17, 11  ;;  %v2439_v17 = vld [vmem:[#allocation2 + $0x14] sm:$0x1]  ;;  %v2128_v21 = vrot.slane %v2126_v7, 7 }
  0x92   : > { %v2105_v32 = vor.u32 %v2103_v18, %v2102_v23  ;;  %v1823_v52 = vsel %vm4588_vm5, %v3438_v44, %v1822_v45  ;;  %v2440_v18 = vld [vmem:[#allocation2 + $0x20] sm:$0x1]  ;;  %v2453_v28 = vshll.u32 %v2439_v17, 16  ;;  %v4304_v7 = vld [vmem:[%s5154_s3 + $0x350] sm:$0xff]  }
  0x93   : > { %3979 = vmatpush3.bf16.msra.mxu1 %v4253_v30  ;;  %3963 = vmatmul.mubr.bf16.vlgmr.msra.gmra.mxu0 %v4257_v20  ;;  %v1832_v30 = vrot.slane %v1830_v15, 7  ;;  %v3473_v20 = vcombine.low %v1782_v4, %v1784_v6  ;;  %v2090_v6 = vld [vmem:[#allocation2 + $0x30] sm:$0x8] }
  0x94   : > { %3980 = vmatprep.subr.bf16.mxu1 %v4255_v43  ;;  %3987 = vmatpush3.bf16.msra.mxu0 %v4258_v42  ;;  %v2106_v42 = vsel %vm4588_vm5, %v3492_v31, %v2105_v32  ;;  %v2121_v15 = vshrl.u32 %v2090_v6, 16  ;;  %v4287_v31 = vld [vmem:[%s5154_s3 + $0x2d0] sm:$0xff]   ;;  %v2442_v6 = vld [vmem:[#allocation2 + $0x38] sm:$0x1] }
  0x95   : > { %3988 = vmatprep.subr.bf16.mxu0 %v4260_v54  ;;  %4002 = vmatprep.mubr.bf16.mxu0 %v3472_v55  ;;  %v1835_v33 = vor.u32 %v1833_v16, %v1832_v30  ;;  %v4277_v55 = vld [vmem:[%s5154_s3 + $0x2f8] sm:$0xff]   ;;  %v2129_v16 = vshll.u32 %v4927_v56, 16  ;;  %v2467_v30 = vshll.u32 %v2440_v18, 16 }
  0x96   : > { %v3494_v32 = vrot.slane %v2121_v15, 11 }
  0x97   : > { %3981 = vmatpush3.bf16.msra.mxu1 %v4255_v43  ;;  %v2119_v43 = vsel %vm4588_vm5, %v3493_v34, %v2118_v36  ;;  %v2131_v34 = vor.u32 %v2129_v16, %v2128_v21 }
  0x98   : > { %4006 = vmatprep.subr.bf16.mxu1 %v4259_v59  ;;  %3989 = vmatpush3.bf16.msra.mxu0 %v4260_v54  ;;  %v3512_v51 = vcombine.low %v2106_v42, %v2119_v43  ;;  %v1836_v54 = vsel %vm4588_vm5, %v3439_v46, %v1835_v33  ;;  %v2469_v42 = vrot.slane %v2467_v30, 5  ;;  %v4289_v43 = vld [vmem:[%s5154_s3 + $0x2c8] sm:$0xff]   ;;  %v4293_v46 = vld [vmem:[%s5154_s3 + $0x378] sm:$0xff]  }
  0x99   : > { %3990 = vmatprep.subr.bf16.mxu0 %v4262_v62  ;;  %v3483_v58 = vcombine.low %v1823_v52, %v1836_v54  ;;  %v2132_v44 = vsel %vm4588_vm5, %v3494_v32, %v2131_v34  ;;  %v4295_v54 = vld [vmem:[%s5154_s3 + $0x338] sm:$0xff]   ;;  %v2865_v32 = vld [vmem:[#allocation2 + $0x20] sm:$0x1]  ;;  %v2867_v34 = vld [vmem:[#allocation2 + $0x2c] sm:$0x1] }
  0x9a   : > { %3983 = vmatmul.mubr.bf16.vlgmr.msra.gmra.mxu1 %v3426_v49  ;;  %v425_v49 = vsel %vm4638_vm7, 0, %v424_v61  ;;  %v4992_v61 = vld [vmem:[#allocation2 + $0x34] sm:$0xf] }
  0x9b   : > { %4007 = vmatpush3.bf16.msra.mxu1 %v4259_v59  ;;  %4022 = vmatprep.mubr.bf16.mxu1 %v3482_v50  ;;  %v3538_v59 = vcombine.low %v4855_v2, %v4857_v1  ;;  %v4917_v50 = vld [vmem:[#allocation2 + $0x10] sm:$0xf]  ;;  %426 = vst [vmem:[#allocation2 + $0x44] sm:$0x1] %v425_v49 }
  0x9c   : > { %4008 = vmatprep.subr.bf16.mxu1 %v4261_v63  ;;  %3991 = vmatpush3.bf16.msra.mxu0 %v4262_v62  ;;  %v4282_v62 = vld [vmem:[%s5154_s3 + $0x2a0] sm:$0xff]   ;;  %v2444_v2 = vshrl.u32 %v4917_v50, 16  ;;  %v2447_v1 = vshll.u32 %v4917_v50, 16 }
  0x9d   : > { %3992 = vmatprep.subr.bf16.mxu0 %v4264_v0 }
  0x9f   : > { %4009 = vmatpush3.bf16.msra.mxu1 %v4261_v63  ;;  %v4919_v63 = vld [vmem:[#allocation2 + $0x1c] sm:$0xf] }
  0xa0   : > { %4010 = vmatprep.subr.bf16.mxu1 %v4263_v53  ;;  %3993 = vmatpush3.bf16.msra.mxu0 %v4264_v0  ;;  %v4281_v0 = vld [vmem:[%s5154_s3 + $0x2e8] sm:$0xff]   ;;  %v2461_v4 = vshll.u32 %v4919_v63, 16 }
  0xa1   : > { %3994 = vmatprep.subr.bf16.mxu0 %v4266_v35 }
  0xa2   : > { %v2463_v14 = vrot.slane %v2461_v4, 5  ;;  %v4301_v4 = vld [vmem:[%s5154_s3 + $0x320] sm:$0xff]  }
  0xa3   : > { %4011 = vmatpush3.bf16.msra.mxu1 %v4263_v53  ;;  %v4284_v53 = vld [vmem:[%s5154_s3 + $0x298] sm:$0xff]  }
  0xa4   : > { %4012 = vmatprep.subr.bf16.mxu1 %v4265_v3  ;;  %3995 = vmatpush3.bf16.msra.mxu0 %v4266_v35  ;;  %v4929_v35 = vld [vmem:[#allocation2 + $0x40] sm:$0xf] }
  0xa5   : > { %3996 = vmatprep.subr.bf16.mxu0 %v4268_v5  ;;  %v2139_v8 = vshrl.u32 %v4929_v35, 16  ;;  %v2142_v24 = vshll.u32 %v4929_v35, 16 }
  0xa7   : > { %4013 = vmatpush3.bf16.msra.mxu1 %v4265_v3  ;;  %v2458_v3 = vshrl.u32 %v4919_v63, 16  ;;  %v2141_v23 = vrot.slane %v2139_v8, 7  ;;  %v2864_v8 = vld [vmem:[#allocation2 + $0x1c] sm:$0xf] }
  0xa8   : > { %4014 = vmatprep.subr.bf16.mxu1 %v4267_v11  ;;  %3997 = vmatpush3.bf16.msra.mxu0 %v4268_v5  ;;  %v4283_v5 = vld [vmem:[%s5154_s3 + $0x2e0] sm:$0xff]   ;;  %v2873_v15 = vshrl.u32 %v2864_v8, 16  ;;  %v2876_v16 = vshll.u32 %v2864_v8, 16 }
  0xa9   : > { %3998 = vmatprep.subr.bf16.mxu0 %v4270_v12  ;;  %v2460_v13 = vrot.slane %v2458_v3, 4  ;;  %v2144_v37 = vor.u32 %v2142_v24, %v2141_v23 }
  0xab   : > { %4015 = vmatpush3.bf16.msra.mxu1 %v4267_v11  ;;  %v2446_v11 = vrot.slane %v2444_v2, 4  ;;  %v2464_v29 = vor.u32 %v2463_v14, %v2460_v13  ;;  %v2495_v13 = vshll.u32 %v2442_v6, 16  ;;  %v4303_v14 = vld [vmem:[%s5154_s3 + $0x318] sm:$0xff]  }
  0xac   : > { %4016 = vmatprep.subr.bf16.mxu1 %v4269_v22  ;;  %3999 = vmatpush3.bf16.msra.mxu0 %v4270_v12  ;;  %v2449_v12 = vrot.slane %v2447_v1, 5 }
  0xad   : > { %4000 = vmatprep.subr.bf16.mxu0 %v4272_v25  ;;  %v2497_v24 = vrot.slane %v2495_v13, 5 }
  0xae   : > { %v2450_v27 = vor.u32 %v2449_v12, %v2446_v11 }
  0xaf   : > { %4017 = vmatpush3.bf16.msra.mxu1 %v4269_v22  ;;  %v2134_v22 = vshrl.u32 %v2092_v10, 16 }
  0xb0   : > { %4018 = vmatprep.subr.bf16.mxu1 %v4271_v40  ;;  %4001 = vmatpush3.bf16.msra.mxu0 %v4272_v25  ;;  %v4288_v25 = vld [vmem:[%s5154_s3 + $0x288] sm:$0xff]  }
  0xb1   : > { %4026 = vmatprep.subr.bf16.mxu0 %v4276_v41  ;;  %v3495_v36 = vrot.slane %v2134_v22, 11 }
  0xb3   : > { %4019 = vmatpush3.bf16.msra.mxu1 %v4271_v40  ;;  %4003 = vmatmul.mubr.bf16.vlgmr.msra.gmra.mxu0 %v3473_v20  ;;  %v2451_v40 = vrot.slane %v2450_v27, 4  ;;  %v2465_v20 = vrot.slane %v2464_v29, 4  ;;  %v2145_v45 = vsel %vm4588_vm5, %v3495_v36, %v2144_v37  ;;  %v2875_v27 = vrot.slane %v2873_v15, 4 }
  0xb4   : > { %4020 = vmatprep.subr.bf16.mxu1 %v4273_v47  ;;  %4027 = vmatpush3.bf16.msra.mxu0 %v4276_v41  ;;  %v2455_v41 = vrot.slane %v2453_v28, 5  ;;  %v2878_v28 = vrot.slane %v2876_v16, 5 }
  0xb5   : > { %4028 = vmatprep.subr.bf16.mxu0 %v4278_v48  ;;  %4042 = vmatprep.mubr.bf16.mxu0 %v3512_v51  ;;  %v4296_v51 = vld [vmem:[%s5154_s3 + $0x370] sm:$0xff]  }
  0xb6   : > { %v2456_v33 = vsel %vm4680_vm10, %v2451_v40, %v2455_v41  ;;  %v2879_v40 = vor.u32 %v2878_v28, %v2875_v27  ;;  %v2882_v41 = vshll.u32 %v2865_v32, 16 }
  0xb7   : > { %4021 = vmatpush3.bf16.msra.mxu1 %v4273_v47  ;;  %v2470_v47 = vsel %vm4680_vm10, %v2465_v20, %v2469_v42  ;;  %v2896_v42 = vshll.u32 %v2867_v34, 16 }
  0xb8   : > { %4046 = vmatprep.subr.bf16.mxu1 %v4277_v55  ;;  %4029 = vmatpush3.bf16.msra.mxu0 %v4278_v48  ;;  %v3513_v48 = vcombine.low %v2132_v44, %v2145_v45  ;;  %v3585_v52 = vcombine.low %v2456_v33, %v2470_v47  ;;  %v4309_v45 = vld [vmem:[%s5154_s3 + $0x300] sm:$0xff]   ;;  %v2884_v33 = vrot.slane %v2882_v41, 5 }
  0xb9   : > { %4030 = vmatprep.subr.bf16.mxu0 %v4280_v57 }
  0xba   : > { %4023 = vmatmul.mubr.bf16.vlgmr.msra.gmra.mxu1 %v3483_v58  ;;  %v3595_v58 = vcombine.low %v4917_v50, %v4919_v63  ;;  %v2486_v63 = vshrl.u32 %v4992_v61, 16 }
  0xbb   : > { %4047 = vmatpush3.bf16.msra.mxu1 %v4277_v55  ;;  %4062 = vmatprep.mubr.bf16.mxu1 %v3538_v59  ;;  %v4298_v55 = vld [vmem:[%s5154_s3 + $0x368] sm:$0xff]   ;;  %v4297_v59 = vld [vmem:[%s5154_s3 + $0x330] sm:$0xff]  }
  0xbc   : > { %4048 = vmatprep.subr.bf16.mxu1 %v4279_v60  ;;  %4031 = vmatpush3.bf16.msra.mxu0 %v4280_v57  ;;  %v3539_v57 = vcombine.low %v4927_v56, %v4929_v35  ;;  %v4302_v56 = vld [vmem:[%s5154_s3 + $0x358] sm:$0xff]   ;;  %v2488_v1 = vrot.slane %v2486_v63, 4  ;;  %v2868_v63 = vld [vmem:[#allocation2 + $0x34] sm:$0xf] }
  0xbd   : > { %4032 = vmatprep.subr.bf16.mxu0 %v4282_v62 }
  0xbf   : > { %4049 = vmatpush3.bf16.msra.mxu1 %v4279_v60  ;;  %v4990_v60 = vld [vmem:[#allocation2 + $0x28] sm:$0xf] }
  0xc0   : > { %4050 = vmatprep.subr.bf16.mxu1 %v4281_v0  ;;  %4033 = vmatpush3.bf16.msra.mxu0 %v4282_v62  ;;  %v4300_v62 = vld [vmem:[%s5154_s3 + $0x360] sm:$0xff]   ;;  %v2472_v49 = vshrl.u32 %v4990_v60, 16  ;;  %v2475_v50 = vshll.u32 %v4990_v60, 16 }
  0xc1   : > { %4034 = vmatprep.subr.bf16.mxu0 %v4284_v53 }
  0xc2   : > { %v2474_v35 = vrot.slane %v2472_v49, 4  ;;  %v2477_v2 = vrot.slane %v2475_v50, 5  ;;  %v4318_v49 = vld [vmem:[%s5154_s3 + $0x3a0] sm:$0xff]  }
  0xc3   : > { %4051 = vmatpush3.bf16.msra.mxu1 %v4281_v0  ;;  %v2489_v0 = vshll.u32 %v4992_v61, 16  ;;  %v4319_v50 = vld [vmem:[%s5154_s3 + $0x3e0] sm:$0xff]  }
  0xc4   : > { %4052 = vmatprep.subr.bf16.mxu1 %v4283_v5  ;;  %4035 = vmatpush3.bf16.msra.mxu0 %v4284_v53  ;;  %v4299_v53 = vld [vmem:[%s5154_s3 + $0x328] sm:$0xff]   ;;  %v2478_v10 = vor.u32 %v2477_v2, %v2474_v35  ;;  %v2904_v35 = vshll.u32 %v2868_v63, 16 }
  0xc5   : > { %4036 = vmatprep.subr.bf16.mxu0 %v4286_v9  ;;  %v2491_v3 = vrot.slane %v2489_v0, 5  ;;  %v2870_v0 = vld [vmem:[#allocation2 + $0x40] sm:$0xf] }
  0xc6   : > { %v2479_v21 = vrot.slane %v2478_v10, 4  ;;  %v2915_v2 = vshrl.u32 %v2870_v0, 16  ;;  %v4323_v10 = vld [vmem:[%s5154_s3 + $0x3d0] sm:$0xff]  }
  0xc7   : > { %4053 = vmatpush3.bf16.msra.mxu1 %v4283_v5  ;;  %v2441_v5 = vld [vmem:[#allocation2 + $0x2c] sm:$0x1]  ;;  %v2492_v12 = vor.u32 %v2491_v3, %v2488_v1  ;;  %v2918_v1 = vshll.u32 %v2870_v0, 16  ;;  %v4321_v3 = vld [vmem:[%s5154_s3 + $0x3d8] sm:$0xff]  }
  0xc8   : > { %4054 = vmatprep.subr.bf16.mxu1 %v4285_v19  ;;  %4037 = vmatpush3.bf16.msra.mxu0 %v4286_v9  ;;  %v2866_v9 = vld [vmem:[#allocation2 + $0x28] sm:$0xf]  ;;  %v2481_v11 = vshll.u32 %v2441_v5, 16  ;;  %v2917_v8 = vrot.slane %v2915_v2, 4 }
  0xc9   : > { %4038 = vmatprep.subr.bf16.mxu0 %v4288_v25  ;;  %v2887_v17 = vshrl.u32 %v2866_v9, 16  ;;  %v2890_v18 = vshll.u32 %v2866_v9, 16  ;;  %v2493_v23 = vrot.slane %v2492_v12, 4  ;;  %v4324_v5 = vld [vmem:[%s5154_s3 + $0x388] sm:$0xff]   ;;  %v2920_v9 = vrot.slane %v2918_v1, 5 }
  0xca   : > { %v2483_v22 = vrot.slane %v2481_v11, 5  ;;  %v2869_v11 = vld [vmem:[#allocation2 + $0x38] sm:$0x1]  ;;  %v2871_v12 = vld [vmem:[#allocation2 + $0x44] sm:$0x1] }
  0xcb   : > { %4055 = vmatpush3.bf16.msra.mxu1 %v4285_v19  ;;  %v4306_v19 = vld [vmem:[%s5154_s3 + $0x348] sm:$0xff]   ;;  %v2889_v29 = vrot.slane %v2887_v17, 4  ;;  %v2892_v30 = vrot.slane %v2890_v18, 5  ;;  %v2498_v37 = vsel %vm4680_vm10, %v2493_v23, %v2497_v24  ;;  %v2910_v16 = vshll.u32 %v2869_v11, 16  ;;  %v4329_v23 = vld [vmem:[#allocation2 + $0x34] ss:$12 sps:$4 sm:$0xff]  }
  0xcc   : > { %4056 = vmatprep.subr.bf16.mxu1 %v4287_v31  ;;  %4039 = vmatpush3.bf16.msra.mxu0 %v4288_v25  ;;  %v4305_v25 = vld [vmem:[%s5154_s3 + $0x310] sm:$0xff]   ;;  %v2484_v36 = vsel %vm4680_vm10, %v2479_v21, %v2483_v22  ;;  %v2921_v17 = vor.u32 %v2920_v9, %v2917_v8  ;;  %v2924_v18 = vshll.u32 %v2871_v12, 16  ;;  %v4325_v21 = vld [vmem:[%s5154_s3 + $0x3c8] sm:$0xff]  }
  0xcd   : > { %4040 = vmatprep.subr.bf16.mxu0 %v4290_v38  ;;  %v2893_v20 = vor.u32 %v2892_v30, %v2889_v29  ;;  %v3586_v44 = vcombine.low %v2484_v36, %v2498_v37  ;;  %v4327_v30 = vld [vmem:[%s5154_s3 + $0x3c0] sm:$0xff]  }
  0xce   : > { %v2922_v27 = vrot.slane %v2921_v17, 4  ;;  %v2926_v28 = vrot.slane %v2924_v18, 5 }
  0xcf   : > { %4057 = vmatpush3.bf16.msra.mxu1 %v4287_v31  ;;  %v4308_v31 = vld [vmem:[%s5154_s3 + $0x340] sm:$0xff]   ;;  %v2894_v47 = vrot.slane %v2893_v20, 4 }
  0xd0   : > { %4058 = vmatprep.subr.bf16.mxu1 %v4289_v43  ;;  %4041 = vmatpush3.bf16.msra.mxu0 %v4290_v38  ;;  %v4307_v38 = vld [vmem:[%s5154_s3 + $0x308] sm:$0xff]   ;;  %v2927_v36 = vsel %vm4680_vm10, %v2922_v27, %v2926_v28 }
  0xd1   : > { %4066 = vmatprep.subr.bf16.mxu0 %v4293_v46 }
  0xd3   : > { %4059 = vmatpush3.bf16.msra.mxu1 %v4289_v43  ;;  %4043 = vmatmul.mubr.bf16.vlgmr.msra.gmra.mxu0 %v3513_v48  ;;  %v4311_v43 = vld [vmem:[%s5154_s3 + $0x3b8] sm:$0xff]   ;;  %v2898_v48 = vrot.slane %v2896_v42, 5 }
  0xd4   : > { %4060 = vmatprep.subr.bf16.mxu1 %v4291_v26  ;;  %4067 = vmatpush3.bf16.msra.mxu0 %v4293_v46  ;;  %v2880_v46 = vrot.slane %v2879_v40, 4 }
  0xd5   : > { %4068 = vmatprep.subr.bf16.mxu0 %v4296_v51  ;;  %4082 = vmatprep.mubr.bf16.mxu0 %v3585_v52  ;;  %v4313_v52 = vld [vmem:[%s5154_s3 + $0x3f8] sm:$0xff]  }
  0xd7   : > { %4061 = vmatpush3.bf16.msra.mxu1 %v4291_v26  ;;  %v4314_v26 = vld [vmem:[%s5154_s3 + $0x3b0] sm:$0xff]  }
  0xd8   : > { %4086 = vmatprep.subr.bf16.mxu1 %v4295_v54  ;;  %4069 = vmatpush3.bf16.msra.mxu0 %v4296_v51  ;;  %v4328_v51 = vld [vmem:[#allocation2 + $0x1c] ss:$12 sps:$4 sm:$0xff]  }
  0xd9   : > { %4070 = vmatprep.subr.bf16.mxu0 %v4298_v55 }
  0xda   : > { %4063 = vmatmul.mubr.bf16.vlgmr.msra.gmra.mxu1 %v3539_v57  ;;  %v4316_v57 = vld [vmem:[%s5154_s3 + $0x3a8] sm:$0xff]  }
  0xdb   : > { %4087 = vmatpush3.bf16.msra.mxu1 %v4295_v54  ;;  %4102 = vmatprep.mubr.bf16.mxu1 %v3595_v58  ;;  %v2885_v54 = vsel %vm4680_vm10, %v2880_v46, %v2884_v33  ;;  %v3596_v58 = vcombine.low %v4990_v60, %v4992_v61  ;;  %v4317_v60 = vld [vmem:[%s5154_s3 + $0x3e8] sm:$0xff]   ;;  %v4320_v61 = vld [vmem:[%s5154_s3 + $0x398] sm:$0xff]  }
  0xdc   : > { %4088 = vmatprep.subr.bf16.mxu1 %v4297_v59  ;;  %4071 = vmatpush3.bf16.msra.mxu0 %v4298_v55  ;;  %v2899_v55 = vsel %vm4680_vm10, %v2894_v47, %v2898_v48  ;;  %v5097_v47 = vld [vmem:[%s5155_s4] ss:$0 sm:$0xff] }
  0xdd   : > { %4072 = vmatprep.subr.bf16.mxu0 %v4300_v62 }
  0xdf   : > { %4089 = vmatpush3.bf16.msra.mxu1 %v4297_v59  ;;  %v3647_v59 = vcombine.low %v2885_v54, %v2899_v55 }
  0xe0   : > { %4090 = vmatprep.subr.bf16.mxu1 %v4299_v53  ;;  %4073 = vmatpush3.bf16.msra.mxu0 %v4300_v62  ;;  %v4315_v62 = vld [vmem:[%s5154_s3 + $0x3f0] sm:$0xff]  }
  0xe1   : > { %4074 = vmatprep.subr.bf16.mxu0 %v4302_v56 }
  0xe3   : > { %4091 = vmatpush3.bf16.msra.mxu1 %v4299_v53  ;;  %v4322_v53 = vld [vmem:[%s5154_s3 + $0x390] sm:$0xff]  }
  0xe4   : > { %4092 = vmatprep.subr.bf16.mxu1 %v4301_v4  ;;  %4075 = vmatpush3.bf16.msra.mxu0 %v4302_v56  ;;  %v2901_v56 = vshrl.u32 %v2868_v63, 16 }
  0xe5   : > { %4076 = vmatprep.subr.bf16.mxu0 %v4304_v7 }
  0xe6   : > { %v2903_v6 = vrot.slane %v2901_v56, 4 }
  0xe7   : > { %4093 = vmatpush3.bf16.msra.mxu1 %v4301_v4 }
  0xe8   : > { %4094 = vmatprep.subr.bf16.mxu1 %v4303_v14  ;;  %4077 = vmatpush3.bf16.msra.mxu0 %v4304_v7  ;;  %v2906_v7 = vrot.slane %v2904_v35, 5 }
  0xe9   : > { %4078 = vmatprep.subr.bf16.mxu0 %v4306_v19 }
  0xea   : > { %v2907_v15 = vor.u32 %v2906_v7, %v2903_v6 }
  0xeb   : > { %4095 = vmatpush3.bf16.msra.mxu1 %v4303_v14  ;;  %v4326_v14 = vld [vmem:[%s5154_s3 + $0x380] sm:$0xff]  }
  0xec   : > { %4096 = vmatprep.subr.bf16.mxu1 %v4305_v25  ;;  %4079 = vmatpush3.bf16.msra.mxu0 %v4306_v19  ;;  %v2908_v24 = vrot.slane %v2907_v15, 4 }
  0xed   : > { %4080 = vmatprep.subr.bf16.mxu0 %v4308_v31 }
  0xef   : > { %4097 = vmatpush3.bf16.msra.mxu1 %v4305_v25  ;;  %v2912_v25 = vrot.slane %v2910_v16, 5 }
  0xf0   : > { %4098 = vmatprep.subr.bf16.mxu1 %v4307_v38  ;;  %4081 = vmatpush3.bf16.msra.mxu0 %v4308_v31 }
  0xf1   : > { %4106 = vmatprep.subr.bf16.mxu0 %v4311_v43  ;;  %v2913_v34 = vsel %vm4680_vm10, %v2908_v24, %v2912_v25 }
  0xf2   : > { %v3648_v41 = vcombine.low %v2913_v34, %v2927_v36 }
  0xf3   : > { %4099 = vmatpush3.bf16.msra.mxu1 %v4307_v38  ;;  %4083 = vmatmul.mubr.bf16.vlgmr.msra.gmra.mxu0 %v3586_v44  ;;  %v3844_v4 = vpop.f32.mrf.mxu0 }
  0xf4   : > { %4100 = vmatprep.subr.bf16.mxu1 %v4309_v45  ;;  %4107 = vmatpush3.bf16.msra.mxu0 %v4311_v43 }
  0xf5   : > { %4108 = vmatprep.subr.bf16.mxu0 %v4314_v26  ;;  %4122 = vmatprep.mubr.bf16.mxu0 %v4328_v51  ;;  %v672_v13 = vpop.f32.mrf.mxu0 }
  0xf7   : > { %4101 = vmatpush3.bf16.msra.mxu1 %v4309_v45  ;;  %v3845_v22 = vpop.f32.mrf.mxu0 }
  0xf8   : > { %4126 = vmatprep.subr.bf16.mxu1 %v4313_v52  ;;  %4109 = vmatpush3.bf16.msra.mxu0 %v4314_v26 }
  0xf9   : > { %4110 = vmatprep.subr.bf16.mxu0 %v4316_v57  ;;  %v675_v31 = vpop.f32.mrf.mxu0 }
  0xfa   : > { %4103 = vmatmul.mubr.bf16.vlgmr.msra.gmra.mxu1 %v3596_v58  ;;  %v3864_v19 = vpop.f32.mrf.mxu1 }
  0xfb   : > { %4127 = vmatpush3.bf16.msra.mxu1 %v4313_v52  ;;  %4142 = vmatprep.mubr.bf16.mxu1 %v3647_v59  ;;  %v786_v38 = vadd.f32 %v3864_v19, %v3844_v4 }
  0xfc   : > { %4128 = vmatprep.subr.bf16.mxu1 %v4315_v62  ;;  %4111 = vmatpush3.bf16.msra.mxu0 %v4316_v57  ;;  %v777_v29 = vpop.f32.mrf.mxu1 }
  0xfd   : > { %4112 = vmatprep.subr.bf16.mxu0 %v4318_v49  ;;  %v778_v20 = vadd.f32 %v777_v29, %v672_v13 }
  0xfe   : > { %v3865_v37 = vpop.f32.mrf.mxu1 }
  0xff   : > { %4129 = vmatpush3.bf16.msra.mxu1 %v4315_v62  ;;  %v789_v45 = vadd.f32 %v3865_v37, %v3845_v22 }
 0x100   : > { %4130 = vmatprep.subr.bf16.mxu1 %v4317_v60  ;;  %4113 = vmatpush3.bf16.msra.mxu0 %v4318_v49  ;;  %v780_v44 = vpop.f32.mrf.mxu1 }
 0x101   : > { %4114 = vmatprep.subr.bf16.mxu0 %v4320_v61  ;;  %v781_v48 = vadd.f32 %v780_v44, %v675_v31 }
 0x103   : > { %4131 = vmatpush3.bf16.msra.mxu1 %v4317_v60 }
 0x104   : > { %4132 = vmatprep.subr.bf16.mxu1 %v4319_v50  ;;  %4115 = vmatpush3.bf16.msra.mxu0 %v4320_v61 }
 0x105   : > { %4116 = vmatprep.subr.bf16.mxu0 %v4322_v53 }
 0x107   : > { %4133 = vmatpush3.bf16.msra.mxu1 %v4319_v50 }
 0x108   : > { %4134 = vmatprep.subr.bf16.mxu1 %v4321_v3  ;;  %4117 = vmatpush3.bf16.msra.mxu0 %v4322_v53 }
 0x109   : > { %4118 = vmatprep.subr.bf16.mxu0 %v4324_v5 }
 0x10b   : > { %4135 = vmatpush3.bf16.msra.mxu1 %v4321_v3 }
 0x10c   : > { %4136 = vmatprep.subr.bf16.mxu1 %v4323_v10  ;;  %4119 = vmatpush3.bf16.msra.mxu0 %v4324_v5 }
 0x10d   : > { %4120 = vmatprep.subr.bf16.mxu0 %v4326_v14 }
 0x10f   : > { %4137 = vmatpush3.bf16.msra.mxu1 %v4323_v10 }
 0x110   : > { %4138 = vmatprep.subr.bf16.mxu1 %v4325_v21  ;;  %4121 = vmatpush3.bf16.msra.mxu0 %v4326_v14 }
 0x113   : > { %4139 = vmatpush3.bf16.msra.mxu1 %v4325_v21  ;;  %v3884_v32 = vpop.f32.mrf.mxu0  ;;  %4123 = vmatmul.mubr.bf16.vlgmr.msra.gmra.mxu0 %v4329_v23 }
 0x114   : > { %4140 = vmatprep.subr.bf16.mxu1 %v4327_v30  ;;  %v976_v42 = vadd.f32 %v3884_v32, %v786_v38 }
 0x115   : > { %v959_v40 = vpop.f32.mrf.mxu0 }
 0x116   : > { %v974_v46 = vadd.f32 %v959_v40, %v778_v20 }
 0x117   : > { %4141 = vmatpush3.bf16.msra.mxu1 %v4327_v30  ;;  %v3885_v43 = vpop.f32.mrf.mxu0 }
 0x118   : > { %v977_v51 = vadd.f32 %v3885_v43, %v789_v45 }
 0x119   : > { %v962_v39 = vpop.f32.mrf.mxu0 }
 0x11a   : > { %v3904_v33 = vpop.f32.mrf.mxu1  ;;  %4143 = vmatmul.mubr.bf16.vlgmr.msra.gmra.mxu1 %v3648_v41  ;;  %v975_v57 = vadd.f32 %v962_v39, %v781_v48 }
 0x11b   : > { %v1106_v26 = vadd.f32 %v3904_v33, %v976_v42 }
 0x11c   : > { %v1089_v52 = vpop.f32.mrf.mxu1 }
 0x11d   : > { %v1117_v54 = vadd.f32 %v5097_v47, %v1106_v26  ;;  %v1104_v55 = vadd.f32 %v1089_v52, %v974_v46 }
 0x11e   : > { %v3905_v58 = vpop.f32.mrf.mxu1 }
 0x11f   : > { %1121 = vst [vmem:[%s5102_s7 + $0x40] sm:$0xff] %v1117_v54  ;;  %v1115_v59 = vadd.f32 %v5097_v47, %v1104_v55  ;;  %v1107_v62 = vadd.f32 %v3905_v58, %v977_v51 }
 0x120   : > { %v1092_v49 = vpop.f32.mrf.mxu1 }
 0x121   : > { %1119 = vst [vmem:[%s5102_s7] sm:$0xff] %v1115_v59  ;;  %v1118_v60 = vadd.f32 %v5097_v47, %v1107_v62  ;;  %v1105_v61 = vadd.f32 %v1092_v49, %v975_v57 }
 0x123   : > { %1122 = vst [vmem:[%s5102_s7 + $0x60] sm:$0xff] %v1118_v60  ;;  %v1116_v50 = vadd.f32 %v5097_v47, %v1105_v61 }
 0x125   : > { %1120 = vst [vmem:[%s5102_s7 + $0x20] sm:$0xff] %v1116_v50 }
 0x133   : > { %v3924_v63 = vpop.f32.mrf.mxu0 }
 0x135   : > { %v1314_v0 = vpop.f32.mrf.mxu0 }
 0x137   : > { %v3925_v56 = vpop.f32.mrf.mxu0 }
 0x139   : > { %v1317_v2 = vpop.f32.mrf.mxu0 }
 0x13a   : > { %v3944_v53 = vpop.f32.mrf.mxu1 }
 0x13b   : > { %v1432_v4 = vadd.f32 %v3944_v53, %v3924_v63 }
 0x13c   : > { %v1423_v35 = vpop.f32.mrf.mxu1 }
 0x13d   : > { %v1424_v6 = vadd.f32 %v1423_v35, %v1314_v0 }
 0x13e   : > { %v3945_v3 = vpop.f32.mrf.mxu1 }
 0x13f   : > { %v1435_v10 = vadd.f32 %v3945_v3, %v3925_v56 }
 0x140   : > { %v1426_v9 = vpop.f32.mrf.mxu1 }
 0x141   : > { %v1427_v14 = vadd.f32 %v1426_v9, %v1317_v2 }
 0x153   : > { %v3964_v1 = vpop.f32.mrf.mxu0 }
 0x154   : > { %v1570_v7 = vadd.f32 %v3964_v1, %v1432_v4 }
 0x155   : > { %v1553_v5 = vpop.f32.mrf.mxu0 }
 0x156   : > { %v1568_v11 = vadd.f32 %v1553_v5, %v1424_v6 }
 0x157   : > { %v3965_v8 = vpop.f32.mrf.mxu0 }
 0x158   : > { %v1571_v16 = vadd.f32 %v3965_v8, %v1435_v10 }
 0x159   : > { %v1556_v13 = vpop.f32.mrf.mxu0 }
 0x15a   : > { %v3984_v12 = vpop.f32.mrf.mxu1  ;;  %v1569_v21 = vadd.f32 %v1556_v13, %v1427_v14 }
 0x15b   : > { %v1760_v15 = vadd.f32 %v3984_v12, %v1570_v7 }
 0x15c   : > { %v1743_v17 = vpop.f32.mrf.mxu1 }
 0x15d   : > { %v1771_v18 = vadd.f32 %v5097_v47, %v1760_v15  ;;  %v1758_v19 = vadd.f32 %v1743_v17, %v1568_v11 }
 0x15e   : > { %v3985_v22 = vpop.f32.mrf.mxu1 }
 0x15f   : > { %1775 = vst [vmem:[%s5102_s7 + $0x48] sm:$0xff] %v1771_v18  ;;  %v1769_v23 = vadd.f32 %v5097_v47, %v1758_v19  ;;  %v1761_v24 = vadd.f32 %v3985_v22, %v1571_v16 }
 0x160   : > { %v1746_v25 = vpop.f32.mrf.mxu1 }
 0x161   : > { %1773 = vst [vmem:[%s5102_s7 + $0x8] sm:$0xff] %v1769_v23  ;;  %v1772_v27 = vadd.f32 %v5097_v47, %v1761_v24  ;;  %v1759_v28 = vadd.f32 %v1746_v25, %v1569_v21 }
 0x163   : > { %1776 = vst [vmem:[%s5102_s7 + $0x68] sm:$0xff] %v1772_v27  ;;  %v1770_v29 = vadd.f32 %v5097_v47, %v1759_v28 }
 0x165   : > { %1774 = vst [vmem:[%s5102_s7 + $0x28] sm:$0xff] %v1770_v29 }
 0x173   : > { %v4004_v30 = vpop.f32.mrf.mxu0 }
 0x175   : > { %v1965_v31 = vpop.f32.mrf.mxu0 }
 0x177   : > { %v4005_v34 = vpop.f32.mrf.mxu0 }
 0x179   : > { %v1968_v37 = vpop.f32.mrf.mxu0 }
 0x17a   : > { %v4024_v32 = vpop.f32.mrf.mxu1 }
 0x17b   : > { %v2079_v41 = vadd.f32 %v4024_v32, %v4004_v30 }
 0x17c   : > { %v2070_v36 = vpop.f32.mrf.mxu1 }
 0x17d   : > { %v2071_v42 = vadd.f32 %v2070_v36, %v1965_v31 }
 0x17e   : > { %v4025_v40 = vpop.f32.mrf.mxu1 }
 0x17f   : > { %v2082_v46 = vadd.f32 %v4025_v40, %v4005_v34 }
 0x180   : > { %v2073_v45 = vpop.f32.mrf.mxu1 }
 0x181   : > { %v2074_v26 = vadd.f32 %v2073_v45, %v1968_v37 }
 0x193   : > { %v4044_v38 = vpop.f32.mrf.mxu0 }
 0x194   : > { %v2270_v43 = vadd.f32 %v4044_v38, %v2079_v41 }
 0x195   : > { %v2253_v20 = vpop.f32.mrf.mxu0 }
 0x196   : > { %v2268_v33 = vadd.f32 %v2253_v20, %v2071_v42 }
 0x197   : > { %v4045_v44 = vpop.f32.mrf.mxu0 }
 0x198   : > { %v2271_v52 = vadd.f32 %v4045_v44, %v2082_v46 }
 0x199   : > { %v2256_v48 = vpop.f32.mrf.mxu0 }
 0x19a   : > { %v4064_v39 = vpop.f32.mrf.mxu1  ;;  %v2269_v58 = vadd.f32 %v2256_v48, %v2074_v26 }
 0x19b   : > { %v2400_v51 = vadd.f32 %v4064_v39, %v2270_v43 }
 0x19c   : > { %v2383_v54 = vpop.f32.mrf.mxu1 }
 0x19d   : > { %v2411_v55 = vadd.f32 %v5097_v47, %v2400_v51  ;;  %v2398_v57 = vadd.f32 %v2383_v54, %v2268_v33 }
 0x19e   : > { %v4065_v59 = vpop.f32.mrf.mxu1 }
 0x19f   : > { %3551 = vst [vmem:[%s5102_s7 + $0x50] sm:$0xff] %v2411_v55  ;;  %v2409_v62 = vadd.f32 %v5097_v47, %v2398_v57  ;;  %v2401_v49 = vadd.f32 %v4065_v59, %v2271_v52 }
 0x1a0   : > { %v2386_v60 = vpop.f32.mrf.mxu1 }
 0x1a1   : > { %3549 = vst [vmem:[%s5102_s7 + $0x10] sm:$0xff] %v2409_v62  ;;  %v2412_v61 = vadd.f32 %v5097_v47, %v2401_v49  ;;  %v2399_v50 = vadd.f32 %v2386_v60, %v2269_v58 }
 0x1a3   : > { %3552 = vst [vmem:[%s5102_s7 + $0x70] sm:$0xff] %v2412_v61  ;;  %v2410_v63 = vadd.f32 %v5097_v47, %v2399_v50 }
 0x1a5   : > { %3550 = vst [vmem:[%s5102_s7 + $0x30] sm:$0xff] %v2410_v63 }
 0x1b3   : > { %v4084_v0 = vpop.f32.mrf.mxu0 }
 0x1b5   : > { %v2606_v53 = vpop.f32.mrf.mxu0 }
 0x1b7   : > { %v4085_v35 = vpop.f32.mrf.mxu0 }
 0x1b9   : > { %v2609_v1 = vpop.f32.mrf.mxu0 }
 0x1ba   : > { %v4104_v56 = vpop.f32.mrf.mxu1 }
 0x1bb   : > { %v2724_v5 = vadd.f32 %v4104_v56, %v4084_v0 }
 0x1bc   : > { %v2715_v2 = vpop.f32.mrf.mxu1 }
 0x1bd   : > { %v2716_v7 = vadd.f32 %v2715_v2, %v2606_v53 }
 0x1be   : > { %v4105_v4 = vpop.f32.mrf.mxu1 }
 0x1bf   : > { %v2727_v11 = vadd.f32 %v4105_v4, %v4085_v35 }
 0x1c0   : > { %v2718_v10 = vpop.f32.mrf.mxu1 }
 0x1c1   : > { %v2719_v15 = vadd.f32 %v2718_v10, %v2609_v1 }
 0x1d3   : > { %v4124_v3 = vpop.f32.mrf.mxu0 }
 0x1d4   : > { %v2862_v8 = vadd.f32 %v4124_v3, %v2724_v5 }
 0x1d5   : > { %v2845_v6 = vpop.f32.mrf.mxu0 }
 0x1d6   : > { %v2860_v12 = vadd.f32 %v2845_v6, %v2716_v7 }
 0x1d7   : > { %v4125_v9 = vpop.f32.mrf.mxu0 }
 0x1d8   : > { %v2863_v17 = vadd.f32 %v4125_v9, %v2727_v11 }
 0x1d9   : > { %v2848_v14 = vpop.f32.mrf.mxu0 }
 0x1da   : > { %v4144_v13 = vpop.f32.mrf.mxu1  ;;  %v2861_v22 = vadd.f32 %v2848_v14, %v2719_v15 }
 0x1db   : > { %v3052_v16 = vadd.f32 %v4144_v13, %v2862_v8 }
 0x1dc   : > { %v3035_v18 = vpop.f32.mrf.mxu1 }
 0x1dd   : > { %v3063_v19 = vadd.f32 %v5097_v47, %v3052_v16  ;;  %v3050_v21 = vadd.f32 %v3035_v18, %v2860_v12 }
 0x1de   : > { %v4145_v23 = vpop.f32.mrf.mxu1 }
 0x1df   : > { %3660 = vst [vmem:[%s5102_s7 + $0x58] sm:$0xff] %v3063_v19  ;;  %v3061_v24 = vadd.f32 %v5097_v47, %v3050_v21  ;;  %v3053_v25 = vadd.f32 %v4145_v23, %v2863_v17 }
 0x1e0   : > { %v3038_v27 = vpop.f32.mrf.mxu1 }
 0x1e1   : > { %3658 = vst [vmem:[%s5102_s7 + $0x18] sm:$0xff] %v3061_v24  ;;  %v3064_v28 = vadd.f32 %v5097_v47, %v3053_v25  ;;  %v3051_v29 = vadd.f32 %v3038_v27, %v2861_v22 }
 0x1e3   : > { %3661 = vst [vmem:[%s5102_s7 + $0x78] sm:$0xff] %v3064_v28  ;;  %v3062_v30 = vadd.f32 %v5097_v47, %v3051_v29 }
 0x1e5   : > { %3659 = vst [vmem:[%s5102_s7 + $0x38] sm:$0xff] %v3062_v30 }
 0x1e6 PF: > { %s15_s22 = sadd.s32 1, %s4368_s22   ;;  %s5166_s18 = smov %s4360_s20 }
 0x1e7   : > { %p12_p0 = scmp.ge.s32.totalorder %s15_s22, 6   ;;  %s5167_s19 = smov %s4364_s21 }
 0x1e8   : > { %s5168_s20 = smov %s5171_s23  ;;  %s5169_s21 = smov %s5175_s24 }
 0x1e9   :  { %14 = sbr.rel (!%p12_p0) target bundleno = 3 (0x3), region = 95 }

</bundles_post_ra>
